<compile_context>
chip_gen: v5e
topology: v5e:2x2
jax: 0.10.0
libtpu: 0.0.40
codegen_flags: <defaults>
</compile_context>

<pallas_src>
import functools
import math

import jax
import jax.numpy as jnp
from jax import lax
from jax.experimental import pallas as pl
from jax.experimental.pallas import tpu as pltpu

BN_EPS = 1e-5
VMEM_LIMIT = 32 * 1024 * 1024      # explicit scoped-VMEM budget (safe on v5e/v6e/v7x)


def _pick_batch_block(n, m_per_image, target_m=256):
    """Smallest divisor of n whose block gives an MXU M-dim >= target_m (caps at n)."""
    want = min(n, max(1, -(-target_m // m_per_image)))
    while n % want:
        want += 1
    return want


def _pick_row_block(rows, cap=1024):
    """Largest row block <= cap that divides `rows` and respects the (8,128) rule."""
    if rows <= cap:
        return rows
    for blk in range(cap, 0, -1):
        if rows % blk == 0 and blk % 8 == 0:
            return blk
    return rows


# -----------------------------------------------------------------------------
# Kernel 1: [optional fused BN-apply + ReLU prologue] -> KxK conv via a single
# in-VMEM im2col matmul (bf16 MXU operands, f32 accumulate) -> + bias -> store,
# plus per-channel sum / sum-of-squares PARTIALS for the following BatchNorm.
# Stats are per-grid-step partial rows (no cross-step accumulation), so the batch
# grid axis is "parallel" and megacore-safe.
# -----------------------------------------------------------------------------
def _conv_bnstats_kernel(*refs, k, pad, bb, h, w, cin, ho, wo, cout,
                         apply_prologue):
    if apply_prologue:
        (x_ref, sc_ref, sh_ref, w_ref, b_ref,
         y_ref, s1_ref, s2_ref, xpad_ref, lhs_ref) = refs
    else:
        x_ref, w_ref, b_ref, y_ref, s1_ref, s2_ref, xpad_ref, lhs_ref = refs

    m = bb * ho * wo

    x = x_ref[...]                                            # (bb, h, w, cin) f32
    if apply_prologue:                                        # fused BN1-apply + ReLU
        sc = sc_ref[...].reshape(1, 1, 1, cin)
        sh = sh_ref[...].reshape(1, 1, 1, cin)
        x = jnp.maximum(x * sc + sh, 0.0)

    # Implicit zero padding via a VMEM halo scratch.  Re-zeroed every step: cheap at
    # this size and correct under any grid-step ordering / core sharding.
    xpad_ref[...] = jnp.zeros_like(xpad_ref)
    xpad_ref[:, pad:pad + h, pad:pad + w, :] = x

    # In-VMEM im2col: LHS row (b,i,j) = concat_{kh,kw} xpad[b, i+kh, j+kw, :].
    for kh in range(k):
        for kw in range(k):
            t = kh * k + kw
            tap = xpad_ref[:, kh:kh + ho, kw:kw + wo, :].reshape(m, cin)
            lhs_ref[:, t * cin:(t + 1) * cin] = tap

    # Single MXU matmul: (m, k*k*cin) x (k*k*cin, cout), bf16 in, f32 accumulate.
    lhs = lhs_ref[...].astype(jnp.bfloat16)
    acc = jnp.dot(lhs, w_ref[...], preferred_element_type=jnp.float32)
    acc = acc + b_ref[...]                                    # conv bias

    y_ref[...] = acc.reshape(bb, ho, wo, cout)
    s1_ref[...] = jnp.sum(acc, axis=0, keepdims=True).reshape(1, 1, cout)
    s2_ref[...] = jnp.sum(acc * acc, axis=0, keepdims=True).reshape(1, 1, cout)


def fused_conv(x, w_mat, b, *, k, pad, scale=None, shift=None):
    """x: (N,H,W,Cin) f32 (true channels); w_mat: (K*K*Cin, Cout) bf16; b/scale/shift: (1,C) f32."""
    n, h, wd, cin = x.shape
    cout = w_mat.shape[1]
    ho = h + 2 * pad - k + 1
    wo = wd + 2 * pad - k + 1
    bb = _pick_batch_block(n, ho * wo)
    nb = n // bb
    apply_prologue = scale is not None

    kern = functools.partial(
        _conv_bnstats_kernel, k=k, pad=pad, bb=bb, h=h, w=wd, cin=cin,
        ho=ho, wo=wo, cout=cout, apply_prologue=apply_prologue)

    in_specs = [pl.BlockSpec((bb, h, wd, cin), lambda i: (i, 0, 0, 0))]
    inputs = [x]
    if apply_prologue:
        in_specs += [pl.BlockSpec((1, cin), lambda i: (0, 0)),
                     pl.BlockSpec((1, cin), lambda i: (0, 0))]
        inputs += [scale, shift]
    in_specs += [pl.BlockSpec((k * k * cin, cout), lambda i: (0, 0)),
                 pl.BlockSpec((1, cout), lambda i: (0, 0))]
    inputs += [w_mat, b]

    grid_spec = pltpu.PrefetchScalarGridSpec(
        num_scalar_prefetch=0,
        grid=(nb,),
        in_specs=in_specs,
        out_specs=[
            pl.BlockSpec((bb, ho, wo, cout), lambda i: (i, 0, 0, 0)),
            pl.BlockSpec((1, 1, cout), lambda i: (i, 0, 0)),   # per-block BN partials
            pl.BlockSpec((1, 1, cout), lambda i: (i, 0, 0)),
        ],
        scratch_shapes=[
            pltpu.VMEM((bb, h + 2 * pad, wd + 2 * pad, cin), jnp.float32),   # halo
            pltpu.VMEM((bb * ho * wo, k * k * cin), jnp.float32),            # im2col LHS
        ],
    )
    # TODO(synk): for real ResNet spatial sizes (H,W >= 56) tile H into row chunks with
    #             a 1-row halo instead of full-image blocks (v7x 64 MiB VMEM budget).
    return pl.pallas_call(
        kern,
        out_shape=(jax.ShapeDtypeStruct((n, ho, wo, cout), jnp.float32),
                   jax.ShapeDtypeStruct((nb, 1, cout), jnp.float32),
                   jax.ShapeDtypeStruct((nb, 1, cout), jnp.float32)),
        grid_spec=grid_spec,
        compiler_params=pltpu.CompilerParams(
            dimension_semantics=("parallel",),      # partial stats => no cross-step dep
            vmem_limit_bytes=VMEM_LIMIT),
    )(*inputs)


# -----------------------------------------------------------------------------
# Kernel 2: BN2-apply + identity residual add + final ReLU on a lane-dense
# (N*H, W*C) flattening with large row blocks.
# -----------------------------------------------------------------------------
def _bn_residual_relu_kernel(y_ref, sc_ref, sh_ref, r_ref, o_ref):
    o_ref[...] = jnp.maximum(
        y_ref[...] * sc_ref[...] + sh_ref[...] + r_ref[...], 0.0)


def bn_residual_relu(y, scale, shift, res):
    """y/res: (N,H,W,C) f32 identical shapes; scale/shift: (1,C) f32."""
    n, h, w, c = y.shape
    rows, cols = n * h, w * c
    y2 = y.reshape(rows, cols)              # contiguous reshape -> lane-dense cols
    r2 = res.reshape(rows, cols)
    sc = jnp.tile(scale, (1, w))            # per-channel -> per-(w,c) lane vector
    sh = jnp.tile(shift, (1, w))
    rb = _pick_row_block(rows)
    grid_spec = pltpu.PrefetchScalarGridSpec(
        num_scalar_prefetch=0,
        grid=(rows // rb,),
        in_specs=[pl.BlockSpec((rb, cols), lambda i: (i, 0)),
                  pl.BlockSpec((1, cols), lambda i: (0, 0)),
                  pl.BlockSpec((1, cols), lambda i: (0, 0)),
                  pl.BlockSpec((rb, cols), lambda i: (i, 0))],
        out_specs=pl.BlockSpec((rb, cols), lambda i: (i, 0)))
    out = pl.pallas_call(
        _bn_residual_relu_kernel,
        out_shape=jax.ShapeDtypeStruct((rows, cols), jnp.float32),
        grid_spec=grid_spec,
        compiler_params=pltpu.CompilerParams(
            dimension_semantics=("parallel",),
            vmem_limit_bytes=VMEM_LIMIT),
    )(y2, sc, sh, r2)
    return out.reshape(n, h, w, c)


# -----------------------------------------------------------------------------
# Parameter-sized glue (runs once per call; not on the data-sized hot path)
# -----------------------------------------------------------------------------
def _bn_affine(s1, s2, gamma, beta, count, eps=BN_EPS):
    """Training-mode BN: fold batch stats + gamma/beta into scale/shift (rsqrt-mul)."""
    mean = s1 / count
    var = jnp.maximum(s2 / count - mean * mean, 0.0)    # biased variance (f32)
    scale = gamma * lax.rsqrt(var + eps)
    shift = beta - mean * scale
    return scale, shift


def _conv_weight_matrix(w_oihw):
    """PyTorch OIHW -> (K*K*Cin, Cout) bf16 matmul operand (row index = kh,kw,ci)."""
    cout, cin, kh, kw = w_oihw.shape
    w = jnp.transpose(w_oihw, (2, 3, 1, 0)).reshape(kh * kw * cin, cout)
    return w.astype(jnp.bfloat16)


# -----------------------------------------------------------------------------
# ResNetBlock_A.forward
# -----------------------------------------------------------------------------
def resnet_block_a_forward(params, x_nchw, *, k=3, pad=1):
    """relu(bn2(conv2(relu(bn1(conv1(x))))) + x)  (downsample=False => identity reslayer)."""
    # TODO(synk): downsample=True path (stride-2 conv1 + 1x1 strided reslayer conv) not
    #             implemented; only the default downsample=False block is covered.
    n, cin, h, w = x_nchw.shape
    cout = params["w1"].shape[0]

    x = jnp.transpose(x_nchw, (0, 2, 3, 1)).astype(jnp.float32)   # NCHW -> NHWC (true C)

    w1 = _conv_weight_matrix(params["w1"])
    b1 = params["b1"].reshape(1, cout).astype(jnp.float32)
    w2 = _conv_weight_matrix(params["w2"])
    b2 = params["b2"].reshape(1, cout).astype(jnp.float32)
    g1, be1 = (v.reshape(1, cout).astype(jnp.float32) for v in params["bn1"])
    g2, be2 = (v.reshape(1, cout).astype(jnp.float32) for v in params["bn2"])

    # conv1 (+ bn1 batch-statistic partials)
    y1, s1p, s2p = fused_conv(x, w1, b1, k=k, pad=pad)
    ho, wo = y1.shape[1], y1.shape[2]
    count = n * ho * wo
    sc1, sh1 = _bn_affine(jnp.sum(s1p, axis=0), jnp.sum(s2p, axis=0), g1, be1, count)

    # bn1-apply + ReLU fused into conv2's prologue (+ bn2 statistic partials)
    y2, t1p, t2p = fused_conv(y1, w2, b2, k=k, pad=pad, scale=sc1, shift=sh1)
    sc2, sh2 = _bn_affine(jnp.sum(t1p, axis=0), jnp.sum(t2p, axis=0), g2, be2, count)

    # bn2-apply + identity residual + final ReLU
    out = bn_residual_relu(y2, sc2, sh2, x)
    return jnp.transpose(out, (0, 3, 1, 2))                       # back to NCHW


# -----------------------------------------------------------------------------
# Pure-JAX f32 reference (PyTorch training-mode semantics) + deterministic params
# -----------------------------------------------------------------------------
def _reference_forward(params, x):
    def conv(h_, w_, b_):
        y = lax.conv_general_dilated(h_, w_, window_strides=(1, 1),
                                     padding=((1, 1), (1, 1)),
                                     dimension_numbers=("NCHW", "OIHW", "NCHW"))
        return y + b_.reshape(1, -1, 1, 1)

    def bn(y, gamma, beta, eps=BN_EPS):
        mean = jnp.mean(y, axis=(0, 2, 3), keepdims=True)
        var = jnp.mean(jnp.square(y - mean), axis=(0, 2, 3), keepdims=True)
        return (gamma.reshape(1, -1, 1, 1) * (y - mean) * lax.rsqrt(var + eps)
                + beta.reshape(1, -1, 1, 1))

    h1 = jax.nn.relu(bn(conv(x, params["w1"], params["b1"]), *params["bn1"]))
    h2 = bn(conv(h1, params["w2"], params["b2"]), *params["bn2"])
    return jax.nn.relu(h2 + x)


def init_params(key, in_size, out_size, k):
    k1, k2, k3, k4 = jax.random.split(key, 4)
    bound1 = 1.0 / math.sqrt(in_size * k * k)
    bound2 = 1.0 / math.sqrt(out_size * k * k)
    return dict(
        w1=jax.random.uniform(k1, (out_size, in_size, k, k), jnp.float32, -bound1, bound1),
        b1=jax.random.uniform(k2, (out_size,), jnp.float32, -bound1, bound1),
        w2=jax.random.uniform(k3, (out_size, out_size, k, k), jnp.float32, -bound2, bound2),
        b2=jax.random.uniform(k4, (out_size,), jnp.float32, -bound2, bound2),
        bn1=(jnp.ones((out_size,), jnp.float32), jnp.zeros((out_size,), jnp.float32)),
        bn2=(jnp.ones((out_size,), jnp.float32), jnp.zeros((out_size,), jnp.float32)),
    )


if __name__ == "__main__":
    key = jax.random.PRNGKey(0)
    kp, kx = jax.random.split(key)
    IN_SIZE = OUT_SIZE = 16
    K = 3   # kernel_size=3 is the only setting where padding=1 keeps the residual add
            # shape-consistent (the class default of 5 would fail in PyTorch too).
    params = init_params(kp, IN_SIZE, OUT_SIZE, K)
    x = jax.random.normal(kx, (2, IN_SIZE, 16, 16), jnp.float32)   # NCHW, like PyTorch

    out = jax.jit(resnet_block_a_forward)(params, x)
    jax.block_until_ready(out)

    assert out.shape == (2, OUT_SIZE, 16, 16)
    assert bool(jnp.all(jnp.isfinite(out)))
    assert bool(jnp.all(out >= 0.0))          # final op is ReLU

    # Relaxed tolerance: bf16 MXU operands (f32 accumulation) vs. f32 reference.
    ref = _reference_forward(params, x)
    max_err = float(jnp.max(jnp.abs(out - ref)))
    assert max_err < 2e-1, f"max abs error vs f32 reference: {max_err}"

    print("KERNEL_OK")
</pallas_src>

<mosaic_0001>
module attributes {stable_mosaic.version = 11 : i64} {
  func.func @_conv_bnstats_kernel(%arg0: i32, %arg1: memref<1x16x16x16xf32, #tpu.memory_space<vmem>>, %arg2: memref<144x16xbf16, #tpu.memory_space<vmem>>, %arg3: memref<1x16xf32, #tpu.memory_space<vmem>>, %arg4: memref<1x16x16x16xf32, #tpu.memory_space<vmem>>, %arg5: memref<1x1x16xf32, #tpu.memory_space<vmem>>, %arg6: memref<1x1x16xf32, #tpu.memory_space<vmem>>, %arg7: memref<1x18x18x16xf32, #tpu.memory_space<vmem>>, %arg8: memref<256x144xf32, #tpu.memory_space<vmem>>) attributes {dimension_semantics = [#tpu.dimension_semantics<parallel>], iteration_bounds = array<i64: 2>, scalar_prefetch = 0 : i64, scratch_operands = 2 : i64, tpu.core_type = #tpu.core_type<tc>, window_params = [{transform_indices = @transform_0, window_bounds = array<i64: 1, 16, 16, 16>}, {pipeline_mode = #tpu.pipeline_mode<synchronous>, transform_indices = @transform_1, window_bounds = array<i64: 144, 16>}, {pipeline_mode = #tpu.pipeline_mode<synchronous>, transform_indices = @transform_2, window_bounds = array<i64: 1, 16>}, {transform_indices = @transform_3, window_bounds = array<i64: 1, 16, 16, 16>}, {transform_indices = @transform_4, window_bounds = array<i64: 1, 1, 16>}, {transform_indices = @transform_5, window_bounds = array<i64: 1, 1, 16>}]} {
    %c0 = arith.constant 0 : index
    %c0_0 = arith.constant 0 : index
    %c0_1 = arith.constant 0 : index
    %c0_2 = arith.constant 0 : index
    %0 = vector.load %arg1[%c0, %c0_0, %c0_1, %c0_2] : memref<1x16x16x16xf32, #tpu.memory_space<vmem>>, vector<1x16x16x16xf32>
    %cst = arith.constant 0.000000e+00 : f32
    %1 = vector.broadcast %cst : f32 to vector<1x18x18x16xf32>
    %c0_3 = arith.constant 0 : index
    %c0_4 = arith.constant 0 : index
    %c0_5 = arith.constant 0 : index
    %c0_6 = arith.constant 0 : index
    %2 = vector.load %arg7[%c0_3, %c0_4, %c0_5, %c0_6] : memref<1x18x18x16xf32, #tpu.memory_space<vmem>>, vector<1x18x18x16xf32>
    tpu.vector_store %arg7[%c0_3, %c0_4, %c0_5, %c0_6], %1 {strides = array<i32>} : memref<1x18x18x16xf32, #tpu.memory_space<vmem>>, vector<1x18x18x16xf32>,
    %c0_7 = arith.constant 0 : index
    %c1 = arith.constant 1 : index
    %c1_8 = arith.constant 1 : index
    %c0_9 = arith.constant 0 : index
    %3 = vector.load %arg7[%c0_7, %c1, %c1_8, %c0_9] : memref<1x18x18x16xf32, #tpu.memory_space<vmem>>, vector<1x16x16x16xf32>
    tpu.vector_store %arg7[%c0_7, %c1, %c1_8, %c0_9], %0 {strides = array<i32>} : memref<1x18x18x16xf32, #tpu.memory_space<vmem>>, vector<1x16x16x16xf32>,
    %c0_10 = arith.constant 0 : index
    %c0_11 = arith.constant 0 : index
    %c0_12 = arith.constant 0 : index
    %c0_13 = arith.constant 0 : index
    %4 = vector.load %arg7[%c0_10, %c0_11, %c0_12, %c0_13] : memref<1x18x18x16xf32, #tpu.memory_space<vmem>>, vector<1x16x16x16xf32>
    %5 = vector.shape_cast %4 : vector<1x16x16x16xf32> to vector<256x16xf32>
    %c0_14 = arith.constant 0 : index
    %c0_15 = arith.constant 0 : index
    %6 = vector.load %arg8[%c0_14, %c0_15] : memref<256x144xf32, #tpu.memory_space<vmem>>, vector<256x16xf32>
    tpu.vector_store %arg8[%c0_14, %c0_15], %5 {strides = array<i32>} : memref<256x144xf32, #tpu.memory_space<vmem>>, vector<256x16xf32>,
    %c0_16 = arith.constant 0 : index
    %c0_17 = arith.constant 0 : index
    %c1_18 = arith.constant 1 : index
    %c0_19 = arith.constant 0 : index
    %7 = vector.load %arg7[%c0_16, %c0_17, %c1_18, %c0_19] : memref<1x18x18x16xf32, #tpu.memory_space<vmem>>, vector<1x16x16x16xf32>
    %8 = vector.shape_cast %7 : vector<1x16x16x16xf32> to vector<256x16xf32>
    %c0_20 = arith.constant 0 : index
    %c16 = arith.constant 16 : index
    %9 = vector.load %arg8[%c0_20, %c16] : memref<256x144xf32, #tpu.memory_space<vmem>>, vector<256x16xf32>
    tpu.vector_store %arg8[%c0_20, %c16], %8 {strides = array<i32>} : memref<256x144xf32, #tpu.memory_space<vmem>>, vector<256x16xf32>,
    %c0_21 = arith.constant 0 : index
    %c0_22 = arith.constant 0 : index
    %c2 = arith.constant 2 : index
    %c0_23 = arith.constant 0 : index
    %10 = vector.load %arg7[%c0_21, %c0_22, %c2, %c0_23] : memref<1x18x18x16xf32, #tpu.memory_space<vmem>>, vector<1x16x16x16xf32>
    %11 = vector.shape_cast %10 : vector<1x16x16x16xf32> to vector<256x16xf32>
    %c0_24 = arith.constant 0 : index
    %c32 = arith.constant 32 : index
    %12 = vector.load %arg8[%c0_24, %c32] : memref<256x144xf32, #tpu.memory_space<vmem>>, vector<256x16xf32>
    tpu.vector_store %arg8[%c0_24, %c32], %11 {strides = array<i32>} : memref<256x144xf32, #tpu.memory_space<vmem>>, vector<256x16xf32>,
    %c0_25 = arith.constant 0 : index
    %c1_26 = arith.constant 1 : index
    %c0_27 = arith.constant 0 : index
    %c0_28 = arith.constant 0 : index
    %13 = vector.load %arg7[%c0_25, %c1_26, %c0_27, %c0_28] : memref<1x18x18x16xf32, #tpu.memory_space<vmem>>, vector<1x16x16x16xf32>
    %14 = vector.shape_cast %13 : vector<1x16x16x16xf32> to vector<256x16xf32>
    %c0_29 = arith.constant 0 : index
    %c48 = arith.constant 48 : index
    %15 = vector.load %arg8[%c0_29, %c48] : memref<256x144xf32, #tpu.memory_space<vmem>>, vector<256x16xf32>
    tpu.vector_store %arg8[%c0_29, %c48], %14 {strides = array<i32>} : memref<256x144xf32, #tpu.memory_space<vmem>>, vector<256x16xf32>,
    %c0_30 = arith.constant 0 : index
    %c1_31 = arith.constant 1 : index
    %c1_32 = arith.constant 1 : index
    %c0_33 = arith.constant 0 : index
    %16 = vector.load %arg7[%c0_30, %c1_31, %c1_32, %c0_33] : memref<1x18x18x16xf32, #tpu.memory_space<vmem>>, vector<1x16x16x16xf32>
    %17 = vector.shape_cast %16 : vector<1x16x16x16xf32> to vector<256x16xf32>
    %c0_34 = arith.constant 0 : index
    %c64 = arith.constant 64 : index
    %18 = vector.load %arg8[%c0_34, %c64] : memref<256x144xf32, #tpu.memory_space<vmem>>, vector<256x16xf32>
    tpu.vector_store %arg8[%c0_34, %c64], %17 {strides = array<i32>} : memref<256x144xf32, #tpu.memory_space<vmem>>, vector<256x16xf32>,
    %c0_35 = arith.constant 0 : index
    %c1_36 = arith.constant 1 : index
    %c2_37 = arith.constant 2 : index
    %c0_38 = arith.constant 0 : index
    %19 = vector.load %arg7[%c0_35, %c1_36, %c2_37, %c0_38] : memref<1x18x18x16xf32, #tpu.memory_space<vmem>>, vector<1x16x16x16xf32>
    %20 = vector.shape_cast %19 : vector<1x16x16x16xf32> to vector<256x16xf32>
    %c0_39 = arith.constant 0 : index
    %c80 = arith.constant 80 : index
    %21 = vector.load %arg8[%c0_39, %c80] : memref<256x144xf32, #tpu.memory_space<vmem>>, vector<256x16xf32>
    tpu.vector_store %arg8[%c0_39, %c80], %20 {strides = array<i32>} : memref<256x144xf32, #tpu.memory_space<vmem>>, vector<256x16xf32>,
    %c0_40 = arith.constant 0 : index
    %c2_41 = arith.constant 2 : index
    %c0_42 = arith.constant 0 : index
    %c0_43 = arith.constant 0 : index
    %22 = vector.load %arg7[%c0_40, %c2_41, %c0_42, %c0_43] : memref<1x18x18x16xf32, #tpu.memory_space<vmem>>, vector<1x16x16x16xf32>
    %23 = vector.shape_cast %22 : vector<1x16x16x16xf32> to vector<256x16xf32>
    %c0_44 = arith.constant 0 : index
    %c96 = arith.constant 96 : index
    %24 = vector.load %arg8[%c0_44, %c96] : memref<256x144xf32, #tpu.memory_space<vmem>>, vector<256x16xf32>
    tpu.vector_store %arg8[%c0_44, %c96], %23 {strides = array<i32>} : memref<256x144xf32, #tpu.memory_space<vmem>>, vector<256x16xf32>,
    %c0_45 = arith.constant 0 : index
    %c2_46 = arith.constant 2 : index
    %c1_47 = arith.constant 1 : index
    %c0_48 = arith.constant 0 : index
    %25 = vector.load %arg7[%c0_45, %c2_46, %c1_47, %c0_48] : memref<1x18x18x16xf32, #tpu.memory_space<vmem>>, vector<1x16x16x16xf32>
    %26 = vector.shape_cast %25 : vector<1x16x16x16xf32> to vector<256x16xf32>
    %c0_49 = arith.constant 0 : index
    %c112 = arith.constant 112 : index
    %27 = vector.load %arg8[%c0_49, %c112] : memref<256x144xf32, #tpu.memory_space<vmem>>, vector<256x16xf32>
    tpu.vector_store %arg8[%c0_49, %c112], %26 {strides = array<i32>} : memref<256x144xf32, #tpu.memory_space<vmem>>, vector<256x16xf32>,
    %c0_50 = arith.constant 0 : index
    %c2_51 = arith.constant 2 : index
    %c2_52 = arith.constant 2 : index
    %c0_53 = arith.constant 0 : index
    %28 = vector.load %arg7[%c0_50, %c2_51, %c2_52, %c0_53] : memref<1x18x18x16xf32, #tpu.memory_space<vmem>>, vector<1x16x16x16xf32>
    %29 = vector.shape_cast %28 : vector<1x16x16x16xf32> to vector<256x16xf32>
    %c0_54 = arith.constant 0 : index
    %c128 = arith.constant 128 : index
    %30 = vector.load %arg8[%c0_54, %c128] : memref<256x144xf32, #tpu.memory_space<vmem>>, vector<256x16xf32>
    tpu.vector_store %arg8[%c0_54, %c128], %29 {strides = array<i32>} : memref<256x144xf32, #tpu.memory_space<vmem>>, vector<256x16xf32>,
    %c0_55 = arith.constant 0 : index
    %c0_56 = arith.constant 0 : index
    %31 = vector.load %arg8[%c0_55, %c0_56] : memref<256x144xf32, #tpu.memory_space<vmem>>, vector<256x144xf32>
    %32 = arith.truncf %31 : vector<256x144xf32> to vector<256x144xbf16>
    %c0_57 = arith.constant 0 : index
    %c0_58 = arith.constant 0 : index
    %33 = vector.load %arg2[%c0_57, %c0_58] : memref<144x16xbf16, #tpu.memory_space<vmem>>, vector<144x16xbf16>
    %cst_59 = arith.constant dense<0.000000e+00> : vector<256x16xf32>
    %34 = tpu.matmul %32, %33, %cst_59 {dimension_numbers = #tpu.dot_dimension_numbers<[1], [0], [0], [1], [0, 0, 1, 1], [], []>} : vector<256x144xbf16>, vector<144x16xbf16>, vector<256x16xf32> -> vector<256x16xf32>
    %c0_60 = arith.constant 0 : index
    %c0_61 = arith.constant 0 : index
    %35 = vector.load %arg3[%c0_60, %c0_61] : memref<1x16xf32, #tpu.memory_space<vmem>>, vector<1x16xf32>
    %36 = vector.broadcast %35 : vector<1x16xf32> to vector<256x16xf32>
    %37 = arith.addf %34, %36 : vector<256x16xf32>
    %38 = vector.shape_cast %37 : vector<256x16xf32> to vector<1x16x16x16xf32>
    %c0_62 = arith.constant 0 : index
    %c0_63 = arith.constant 0 : index
    %c0_64 = arith.constant 0 : index
    %c0_65 = arith.constant 0 : index
    %39 = vector.load %arg4[%c0_62, %c0_63, %c0_64, %c0_65] : memref<1x16x16x16xf32, #tpu.memory_space<vmem>>, vector<1x16x16x16xf32>
    tpu.vector_store %arg4[%c0_62, %c0_63, %c0_64, %c0_65], %38 {strides = array<i32>} : memref<1x16x16x16xf32, #tpu.memory_space<vmem>>, vector<1x16x16x16xf32>,
    %cst_66 = arith.constant dense<0.000000e+00> : vector<16xf32>
    %40 = vector.multi_reduction <add>, %37, %cst_66 [0] : vector<256x16xf32> to vector<16xf32>
    %41 = vector.shape_cast %40 : vector<16xf32> to vector<1x16xf32>
    %42 = vector.shape_cast %41 : vector<1x16xf32> to vector<1x1x16xf32>
    %c0_67 = arith.constant 0 : index
    %c0_68 = arith.constant 0 : index
    %c0_69 = arith.constant 0 : index
    %43 = vector.load %arg5[%c0_67, %c0_68, %c0_69] : memref<1x1x16xf32, #tpu.memory_space<vmem>>, vector<1x1x16xf32>
    tpu.vector_store %arg5[%c0_67, %c0_68, %c0_69], %42 {strides = array<i32>} : memref<1x1x16xf32, #tpu.memory_space<vmem>>, vector<1x1x16xf32>,
    %44 = arith.mulf %37, %37 : vector<256x16xf32>
    %cst_70 = arith.constant dense<0.000000e+00> : vector<16xf32>
    %45 = vector.multi_reduction <add>, %44, %cst_70 [0] : vector<256x16xf32> to vector<16xf32>
    %46 = vector.shape_cast %45 : vector<16xf32> to vector<1x16xf32>
    %47 = vector.shape_cast %46 : vector<1x16xf32> to vector<1x1x16xf32>
    %c0_71 = arith.constant 0 : index
    %c0_72 = arith.constant 0 : index
    %c0_73 = arith.constant 0 : index
    %48 = vector.load %arg6[%c0_71, %c0_72, %c0_73] : memref<1x1x16xf32, #tpu.memory_space<vmem>>, vector<1x1x16xf32>
    tpu.vector_store %arg6[%c0_71, %c0_72, %c0_73], %47 {strides = array<i32>} : memref<1x1x16xf32, #tpu.memory_space<vmem>>, vector<1x1x16xf32>,
    return
  }
  func.func @transform_0(%arg0: i32) -> (i32, i32, i32, i32) {
    %c0_i32 = arith.constant 0 : i32
    %c0_i32_0 = arith.constant 0 : i32
    %c0_i32_1 = arith.constant 0 : i32
    %c0_i32_2 = arith.constant 0 : i32
    return %arg0, %c0_i32, %c0_i32_0, %c0_i32_1 : i32, i32, i32, i32
  }
  func.func @transform_1(%arg0: i32) -> (i32, i32) {
    %c0_i32 = arith.constant 0 : i32
    %c0_i32_0 = arith.constant 0 : i32
    %c0_i32_1 = arith.constant 0 : i32
    return %c0_i32, %c0_i32_0 : i32, i32
  }
  func.func @transform_2(%arg0: i32) -> (i32, i32) {
    %c0_i32 = arith.constant 0 : i32
    %c0_i32_0 = arith.constant 0 : i32
    %c0_i32_1 = arith.constant 0 : i32
    return %c0_i32, %c0_i32_0 : i32, i32
  }
  func.func @transform_3(%arg0: i32) -> (i32, i32, i32, i32) {
    %c0_i32 = arith.constant 0 : i32
    %c0_i32_0 = arith.constant 0 : i32
    %c0_i32_1 = arith.constant 0 : i32
    %c0_i32_2 = arith.constant 0 : i32
    return %arg0, %c0_i32, %c0_i32_0, %c0_i32_1 : i32, i32, i32, i32
  }
  func.func @transform_4(%arg0: i32) -> (i32, i32, i32) {
    %c0_i32 = arith.constant 0 : i32
    %c0_i32_0 = arith.constant 0 : i32
    %c0_i32_1 = arith.constant 0 : i32
    return %arg0, %c0_i32, %c0_i32_0 : i32, i32, i32
  }
  func.func @transform_5(%arg0: i32) -> (i32, i32, i32) {
    %c0_i32 = arith.constant 0 : i32
    %c0_i32_0 = arith.constant 0 : i32
    %c0_i32_1 = arith.constant 0 : i32
    return %arg0, %c0_i32, %c0_i32_0 : i32, i32, i32
  }
}

module attributes {stable_mosaic.version = 11 : i64} {
  func.func @_conv_bnstats_kernel(%arg0: i32, %arg1: memref<1x16x16x16xf32, #tpu.memory_space<vmem>>, %arg2: memref<1x16xf32, #tpu.memory_space<vmem>>, %arg3: memref<1x16xf32, #tpu.memory_space<vmem>>, %arg4: memref<144x16xbf16, #tpu.memory_space<vmem>>, %arg5: memref<1x16xf32, #tpu.memory_space<vmem>>, %arg6: memref<1x16x16x16xf32, #tpu.memory_space<vmem>>, %arg7: memref<1x1x16xf32, #tpu.memory_space<vmem>>, %arg8: memref<1x1x16xf32, #tpu.memory_space<vmem>>, %arg9: memref<1x18x18x16xf32, #tpu.memory_space<vmem>>, %arg10: memref<256x144xf32, #tpu.memory_space<vmem>>) attributes {dimension_semantics = [#tpu.dimension_semantics<parallel>], iteration_bounds = array<i64: 2>, scalar_prefetch = 0 : i64, scratch_operands = 2 : i64, tpu.core_type = #tpu.core_type<tc>, window_params = [{transform_indices = @transform_0, window_bounds = array<i64: 1, 16, 16, 16>}, {pipeline_mode = #tpu.pipeline_mode<synchronous>, transform_indices = @transform_1, window_bounds = array<i64: 1, 16>}, {pipeline_mode = #tpu.pipeline_mode<synchronous>, transform_indices = @transform_2, window_bounds = array<i64: 1, 16>}, {pipeline_mode = #tpu.pipeline_mode<synchronous>, transform_indices = @transform_3, window_bounds = array<i64: 144, 16>}, {pipeline_mode = #tpu.pipeline_mode<synchronous>, transform_indices = @transform_4, window_bounds = array<i64: 1, 16>}, {transform_indices = @transform_5, window_bounds = array<i64: 1, 16, 16, 16>}, {transform_indices = @transform_6, window_bounds = array<i64: 1, 1, 16>}, {transform_indices = @transform_7, window_bounds = array<i64: 1, 1, 16>}]} {
    %c0 = arith.constant 0 : index
    %c0_0 = arith.constant 0 : index
    %c0_1 = arith.constant 0 : index
    %c0_2 = arith.constant 0 : index
    %0 = vector.load %arg1[%c0, %c0_0, %c0_1, %c0_2] : memref<1x16x16x16xf32, #tpu.memory_space<vmem>>, vector<1x16x16x16xf32>
    %c0_3 = arith.constant 0 : index
    %c0_4 = arith.constant 0 : index
    %1 = vector.load %arg2[%c0_3, %c0_4] : memref<1x16xf32, #tpu.memory_space<vmem>>, vector<1x16xf32>
    %2 = vector.shape_cast %1 : vector<1x16xf32> to vector<1x1x1x16xf32>
    %c0_5 = arith.constant 0 : index
    %c0_6 = arith.constant 0 : index
    %3 = vector.load %arg3[%c0_5, %c0_6] : memref<1x16xf32, #tpu.memory_space<vmem>>, vector<1x16xf32>
    %4 = vector.shape_cast %3 : vector<1x16xf32> to vector<1x1x1x16xf32>
    %5 = vector.broadcast %2 : vector<1x1x1x16xf32> to vector<1x16x16x16xf32>
    %6 = arith.mulf %0, %5 : vector<1x16x16x16xf32>
    %7 = vector.broadcast %4 : vector<1x1x1x16xf32> to vector<1x16x16x16xf32>
    %8 = arith.addf %6, %7 : vector<1x16x16x16xf32>
    %cst = arith.constant 0.000000e+00 : f32
    %9 = vector.broadcast %cst : f32 to vector<1x16x16x16xf32>
    %10 = arith.maximumf %8, %9 : vector<1x16x16x16xf32>
    %cst_7 = arith.constant 0.000000e+00 : f32
    %11 = vector.broadcast %cst_7 : f32 to vector<1x18x18x16xf32>
    %c0_8 = arith.constant 0 : index
    %c0_9 = arith.constant 0 : index
    %c0_10 = arith.constant 0 : index
    %c0_11 = arith.constant 0 : index
    %12 = vector.load %arg9[%c0_8, %c0_9, %c0_10, %c0_11] : memref<1x18x18x16xf32, #tpu.memory_space<vmem>>, vector<1x18x18x16xf32>
    tpu.vector_store %arg9[%c0_8, %c0_9, %c0_10, %c0_11], %11 {strides = array<i32>} : memref<1x18x18x16xf32, #tpu.memory_space<vmem>>, vector<1x18x18x16xf32>,
    %c0_12 = arith.constant 0 : index
    %c1 = arith.constant 1 : index
    %c1_13 = arith.constant 1 : index
    %c0_14 = arith.constant 0 : index
    %13 = vector.load %arg9[%c0_12, %c1, %c1_13, %c0_14] : memref<1x18x18x16xf32, #tpu.memory_space<vmem>>, vector<1x16x16x16xf32>
    tpu.vector_store %arg9[%c0_12, %c1, %c1_13, %c0_14], %10 {strides = array<i32>} : memref<1x18x18x16xf32, #tpu.memory_space<vmem>>, vector<1x16x16x16xf32>,
    %c0_15 = arith.constant 0 : index
    %c0_16 = arith.constant 0 : index
    %c0_17 = arith.constant 0 : index
    %c0_18 = arith.constant 0 : index
    %14 = vector.load %arg9[%c0_15, %c0_16, %c0_17, %c0_18] : memref<1x18x18x16xf32, #tpu.memory_space<vmem>>, vector<1x16x16x16xf32>
    %15 = vector.shape_cast %14 : vector<1x16x16x16xf32> to vector<256x16xf32>
    %c0_19 = arith.constant 0 : index
    %c0_20 = arith.constant 0 : index
    %16 = vector.load %arg10[%c0_19, %c0_20] : memref<256x144xf32, #tpu.memory_space<vmem>>, vector<256x16xf32>
    tpu.vector_store %arg10[%c0_19, %c0_20], %15 {strides = array<i32>} : memref<256x144xf32, #tpu.memory_space<vmem>>, vector<256x16xf32>,
    %c0_21 = arith.constant 0 : index
    %c0_22 = arith.constant 0 : index
    %c1_23 = arith.constant 1 : index
    %c0_24 = arith.constant 0 : index
    %17 = vector.load %arg9[%c0_21, %c0_22, %c1_23, %c0_24] : memref<1x18x18x16xf32, #tpu.memory_space<vmem>>, vector<1x16x16x16xf32>
    %18 = vector.shape_cast %17 : vector<1x16x16x16xf32> to vector<256x16xf32>
    %c0_25 = arith.constant 0 : index
    %c16 = arith.constant 16 : index
    %19 = vector.load %arg10[%c0_25, %c16] : memref<256x144xf32, #tpu.memory_space<vmem>>, vector<256x16xf32>
    tpu.vector_store %arg10[%c0_25, %c16], %18 {strides = array<i32>} : memref<256x144xf32, #tpu.memory_space<vmem>>, vector<256x16xf32>,
    %c0_26 = arith.constant 0 : index
    %c0_27 = arith.constant 0 : index
    %c2 = arith.constant 2 : index
    %c0_28 = arith.constant 0 : index
    %20 = vector.load %arg9[%c0_26, %c0_27, %c2, %c0_28] : memref<1x18x18x16xf32, #tpu.memory_space<vmem>>, vector<1x16x16x16xf32>
    %21 = vector.shape_cast %20 : vector<1x16x16x16xf32> to vector<256x16xf32>
    %c0_29 = arith.constant 0 : index
    %c32 = arith.constant 32 : index
    %22 = vector.load %arg10[%c0_29, %c32] : memref<256x144xf32, #tpu.memory_space<vmem>>, vector<256x16xf32>
    tpu.vector_store %arg10[%c0_29, %c32], %21 {strides = array<i32>} : memref<256x144xf32, #tpu.memory_space<vmem>>, vector<256x16xf32>,
    %c0_30 = arith.constant 0 : index
    %c1_31 = arith.constant 1 : index
    %c0_32 = arith.constant 0 : index
    %c0_33 = arith.constant 0 : index
    %23 = vector.load %arg9[%c0_30, %c1_31, %c0_32, %c0_33] : memref<1x18x18x16xf32, #tpu.memory_space<vmem>>, vector<1x16x16x16xf32>
    %24 = vector.shape_cast %23 : vector<1x16x16x16xf32> to vector<256x16xf32>
    %c0_34 = arith.constant 0 : index
    %c48 = arith.constant 48 : index
    %25 = vector.load %arg10[%c0_34, %c48] : memref<256x144xf32, #tpu.memory_space<vmem>>, vector<256x16xf32>
    tpu.vector_store %arg10[%c0_34, %c48], %24 {strides = array<i32>} : memref<256x144xf32, #tpu.memory_space<vmem>>, vector<256x16xf32>,
    %c0_35 = arith.constant 0 : index
    %c1_36 = arith.constant 1 : index
    %c1_37 = arith.constant 1 : index
    %c0_38 = arith.constant 0 : index
    %26 = vector.load %arg9[%c0_35, %c1_36, %c1_37, %c0_38] : memref<1x18x18x16xf32, #tpu.memory_space<vmem>>, vector<1x16x16x16xf32>
    %27 = vector.shape_cast %26 : vector<1x16x16x16xf32> to vector<256x16xf32>
    %c0_39 = arith.constant 0 : index
    %c64 = arith.constant 64 : index
    %28 = vector.load %arg10[%c0_39, %c64] : memref<256x144xf32, #tpu.memory_space<vmem>>, vector<256x16xf32>
    tpu.vector_store %arg10[%c0_39, %c64], %27 {strides = array<i32>} : memref<256x144xf32, #tpu.memory_space<vmem>>, vector<256x16xf32>,
    %c0_40 = arith.constant 0 : index
    %c1_41 = arith.constant 1 : index
    %c2_42 = arith.constant 2 : index
    %c0_43 = arith.constant 0 : index
    %29 = vector.load %arg9[%c0_40, %c1_41, %c2_42, %c0_43] : memref<1x18x18x16xf32, #tpu.memory_space<vmem>>, vector<1x16x16x16xf32>
    %30 = vector.shape_cast %29 : vector<1x16x16x16xf32> to vector<256x16xf32>
    %c0_44 = arith.constant 0 : index
    %c80 = arith.constant 80 : index
    %31 = vector.load %arg10[%c0_44, %c80] : memref<256x144xf32, #tpu.memory_space<vmem>>, vector<256x16xf32>
    tpu.vector_store %arg10[%c0_44, %c80], %30 {strides = array<i32>} : memref<256x144xf32, #tpu.memory_space<vmem>>, vector<256x16xf32>,
    %c0_45 = arith.constant 0 : index
    %c2_46 = arith.constant 2 : index
    %c0_47 = arith.constant 0 : index
    %c0_48 = arith.constant 0 : index
    %32 = vector.load %arg9[%c0_45, %c2_46, %c0_47, %c0_48] : memref<1x18x18x16xf32, #tpu.memory_space<vmem>>, vector<1x16x16x16xf32>
    %33 = vector.shape_cast %32 : vector<1x16x16x16xf32> to vector<256x16xf32>
    %c0_49 = arith.constant 0 : index
    %c96 = arith.constant 96 : index
    %34 = vector.load %arg10[%c0_49, %c96] : memref<256x144xf32, #tpu.memory_space<vmem>>, vector<256x16xf32>
    tpu.vector_store %arg10[%c0_49, %c96], %33 {strides = array<i32>} : memref<256x144xf32, #tpu.memory_space<vmem>>, vector<256x16xf32>,
    %c0_50 = arith.constant 0 : index
    %c2_51 = arith.constant 2 : index
    %c1_52 = arith.constant 1 : index
    %c0_53 = arith.constant 0 : index
    %35 = vector.load %arg9[%c0_50, %c2_51, %c1_52, %c0_53] : memref<1x18x18x16xf32, #tpu.memory_space<vmem>>, vector<1x16x16x16xf32>
    %36 = vector.shape_cast %35 : vector<1x16x16x16xf32> to vector<256x16xf32>
    %c0_54 = arith.constant 0 : index
    %c112 = arith.constant 112 : index
    %37 = vector.load %arg10[%c0_54, %c112] : memref<256x144xf32, #tpu.memory_space<vmem>>, vector<256x16xf32>
    tpu.vector_store %arg10[%c0_54, %c112], %36 {strides = array<i32>} : memref<256x144xf32, #tpu.memory_space<vmem>>, vector<256x16xf32>,
    %c0_55 = arith.constant 0 : index
    %c2_56 = arith.constant 2 : index
    %c2_57 = arith.constant 2 : index
    %c0_58 = arith.constant 0 : index
    %38 = vector.load %arg9[%c0_55, %c2_56, %c2_57, %c0_58] : memref<1x18x18x16xf32, #tpu.memory_space<vmem>>, vector<1x16x16x16xf32>
    %39 = vector.shape_cast %38 : vector<1x16x16x16xf32> to vector<256x16xf32>
    %c0_59 = arith.constant 0 : index
    %c128 = arith.constant 128 : index
    %40 = vector.load %arg10[%c0_59, %c128] : memref<256x144xf32, #tpu.memory_space<vmem>>, vector<256x16xf32>
    tpu.vector_store %arg10[%c0_59, %c128], %39 {strides = array<i32>} : memref<256x144xf32, #tpu.memory_space<vmem>>, vector<256x16xf32>,
    %c0_60 = arith.constant 0 : index
    %c0_61 = arith.constant 0 : index
    %41 = vector.load %arg10[%c0_60, %c0_61] : memref<256x144xf32, #tpu.memory_space<vmem>>, vector<256x144xf32>
    %42 = arith.truncf %41 : vector<256x144xf32> to vector<256x144xbf16>
    %c0_62 = arith.constant 0 : index
    %c0_63 = arith.constant 0 : index
    %43 = vector.load %arg4[%c0_62, %c0_63] : memref<144x16xbf16, #tpu.memory_space<vmem>>, vector<144x16xbf16>
    %cst_64 = arith.constant dense<0.000000e+00> : vector<256x16xf32>
    %44 = tpu.matmul %42, %43, %cst_64 {dimension_numbers = #tpu.dot_dimension_numbers<[1], [0], [0], [1], [0, 0, 1, 1], [], []>} : vector<256x144xbf16>, vector<144x16xbf16>, vector<256x16xf32> -> vector<256x16xf32>
    %c0_65 = arith.constant 0 : index
    %c0_66 = arith.constant 0 : index
    %45 = vector.load %arg5[%c0_65, %c0_66] : memref<1x16xf32, #tpu.memory_space<vmem>>, vector<1x16xf32>
    %46 = vector.broadcast %45 : vector<1x16xf32> to vector<256x16xf32>
    %47 = arith.addf %44, %46 : vector<256x16xf32>
    %48 = vector.shape_cast %47 : vector<256x16xf32> to vector<1x16x16x16xf32>
    %c0_67 = arith.constant 0 : index
    %c0_68 = arith.constant 0 : index
    %c0_69 = arith.constant 0 : index
    %c0_70 = arith.constant 0 : index
    %49 = vector.load %arg6[%c0_67, %c0_68, %c0_69, %c0_70] : memref<1x16x16x16xf32, #tpu.memory_space<vmem>>, vector<1x16x16x16xf32>
    tpu.vector_store %arg6[%c0_67, %c0_68, %c0_69, %c0_70], %48 {strides = array<i32>} : memref<1x16x16x16xf32, #tpu.memory_space<vmem>>, vector<1x16x16x16xf32>,
    %cst_71 = arith.constant dense<0.000000e+00> : vector<16xf32>
    %50 = vector.multi_reduction <add>, %47, %cst_71 [0] : vector<256x16xf32> to vector<16xf32>
    %51 = vector.shape_cast %50 : vector<16xf32> to vector<1x16xf32>
    %52 = vector.shape_cast %51 : vector<1x16xf32> to vector<1x1x16xf32>
    %c0_72 = arith.constant 0 : index
    %c0_73 = arith.constant 0 : index
    %c0_74 = arith.constant 0 : index
    %53 = vector.load %arg7[%c0_72, %c0_73, %c0_74] : memref<1x1x16xf32, #tpu.memory_space<vmem>>, vector<1x1x16xf32>
    tpu.vector_store %arg7[%c0_72, %c0_73, %c0_74], %52 {strides = array<i32>} : memref<1x1x16xf32, #tpu.memory_space<vmem>>, vector<1x1x16xf32>,
    %54 = arith.mulf %47, %47 : vector<256x16xf32>
    %cst_75 = arith.constant dense<0.000000e+00> : vector<16xf32>
    %55 = vector.multi_reduction <add>, %54, %cst_75 [0] : vector<256x16xf32> to vector<16xf32>
    %56 = vector.shape_cast %55 : vector<16xf32> to vector<1x16xf32>
    %57 = vector.shape_cast %56 : vector<1x16xf32> to vector<1x1x16xf32>
    %c0_76 = arith.constant 0 : index
    %c0_77 = arith.constant 0 : index
    %c0_78 = arith.constant 0 : index
    %58 = vector.load %arg8[%c0_76, %c0_77, %c0_78] : memref<1x1x16xf32, #tpu.memory_space<vmem>>, vector<1x1x16xf32>
    tpu.vector_store %arg8[%c0_76, %c0_77, %c0_78], %57 {strides = array<i32>} : memref<1x1x16xf32, #tpu.memory_space<vmem>>, vector<1x1x16xf32>,
    return
  }
  func.func @transform_0(%arg0: i32) -> (i32, i32, i32, i32) {
    %c0_i32 = arith.constant 0 : i32
    %c0_i32_0 = arith.constant 0 : i32
    %c0_i32_1 = arith.constant 0 : i32
    %c0_i32_2 = arith.constant 0 : i32
    return %arg0, %c0_i32, %c0_i32_0, %c0_i32_1 : i32, i32, i32, i32
  }
  func.func @transform_1(%arg0: i32) -> (i32, i32) {
    %c0_i32 = arith.constant 0 : i32
    %c0_i32_0 = arith.constant 0 : i32
    %c0_i32_1 = arith.constant 0 : i32
    return %c0_i32, %c0_i32_0 : i32, i32
  }
  func.func @transform_2(%arg0: i32) -> (i32, i32) {
    %c0_i32 = arith.constant 0 : i32
    %c0_i32_0 = arith.constant 0 : i32
    %c0_i32_1 = arith.constant 0 : i32
    return %c0_i32, %c0_i32_0 : i32, i32
  }
  func.func @transform_3(%arg0: i32) -> (i32, i32) {
    %c0_i32 = arith.constant 0 : i32
    %c0_i32_0 = arith.constant 0 : i32
    %c0_i32_1 = arith.constant 0 : i32
    return %c0_i32, %c0_i32_0 : i32, i32
  }
  func.func @transform_4(%arg0: i32) -> (i32, i32) {
    %c0_i32 = arith.constant 0 : i32
    %c0_i32_0 = arith.constant 0 : i32
    %c0_i32_1 = arith.constant 0 : i32
    return %c0_i32, %c0_i32_0 : i32, i32
  }
  func.func @transform_5(%arg0: i32) -> (i32, i32, i32, i32) {
    %c0_i32 = arith.constant 0 : i32
    %c0_i32_0 = arith.constant 0 : i32
    %c0_i32_1 = arith.constant 0 : i32
    %c0_i32_2 = arith.constant 0 : i32
    return %arg0, %c0_i32, %c0_i32_0, %c0_i32_1 : i32, i32, i32, i32
  }
  func.func @transform_6(%arg0: i32) -> (i32, i32, i32) {
    %c0_i32 = arith.constant 0 : i32
    %c0_i32_0 = arith.constant 0 : i32
    %c0_i32_1 = arith.constant 0 : i32
    return %arg0, %c0_i32, %c0_i32_0 : i32, i32, i32
  }
  func.func @transform_7(%arg0: i32) -> (i32, i32, i32) {
    %c0_i32 = arith.constant 0 : i32
    %c0_i32_0 = arith.constant 0 : i32
    %c0_i32_1 = arith.constant 0 : i32
    return %arg0, %c0_i32, %c0_i32_0 : i32, i32, i32
  }
}

module attributes {stable_mosaic.version = 11 : i64} {
  func.func @_bn_residual_relu_kernel(%arg0: i32, %arg1: memref<32x256xf32, #tpu.memory_space<vmem>>, %arg2: memref<1x256xf32, #tpu.memory_space<vmem>>, %arg3: memref<1x256xf32, #tpu.memory_space<vmem>>, %arg4: memref<32x256xf32, #tpu.memory_space<vmem>>, %arg5: memref<32x256xf32, #tpu.memory_space<vmem>>) attributes {dimension_semantics = [#tpu.dimension_semantics<parallel>], iteration_bounds = array<i64: 1>, scalar_prefetch = 0 : i64, scratch_operands = 0 : i64, tpu.core_type = #tpu.core_type<tc>, window_params = [{transform_indices = @transform_0, window_bounds = array<i64: 32, 256>}, {pipeline_mode = #tpu.pipeline_mode<synchronous>, transform_indices = @transform_1, window_bounds = array<i64: 1, 256>}, {pipeline_mode = #tpu.pipeline_mode<synchronous>, transform_indices = @transform_2, window_bounds = array<i64: 1, 256>}, {transform_indices = @transform_3, window_bounds = array<i64: 32, 256>}, {transform_indices = @transform_4, window_bounds = array<i64: 32, 256>}]} {
    %c0 = arith.constant 0 : index
    %c0_0 = arith.constant 0 : index
    %0 = vector.load %arg1[%c0, %c0_0] : memref<32x256xf32, #tpu.memory_space<vmem>>, vector<32x256xf32>
    %c0_1 = arith.constant 0 : index
    %c0_2 = arith.constant 0 : index
    %1 = vector.load %arg2[%c0_1, %c0_2] : memref<1x256xf32, #tpu.memory_space<vmem>>, vector<1x256xf32>
    %2 = vector.broadcast %1 : vector<1x256xf32> to vector<32x256xf32>
    %3 = arith.mulf %0, %2 : vector<32x256xf32>
    %c0_3 = arith.constant 0 : index
    %c0_4 = arith.constant 0 : index
    %4 = vector.load %arg3[%c0_3, %c0_4] : memref<1x256xf32, #tpu.memory_space<vmem>>, vector<1x256xf32>
    %5 = vector.broadcast %4 : vector<1x256xf32> to vector<32x256xf32>
    %6 = arith.addf %3, %5 : vector<32x256xf32>
    %c0_5 = arith.constant 0 : index
    %c0_6 = arith.constant 0 : index
    %7 = vector.load %arg4[%c0_5, %c0_6] : memref<32x256xf32, #tpu.memory_space<vmem>>, vector<32x256xf32>
    %8 = arith.addf %6, %7 : vector<32x256xf32>
    %cst = arith.constant 0.000000e+00 : f32
    %9 = vector.broadcast %cst : f32 to vector<32x256xf32>
    %10 = arith.maximumf %8, %9 : vector<32x256xf32>
    %c0_7 = arith.constant 0 : index
    %c0_8 = arith.constant 0 : index
    %11 = vector.load %arg5[%c0_7, %c0_8] : memref<32x256xf32, #tpu.memory_space<vmem>>, vector<32x256xf32>
    tpu.vector_store %arg5[%c0_7, %c0_8], %10 {strides = array<i32>} : memref<32x256xf32, #tpu.memory_space<vmem>>, vector<32x256xf32>,
    return
  }
  func.func @transform_0(%arg0: i32) -> (i32, i32) {
    %c0_i32 = arith.constant 0 : i32
    %c0_i32_0 = arith.constant 0 : i32
    return %arg0, %c0_i32 : i32, i32
  }
  func.func @transform_1(%arg0: i32) -> (i32, i32) {
    %c0_i32 = arith.constant 0 : i32
    %c0_i32_0 = arith.constant 0 : i32
    %c0_i32_1 = arith.constant 0 : i32
    return %c0_i32, %c0_i32_0 : i32, i32
  }
  func.func @transform_2(%arg0: i32) -> (i32, i32) {
    %c0_i32 = arith.constant 0 : i32
    %c0_i32_0 = arith.constant 0 : i32
    %c0_i32_1 = arith.constant 0 : i32
    return %c0_i32, %c0_i32_0 : i32, i32
  }
  func.func @transform_3(%arg0: i32) -> (i32, i32) {
    %c0_i32 = arith.constant 0 : i32
    %c0_i32_0 = arith.constant 0 : i32
    return %arg0, %c0_i32 : i32, i32
  }
  func.func @transform_4(%arg0: i32) -> (i32, i32) {
    %c0_i32 = arith.constant 0 : i32
    %c0_i32_0 = arith.constant 0 : i32
    return %arg0, %c0_i32 : i32, i32
  }
}

</mosaic_0001>

<bundles_post_ra>
// kernel: resnet_block_a_forward.5
= control target key start
LH: loop header
LB: loop body
LE: loop exit
PB: predicated region body
PF: predicated region fallthrough
CT: control target
= control target key end

     0   :  { %s192_s0 = inlined_call_operand.vmem [shape: f32[32,256], index: 0, kind: input, shape index: {}]   ;;  %s193_s1 = inlined_call_operand.vmem [shape: f32[1,256], index: 1, kind: input, shape index: {}]   ;;  %s194_s2 = inlined_call_operand.vmem [shape: f32[1,256], index: 2, kind: input, shape index: {}]   ;;  %s195_s3 = inlined_call_operand.vmem [shape: f32[32,256], index: 3, kind: input, shape index: {}]   ;;  %s196_s4 = inlined_call_operand.vmem [shape: f32[32,256], index: 4, kind: output, shape index: {}]  }
   0x1   :  { %v17_v0 = vld [vmem:[%s192_s0] sm:$0xff]  ;;  %v18_v5 = vld [vmem:[%s192_s0 + $0x8] sm:$0xff]  ;;  %v19_v9 = vld [vmem:[%s192_s0 + $0x10] sm:$0xff] }
   0x2   :  { %v25_v1 = vld [vmem:[%s193_s1] sm:$0x3]  ;;  %v54_v12 = vld [vmem:[%s195_s3 + $0x8] sm:$0xff]  ;;  %v20_v14 = vld [vmem:[%s192_s0 + $0x18] sm:$0xff] }
   0x3   :  { %v39_v2 = vld [vmem:[%s194_s2] sm:$0x3]  ;;  %v27_v3 = vperm.slane %v25_v1, 0  ;;  %v28_v6 = vperm.slane %v25_v1, 1  ;;  %v55_v16 = vld [vmem:[%s195_s3 + $0x10] sm:$0xff]  ;;  %v56_v18 = vld [vmem:[%s195_s3 + $0x18] sm:$0xff] }
   0x4   :  { %v41_v4 = vperm.slane %v39_v2, 0  ;;  %v42_v7 = vperm.slane %v39_v2, 1  ;;  %v53_v8 = vld [vmem:[%s195_s3] sm:$0xff]  ;;  %v22_v20 = vld [vmem:[%s192_s0 + $0x28] sm:$0xff]  ;;  %v23_v26 = vld [vmem:[%s192_s0 + $0x30] sm:$0xff] }
   0x5   :  { %v31_v10 = vmul.f32 %v27_v3, %v17_v0  ;;  %v32_v11 = vmul.f32 %v28_v6, %v18_v5  ;;  %v33_v13 = vmul.f32 %v27_v3, %v19_v9  ;;  %v21_v15 = vld [vmem:[%s192_s0 + $0x20] sm:$0xff]  ;;  %v34_v17 = vmul.f32 %v28_v6, %v20_v14  ;;  %v24_v27 = vld [vmem:[%s192_s0 + $0x38] sm:$0xff]  ;;  %v58_v30 = vld [vmem:[%s195_s3 + $0x28] sm:$0xff] }
   0x6   :  { %v35_v19 = vmul.f32 %v27_v3, %v21_v15  ;;  %v57_v24 = vld [vmem:[%s195_s3 + $0x20] sm:$0xff]  ;;  %v36_v25 = vmul.f32 %v28_v6, %v22_v20  ;;  %v37_v31 = vmul.f32 %v27_v3, %v23_v26  ;;  %v38_v32 = vmul.f32 %v28_v6, %v24_v27  ;;  %v59_v37 = vld [vmem:[%s195_s3 + $0x30] sm:$0xff]  ;;  %v60_v38 = vld [vmem:[%s195_s3 + $0x38] sm:$0xff] }
   0x7   :  { %v45_v21 = vadd.f32 %v41_v4, %v31_v10  ;;  %v46_v22 = vadd.f32 %v42_v7, %v32_v11  ;;  %v47_v23 = vadd.f32 %v41_v4, %v33_v13  ;;  %v48_v28 = vadd.f32 %v42_v7, %v34_v17 }
   0x8   :  { %v49_v29 = vadd.f32 %v41_v4, %v35_v19  ;;  %v50_v36 = vadd.f32 %v42_v7, %v36_v25  ;;  %v51_v41 = vadd.f32 %v41_v4, %v37_v31  ;;  %v52_v42 = vadd.f32 %v42_v7, %v38_v32 }
   0x9   :  { %v61_v33 = vadd.f32 %v53_v8, %v45_v21  ;;  %v62_v34 = vadd.f32 %v54_v12, %v46_v22  ;;  %v63_v35 = vadd.f32 %v55_v16, %v47_v23  ;;  %v64_v39 = vadd.f32 %v56_v18, %v48_v28 }
   0xa   :  { %v65_v40 = vadd.f32 %v57_v24, %v49_v29  ;;  %v66_v46 = vadd.f32 %v58_v30, %v50_v36  ;;  %v67_v48 = vadd.f32 %v59_v37, %v51_v41  ;;  %v68_v49 = vadd.f32 %v60_v38, %v52_v42 }
   0xb   :  { %v69_v43 = vmax.f32 %v61_v33, 0.0  ;;  %v70_v44 = vmax.f32 %v62_v34, 0.0  ;;  %v71_v45 = vmax.f32 %v63_v35, 0.0  ;;  %v72_v47 = vmax.f32 %v64_v39, 0.0 }
   0xc   :  { %v73_v50 = vmax.f32 %v65_v40, 0.0  ;;  %v74_v51 = vmax.f32 %v66_v46, 0.0  ;;  %v75_v52 = vmax.f32 %v67_v48, 0.0  ;;  %v76_v53 = vmax.f32 %v68_v49, 0.0 }
   0xd   :  { %77 = vst [vmem:[%s196_s4] sm:$0xff] %v69_v43 }
   0xe   :  { %78 = vst [vmem:[%s196_s4 + $0x8] sm:$0xff] %v70_v44 }
   0xf   :  { %79 = vst [vmem:[%s196_s4 + $0x10] sm:$0xff] %v71_v45 }
  0x10   :  { %80 = vst [vmem:[%s196_s4 + $0x18] sm:$0xff] %v72_v47 }
  0x11   :  { %81 = vst [vmem:[%s196_s4 + $0x20] sm:$0xff] %v73_v50 }
  0x12   :  { %82 = vst [vmem:[%s196_s4 + $0x28] sm:$0xff] %v74_v51 }
  0x13   :  { %83 = vst [vmem:[%s196_s4 + $0x30] sm:$0xff] %v75_v52 }
  0x14   :  { %84 = vst [vmem:[%s196_s4 + $0x38] sm:$0xff] %v76_v53 }

// kernel: resnet_block_a_forward.3
= control target key start
LH: loop header
LB: loop body
LE: loop exit
PB: predicated region body
PF: predicated region fallthrough
CT: control target
= control target key end

     0   :  { %s2698_s18 = smov 0   ;;  %s4087_s0 = inlined_call_operand.vmem [shape: f32[2,16,16,16], index: 0, kind: input, shape index: {}]   ;;  %s4088_s1 = inlined_call_operand.vmem [shape: bf16[144,16], index: 1, kind: input, shape index: {}]   ;;  %s4089_s2 = inlined_call_operand.vmem [shape: f32[1,16], index: 2, kind: input, shape index: {}]   ;;  %s4090_s3 = inlined_call_operand.vmem [shape: f32[2,16,16,16], index: 3, kind: output, shape index: {0}]   ;;  %s4091_s4 = inlined_call_operand.vmem [shape: f32[2,1,16], index: 4, kind: output, shape index: {1}]   ;;  %s4092_s5 = inlined_call_operand.vmem [shape: f32[2,1,16], index: 5, kind: output, shape index: {2}]  }
   0x1 LB: > { %s2552_s19 = sadd.s32 4294967295, %s2658_s18   ;;  %p2556_p0 = scmp.ge.s32.totalorder %s2658_s18, 1  ;;  %s2658_s18 = sphi %s2698_s18, %s16_s18  }
   0x2   : > { %p192_p1 = scmp.lt.s32.totalorder %s2658_s18, 3 }
   0x4   : > { %p193_p2 = pnand %p2556_p0, %p192_p1 }
   0x6   : > { %196 = sbr.rel (%p193_p2) target bundleno = 946 (0x3b2), region = 32 }
   0xb   : > { %vm275_vm0 = vcmask 130048   ;;  %v2660_v0 = vmov 0.0   ;;  %s2661_s20 = smov 16   ;;  %p226_p3 = scmp.lt.s32.totalorder %s2552_s19, 1  ;;  %vm278_vm1 = vcmask 123904   ;;  %vm588_vm2 = vcmask 261248  }
   0xc   : > { %276 = vst.msk [vmem:[#allocation2] sm:$0xff] %vm275_vm0, %v2660_v0  ;;  %s2662_s25 = smov 32   ;;  %s2663_s26 = smov 48   ;;  %vm781_vm3 = vcmask 392448   ;;  %vm974_vm4 = vcmask 523648   ;;  %vm1167_vm5 = vcmask 654848  }
   0xd   : > { %277 = vst.msk [vmem:[#allocation2 + $0x8] sm:$0xff] %vm275_vm0, %v2660_v0  ;;  %s4100_s19 = smov (!%p226_p3, %s2552_s19), 1  ;;  %s2664_s27 = smov 64   ;;  %vm1360_vm6 = vcmask 786048   ;;  %vm1554_vm7 = vcmask 917248   ;;  %vm1747_vm8 = vcmask 1048448  }
   0xe   : > { %280 = vst.msk [vmem:[#allocation2 + $0x18] sm:$0xff] %vm275_vm0, %v2660_v0  ;;  %s2615_s21 = sshll.u32 %s4100_s19, 8  ;;  %s2665_s28 = smov 80   ;;  %vm2343_vm9 = vcmask 122880  }
   0xf   : > { %281 = vst.msk [vmem:[#allocation2 + $0x20] sm:$0xff] %vm275_vm0, %v2660_v0  ;;  %s2781_s24 = scalar_lea.vmem %s4087_s0, %s2615_s21  ;;  %s2666_s29 = smov 96  }
  0x10   : > { %283 = vst.msk [vmem:[#allocation2 + $0x30] sm:$0xff] %vm275_vm0, %v2660_v0  ;;  %v243_v2 = vld [vmem:[%s2781_s24] sm:$0xff]  ;;  %v244_v5 = vld [vmem:[%s2781_s24 + $0x8] sm:$0xff]  ;;  %v250_v8 = vld [vmem:[%s2781_s24 + $0x38] sm:$0xff]  ;;  %s2667_s30 = smov 112   ;;  %s3723_s10 = scalar_lea.vmem %s4090_s3, %s2615_s21 }
  0x11   : > { %284 = vst.msk [vmem:[#allocation2 + $0x38] sm:$0xff] %vm275_vm0, %v2660_v0  ;;  %v247_v6 = vld [vmem:[%s2781_s24 + $0x20] sm:$0xff]  ;;  %v248_v7 = vld [vmem:[%s2781_s24 + $0x28] sm:$0xff]  ;;  %v245_v9 = vld [vmem:[%s2781_s24 + $0x10] sm:$0xff]  ;;  %s241_s11 = scalar_lea.vmem %s4092_s5, %s4100_s19 }
  0x12   : > { %286 = vst.msk [vmem:[#allocation2 + $0x48] sm:$0xff] %vm275_vm0, %v2660_v0  ;;  %v251_v10 = vld [vmem:[%s2781_s24 + $0x40] sm:$0xff]  ;;  %v253_v11 = vld [vmem:[%s2781_s24 + $0x50] sm:$0xff]  ;;  %v246_v12 = vld [vmem:[%s2781_s24 + $0x18] sm:$0xff] }
  0x13   : > { %287 = vst.msk [vmem:[#allocation2 + $0x50] sm:$0xff] %vm275_vm0, %v2660_v0  ;;  %v254_v13 = vld [vmem:[%s2781_s24 + $0x58] sm:$0xff]  ;;  %v256_v14 = vld [vmem:[%s2781_s24 + $0x68] sm:$0xff]  ;;  %v249_v16 = vld [vmem:[%s2781_s24 + $0x30] sm:$0xff] }
  0x14   : > { %v428_v1 = vld [vmem:[#allocation2 + $0x1] sm:$0xff]  ;;  %289 = vst.msk [vmem:[#allocation2 + $0x60] sm:$0xff] %vm275_vm0, %v2660_v0  ;;  %v257_v18 = vld [vmem:[%s2781_s24 + $0x70] sm:$0xff]  ;;  %v262_v23 = vld [vmem:[%s2781_s24 + $0x98] sm:$0xff] }
  0x15   : > { %492 = vrot.lane.b32.xlu0 %v428_v1, %s2661_s20  ;;  %290 = vst.msk [vmem:[#allocation2 + $0x68] sm:$0xff] %vm275_vm0, %v2660_v0  ;;  %v259_v19 = vld [vmem:[%s2781_s24 + $0x80] sm:$0xff]  ;;  %v252_v20 = vld [vmem:[%s2781_s24 + $0x48] sm:$0xff]  ;;  %v265_v29 = vld [vmem:[%s2781_s24 + $0xb0] sm:$0xff] }
  0x16   : > { %292 = vst.msk [vmem:[#allocation2 + $0x78] sm:$0xff] %vm275_vm0, %v2660_v0  ;;  %v260_v22 = vld [vmem:[%s2781_s24 + $0x88] sm:$0xff]  ;;  %v255_v26 = vld [vmem:[%s2781_s24 + $0x60] sm:$0xff]  ;;  %v258_v32 = vld [vmem:[%s2781_s24 + $0x78] sm:$0xff] }
  0x17   : > { %293 = vst.msk [vmem:[#allocation2 + $0x80] sm:$0xff] %vm275_vm0, %v2660_v0  ;;  %v263_v27 = vld [vmem:[%s2781_s24 + $0xa0] sm:$0xff]  ;;  %v266_v33 = vld [vmem:[%s2781_s24 + $0xb8] sm:$0xff]  ;;  %v268_v35 = vld [vmem:[%s2781_s24 + $0xc8] sm:$0xff] }
  0x18   : > { %295 = vst.msk [vmem:[#allocation2 + $0x90] sm:$0xff] %vm275_vm0, %v2660_v0  ;;  %v261_v38 = vld [vmem:[%s2781_s24 + $0x90] sm:$0xff]  ;;  %v271_v41 = vld [vmem:[%s2781_s24 + $0xe0] sm:$0xff]  ;;  %v264_v44 = vld [vmem:[%s2781_s24 + $0xa8] sm:$0xff] }
  0x19   : > { %296 = vst.msk [vmem:[#allocation2 + $0x98] sm:$0xff] %vm275_vm0, %v2660_v0  ;;  %v269_v39 = vld [vmem:[%s2781_s24 + $0xd0] sm:$0xff]  ;;  %v272_v45 = vld [vmem:[%s2781_s24 + $0xe8] sm:$0xff]  ;;  %v267_v49 = vld [vmem:[%s2781_s24 + $0xc0] sm:$0xff] }
  0x1a   : > { %298 = vst.msk [vmem:[#allocation2 + $0xa8] sm:$0xff] %vm275_vm0, %v2660_v0  ;;  %v270_v53 = vld [vmem:[%s2781_s24 + $0xd8] sm:$0xff]  ;;  %v364_v1 = vld [vmem:[#allocation2] sm:$0xff] }
  0x1b   : > { %299 = vst.msk [vmem:[#allocation2 + $0xb0] sm:$0xff] %vm275_vm0, %v2660_v0 }
  0x1c   : > { %301 = vst.msk [vmem:[#allocation2 + $0xc0] sm:$0xff] %vm275_vm0, %v2660_v0 }
  0x1d   : > { %302 = vst.msk [vmem:[#allocation2 + $0xc8] sm:$0xff] %vm275_vm0, %v2660_v0 }
  0x1e   : > { %304 = vst.msk [vmem:[#allocation2 + $0xd8] sm:$0xff] %vm275_vm0, %v2660_v0 }
  0x1f   : > { %305 = vst.msk [vmem:[#allocation2 + $0xe0] sm:$0xff] %vm275_vm0, %v2660_v0 }
  0x20   : > { %307 = vst.msk [vmem:[#allocation2 + $0xf0] sm:$0xff] %vm275_vm0, %v2660_v0 }
  0x21   : > { %308 = vst.msk [vmem:[#allocation2 + $0xf8] sm:$0xff] %vm275_vm0, %v2660_v0 }
  0x22   : > { %310 = vst.msk [vmem:[#allocation2 + $0x108] sm:$0xff] %vm275_vm0, %v2660_v0 }
  0x23   : > { %311 = vst.msk [vmem:[#allocation2 + $0x110] sm:$0xff] %vm275_vm0, %v2660_v0 }
  0x24   : > { %313 = vst.msk [vmem:[#allocation2 + $0x120] sm:$0xff] %vm275_vm0, %v2660_v0 }
  0x25   : > { %314 = vst.msk [vmem:[#allocation2 + $0x128] sm:$0xff] %vm275_vm0, %v2660_v0 }
  0x26   : > { %316 = vst.msk [vmem:[#allocation2 + $0x138] sm:$0xff] %vm275_vm0, %v2660_v0 }
  0x27   : > { %317 = vst.msk [vmem:[#allocation2 + $0x140] sm:$0xff] %vm275_vm0, %v2660_v0 }
  0x28   : > { %319 = vst.msk [vmem:[#allocation2 + $0x150] sm:$0xff] %vm275_vm0, %v2660_v0 }
  0x29   : > { %320 = vst.msk [vmem:[#allocation2 + $0x158] sm:$0xff] %vm275_vm0, %v2660_v0 }
  0x2a   : > { %322 = vst.msk [vmem:[#allocation2 + $0x168] sm:$0xff] %vm275_vm0, %v2660_v0 }
  0x2b   : > { %323 = vst.msk [vmem:[#allocation2 + $0x170] sm:$0xff] %vm275_vm0, %v2660_v0 }
  0x2c   : > { %325 = vst.msk [vmem:[#allocation2 + $0x180] sm:$0xff] %vm275_vm0, %v2660_v0 }
  0x2d   : > { %326 = vst.msk [vmem:[#allocation2 + $0x188] sm:$0xff] %vm275_vm0, %v2660_v0 }
  0x2e   : > { %328 = vst.msk [vmem:[#allocation2 + $0x198] sm:$0xff] %vm275_vm0, %v2660_v0 }
  0x2f   : > { %329 = vst.msk [vmem:[#allocation2 + $0x1a0] sm:$0xff] %vm275_vm0, %v2660_v0 }
  0x30   : > { %332 = vst.msk [vmem:[#allocation2 + $0x19] sm:$0xff] %vm275_vm0, %v243_v2 }
  0x31   : > { %279 = vst.msk [vmem:[#allocation2 + $0x10] sm:$0x3] %vm278_vm1, %v2660_v0 }
  0x32   : > { %282 = vst.msk [vmem:[#allocation2 + $0x28] sm:$0x3] %vm278_vm1, %v2660_v0 }
  0x33   : > { %285 = vst.msk [vmem:[#allocation2 + $0x40] sm:$0x3] %vm278_vm1, %v2660_v0 }
  0x34   : > { %288 = vst.msk [vmem:[#allocation2 + $0x58] sm:$0x3] %vm278_vm1, %v2660_v0 }
  0x35   : > { %291 = vst.msk [vmem:[#allocation2 + $0x70] sm:$0x3] %vm278_vm1, %v2660_v0 }
  0x36   : > { %294 = vst.msk [vmem:[#allocation2 + $0x88] sm:$0x3] %vm278_vm1, %v2660_v0 }
  0x37   : > { %v2807_v3 = vld [vmem:[#allocation2 + $0x19] sm:$0xff]  ;;  %297 = vst.msk [vmem:[#allocation2 + $0xa0] sm:$0x3] %vm278_vm1, %v2660_v0 }
  0x38   : > { %496 = vrot.lane.b32.xlu1 %v2807_v3, %s2661_s20  ;;  %v429_v4 = vld [vmem:[#allocation2 + $0x9] sm:$0xff]  ;;  %300 = vst.msk [vmem:[#allocation2 + $0xb8] sm:$0x3] %vm278_vm1, %v2660_v0 }
  0x39   : > { %494 = vrot.lane.b32.xlu0 %v429_v4, %s2661_s20  ;;  %303 = vst.msk [vmem:[#allocation2 + $0xd0] sm:$0x3] %vm278_vm1, %v2660_v0 }
  0x3a   : > { %306 = vst.msk [vmem:[#allocation2 + $0xe8] sm:$0x3] %vm278_vm1, %v2660_v0 }
  0x3b   : > { %309 = vst.msk [vmem:[#allocation2 + $0x100] sm:$0x3] %vm278_vm1, %v2660_v0 }
  0x3c   : > { %312 = vst.msk [vmem:[#allocation2 + $0x118] sm:$0x3] %vm278_vm1, %v2660_v0 }
  0x3d   : > { %315 = vst.msk [vmem:[#allocation2 + $0x130] sm:$0x3] %vm278_vm1, %v2660_v0 }
  0x3e   : > { %318 = vst.msk [vmem:[#allocation2 + $0x148] sm:$0x3] %vm278_vm1, %v2660_v0 }
  0x3f   : > { %321 = vst.msk [vmem:[#allocation2 + $0x160] sm:$0x3] %vm278_vm1, %v2660_v0 }
  0x40   : > { %324 = vst.msk [vmem:[#allocation2 + $0x178] sm:$0x3] %vm278_vm1, %v2660_v0 }
  0x41   : > { %327 = vst.msk [vmem:[#allocation2 + $0x190] sm:$0x3] %vm278_vm1, %v2660_v0 }
  0x42   : > { %330 = vst.msk [vmem:[#allocation2 + $0x1a8] sm:$0x3] %vm278_vm1, %v2660_v0 }
  0x43   : > { %333 = vst.msk [vmem:[#allocation2 + $0x21] sm:$0xff] %vm275_vm0, %v244_v5  ;;  %v622_v5 = vld [vmem:[#allocation2 + $0xa] sm:$0xff] }
  0x44   : > { %336 = vst.msk [vmem:[#allocation2 + $0x49] sm:$0xff] %vm275_vm0, %v247_v6 }
  0x45   : > { %337 = vst.msk [vmem:[#allocation2 + $0x51] sm:$0xff] %vm275_vm0, %v248_v7 }
  0x46   : > { %339 = vst.msk [vmem:[#allocation2 + $0x69] sm:$0xff] %vm275_vm0, %v250_v8  ;;  %v2988_v8 = vld [vmem:[#allocation2 + $0x18] sm:$0xff] }
  0x47   : > { %334 = vst.msk [vmem:[#allocation2 + $0x31] sm:$0xff] %vm275_vm0, %v245_v9  ;;  %v365_v9 = vld [vmem:[#allocation2 + $0x8] sm:$0xff] }
  0x48   : > { %340 = vst.msk [vmem:[#allocation2 + $0x79] sm:$0xff] %vm275_vm0, %v251_v10 }
  0x49   : > { %342 = vst.msk [vmem:[#allocation2 + $0x91] sm:$0xff] %vm275_vm0, %v253_v11 }
  0x4a   : > { %v2853_v15 = vld [vmem:[#allocation2 + $0x21] sm:$0xff]  ;;  %335 = vst.msk [vmem:[#allocation2 + $0x39] sm:$0xff] %vm275_vm0, %v246_v12 }
  0x4b   : > { %498 = vrot.lane.b32.xlu1 %v2853_v15, %s2661_s20  ;;  %v2859_v17 = vld [vmem:[#allocation2 + $0x49] sm:$0xff]  ;;  %343 = vst.msk [vmem:[#allocation2 + $0x99] sm:$0xff] %vm275_vm0, %v254_v13  ;;  %v2998_v11 = vld [vmem:[#allocation2 + $0x1a] sm:$0xff] }
  0x4c   : > { %504 = vrot.lane.b32.xlu0 %v2859_v17, %s2661_s20  ;;  %345 = vst.msk [vmem:[#allocation2 + $0xb1] sm:$0xff] %vm275_vm0, %v256_v14  ;;  %v2877_v24 = vld [vmem:[#allocation2 + $0x51] sm:$0xff]  ;;  %v621_v12 = vld [vmem:[#allocation2 + $0x2] sm:$0xff] }
  0x4d   : > { %338 = vst.msk [vmem:[#allocation2 + $0x61] sm:$0xff] %vm275_vm0, %v249_v16  ;;  %v2880_v25 = vld [vmem:[#allocation2 + $0x69] sm:$0xff]  ;;  %v2969_v59 = vld [vmem:[#allocation2 + $0x52] sm:$0xff]  ;;  %v3008_v14 = vld [vmem:[#allocation2 + $0x20] sm:$0xff] }
  0x4e   : > { %v2869_v21 = vld [vmem:[#allocation2 + $0x31] sm:$0xff]  ;;  %346 = vst.msk [vmem:[#allocation2 + $0xc1] sm:$0xff] %vm275_vm0, %v257_v18  ;;  %v3014_v16 = vld [vmem:[#allocation2 + $0x48] sm:$0xff] }
  0x4f   : > { %500 = vrot.lane.b32.xlu2 %v2869_v21, %s2661_s20  ;;  %348 = vst.msk [vmem:[#allocation2 + $0xd9] sm:$0xff] %vm275_vm0, %v259_v19  ;;  %v2898_v30 = vld [vmem:[#allocation2 + $0x79] sm:$0xff]  ;;  %v2986_v7 = vld [vmem:[#allocation2 + $0x30] sm:$0xff]  ;;  %v3024_v19 = vld [vmem:[#allocation2 + $0x22] sm:$0xff] }
  0x50   : > { %341 = vst.msk [vmem:[#allocation2 + $0x81] sm:$0xff] %vm275_vm0, %v252_v20  ;;  %v2900_v31 = vld [vmem:[#allocation2 + $0x91] sm:$0xff] }
  0x51   : > { %349 = vst.msk [vmem:[#allocation2 + $0xe1] sm:$0xff] %vm275_vm0, %v260_v22  ;;  %v2891_v28 = vld [vmem:[#allocation2 + $0x39] sm:$0xff]  ;;  %v2996_v10 = vld [vmem:[#allocation2 + $0x4a] sm:$0xff] }
  0x52   : > { %351 = vst.msk [vmem:[#allocation2 + $0xf9] sm:$0xff] %vm275_vm0, %v262_v23  ;;  %v2916_v36 = vld [vmem:[#allocation2 + $0x99] sm:$0xff]  ;;  %v630_v18 = vld [vmem:[#allocation2 + $0x6a] sm:$0xff] }
  0x53   : > { %506 = vrot.lane.b32.xlu1 %v2877_v24, %s2661_s20  ;;  %344 = vst.msk [vmem:[#allocation2 + $0xa9] sm:$0xff] %vm275_vm0, %v255_v26  ;;  %v443_v37 = vld [vmem:[#allocation2 + $0xb1] sm:$0xff]  ;;  %v2960_v56 = vld [vmem:[#allocation2 + $0x3a] sm:$0xff] }
  0x54   : > { %510 = vrot.lane.b32.xlu0 %v2880_v25, %s2661_s20  ;;  %352 = vst.msk [vmem:[#allocation2 + $0x109] sm:$0xff] %vm275_vm0, %v263_v27  ;;  %v2909_v34 = vld [vmem:[#allocation2 + $0x61] sm:$0xff]  ;;  %v2954_v54 = vld [vmem:[#allocation2 + $0x32] sm:$0xff] }
  0x55   : > { %354 = vst.msk [vmem:[#allocation2 + $0x121] sm:$0xff] %vm275_vm0, %v265_v29  ;;  %v444_v42 = vld [vmem:[#allocation2 + $0xc1] sm:$0xff]  ;;  %v3006_v13 = vld [vmem:[#allocation2 + $0x38] sm:$0xff]  ;;  %v3028_v22 = vld [vmem:[#allocation2 + $0x50] sm:$0xff] }
  0x56   : > { %347 = vst.msk [vmem:[#allocation2 + $0xc9] sm:$0xff] %vm275_vm0, %v258_v32  ;;  %v2931_v43 = vld [vmem:[#allocation2 + $0xd9] sm:$0xff]  ;;  %v2972_v61 = vld [vmem:[#allocation2 + $0x62] sm:$0xff] }
  0x57   : > { %502 = vrot.lane.b32.xlu2 %v2891_v28, %s2661_s20  ;;  %355 = vst.msk [vmem:[#allocation2 + $0x129] sm:$0xff] %vm275_vm0, %v266_v33  ;;  %v2924_v40 = vld [vmem:[#allocation2 + $0x81] sm:$0xff] }
  0x58   : > { %357 = vst.msk [vmem:[#allocation2 + $0x141] sm:$0xff] %vm275_vm0, %v268_v35  ;;  %v2941_v47 = vld [vmem:[#allocation2 + $0xe1] sm:$0xff]  ;;  %v3048_v35 = vld [vmem:[#allocation2 + $0x78] sm:$0xff] }
  0x59   : > { %350 = vst.msk [vmem:[#allocation2 + $0xf1] sm:$0xff] %vm275_vm0, %v261_v38  ;;  %v2943_v48 = vld [vmem:[#allocation2 + $0xf9] sm:$0xff]  ;;  %v3034_v23 = vld [vmem:[#allocation2 + $0x68] sm:$0xff] }
  0x5a   : > { %358 = vst.msk [vmem:[#allocation2 + $0x151] sm:$0xff] %vm275_vm0, %v269_v39  ;;  %v442_v46 = vld [vmem:[#allocation2 + $0xa9] sm:$0xff]  ;;  %v3026_v20 = vld [vmem:[#allocation2 + $0x60] sm:$0xff] }
  0x5b   : > { %512 = vrot.lane.b32.xlu1 %v2898_v30, %s2661_s20  ;;  %360 = vst.msk [vmem:[#allocation2 + $0x169] sm:$0xff] %vm275_vm0, %v271_v41  ;;  %v450_v51 = vld [vmem:[#allocation2 + $0x109] sm:$0xff]  ;;  %v631_v26 = vld [vmem:[#allocation2 + $0x7a] sm:$0xff] }
  0x5c   : > { %516 = vrot.lane.b32.xlu0 %v2900_v31, %s2661_s20  ;;  %353 = vst.msk [vmem:[#allocation2 + $0x111] sm:$0xff] %vm275_vm0, %v264_v44  ;;  %v452_v52 = vld [vmem:[#allocation2 + $0x121] sm:$0xff]  ;;  %v3065_v44 = vld [vmem:[#allocation2 + $0x98] sm:$0xff] }
  0x5d   : > { %361 = vst.msk [vmem:[#allocation2 + $0x171] sm:$0xff] %vm275_vm0, %v272_v45  ;;  %v445_v50 = vld [vmem:[#allocation2 + $0xc9] sm:$0xff]  ;;  %v3046_v33 = vld [vmem:[#allocation2 + $0x80] sm:$0xff] }
  0x5e   : > { %356 = vst.msk [vmem:[#allocation2 + $0x139] sm:$0xff] %vm275_vm0, %v267_v49  ;;  %v453_v57 = vld [vmem:[#allocation2 + $0x129] sm:$0xff]  ;;  %v634_v39 = vld [vmem:[#allocation2 + $0x9a] sm:$0xff] }
  0x5f   : > { %508 = vrot.lane.b32.xlu2 %v2909_v34, %s2661_s20  ;;  %359 = vst.msk [vmem:[#allocation2 + $0x159] sm:$0xff] %vm275_vm0, %v270_v53  ;;  %v455_v58 = vld [vmem:[#allocation2 + $0x141] sm:$0xff]  ;;  %v3071_v45 = vld [vmem:[#allocation2 + $0xb0] sm:$0xff] }
  0x60   : > { %v2958_v55 = vld [vmem:[#allocation2 + $0xf1] sm:$0xff]  ;;  %1812 = vst.msk [vmem:[#allocation3 + $0x8] sm:$0xff] %vm275_vm0, %v2954_v54  ;;  %v632_v38 = vld [vmem:[#allocation2 + $0x82] sm:$0xff] }
  0x61   : > { %1813 = vst.msk [vmem:[#allocation3 + $0x18] sm:$0xff] %vm275_vm0, %v2960_v56  ;;  %v456_v62 = vld [vmem:[#allocation2 + $0x151] sm:$0xff]  ;;  %v637_v49 = vld [vmem:[#allocation2 + $0xc2] sm:$0xff] }
  0x62   : > { %1815 = vst.msk [vmem:[#allocation3 + $0x38] sm:$0xff] %vm275_vm0, %v2969_v59  ;;  %v458_v63 = vld [vmem:[#allocation2 + $0x169] sm:$0xff] }
  0x63   : > { %518 = vrot.lane.b32.xlu1 %v2916_v36, %s2661_s20  ;;  %v451_v60 = vld [vmem:[#allocation2 + $0x111] sm:$0xff]  ;;  %1816 = vst.msk [vmem:[#allocation3 + $0x48] sm:$0xff] %vm275_vm0, %v2972_v61 }
  0x64   : > { %522 = vrot.lane.b32.xlu0 %v443_v37, %s2661_s20  ;;  %396 = vst.msk [vmem:[#allocation3] sm:$0xff] %vm275_vm0, %v364_v1  ;;  %v459_v4 = vld [vmem:[#allocation2 + $0x171] sm:$0xff] }
  0x65   : > { %v454_v0 = vld [vmem:[#allocation2 + $0x139] sm:$0xff]  ;;  %400 = vst.msk [vmem:[#allocation3 + $0x40] sm:$0xff] %vm275_vm0, %v2986_v7  ;;  %v3054_v37 = vld [vmem:[#allocation2 + $0x90] sm:$0xff] }
  0x66   : > { %v457_v6 = vld [vmem:[#allocation2 + $0x159] sm:$0xff]  ;;  %398 = vst.msk [vmem:[#allocation3 + $0x20] sm:$0xff] %vm275_vm0, %v2988_v8 }
  0x67   : > { %514 = vrot.lane.b32.xlu2 %v2924_v40, %s2661_s20  ;;  %397 = vst.msk [vmem:[#allocation3 + $0x10] sm:$0xff] %vm275_vm0, %v365_v9  ;;  %v636_v1 = vld [vmem:[#allocation2 + $0xb2] sm:$0xff] }
  0x68   : > { %1814 = vst.msk [vmem:[#allocation3 + $0x28] sm:$0xff] %vm275_vm0, %v2996_v10  ;;  %v3107_v9 = vld [vmem:[#allocation2 + $0xf8] sm:$0xff] }
  0x69   : > { %401 = vst.msk [vmem:[#allocation3 + $0x50] sm:$0xff] %vm275_vm0, %v3006_v13 }
  0x6a   : > { %399 = vst.msk [vmem:[#allocation3 + $0x30] sm:$0xff] %vm275_vm0, %v3008_v14 }
  0x6b   : > { %524 = vrot.lane.b32.xlu1 %v444_v42, %s2661_s20  ;;  %402 = vst.msk [vmem:[#allocation3 + $0x60] sm:$0xff] %vm275_vm0, %v3014_v16  ;;  %v3063_v42 = vld [vmem:[#allocation2 + $0xa8] sm:$0xff] }
  0x6c   : > { %528 = vrot.lane.b32.xlu0 %v2931_v43, %s2661_s20  ;;  %1817 = vst.msk [vmem:[#allocation3 + $0x58] sm:$0xff] %vm275_vm0, %v630_v18 }
  0x6d   : > { %404 = vst.msk [vmem:[#allocation3 + $0x80] sm:$0xff] %vm275_vm0, %v3026_v20 }
  0x6e   : > { %403 = vst.msk [vmem:[#allocation3 + $0x70] sm:$0xff] %vm275_vm0, %v3028_v22 }
  0x6f   : > { %520 = vrot.lane.b32.xlu2 %v442_v46, %s2661_s20  ;;  %405 = vst.msk [vmem:[#allocation3 + $0x90] sm:$0xff] %vm275_vm0, %v3034_v23  ;;  %v635_v46 = vld [vmem:[#allocation2 + $0xaa] sm:$0xff] }
  0x70   : > { %407 = vst.msk [vmem:[#allocation3 + $0xb0] sm:$0xff] %vm275_vm0, %v3046_v33 }
  0x71   : > { %406 = vst.msk [vmem:[#allocation3 + $0xa0] sm:$0xff] %vm275_vm0, %v3048_v35 }
  0x72   : > { %408 = vst.msk [vmem:[#allocation3 + $0xc0] sm:$0xff] %vm275_vm0, %v3054_v37 }
  0x73   : > { %530 = vrot.lane.b32.xlu1 %v2941_v47, %s2661_s20  ;;  %410 = vst.msk [vmem:[#allocation3 + $0xe0] sm:$0xff] %vm275_vm0, %v3063_v42 }
  0x74   : > { %534 = vrot.lane.b32.xlu0 %v2943_v48, %s2661_s20  ;;  %409 = vst.msk [vmem:[#allocation3 + $0xd0] sm:$0xff] %vm275_vm0, %v3065_v44 }
  0x75   : > { %411 = vst.msk [vmem:[#allocation3 + $0xf0] sm:$0xff] %vm275_vm0, %v3071_v45 }
  0x76   : > { %417 = vst.msk [vmem:[#allocation3 + $0x150] sm:$0xff] %vm275_vm0, %v3107_v9 }
  0x77   : > { %526 = vrot.lane.b32.xlu2 %v445_v50, %s2661_s20 }
  0x7b   : > { %536 = vrot.lane.b32.xlu1 %v450_v51, %s2661_s20  ;;  %v633_v51 = vld [vmem:[#allocation2 + $0x92] sm:$0xff] }
  0x7c   : > { %540 = vrot.lane.b32.xlu0 %v452_v52, %s2661_s20  ;;  %v3079_v52 = vld [vmem:[#allocation2 + $0xc8] sm:$0xff] }
  0x7d   : > { %413 = vst.msk [vmem:[#allocation3 + $0x110] sm:$0xff] %vm275_vm0, %v3079_v52 }
  0x7f   : > { %532 = vrot.lane.b32.xlu2 %v2958_v55, %s2661_s20 }
  0x83   : > { %542 = vrot.lane.b32.xlu1 %v453_v57, %s2661_s20  ;;  %v3083_v57 = vld [vmem:[#allocation2 + $0xc0] sm:$0xff] }
  0x84   : > { %546 = vrot.lane.b32.xlu0 %v455_v58, %s2661_s20  ;;  %412 = vst.msk [vmem:[#allocation3 + $0x100] sm:$0xff] %vm275_vm0, %v3083_v57 }
  0x87   : > { %538 = vrot.lane.b32.xlu2 %v451_v60, %s2661_s20  ;;  %v493_v2 = vpop.permute.xlu0 %492  ;;  %v3086_v60 = vld [vmem:[#allocation2 + $0xd8] sm:$0xff] }
  0x88   : > { %589 = vst.msk [vmem:[#allocation3] sm:$0xff] %vm588_vm2, %v493_v2  ;;  %v3100_v2 = vld [vmem:[#allocation2 + $0xf0] sm:$0xff] }
  0x89   : > { %414 = vst.msk [vmem:[#allocation3 + $0x120] sm:$0xff] %vm275_vm0, %v3086_v60 }
  0x8a   : > { %416 = vst.msk [vmem:[#allocation3 + $0x140] sm:$0xff] %vm275_vm0, %v3100_v2 }
  0x8b   : > { %548 = vrot.lane.b32.xlu1 %v456_v62, %s2661_s20  ;;  %v638_v62 = vld [vmem:[#allocation2 + $0xca] sm:$0xff] }
  0x8c   : > { %552 = vrot.lane.b32.xlu0 %v458_v63, %s2661_s20  ;;  %v3092_v63 = vld [vmem:[#allocation2 + $0xe2] sm:$0xff] }
  0x8f   : > { %544 = vrot.lane.b32.xlu2 %v454_v0, %s2661_s20 }
  0x93   : > { %554 = vrot.lane.b32.xlu1 %v459_v4, %s2661_s20 }
  0x94   : > { %687 = vrot.lane.b32.xlu0 %v622_v5, %s2662_s25  ;;  %v3104_v5 = vld [vmem:[#allocation2 + $0xe0] sm:$0xff] }
  0x95   : > { %415 = vst.msk [vmem:[#allocation3 + $0x130] sm:$0xff] %vm275_vm0, %v3104_v5 }
  0x97   : > { %550 = vrot.lane.b32.xlu2 %v457_v6, %s2661_s20 }
  0x9b   : > { %689 = vrot.lane.b32.xlu1 %v2998_v11, %s2662_s25 }
  0x9c   : > { %693 = vrot.lane.b32.xlu0 %v2954_v54, %s2662_s25 }
  0x9f   : > { %685 = vrot.lane.b32.xlu2 %v621_v12, %s2662_s25  ;;  %v3111_v12 = vld [vmem:[#allocation2 + $0xf2] sm:$0xff] }
  0xa3   : > { %695 = vrot.lane.b32.xlu1 %v2960_v56, %s2662_s25 }
  0xa4   : > { %699 = vrot.lane.b32.xlu0 %v2969_v59, %s2662_s25 }
  0xa7   : > { %691 = vrot.lane.b32.xlu2 %v3024_v19, %s2662_s25 }
  0xa9   : > { %v501_v27 = vpop.permute.xlu2 %500 }
  0xaa   : > { %593 = vst.msk [vmem:[#allocation3 + $0x40] sm:$0xff] %vm588_vm2, %v501_v27  ;;  %v497_v29 = vpop.permute.xlu1 %496  ;;  %v3124_v27 = vld [vmem:[#allocation2 + $0xda] sm:$0xff] }
  0xab   : > { %701 = vrot.lane.b32.xlu1 %v2972_v61, %s2662_s25  ;;  %591 = vst.msk [vmem:[#allocation3 + $0x20] sm:$0xff] %vm588_vm2, %v497_v29  ;;  %v495_v32 = vpop.permute.xlu0 %494  ;;  %v3126_v29 = vld [vmem:[#allocation2 + $0x110] sm:$0xff] }
  0xac   : > { %705 = vrot.lane.b32.xlu0 %v631_v26, %s2662_s25  ;;  %590 = vst.msk [vmem:[#allocation3 + $0x10] sm:$0xff] %vm588_vm2, %v495_v32 }
  0xad   : > { %419 = vst.msk [vmem:[#allocation3 + $0x170] sm:$0xff] %vm275_vm0, %v3126_v29 }
  0xaf   : > { %697 = vrot.lane.b32.xlu2 %v2996_v10, %s2662_s25 }
  0xb1   : > { %v503_v41 = vpop.permute.xlu2 %502 }
  0xb2   : > { %594 = vst.msk [vmem:[#allocation3 + $0x50] sm:$0xff] %vm588_vm2, %v503_v41  ;;  %v3133_v41 = vld [vmem:[#allocation2 + $0x120] sm:$0xff] }
  0xb3   : > { %707 = vrot.lane.b32.xlu1 %v632_v38, %s2662_s25  ;;  %v3130_v38 = vld [vmem:[#allocation2 + $0x108] sm:$0xff]  ;;  %420 = vst.msk [vmem:[#allocation3 + $0x180] sm:$0xff] %vm275_vm0, %v3133_v41 }
  0xb4   : > { %711 = vrot.lane.b32.xlu0 %v634_v39, %s2662_s25  ;;  %418 = vst.msk [vmem:[#allocation3 + $0x160] sm:$0xff] %vm275_vm0, %v3130_v38 }
  0xb7   : > { %703 = vrot.lane.b32.xlu2 %v630_v18, %s2662_s25  ;;  %v3115_v18 = vld [vmem:[#allocation2 + $0x10a] sm:$0xff] }
  0xb8   : > { %4095 = vst [vmem:[#allocation4_spill] sm:$0xff] %v3115_v18 }
  0xb9   : > { %v509_v50 = vpop.permute.xlu2 %508 }
  0xba   : > { %597 = vst.msk [vmem:[#allocation3 + $0x80] sm:$0xff] %vm588_vm2, %v509_v50 }
  0xbb   : > { %713 = vrot.lane.b32.xlu1 %v635_v46, %s2662_s25  ;;  %v3138_v46 = vld [vmem:[#allocation2 + $0x112] sm:$0xff] }
  0xbc   : > { %717 = vrot.lane.b32.xlu0 %v637_v49, %s2662_s25  ;;  %4096 = vst [vmem:[#allocation5_spill] sm:$0xff] %v3138_v46  ;;  %v646_v49 = vld [vmem:[#allocation2 + $0x12a] sm:$0xff] }
  0xbd   : > { %v499_v53 = vpop.permute.xlu1 %498 }
  0xbe   : > { %592 = vst.msk [vmem:[#allocation3 + $0x30] sm:$0xff] %vm588_vm2, %v499_v53  ;;  %v505_v58 = vpop.permute.xlu0 %504  ;;  %v3150_v53 = vld [vmem:[#allocation2 + $0x138] sm:$0xff] }
  0xbf   : > { %595 = vst.msk [vmem:[#allocation3 + $0x60] sm:$0xff] %vm588_vm2, %v505_v58  ;;  %709 = vrot.lane.b32.xlu2 %v633_v51, %s2662_s25  ;;  %v3148_v51 = vld [vmem:[#allocation2 + $0xfa] sm:$0xff] }
  0xc0   : > { %422 = vst.msk [vmem:[#allocation3 + $0x1a0] sm:$0xff] %vm275_vm0, %v3150_v53 }
  0xc1   : > { %v515_v0 = vpop.permute.xlu2 %514 }
  0xc2   : > { %600 = vst.msk [vmem:[#allocation3 + $0xb0] sm:$0xff] %vm588_vm2, %v515_v0 }
  0xc3   : > { %719 = vrot.lane.b32.xlu1 %v638_v62, %s2662_s25  ;;  %v3154_v62 = vld [vmem:[#allocation2 + $0x128] sm:$0xff] }
  0xc4   : > { %723 = vrot.lane.b32.xlu0 %v3092_v63, %s2662_s25  ;;  %421 = vst.msk [vmem:[#allocation3 + $0x190] sm:$0xff] %vm275_vm0, %v3154_v62 }
  0xc5   : > { %v507_v4 = vpop.permute.xlu1 %506 }
  0xc6   : > { %596 = vst.msk [vmem:[#allocation3 + $0x70] sm:$0xff] %vm588_vm2, %v507_v4  ;;  %v511_v6 = vpop.permute.xlu0 %510  ;;  %v647_v4 = vld [vmem:[#allocation2 + $0x13a] sm:$0xff] }
  0xc7   : > { %598 = vst.msk [vmem:[#allocation3 + $0x90] sm:$0xff] %vm588_vm2, %v511_v6  ;;  %715 = vrot.lane.b32.xlu2 %v636_v1, %s2662_s25  ;;  %v3157_v1 = vld [vmem:[#allocation2 + $0x140] sm:$0xff]  ;;  %v649_v6 = vld [vmem:[#allocation2 + $0x152] sm:$0xff] }
  0xc8   : > { %423 = vst.msk [vmem:[#allocation3 + $0x1b0] sm:$0xff] %vm275_vm0, %v3157_v1 }
  0xc9   : > { %v521_v26 = vpop.permute.xlu2 %520 }
  0xca   : > { %603 = vst.msk [vmem:[#allocation3 + $0xe0] sm:$0xff] %vm588_vm2, %v521_v26 }
  0xcb   : > { %725 = vrot.lane.b32.xlu1 %v3111_v12, %s2662_s25 }
  0xcc   : > { %729 = vrot.lane.b32.xlu0 %v3115_v18, %s2662_s25 }
  0xcd   : > { %v513_v32 = vpop.permute.xlu1 %512 }
  0xce   : > { %599 = vst.msk [vmem:[#allocation3 + $0xa0] sm:$0xff] %vm588_vm2, %v513_v32  ;;  %v517_v39 = vpop.permute.xlu0 %516  ;;  %v645_v32 = vld [vmem:[#allocation2 + $0x122] sm:$0xff] }
  0xcf   : > { %601 = vst.msk [vmem:[#allocation3 + $0xc0] sm:$0xff] %vm588_vm2, %v517_v39  ;;  %721 = vrot.lane.b32.xlu2 %v3124_v27, %s2662_s25  ;;  %v3169_v39 = vld [vmem:[#allocation2 + $0x158] sm:$0xff] }
  0xd0   : > { %425 = vst.msk [vmem:[#allocation3 + $0x1d0] sm:$0xff] %vm275_vm0, %v3169_v39 }
  0xd1   : > { %v527_v50 = vpop.permute.xlu2 %526 }
  0xd2   : > { %606 = vst.msk [vmem:[#allocation3 + $0x110] sm:$0xff] %vm588_vm2, %v527_v50  ;;  %v3173_v50 = vld [vmem:[#allocation2 + $0x150] sm:$0xff] }
  0xd3   : > { %731 = vrot.lane.b32.xlu1 %v3138_v46, %s2662_s25  ;;  %424 = vst.msk [vmem:[#allocation3 + $0x1c0] sm:$0xff] %vm275_vm0, %v3173_v50  ;;  %v3187_v46 = vld [vmem:[#allocation2 + $0x170] sm:$0xff] }
  0xd4   : > { %735 = vrot.lane.b32.xlu0 %v646_v49, %s2662_s25  ;;  %427 = vst.msk [vmem:[#allocation3 + $0x1f0] sm:$0xff] %vm275_vm0, %v3187_v46 }
  0xd5   : > { %v519_v58 = vpop.permute.xlu1 %518 }
  0xd6   : > { %602 = vst.msk [vmem:[#allocation3 + $0xd0] sm:$0xff] %vm588_vm2, %v519_v58  ;;  %v523_v0 = vpop.permute.xlu0 %522 }
  0xd7   : > { %604 = vst.msk [vmem:[#allocation3 + $0xf0] sm:$0xff] %vm588_vm2, %v523_v0  ;;  %727 = vrot.lane.b32.xlu2 %v3148_v51, %s2662_s25  ;;  %v3176_v0 = vld [vmem:[#allocation2 + $0x168] sm:$0xff] }
  0xd8   : > { %426 = vst.msk [vmem:[#allocation3 + $0x1e0] sm:$0xff] %vm275_vm0, %v3176_v0 }
  0xd9   : > { %v533_v26 = vpop.permute.xlu2 %532 }
  0xda   : > { %609 = vst.msk [vmem:[#allocation3 + $0x140] sm:$0xff] %vm588_vm2, %v533_v26 }
  0xdb   : > { %737 = vrot.lane.b32.xlu1 %v647_v4, %s2662_s25  ;;  %v650_v4 = vld [vmem:[#allocation2 + $0x15a] sm:$0xff] }
  0xdc   : > { %741 = vrot.lane.b32.xlu0 %v649_v6, %s2662_s25  ;;  %v652_v6 = vld [vmem:[#allocation2 + $0x172] sm:$0xff] }
  0xdd   : > { %v525_v49 = vpop.permute.xlu1 %524 }
  0xde   : > { %605 = vst.msk [vmem:[#allocation3 + $0x100] sm:$0xff] %vm588_vm2, %v525_v49  ;;  %v529_v58 = vpop.permute.xlu0 %528  ;;  %v648_v49 = vld [vmem:[#allocation2 + $0x142] sm:$0xff] }
  0xdf   : > { %607 = vst.msk [vmem:[#allocation3 + $0x120] sm:$0xff] %vm588_vm2, %v529_v58  ;;  %733 = vrot.lane.b32.xlu2 %v645_v32, %s2662_s25 }
  0xe1   : > { %v539_v26 = vpop.permute.xlu2 %538 }
  0xe2   : > { %612 = vst.msk [vmem:[#allocation3 + $0x170] sm:$0xff] %vm588_vm2, %v539_v26 }
  0xe3   : > { %743 = vrot.lane.b32.xlu1 %v650_v4, %s2662_s25  ;;  %v651_v4 = vld [vmem:[#allocation2 + $0x16a] sm:$0xff] }
  0xe4   : > { %747 = vrot.lane.b32.xlu0 %v652_v6, %s2662_s25 }
  0xe5   : > { %v531_v58 = vpop.permute.xlu1 %530 }
  0xe6   : > { %608 = vst.msk [vmem:[#allocation3 + $0x130] sm:$0xff] %vm588_vm2, %v531_v58  ;;  %v535_v32 = vpop.permute.xlu0 %534 }
  0xe7   : > { %610 = vst.msk [vmem:[#allocation3 + $0x150] sm:$0xff] %vm588_vm2, %v535_v32  ;;  %739 = vrot.lane.b32.xlu2 %v648_v49, %s2662_s25 }
  0xe9   : > { %v545_v18 = vpop.permute.xlu2 %544 }
  0xea   : > { %615 = vst.msk [vmem:[#allocation3 + $0x1a0] sm:$0xff] %vm588_vm2, %v545_v18 }
  0xeb   : > { %878 = vrot.lane.b32.xlu1 %v2988_v8, %s2663_s26 }
  0xec   : > { %882 = vrot.lane.b32.xlu0 %v2986_v7, %s2663_s26 }
  0xed   : > { %v537_v6 = vpop.permute.xlu1 %536 }
  0xee   : > { %611 = vst.msk [vmem:[#allocation3 + $0x160] sm:$0xff] %vm588_vm2, %v537_v6  ;;  %v541_v26 = vpop.permute.xlu0 %540 }
  0xef   : > { %613 = vst.msk [vmem:[#allocation3 + $0x180] sm:$0xff] %vm588_vm2, %v541_v26  ;;  %745 = vrot.lane.b32.xlu2 %v651_v4, %s2662_s25 }
  0xf1   : > { %v551_v49 = vpop.permute.xlu2 %550 }
  0xf2   : > { %618 = vst.msk [vmem:[#allocation3 + $0x1d0] sm:$0xff] %vm588_vm2, %v551_v49 }
  0xf3   : > { %884 = vrot.lane.b32.xlu1 %v3006_v13, %s2663_s26 }
  0xf4   : > { %888 = vrot.lane.b32.xlu0 %v3028_v22, %s2663_s26 }
  0xf5   : > { %v543_v8 = vpop.permute.xlu1 %542 }
  0xf6   : > { %614 = vst.msk [vmem:[#allocation3 + $0x190] sm:$0xff] %vm588_vm2, %v543_v8  ;;  %v547_v18 = vpop.permute.xlu0 %546 }
  0xf7   : > { %616 = vst.msk [vmem:[#allocation3 + $0x1b0] sm:$0xff] %vm588_vm2, %v547_v18  ;;  %880 = vrot.lane.b32.xlu2 %v3008_v14, %s2663_s26 }
  0xf9   : > { %v686_v58 = vpop.permute.xlu2 %685 }
  0xfa   : > { %782 = vst.msk [vmem:[#allocation3] sm:$0xff] %vm781_vm3, %v686_v58  ;;  %v273_v58 = vld [vmem:[%s2781_s24 + $0xf0] sm:$0xff] }
  0xfb   : > { %890 = vrot.lane.b32.xlu1 %v3026_v20, %s2663_s26  ;;  %362 = vst.msk [vmem:[#allocation2 + $0x181] sm:$0xff] %vm275_vm0, %v273_v58 }
  0xfc   : > { %894 = vrot.lane.b32.xlu0 %v3048_v35, %s2663_s26 }
  0xfd   : > { %v549_v32 = vpop.permute.xlu1 %548 }
  0xfe   : > { %617 = vst.msk [vmem:[#allocation3 + $0x1c0] sm:$0xff] %vm588_vm2, %v549_v32  ;;  %v553_v4 = vpop.permute.xlu0 %552 }
  0xff   : > { %619 = vst.msk [vmem:[#allocation3 + $0x1e0] sm:$0xff] %vm588_vm2, %v553_v4  ;;  %886 = vrot.lane.b32.xlu2 %v3014_v16, %s2663_s26 }
 0x101   : > { %v692_v14 = vpop.permute.xlu2 %691 }
 0x102   : > { %785 = vst.msk [vmem:[#allocation3 + $0x30] sm:$0xff] %vm781_vm3, %v692_v14 }
 0x103   : > { %896 = vrot.lane.b32.xlu1 %v3046_v33, %s2663_s26 }
 0x104   : > { %900 = vrot.lane.b32.xlu0 %v3065_v44, %s2663_s26 }
 0x105   : > { %v555_v6 = vpop.permute.xlu1 %554 }
 0x106   : > { %620 = vst.msk [vmem:[#allocation3 + $0x1f0] sm:$0xff] %vm588_vm2, %v555_v6  ;;  %v688_v26 = vpop.permute.xlu0 %687 }
 0x107   : > { %783 = vst.msk [vmem:[#allocation3 + $0x10] sm:$0xff] %vm781_vm3, %v688_v26  ;;  %892 = vrot.lane.b32.xlu2 %v3034_v23, %s2663_s26 }
 0x109   : > { %v698_v49 = vpop.permute.xlu2 %697 }
 0x10a   : > { %788 = vst.msk [vmem:[#allocation3 + $0x60] sm:$0xff] %vm781_vm3, %v698_v49 }
 0x10b   : > { %902 = vrot.lane.b32.xlu1 %v3063_v42, %s2663_s26 }
 0x10c   : > { %906 = vrot.lane.b32.xlu0 %v3083_v57, %s2663_s26 }
 0x10d   : > { %v690_v44 = vpop.permute.xlu1 %689 }
 0x10e   : > { %784 = vst.msk [vmem:[#allocation3 + $0x20] sm:$0xff] %vm781_vm3, %v690_v44  ;;  %v694_v8 = vpop.permute.xlu0 %693  ;;  %v844_v44 = vld [vmem:[#allocation2 + $0x180] sm:$0xff] }
 0x10f   : > { %786 = vst.msk [vmem:[#allocation3 + $0x40] sm:$0xff] %vm781_vm3, %v694_v8  ;;  %898 = vrot.lane.b32.xlu2 %v3054_v37, %s2663_s26 }
 0x111   : > { %v704_v18 = vpop.permute.xlu2 %703 }
 0x112   : > { %791 = vst.msk [vmem:[#allocation3 + $0x90] sm:$0xff] %vm781_vm3, %v704_v18 }
 0x113   : > { %908 = vrot.lane.b32.xlu1 %v3079_v52, %s2663_s26 }
 0x114   : > { %912 = vrot.lane.b32.xlu0 %v3104_v5, %s2663_s26 }
 0x115   : > { %v696_v42 = vpop.permute.xlu1 %695 }
 0x116   : > { %787 = vst.msk [vmem:[#allocation3 + $0x50] sm:$0xff] %vm781_vm3, %v696_v42  ;;  %v700_v57 = vpop.permute.xlu0 %699 }
 0x117   : > { %789 = vst.msk [vmem:[#allocation3 + $0x70] sm:$0xff] %vm781_vm3, %v700_v57  ;;  %904 = vrot.lane.b32.xlu2 %v3071_v45, %s2663_s26 }
 0x119   : > { %v710_v37 = vpop.permute.xlu2 %709 }
 0x11a   : > { %794 = vst.msk [vmem:[#allocation3 + $0xc0] sm:$0xff] %vm781_vm3, %v710_v37 }
 0x11b   : > { %914 = vrot.lane.b32.xlu1 %v3100_v2, %s2663_s26 }
 0x11c   : > { %918 = vrot.lane.b32.xlu0 %v3130_v38, %s2663_s26 }
 0x11d   : > { %v702_v52 = vpop.permute.xlu1 %701 }
 0x11e   : > { %790 = vst.msk [vmem:[#allocation3 + $0x80] sm:$0xff] %vm781_vm3, %v702_v52  ;;  %v706_v5 = vpop.permute.xlu0 %705 }
 0x11f   : > { %792 = vst.msk [vmem:[#allocation3 + $0xa0] sm:$0xff] %vm781_vm3, %v706_v5  ;;  %910 = vrot.lane.b32.xlu2 %v3086_v60, %s2663_s26  ;;  %v274_v60 = vld [vmem:[%s2781_s24 + $0xf8] sm:$0xff] }
 0x120   : > { %363 = vst.msk [vmem:[#allocation2 + $0x189] sm:$0xff] %vm275_vm0, %v274_v60  ;;  %v1845_v5 = vld [vmem:[#allocation3 + $0x8] sm:$0xff]  ;;  %v1851_v60 = vld [vmem:[#allocation3 + $0x38] sm:$0xff] }
 0x121   : > { %v716_v45 = vpop.permute.xlu2 %715 }
 0x122   : > { %797 = vst.msk [vmem:[#allocation3 + $0xf0] sm:$0xff] %vm781_vm3, %v716_v45  ;;  %v1847_v45 = vld [vmem:[#allocation3 + $0x18] sm:$0xff] }
 0x123   : > { %920 = vrot.lane.b32.xlu1 %v3126_v29, %s2663_s26 }
 0x124   : > { %924 = vrot.lane.b32.xlu0 %v3154_v62, %s2663_s26 }
 0x125   : > { %v708_v32 = vpop.permute.xlu1 %707 }
 0x126   : > { %793 = vst.msk [vmem:[#allocation3 + $0xb0] sm:$0xff] %vm781_vm3, %v708_v32  ;;  %v712_v4 = vpop.permute.xlu0 %711  ;;  %v1909_v32 = vpack.c.bf16 %v1847_v45, %v1845_v5  ;;  %v3473_v5 = vld [vmem:[#allocation2 + $0xaa] sm:$0xff] }
 0x127   : > { %795 = vst.msk [vmem:[#allocation3 + $0xd0] sm:$0xff] %vm781_vm3, %v712_v4  ;;  %916 = vrot.lane.b32.xlu2 %v3107_v9, %s2663_s26  ;;  %v845_v18 = vld [vmem:[#allocation2 + $0x188] sm:$0xff] }
 0x128   : > { %1822 = vst.msk [vmem:[#allocation3 + $0xa8] sm:$0xff] %vm275_vm0, %v3473_v5 }
 0x129   : > { %v722_v14 = vpop.permute.xlu2 %721 }
 0x12a   : > { %800 = vst.msk [vmem:[#allocation3 + $0x120] sm:$0xff] %vm781_vm3, %v722_v14  ;;  %v1849_v14 = vld [vmem:[#allocation3 + $0x28] sm:$0xff] }
 0x12b   : > { %926 = vrot.lane.b32.xlu1 %v3150_v53, %s2663_s26 }
 0x12c   : > { %930 = vrot.lane.b32.xlu0 %v3173_v50, %s2663_s26 }
 0x12d   : > { %v714_v6 = vpop.permute.xlu1 %713 }
 0x12e   : > { %796 = vst.msk [vmem:[#allocation3 + $0xe0] sm:$0xff] %vm781_vm3, %v714_v6  ;;  %v718_v26 = vpop.permute.xlu0 %717 }
 0x12f   : > { %798 = vst.msk [vmem:[#allocation3 + $0x100] sm:$0xff] %vm781_vm3, %v718_v26  ;;  %922 = vrot.lane.b32.xlu2 %v3133_v41, %s2663_s26  ;;  %v1911_v26 = vpack.c.bf16 %v1851_v60, %v1849_v14  ;;  %v4097_v60 = vld [vmem:[#allocation4_spill] sm:$0xff] }
 0x131   : > { %v728_v49 = vpop.permute.xlu2 %727 }
 0x132   : > { %803 = vst.msk [vmem:[#allocation3 + $0x150] sm:$0xff] %vm781_vm3, %v728_v49 }
 0x133   : > { %932 = vrot.lane.b32.xlu1 %v3169_v39, %s2663_s26 }
 0x134   : > { %936 = vrot.lane.b32.xlu0 %v3187_v46, %s2663_s26 }
 0x135   : > { %v720_v53 = vpop.permute.xlu1 %719 }
 0x136   : > { %799 = vst.msk [vmem:[#allocation3 + $0x110] sm:$0xff] %vm781_vm3, %v720_v53  ;;  %v724_v50 = vpop.permute.xlu0 %723  ;;  %v1855_v53 = vld [vmem:[#allocation3 + $0x58] sm:$0xff] }
 0x137   : > { %801 = vst.msk [vmem:[#allocation3 + $0x130] sm:$0xff] %vm781_vm3, %v724_v50  ;;  %928 = vrot.lane.b32.xlu2 %v3157_v1, %s2663_s26 }
 0x139   : > { %v734_v8 = vpop.permute.xlu2 %733 }
 0x13a   : > { %806 = vst.msk [vmem:[#allocation3 + $0x180] sm:$0xff] %vm781_vm3, %v734_v8 }
 0x13b   : > { %938 = vrot.lane.b32.xlu1 %v844_v44, %s2663_s26 }
 0x13c   : > { %1071 = vrot.lane.b32.xlu0 %v2807_v3, %s2664_s27 }
 0x13d   : > { %v726_v46 = vpop.permute.xlu1 %725 }
 0x13e   : > { %802 = vst.msk [vmem:[#allocation3 + $0x140] sm:$0xff] %vm781_vm3, %v726_v46  ;;  %v730_v39 = vpop.permute.xlu0 %729 }
 0x13f   : > { %804 = vst.msk [vmem:[#allocation3 + $0x160] sm:$0xff] %vm781_vm3, %v730_v39  ;;  %934 = vrot.lane.b32.xlu2 %v3176_v0, %s2663_s26  ;;  %v3405_v39 = vld [vmem:[#allocation2 + $0x82] sm:$0xff] }
 0x140   : > { %1819 = vst.msk [vmem:[#allocation3 + $0x78] sm:$0xff] %vm275_vm0, %v3405_v39 }
 0x141   : > { %v740_v1 = vpop.permute.xlu2 %739 }
 0x142   : > { %809 = vst.msk [vmem:[#allocation3 + $0x1b0] sm:$0xff] %vm781_vm3, %v740_v1 }
 0x143   : > { %1073 = vrot.lane.b32.xlu1 %v2853_v15, %s2664_s27 }
 0x144   : > { %1077 = vrot.lane.b32.xlu0 %v2891_v28, %s2664_s27 }
 0x145   : > { %v732_v3 = vpop.permute.xlu1 %731 }
 0x146   : > { %805 = vst.msk [vmem:[#allocation3 + $0x170] sm:$0xff] %vm781_vm3, %v732_v3  ;;  %v736_v58 = vpop.permute.xlu0 %735 }
 0x147   : > { %807 = vst.msk [vmem:[#allocation3 + $0x190] sm:$0xff] %vm781_vm3, %v736_v58  ;;  %940 = vrot.lane.b32.xlu2 %v845_v18, %s2663_s26  ;;  %v2624_v58 = vld [vmem:[%s4088_s1 + $0x38] sm:$0xff] }
 0x148   : > { %2064 = vmatpush.bf16.msra.mxu0 %v2624_v58  ;;  %2626 = vmatpush.bf16.msra.mxu2 %v2624_v58 }
 0x149   : > { %v746_v42 = vpop.permute.xlu2 %745 }
 0x14a   : > { %812 = vst.msk [vmem:[#allocation3 + $0x1e0] sm:$0xff] %vm781_vm3, %v746_v42  ;;  %v1859_v42 = vld [vmem:[#allocation3 + $0x78] sm:$0xff] }
 0x14b   : > { %1079 = vrot.lane.b32.xlu1 %v2859_v17, %s2664_s27 }
 0x14c   : > { %1083 = vrot.lane.b32.xlu0 %v2909_v34, %s2664_s27 }
 0x14d   : > { %v738_v15 = vpop.permute.xlu1 %737 }
 0x14e   : > { %808 = vst.msk [vmem:[#allocation3 + $0x1a0] sm:$0xff] %vm781_vm3, %v738_v15  ;;  %v742_v0 = vpop.permute.xlu0 %741 }
 0x14f   : > { %810 = vst.msk [vmem:[#allocation3 + $0x1c0] sm:$0xff] %vm781_vm3, %v742_v0  ;;  %1075 = vrot.lane.b32.xlu2 %v2869_v21, %s2664_s27 }
 0x151   : > { %v881_v57 = vpop.permute.xlu2 %880 }
 0x152   : > { %976 = vst.msk [vmem:[#allocation3 + $0x10] sm:$0xff] %vm974_vm4, %v881_v57  ;;  %v1025_v57 = vld [vmem:[#allocation2 + $0xf1] sm:$0xff] }
 0x153   : > { %1085 = vrot.lane.b32.xlu1 %v2880_v25, %s2664_s27 }
 0x154   : > { %1089 = vrot.lane.b32.xlu0 %v2924_v40, %s2664_s27 }
 0x155   : > { %v744_v34 = vpop.permute.xlu1 %743 }
 0x156   : > { %811 = vst.msk [vmem:[#allocation3 + $0x1d0] sm:$0xff] %vm781_vm3, %v744_v34  ;;  %v748_v37 = vpop.permute.xlu0 %747 }
 0x157   : > { %813 = vst.msk [vmem:[#allocation3 + $0x1f0] sm:$0xff] %vm781_vm3, %v748_v37  ;;  %1081 = vrot.lane.b32.xlu2 %v2877_v24, %s2664_s27  ;;  %v3433_v37 = vld [vmem:[#allocation2 + $0x92] sm:$0xff] }
 0x158   : > { %1820 = vst.msk [vmem:[#allocation3 + $0x88] sm:$0xff] %vm275_vm0, %v3433_v37 }
 0x159   : > { %v887_v52 = vpop.permute.xlu2 %886 }
 0x15a   : > { %979 = vst.msk [vmem:[#allocation3 + $0x40] sm:$0xff] %vm974_vm4, %v887_v52 }
 0x15b   : > { %1091 = vrot.lane.b32.xlu1 %v2900_v31, %s2664_s27 }
 0x15c   : > { %1264 = vrot.lane.b32.xlu0 %v2998_v11, %s2665_s28 }
 0x15d   : > { %v879_v25 = vpop.permute.xlu1 %878 }
 0x15e   : > { %975 = vst.msk [vmem:[#allocation3] sm:$0xff] %vm974_vm4, %v879_v25  ;;  %v883_v40 = vpop.permute.xlu0 %882  ;;  %v3436_v25 = vld [vmem:[#allocation2 + $0x9a] sm:$0xff] }
 0x15f   : > { %977 = vst.msk [vmem:[#allocation3 + $0x20] sm:$0xff] %vm974_vm4, %v883_v40  ;;  %1087 = vrot.lane.b32.xlu2 %v2898_v30, %s2664_s27 }
 0x160   : > { %1821 = vst.msk [vmem:[#allocation3 + $0x98] sm:$0xff] %vm275_vm0, %v3436_v25 }
 0x161   : > { %v893_v24 = vpop.permute.xlu2 %892 }
 0x162   : > { %982 = vst.msk [vmem:[#allocation3 + $0x70] sm:$0xff] %vm974_vm4, %v893_v24  ;;  %v2621_v24 = vld [vmem:[%s4088_s1 + $0x20] sm:$0xff] }
 0x163   : > { %1266 = vrot.lane.b32.xlu1 %v3024_v19, %s2665_s28 }
 0x164   : > { %1460 = vrot.lane.b32.xlu0 %v3006_v13, %s2666_s29 }
 0x165   : > { %v885_v31 = vpop.permute.xlu1 %884 }
 0x166   : > { %978 = vst.msk [vmem:[#allocation3 + $0x30] sm:$0xff] %vm974_vm4, %v885_v31  ;;  %v889_v11 = vpop.permute.xlu0 %888 }
 0x167   : > { %980 = vst.msk [vmem:[#allocation3 + $0x50] sm:$0xff] %vm974_vm4, %v889_v11  ;;  %1093 = vrot.lane.b32.xlu2 %v2916_v36, %s2664_s27 }
 0x169   : > { %v899_v30 = vpop.permute.xlu2 %898 }
 0x16a   : > { %985 = vst.msk [vmem:[#allocation3 + $0xa0] sm:$0xff] %vm974_vm4, %v899_v30  ;;  %v1861_v30 = vld [vmem:[#allocation3 + $0x88] sm:$0xff] }
 0x16b   : > { %1651 = vrot.lane.b32.xlu1 %v2869_v21, %s2667_s30  ;;  %v2625_v21 = vld [vmem:[%s4088_s1 + $0x40] sm:$0xff] }
 0x16c   : > { %1268 = vrot.lane.b32.xlu0 %v2954_v54, %s2665_s28  ;;  %2160 = vmatpush.bf16.msra.mxu1 %v2625_v21 }
 0x16d   : > { %v891_v13 = vpop.permute.xlu1 %890  ;;  %2634 = vmatpush.bf16.msra.mxu3 %v2625_v21  ;;  %v1605_v21 = vld [vmem:[#allocation2 + $0x109] sm:$0xff] }
 0x16e   : > { %981 = vst.msk [vmem:[#allocation3 + $0x60] sm:$0xff] %vm974_vm4, %v891_v13  ;;  %v895_v19 = vpop.permute.xlu0 %894  ;;  %v1863_v13 = vld [vmem:[#allocation3 + $0x98] sm:$0xff] }
 0x16f   : > { %983 = vst.msk [vmem:[#allocation3 + $0x80] sm:$0xff] %vm974_vm4, %v895_v19  ;;  %1458 = vrot.lane.b32.xlu2 %v2986_v7, %s2666_s29  ;;  %2597 = vmatmul.msk.bf16.vlgmr.msra.gmra.mxu1 %vm275_vm0, %v1909_v32 }
 0x171   : > { %v905_v36 = vpop.permute.xlu2 %904 }
 0x172   : > { %988 = vst.msk [vmem:[#allocation3 + $0xd0] sm:$0xff] %vm974_vm4, %v905_v36  ;;  %v1917_v36 = vpack.c.bf16 %v1863_v13, %v1861_v30 }
 0x173   : > { %1270 = vrot.lane.b32.xlu1 %v2960_v56, %s2665_s28 }
 0x174   : > { %1464 = vrot.lane.b32.xlu0 %v3028_v22, %s2666_s29 }
 0x175   : > { %v897_v54 = vpop.permute.xlu1 %896 }
 0x176   : > { %984 = vst.msk [vmem:[#allocation3 + $0x90] sm:$0xff] %vm974_vm4, %v897_v54  ;;  %v901_v7 = vpop.permute.xlu0 %900 }
 0x177   : > { %986 = vst.msk [vmem:[#allocation3 + $0xb0] sm:$0xff] %vm974_vm4, %v901_v7  ;;  %1653 = vrot.lane.b32.xlu2 %v2891_v28, %s2667_s30  ;;  %v3476_v7 = vld [vmem:[#allocation2 + $0xb2] sm:$0xff] }
 0x178   : > { %1823 = vst.msk [vmem:[#allocation3 + $0xb8] sm:$0xff] %vm275_vm0, %v3476_v7 }
 0x179   : > { %v911_v56 = vpop.permute.xlu2 %910 }
 0x17a   : > { %991 = vst.msk [vmem:[#allocation3 + $0x100] sm:$0xff] %vm974_vm4, %v911_v56  ;;  %v2617_v56 = vld [vmem:[%s4088_s1] sm:$0xff] }
 0x17b   : > { %1655 = vrot.lane.b32.xlu1 %v2859_v17, %s2667_s30  ;;  %v1590_v17 = vld [vmem:[#allocation2 + $0x51] sm:$0xff] }
 0x17c   : > { %1103 = vrot.lane.b32.xlu0 %v2931_v43, %s2664_s27 }
 0x17d   : > { %v903_v22 = vpop.permute.xlu1 %902 }
 0x17e   : > { %987 = vst.msk [vmem:[#allocation3 + $0xc0] sm:$0xff] %vm974_vm4, %v903_v22  ;;  %v907_v4 = vpop.permute.xlu0 %906  ;;  %v1207_v22 = vld [vmem:[#allocation2 + $0x6a] sm:$0xff] }
 0x17f   : > { %989 = vst.msk [vmem:[#allocation3 + $0xe0] sm:$0xff] %vm974_vm4, %v907_v4  ;;  %1462 = vrot.lane.b32.xlu2 %v3014_v16, %s2666_s29  ;;  %2598 = vmatmul.msk.bf16.gmra.mxu1 %vm275_vm0, %v1911_v26 }
 0x181   : > { %v917_v28 = vpop.permute.xlu2 %916 }
 0x182   : > { %994 = vst.msk [vmem:[#allocation3 + $0x130] sm:$0xff] %vm974_vm4, %v917_v28 }
 0x183   : > { %1105 = vrot.lane.b32.xlu1 %v2941_v47, %s2664_s27 }
 0x184   : > { %1298 = vrot.lane.b32.xlu0 %v3092_v63, %s2665_s28 }
 0x185   : > { %v909_v43 = vpop.permute.xlu1 %908 }
 0x186   : > { %990 = vst.msk [vmem:[#allocation3 + $0xf0] sm:$0xff] %vm974_vm4, %v909_v43  ;;  %v913_v6 = vpop.permute.xlu0 %912  ;;  %v1867_v43 = vld [vmem:[#allocation3 + $0xb8] sm:$0xff] }
 0x187   : > { %992 = vst.msk [vmem:[#allocation3 + $0x110] sm:$0xff] %vm974_vm4, %v913_v6  ;;  %1657 = vrot.lane.b32.xlu2 %v1590_v17, %s2667_s30  ;;  %v1865_v17 = vld [vmem:[#allocation3 + $0xa8] sm:$0xff] }
 0x188   : > { %v1919_v14 = vpack.c.bf16 %v1867_v43, %v1865_v17  ;;  %v1593_v6 = vld [vmem:[#allocation2 + $0x79] sm:$0xff]  ;;  %v1610_v43 = vld [vmem:[#allocation2 + $0x141] sm:$0xff] }
 0x189   : > { %v923_v16 = vpop.permute.xlu2 %922 }
 0x18a   : > { %997 = vst.msk [vmem:[#allocation3 + $0x160] sm:$0xff] %vm974_vm4, %v923_v16 }
 0x18b   : > { %1490 = vrot.lane.b32.xlu1 %v3100_v2, %s2666_s29 }
 0x18c   : > { %1683 = vrot.lane.b32.xlu0 %v2958_v55, %s2667_s30  ;;  %v1853_v55 = vld [vmem:[#allocation3 + $0x48] sm:$0xff] }
 0x18d   : > { %v915_v47 = vpop.permute.xlu1 %914  ;;  %v1913_v44 = vpack.c.bf16 %v1855_v53, %v1853_v55  ;;  %v3515_v55 = vld [vmem:[#allocation2 + $0x12a] sm:$0xff] }
 0x18e   : > { %993 = vst.msk [vmem:[#allocation3 + $0x120] sm:$0xff] %vm974_vm4, %v915_v47  ;;  %v919_v63 = vpop.permute.xlu0 %918  ;;  %v3502_v47 = vld [vmem:[#allocation2 + $0xc2] sm:$0xff] }
 0x18f   : > { %995 = vst.msk [vmem:[#allocation3 + $0x140] sm:$0xff] %vm974_vm4, %v919_v63  ;;  %1296 = vrot.lane.b32.xlu2 %v3124_v27, %s2665_s28  ;;  %2599 = vmatmul.msk.bf16.gmra.mxu1 %vm275_vm0, %v1913_v44  ;;  %v1591_v27 = vld [vmem:[#allocation2 + $0x61] sm:$0xff]  ;;  %v3506_v63 = vld [vmem:[#allocation2 + $0xca] sm:$0xff] }
 0x190   : > { %1824 = vst.msk [vmem:[#allocation3 + $0xc8] sm:$0xff] %vm275_vm0, %v3502_v47  ;;  %v1607_v44 = vld [vmem:[#allocation2 + $0x121] sm:$0xff] }
 0x191   : > { %v929_v49 = vpop.permute.xlu2 %928  ;;  %1825 = vst.msk [vmem:[#allocation3 + $0xd8] sm:$0xff] %vm275_vm0, %v3506_v63 }
 0x192   : > { %1000 = vst.msk [vmem:[#allocation3 + $0x190] sm:$0xff] %vm974_vm4, %v929_v49 }
 0x193   : > { %1685 = vrot.lane.b32.xlu1 %v2943_v48, %s2667_s30  ;;  %1833 = vst.msk [vmem:[#allocation3 + $0x158] sm:$0xff] %vm275_vm0, %v3515_v55 }
 0x194   : > { %1274 = vrot.lane.b32.xlu0 %v2969_v59, %s2665_s28  ;;  %v3402_v59 = vld [vmem:[#allocation2 + $0x7a] sm:$0xff] }
 0x195   : > { %v921_v2 = vpop.permute.xlu1 %920  ;;  %1818 = vst.msk [vmem:[#allocation3 + $0x68] sm:$0xff] %vm275_vm0, %v3402_v59 }
 0x196   : > { %996 = vst.msk [vmem:[#allocation3 + $0x150] sm:$0xff] %vm974_vm4, %v921_v2  ;;  %v925_v50 = vpop.permute.xlu0 %924  ;;  %v4098_v2 = vld [vmem:[#allocation5_spill] sm:$0xff] }
 0x197   : > { %998 = vst.msk [vmem:[#allocation3 + $0x170] sm:$0xff] %vm974_vm4, %v925_v50  ;;  %1492 = vrot.lane.b32.xlu2 %v3107_v9, %s2666_s29  ;;  %v1592_v9 = vld [vmem:[#allocation2 + $0x69] sm:$0xff] }
 0x199   : > { %v935_v8 = vpop.permute.xlu2 %934 }
 0x19a   : > { %1003 = vst.msk [vmem:[#allocation3 + $0x1c0] sm:$0xff] %vm974_vm4, %v935_v8 }
 0x19b   : > { %1466 = vrot.lane.b32.xlu1 %v3026_v20, %s2666_s29  ;;  %v1026_v20 = vld [vmem:[#allocation2 + $0xf9] sm:$0xff] }
 0x19c   : > { %1659 = vrot.lane.b32.xlu0 %v1591_v27, %s2667_s30  ;;  %v1869_v27 = vld [vmem:[#allocation3 + $0xc8] sm:$0xff] }
 0x19d   : > { %v927_v48 = vpop.permute.xlu1 %926 }
 0x19e   : > { %999 = vst.msk [vmem:[#allocation3 + $0x180] sm:$0xff] %vm974_vm4, %v927_v48  ;;  %v931_v46 = vpop.permute.xlu0 %930  ;;  %v1871_v48 = vld [vmem:[#allocation3 + $0xd8] sm:$0xff] }
 0x19f   : > { %1001 = vst.msk [vmem:[#allocation3 + $0x1a0] sm:$0xff] %vm974_vm4, %v931_v46  ;;  %1272 = vrot.lane.b32.xlu2 %v2996_v10, %s2665_s28  ;;  %v1857_v10 = vld [vmem:[#allocation3 + $0x68] sm:$0xff] }
 0x1a0   : > { %v1915_v0 = vpack.c.bf16 %v1859_v42, %v1857_v10  ;;  %v1608_v10 = vld [vmem:[#allocation2 + $0x129] sm:$0xff] }
 0x1a1   : > { %v941_v1 = vpop.permute.xlu2 %940 }
 0x1a2   : > { %1006 = vst.msk [vmem:[#allocation3 + $0x1f0] sm:$0xff] %vm974_vm4, %v941_v1  ;;  %2600 = vmatmul.msk.bf16.gmra.mxu1 %vm275_vm0, %v1915_v0  ;;  %v1795_v1 = vld [vmem:[#allocation2 + $0xe2] sm:$0xff]  ;;  %v1595_v0 = vld [vmem:[#allocation2 + $0x91] sm:$0xff] }
 0x1a3   : > { %1661 = vrot.lane.b32.xlu1 %v1592_v9, %s2667_s30  ;;  %1827 = vst.msk [vmem:[#allocation3 + $0xf8] sm:$0xff] %vm275_vm0, %v1795_v1 }
 0x1a4   : > { %1109 = vrot.lane.b32.xlu0 %v1026_v20, %s2664_s27  ;;  %v1794_v20 = vld [vmem:[#allocation2 + $0xda] sm:$0xff] }
 0x1a5   : > { %v933_v18 = vpop.permute.xlu1 %932  ;;  %1826 = vst.msk [vmem:[#allocation3 + $0xe8] sm:$0xff] %vm275_vm0, %v1794_v20 }
 0x1a6   : > { %1002 = vst.msk [vmem:[#allocation3 + $0x1b0] sm:$0xff] %vm974_vm4, %v933_v18  ;;  %v937_v3 = vpop.permute.xlu0 %936  ;;  %v1403_v18 = vld [vmem:[#allocation2 + $0x98] sm:$0xff] }
 0x1a7   : > { %1004 = vst.msk [vmem:[#allocation3 + $0x1d0] sm:$0xff] %vm974_vm4, %v937_v3  ;;  %1468 = vrot.lane.b32.xlu2 %v3034_v23, %s2666_s29  ;;  %v2623_v23 = vld [vmem:[%s4088_s1 + $0x30] sm:$0xff] }
 0x1a8   : > { %2065 = vmatpush.bf16.msra.mxu0 %v2623_v23  ;;  %2627 = vmatpush.bf16.msra.mxu2 %v2623_v23 }
 0x1a9   : > { %v1076_v15 = vpop.permute.xlu2 %1075 }
 0x1aa   : > { %1170 = vst.msk [vmem:[#allocation3 + $0x20] sm:$0xff] %vm1167_vm5, %v1076_v15 }
 0x1ab   : > { %1300 = vrot.lane.b32.xlu1 %v3111_v12, %s2665_s28  ;;  %v2622_v12 = vld [vmem:[%s4088_s1 + $0x28] sm:$0xff] }
 0x1ac   : > { %1494 = vrot.lane.b32.xlu0 %v3130_v38, %s2666_s29  ;;  %v3445_v38 = vld [vmem:[#allocation2 + $0x111] sm:$0xff]  ;;  %2066 = vmatpush.bf16.msra.mxu0 %v2622_v12 }
 0x1ad   : > { %v939_v34 = vpop.permute.xlu1 %938  ;;  %2628 = vmatpush.bf16.msra.mxu2 %v2622_v12  ;;  %v1873_v23 = vld [vmem:[#allocation3 + $0xe8] sm:$0xff]  ;;  %v1402_v12 = vld [vmem:[#allocation2 + $0x90] sm:$0xff] }
 0x1ae   : > { %1005 = vst.msk [vmem:[#allocation3 + $0x1e0] sm:$0xff] %vm974_vm4, %v939_v34  ;;  %v1072_v52 = vpop.permute.xlu0 %1071  ;;  %v1875_v34 = vld [vmem:[#allocation3 + $0xf8] sm:$0xff] }
 0x1af   : > { %1168 = vst.msk [vmem:[#allocation3] sm:$0xff] %vm1167_vm5, %v1072_v52  ;;  %1107 = vrot.lane.b32.xlu2 %v1025_v57, %s2664_s27  ;;  %v1923_v52 = vpack.c.bf16 %v1875_v34, %v1873_v23  ;;  %v1612_v34 = vld [vmem:[#allocation2 + $0x159] sm:$0xff] }
 0x1b0   : > { %2067 = vmatpush.bf16.msra.mxu0 %v2621_v24 }
 0x1b1   : > { %v1082_v40 = vpop.permute.xlu2 %1081  ;;  %2629 = vmatpush.bf16.msra.mxu2 %v2621_v24  ;;  %v1796_v24 = vld [vmem:[#allocation2 + $0xf2] sm:$0xff] }
 0x1b2   : > { %1173 = vst.msk [vmem:[#allocation3 + $0x50] sm:$0xff] %vm1167_vm5, %v1082_v40  ;;  %2601 = vmatmul.msk.bf16.gmra.mxu1 %vm275_vm0, %v1917_v36 }
 0x1b3   : > { %1496 = vrot.lane.b32.xlu1 %v3126_v29, %s2666_s29  ;;  %v2620_v29 = vld [vmem:[%s4088_s1 + $0x18] sm:$0xff]  ;;  %1828 = vst.msk [vmem:[#allocation3 + $0x108] sm:$0xff] %vm275_vm0, %v1796_v24 }
 0x1b4   : > { %1689 = vrot.lane.b32.xlu0 %v3445_v38, %s2667_s30  ;;  %2068 = vmatpush.bf16.msra.mxu0 %v2620_v29 }
 0x1b5   : > { %v1074_v31 = vpop.permute.xlu1 %1073  ;;  %2630 = vmatpush.bf16.msra.mxu2 %v2620_v29  ;;  %v1596_v29 = vld [vmem:[#allocation2 + $0x99] sm:$0xff] }
 0x1b6   : > { %1169 = vst.msk [vmem:[#allocation3 + $0x10] sm:$0xff] %vm1167_vm5, %v1074_v31  ;;  %v1078_v11 = vpop.permute.xlu0 %1077  ;;  %v1797_v31 = vld [vmem:[#allocation2 + $0xfa] sm:$0xff] }
 0x1b7   : > { %1171 = vst.msk [vmem:[#allocation3 + $0x30] sm:$0xff] %vm1167_vm5, %v1078_v11  ;;  %1302 = vrot.lane.b32.xlu2 %v3148_v51, %s2665_s28  ;;  %v2619_v51 = vld [vmem:[%s4088_s1 + $0x10] sm:$0xff] }
 0x1b8   : > { %2069 = vmatpush.bf16.msra.mxu0 %v2619_v51  ;;  %1829 = vst.msk [vmem:[#allocation3 + $0x118] sm:$0xff] %vm275_vm0, %v1797_v31 }
 0x1b9   : > { %v1088_v19 = vpop.permute.xlu2 %1087  ;;  %2631 = vmatpush.bf16.msra.mxu2 %v2619_v51 }
 0x1ba   : > { %1176 = vst.msk [vmem:[#allocation3 + $0x80] sm:$0xff] %vm1167_vm5, %v1088_v19 }
 0x1bb   : > { %1276 = vrot.lane.b32.xlu1 %v2972_v61, %s2665_s28  ;;  %v2618_v61 = vld [vmem:[%s4088_s1 + $0x8] sm:$0xff] }
 0x1bc   : > { %1470 = vrot.lane.b32.xlu0 %v3048_v35, %s2666_s29  ;;  %v1594_v35 = vld [vmem:[#allocation2 + $0x81] sm:$0xff]  ;;  %2070 = vmatpush.bf16.msra.mxu0 %v2618_v61 }
 0x1bd   : > { %v1080_v54 = vpop.permute.xlu1 %1079  ;;  %2632 = vmatpush.bf16.msra.mxu2 %v2618_v61  ;;  %v3563_v61 = vld [vmem:[#allocation2 + $0x13a] sm:$0xff] }
 0x1be   : > { %1172 = vst.msk [vmem:[#allocation3 + $0x40] sm:$0xff] %vm1167_vm5, %v1080_v54  ;;  %v1084_v45 = vpop.permute.xlu0 %1083  ;;  %v1416_v54 = vld [vmem:[#allocation2 + $0x138] sm:$0xff] }
 0x1bf   : > { %1174 = vst.msk [vmem:[#allocation3 + $0x60] sm:$0xff] %vm1167_vm5, %v1084_v45  ;;  %1687 = vrot.lane.b32.xlu2 %v1605_v21, %s2667_s30  ;;  %v1877_v45 = vld [vmem:[#allocation3 + $0x108] sm:$0xff] }
 0x1c0   : > { %2071 = vmatpush.bf16.msra.mxu0 %v2617_v56  ;;  %1834 = vst.msk [vmem:[#allocation3 + $0x168] sm:$0xff] %vm275_vm0, %v3563_v61 }
 0x1c1   : > { %v1094_v32 = vpop.permute.xlu2 %1093  ;;  %2633 = vmatpush.bf16.msra.mxu2 %v2617_v56  ;;  %v1879_v56 = vld [vmem:[#allocation3 + $0x118] sm:$0xff] }
 0x1c2   : > { %1179 = vst.msk [vmem:[#allocation3 + $0xb0] sm:$0xff] %vm1167_vm5, %v1094_v32  ;;  %2602 = vmatmul.msk.bf16.gmra.mxu1 %vm275_vm0, %v1919_v14  ;;  %v1417_v14 = vld [vmem:[#allocation2 + $0x140] sm:$0xff] }
 0x1c3   : > { %1472 = vrot.lane.b32.xlu1 %v3046_v33, %s2666_s29 }
 0x1c4   : > { %1665 = vrot.lane.b32.xlu0 %v1594_v35, %s2667_s30  ;;  %v3565_v35 = vld [vmem:[#allocation2 + $0x139] sm:$0xff] }
 0x1c5   : > { %v1086_v4 = vpop.permute.xlu1 %1085 }
 0x1c6   : > { %1175 = vst.msk [vmem:[#allocation3 + $0x70] sm:$0xff] %vm1167_vm5, %v1086_v4  ;;  %v1090_v28 = vpop.permute.xlu0 %1089 }
 0x1c7   : > { %1177 = vst.msk [vmem:[#allocation3 + $0x90] sm:$0xff] %vm1167_vm5, %v1090_v28  ;;  %1278 = vrot.lane.b32.xlu2 %v1207_v22, %s2665_s28  ;;  %v1925_v22 = vpack.c.bf16 %v1879_v56, %v1877_v45  ;;  %v1887_v56 = vld [vmem:[#allocation3 + $0x158] sm:$0xff] }
 0x1c9   : > { %v1459_v33 = vpop.permute.xlu2 %1458 }
 0x1cb   : > { %1111 = vrot.lane.b32.xlu1 %v1605_v21, %s2664_s27 }
 0x1cc   : > { %1304 = vrot.lane.b32.xlu0 %v4097_v60, %s2665_s28 }
 0x1cd   : > { %v1092_v26 = vpop.permute.xlu1 %1091 }
 0x1ce   : > { %1178 = vst.msk [vmem:[#allocation3 + $0xa0] sm:$0xff] %vm1167_vm5, %v1092_v26  ;;  %v1265_v16 = vpop.permute.xlu0 %1264 }
 0x1cf   : > { %1361 = vst.msk [vmem:[#allocation3] sm:$0xff] %vm1360_vm6, %v1265_v16  ;;  %1663 = vrot.lane.b32.xlu2 %v1593_v6, %s2667_s30  ;;  %v1404_v16 = vld [vmem:[#allocation2 + $0xa8] sm:$0xff] }
 0x1d0   : > { %1555 = vst.msk [vmem:[#allocation3] sm:$0xff] %vm1554_vm7, %v1459_v33 }
 0x1d1   : > { %v1654_v49 = vpop.permute.xlu2 %1653 }
 0x1d3   : > { %1306 = vrot.lane.b32.xlu1 %v4098_v2, %s2665_s28 }
 0x1d4   : > { %1500 = vrot.lane.b32.xlu0 %v3154_v62, %s2666_s29  ;;  %v1921_v62 = vpack.c.bf16 %v1871_v48, %v1869_v27 }
 0x1d5   : > { %v1267_v53 = vpop.permute.xlu1 %1266 }
 0x1d6   : > { %1362 = vst.msk [vmem:[#allocation3 + $0x10] sm:$0xff] %vm1360_vm6, %v1267_v53  ;;  %v1461_v50 = vpop.permute.xlu0 %1460  ;;  %2603 = vmatmul.msk.bf16.gmra.mxu1 %vm275_vm0, %v1921_v62  ;;  %v1799_v53 = vld [vmem:[#allocation2 + $0x112] sm:$0xff] }
 0x1d7   : > { %1556 = vst.msk [vmem:[#allocation3 + $0x10] sm:$0xff] %vm1554_vm7, %v1461_v50  ;;  %1113 = vrot.lane.b32.xlu2 %v3445_v38, %s2664_s27  ;;  %v3602_v62 = vld [vmem:[#allocation2 + $0xb1] sm:$0xff] }
 0x1d8   : > { %1749 = vst.msk [vmem:[#allocation3 + $0x10] sm:$0xff] %vm1747_vm8, %v1654_v49  ;;  %v3588_v49 = vld [vmem:[#allocation2 + $0xa9] sm:$0xff] }
 0x1d9   : > { %v1463_v8 = vpop.permute.xlu2 %1462  ;;  %1831 = vst.msk [vmem:[#allocation3 + $0x138] sm:$0xff] %vm275_vm0, %v1799_v53 }
 0x1db   : > { %1691 = vrot.lane.b32.xlu1 %v1607_v44, %s2667_s30 }
 0x1dc   : > { %1280 = vrot.lane.b32.xlu0 %v3402_v59, %s2665_s28 }
 0x1dd   : > { %v1652_v46 = vpop.permute.xlu1 %1651 }
 0x1de   : > { %1748 = vst.msk [vmem:[#allocation3] sm:$0xff] %vm1747_vm8, %v1652_v46  ;;  %v1269_v9 = vpop.permute.xlu0 %1268 }
 0x1df   : > { %1363 = vst.msk [vmem:[#allocation3 + $0x20] sm:$0xff] %vm1360_vm6, %v1269_v9  ;;  %1498 = vrot.lane.b32.xlu2 %v3133_v41, %s2666_s29  ;;  %v1846_v59 = vld [vmem:[#allocation3 + $0x10] sm:$0xff] }
 0x1e0   : > { %1557 = vst.msk [vmem:[#allocation3 + $0x20] sm:$0xff] %vm1554_vm7, %v1463_v8  ;;  %v1225_v9 = vld [vmem:[#allocation2 + $0x142] sm:$0xff] }
 0x1e1   : > { %v1658_v3 = vpop.permute.xlu2 %1657  ;;  %1835 = vst.msk [vmem:[#allocation3 + $0x178] sm:$0xff] %vm275_vm0, %v1225_v9  ;;  %v1883_v1 = vld [vmem:[#allocation3 + $0x138] sm:$0xff] }
 0x1e3   : > { %1282 = vrot.lane.b32.xlu1 %v3405_v39, %s2665_s28  ;;  %v1222_v39 = vld [vmem:[#allocation2 + $0x122] sm:$0xff] }
 0x1e4   : > { %1476 = vrot.lane.b32.xlu0 %v1403_v18, %s2666_s29  ;;  %1832 = vst.msk [vmem:[#allocation3 + $0x148] sm:$0xff] %vm275_vm0, %v1222_v39  ;;  %v1405_v18 = vld [vmem:[#allocation2 + $0xb0] sm:$0xff] }
 0x1e5   : > { %v1271_v58 = vpop.permute.xlu1 %1270  ;;  %v1844_v42 = vld [vmem:[#allocation3] sm:$0xff] }
 0x1e6   : > { %1364 = vst.msk [vmem:[#allocation3 + $0x30] sm:$0xff] %vm1360_vm6, %v1271_v58  ;;  %v1465_v41 = vpop.permute.xlu0 %1464  ;;  %v1908_v15 = vpack.c.bf16 %v1846_v59, %v1844_v42  ;;  %2604 = vmatmul.msk.bf16.gmra.mxu1 %vm275_vm0, %v1923_v52  ;;  %v1418_v58 = vld [vmem:[#allocation2 + $0x150] sm:$0xff] }
 0x1e7   : > { %1558 = vst.msk [vmem:[#allocation3 + $0x30] sm:$0xff] %vm1554_vm7, %v1465_v41  ;;  %1693 = vrot.lane.b32.xlu2 %v1608_v10, %s2667_s30 }
 0x1e8   : > { %2072 = vmatmul.bf16.vlgmr.msra.gmra.mxu0 %v1908_v15  ;;  %1751 = vst.msk [vmem:[#allocation3 + $0x30] sm:$0xff] %vm1747_vm8, %v1658_v3 }
 0x1e9   : > { %v1297_v57 = vpop.permute.xlu2 %1296 }
 0x1eb   : > { %1667 = vrot.lane.b32.xlu1 %v1595_v0, %s2667_s30 }
 0x1ec   : > { %1115 = vrot.lane.b32.xlu0 %v1607_v44, %s2664_s27  ;;  %v3557_v36 = vpop.f32.mrf.mxu1 }
 0x1ed   : > { %v1656_v38 = vpop.permute.xlu1 %1655 }
 0x1ee   : > { %1750 = vst.msk [vmem:[#allocation3 + $0x20] sm:$0xff] %vm1747_vm8, %v1656_v38  ;;  %v1104_v40 = vpop.permute.xlu0 %1103  ;;  %v1227_v38 = vld [vmem:[#allocation2 + $0x15a] sm:$0xff] }
 0x1ef   : > { %1184 = vst.msk [vmem:[#allocation3 + $0x100] sm:$0xff] %vm1167_vm5, %v1104_v40  ;;  %1474 = vrot.lane.b32.xlu2 %v1402_v12, %s2666_s29  ;;  %v1850_v30 = vld [vmem:[#allocation3 + $0x30] sm:$0xff] }
 0x1f0   : > { %1377 = vst.msk [vmem:[#allocation3 + $0x100] sm:$0xff] %vm1360_vm6, %v1297_v57  ;;  %v1419_v57 = vld [vmem:[#allocation2 + $0x158] sm:$0xff] }
 0x1f1   : > { %v1493_v11 = vpop.permute.xlu2 %1492  ;;  %1837 = vst.msk [vmem:[#allocation3 + $0x198] sm:$0xff] %vm275_vm0, %v1227_v38 }
 0x1f3   : > { %1117 = vrot.lane.b32.xlu1 %v1608_v10, %s2664_s27 }
 0x1f4   : > { %1310 = vrot.lane.b32.xlu0 %v3515_v55, %s2665_s28  ;;  %v3574_v28 = vpop.f32.mrf.mxu1  ;;  %v1798_v55 = vld [vmem:[#allocation2 + $0x10a] sm:$0xff] }
 0x1f5   : > { %v1106_v13 = vpop.permute.xlu1 %1105  ;;  %v1848_v19 = vld [vmem:[#allocation3 + $0x20] sm:$0xff]  ;;  %1830 = vst.msk [vmem:[#allocation3 + $0x128] sm:$0xff] %vm275_vm0, %v1798_v55 }
 0x1f6   : > { %1185 = vst.msk [vmem:[#allocation3 + $0x110] sm:$0xff] %vm1167_vm5, %v1106_v13  ;;  %v1299_v51 = vpop.permute.xlu0 %1298  ;;  %v1910_v21 = vpack.c.bf16 %v1850_v30, %v1848_v19  ;;  %2605 = vmatmul.msk.bf16.gmra.mxu1 %vm275_vm0, %v1925_v22  ;;  %v1611_v30 = vld [vmem:[#allocation2 + $0x151] sm:$0xff]  ;;  %v3652_v22 = vld [vmem:[#allocation2 + $0xc1] sm:$0xff]  ;;  %v1600_v55 = vld [vmem:[#allocation2 + $0xc9] sm:$0xff] }
 0x1f7   : > { %1378 = vst.msk [vmem:[#allocation3 + $0x110] sm:$0xff] %vm1360_vm6, %v1299_v51  ;;  %1669 = vrot.lane.b32.xlu2 %v1596_v29, %s2667_s30 }
 0x1f8   : > { %2077 = vmatmul.bf16.gmra.mxu0 %v1910_v21  ;;  %1572 = vst.msk [vmem:[#allocation3 + $0x110] sm:$0xff] %vm1554_vm7, %v1493_v11 }
 0x1f9   : > { %v1273_v32 = vpop.permute.xlu2 %1272 }
 0x1fa   : > { %1365 = vst.msk [vmem:[#allocation3 + $0x40] sm:$0xff] %vm1360_vm6, %v1273_v32  ;;  %v1885_v32 = vld [vmem:[#allocation3 + $0x148] sm:$0xff] }
 0x1fb   : > { %1502 = vrot.lane.b32.xlu1 %v1416_v54, %s2666_s29  ;;  %v1407_v54 = vld [vmem:[#allocation2 + $0xc8] sm:$0xff] }
 0x1fc   : > { %1695 = vrot.lane.b32.xlu0 %v3565_v35, %s2667_s30  ;;  %v3582_v6 = vpop.f32.mrf.mxu1  ;;  %v1881_v20 = vld [vmem:[#allocation3 + $0x128] sm:$0xff] }
 0x1fd   : > { %v1491_v4 = vpop.permute.xlu1 %1490  ;;  %v1927_v3 = vpack.c.bf16 %v1883_v1, %v1881_v20  ;;  %v1228_v1 = vld [vmem:[#allocation2 + $0x16a] sm:$0xff] }
 0x1fe   : > { %1571 = vst.msk [vmem:[#allocation3 + $0x100] sm:$0xff] %vm1554_vm7, %v1491_v4  ;;  %v1684_v17 = vpop.permute.xlu0 %1683  ;;  %v1929_v4 = vpack.c.bf16 %v1887_v56, %v1885_v32  ;;  %v3732_v32 = vld [vmem:[#allocation2 + $0x18a] sm:$0xff] }
 0x1ff   : > { %1764 = vst.msk [vmem:[#allocation3 + $0x100] sm:$0xff] %vm1747_vm8, %v1684_v17  ;;  %1308 = vrot.lane.b32.xlu2 %v1222_v39, %s2665_s28  ;;  %2606 = vmatmul.msk.bf16.vlgmr.msra.gmra.mxu3 %vm275_vm0, %v1927_v3  ;;  %v1226_v17 = vld [vmem:[#allocation2 + $0x152] sm:$0xff] }
 0x200   : > { %1836 = vst.msk [vmem:[#allocation3 + $0x188] sm:$0xff] %vm275_vm0, %v1226_v17 }
 0x201   : > { %v1469_v33 = vpop.permute.xlu2 %1468  ;;  %1838 = vst.msk [vmem:[#allocation3 + $0x1a8] sm:$0xff] %vm275_vm0, %v1228_v1 }
 0x202   : > { %1841 = vst.msk [vmem:[#allocation3 + $0x1d8] sm:$0xff] %vm275_vm0, %v3732_v32 }
 0x203   : > { %1697 = vrot.lane.b32.xlu1 %v1610_v43, %s2667_s30 }
 0x204   : > { %1286 = vrot.lane.b32.xlu0 %v3436_v25, %s2665_s28  ;;  %v3597_v48 = vpop.f32.mrf.mxu1 }
 0x205   : > { %v1686_v60 = vpop.permute.xlu1 %1685 }
 0x206   : > { %1765 = vst.msk [vmem:[#allocation3 + $0x110] sm:$0xff] %vm1747_vm8, %v1686_v60  ;;  %v1275_v26 = vpop.permute.xlu0 %1274  ;;  %v1876_v25 = vld [vmem:[#allocation3 + $0x100] sm:$0xff] }
 0x207   : > { %1366 = vst.msk [vmem:[#allocation3 + $0x50] sm:$0xff] %vm1360_vm6, %v1275_v26  ;;  %1504 = vrot.lane.b32.xlu2 %v1417_v14, %s2666_s29 }
 0x208   : > { %1560 = vst.msk [vmem:[#allocation3 + $0x50] sm:$0xff] %vm1554_vm7, %v1469_v33  ;;  %v1406_v33 = vld [vmem:[#allocation2 + $0xc0] sm:$0xff] }
 0x209   : > { %v1108_v2 = vpop.permute.xlu2 %1107 }
 0x20a   : > { %1186 = vst.msk [vmem:[#allocation3 + $0x120] sm:$0xff] %vm1167_vm5, %v1108_v2 }
 0x20b   : > { %1478 = vrot.lane.b32.xlu1 %v1404_v16, %s2666_s29 }
 0x20c   : > { %1671 = vrot.lane.b32.xlu0 %v3588_v49, %s2667_s30  ;;  %v3613_v10 = vpop.f32.mrf.mxu1 }
 0x20d   : > { %v1467_v50 = vpop.permute.xlu1 %1466  ;;  %v1878_v44 = vld [vmem:[#allocation3 + $0x110] sm:$0xff] }
 0x20e   : > { %1559 = vst.msk [vmem:[#allocation3 + $0x40] sm:$0xff] %vm1554_vm7, %v1467_v50  ;;  %v1660_v27 = vpop.permute.xlu0 %1659  ;;  %v1924_v8 = vpack.c.bf16 %v1878_v44, %v1876_v25  ;;  %v1420_v50 = vld [vmem:[#allocation2 + $0x168] sm:$0xff] }
 0x20f   : > { %1752 = vst.msk [vmem:[#allocation3 + $0x40] sm:$0xff] %vm1747_vm8, %v1660_v27  ;;  %1284 = vrot.lane.b32.xlu2 %v3433_v37, %s2665_s28  ;;  %2607 = vmatmul.msk.bf16.gmra.mxu3 %vm275_vm0, %v1929_v4  ;;  %v3671_v44 = vld [vmem:[#allocation2 + $0x169] sm:$0xff] }
 0x210   : > { %2112 = vmatmul.bf16.vlgmr.msra.gmra.mxu2 %v1924_v8 }
 0x211   : > { %v1303_v46 = vpop.permute.xlu2 %1302 }
 0x213   : > { %1673 = vrot.lane.b32.xlu1 %v3602_v62, %s2667_s30 }
 0x214   : > { %1121 = vrot.lane.b32.xlu0 %v1610_v43, %s2664_s27  ;;  %v3624_v12 = vpop.f32.mrf.mxu1 }
 0x215   : > { %v1662_v59 = vpop.permute.xlu1 %1661 }
 0x216   : > { %1753 = vst.msk [vmem:[#allocation3 + $0x50] sm:$0xff] %vm1747_vm8, %v1662_v59  ;;  %v1110_v37 = vpop.permute.xlu0 %1109  ;;  %v1852_v41 = vld [vmem:[#allocation3 + $0x40] sm:$0xff] }
 0x217   : > { %1187 = vst.msk [vmem:[#allocation3 + $0x130] sm:$0xff] %vm1167_vm5, %v1110_v37  ;;  %1480 = vrot.lane.b32.xlu2 %v1405_v18, %s2666_s29  ;;  %v3684_v18 = vld [vmem:[#allocation2 + $0x172] sm:$0xff] }
 0x218   : > { %1380 = vst.msk [vmem:[#allocation3 + $0x130] sm:$0xff] %vm1360_vm6, %v1303_v46  ;;  %v1421_v59 = vld [vmem:[#allocation2 + $0x170] sm:$0xff] }
 0x219   : > { %v1688_v42 = vpop.permute.xlu2 %1687  ;;  %1839 = vst.msk [vmem:[#allocation3 + $0x1b8] sm:$0xff] %vm275_vm0, %v3684_v18 }
 0x21b   : > { %1312 = vrot.lane.b32.xlu1 %v3563_v61, %s2665_s28 }
 0x21c   : > { %1506 = vrot.lane.b32.xlu0 %v1418_v58, %s2666_s29 }
 0x21d   : > { %v1301_v15 = vpop.permute.xlu1 %1300  ;;  %v1854_v0 = vld [vmem:[#allocation3 + $0x50] sm:$0xff] }
 0x21e   : > { %1379 = vst.msk [vmem:[#allocation3 + $0x120] sm:$0xff] %vm1360_vm6, %v1301_v15  ;;  %v1495_v23 = vpop.permute.xlu0 %1494  ;;  %v1912_v39 = vpack.c.bf16 %v1854_v0, %v1852_v41  ;;  %v1408_v0 = vld [vmem:[#allocation2 + $0xd8] sm:$0xff] }
 0x21f   : > { %1573 = vst.msk [vmem:[#allocation3 + $0x120] sm:$0xff] %vm1554_vm7, %v1495_v23  ;;  %1119 = vrot.lane.b32.xlu2 %v3565_v35, %s2664_s27  ;;  %v3636_v29 = vpop.f32.mrf.mxu1 }
 0x220   : > { %2082 = vmatmul.bf16.gmra.mxu0 %v1912_v39  ;;  %1766 = vst.msk [vmem:[#allocation3 + $0x120] sm:$0xff] %vm1747_vm8, %v1688_v42 }
 0x221   : > { %v1279_v52 = vpop.permute.xlu2 %1278 }
 0x222   : > { %1368 = vst.msk [vmem:[#allocation3 + $0x70] sm:$0xff] %vm1360_vm6, %v1279_v52  ;;  %v1889_v52 = vld [vmem:[#allocation3 + $0x168] sm:$0xff] }
 0x223   : > { %1508 = vrot.lane.b32.xlu1 %v1419_v57, %s2666_s29 }
 0x224   : > { %1701 = vrot.lane.b32.xlu0 %v1612_v34, %s2667_s30 }
 0x225   : > { %v1497_v40 = vpop.permute.xlu1 %1496 }
 0x226   : > { %1574 = vst.msk [vmem:[#allocation3 + $0x130] sm:$0xff] %vm1554_vm7, %v1497_v40  ;;  %v1690_v24 = vpop.permute.xlu0 %1689  ;;  %v1409_v40 = vld [vmem:[#allocation2 + $0xe0] sm:$0xff] }
 0x227   : > { %1767 = vst.msk [vmem:[#allocation3 + $0x130] sm:$0xff] %vm1747_vm8, %v1690_v24  ;;  %1314 = vrot.lane.b32.xlu2 %v1225_v9, %s2665_s28  ;;  %v1880_v11 = vld [vmem:[#allocation3 + $0x120] sm:$0xff]  ;;  %v3647_v35 = vpop.f32.mrf.mxu1  ;;  %v1602_v24 = vld [vmem:[#allocation2 + $0xe1] sm:$0xff] }
 0x228   : > { %v3681_v9 = vld [vmem:[#allocation2 + $0x171] sm:$0xff] }
 0x229   : > { %v1664_v31 = vpop.permute.xlu2 %1663 }
 0x22b   : > { %1095 = vrot.lane.b32.xlu1 %v3588_v49, %s2664_s27 }
 0x22c   : > { %1288 = vrot.lane.b32.xlu0 %v3473_v5, %s2665_s28 }
 0x22d   : > { %v1277_v13 = vpop.permute.xlu1 %1276 }
 0x22e   : > { %1367 = vst.msk [vmem:[#allocation3 + $0x60] sm:$0xff] %vm1360_vm6, %v1277_v13  ;;  %v1471_v19 = vpop.permute.xlu0 %1470  ;;  %v1882_v51 = vld [vmem:[#allocation3 + $0x130] sm:$0xff] }
 0x22f   : > { %1561 = vst.msk [vmem:[#allocation3 + $0x60] sm:$0xff] %vm1554_vm7, %v1471_v19  ;;  %v1926_v21 = vpack.c.bf16 %v1882_v51, %v1880_v11  ;;  %1699 = vrot.lane.b32.xlu2 %v1611_v30, %s2667_s30  ;;  %v3663_v49 = vpop.f32.mrf.mxu1  ;;  %v3711_v11 = vld [vmem:[%s4089_s2] ss:$0 sm:$0xff] }
 0x230   : > { %1754 = vst.msk [vmem:[#allocation3 + $0x60] sm:$0xff] %vm1747_vm8, %v1664_v31 }
 0x231   : > { %2117 = vmatmul.bf16.gmra.mxu2 %v1926_v21  ;;  %v1114_v45 = vpop.permute.xlu2 %1113 }
 0x232   : > { %1189 = vst.msk [vmem:[#allocation3 + $0x150] sm:$0xff] %vm1167_vm5, %v1114_v45 }
 0x233   : > { %1290 = vrot.lane.b32.xlu1 %v3476_v7, %s2665_s28 }
 0x234   : > { %1484 = vrot.lane.b32.xlu0 %v1407_v54, %s2666_s29 }
 0x235   : > { %v1473_v5 = vpop.permute.xlu1 %1472 }
 0x236   : > { %1562 = vst.msk [vmem:[#allocation3 + $0x70] sm:$0xff] %vm1554_vm7, %v1473_v5  ;;  %v1666_v61 = vpop.permute.xlu0 %1665 }
 0x237   : > { %1755 = vst.msk [vmem:[#allocation3 + $0x70] sm:$0xff] %vm1747_vm8, %v1666_v61  ;;  %1097 = vrot.lane.b32.xlu2 %v3602_v62, %s2664_s27  ;;  %v1856_v43 = vld [vmem:[#allocation3 + $0x60] sm:$0xff]  ;;  %v3673_v8 = vpop.f32.mrf.mxu1 }
 0x239   : > { %v1499_v7 = vpop.permute.xlu2 %1498 }
 0x23b   : > { %1675 = vrot.lane.b32.xlu1 %v3652_v22, %s2667_s30 }
 0x23c   : > { %1123 = vrot.lane.b32.xlu0 %v1611_v30, %s2664_s27 }
 0x23d   : > { %v1112_v14 = vpop.permute.xlu1 %1111 }
 0x23e   : > { %1188 = vst.msk [vmem:[#allocation3 + $0x140] sm:$0xff] %vm1167_vm5, %v1112_v14  ;;  %v1305_v60 = vpop.permute.xlu0 %1304  ;;  %v1858_v26 = vld [vmem:[#allocation3 + $0x70] sm:$0xff] }
 0x23f   : > { %1381 = vst.msk [vmem:[#allocation3 + $0x140] sm:$0xff] %vm1360_vm6, %v1305_v60  ;;  %v1914_v16 = vpack.c.bf16 %v1858_v26, %v1856_v43  ;;  %1482 = vrot.lane.b32.xlu2 %v1406_v33, %s2666_s29  ;;  %v3692_v37 = vpop.f32.mrf.mxu1  ;;  %v1423_v33 = vld [vmem:[#allocation2 + $0x188] sm:$0xff] }
 0x240   : > { %1575 = vst.msk [vmem:[#allocation3 + $0x140] sm:$0xff] %vm1554_vm7, %v1499_v7 }
 0x241   : > { %2087 = vmatmul.bf16.gmra.mxu0 %v1914_v16  ;;  %v1694_v2 = vpop.permute.xlu2 %1693 }
 0x243   : > { %1125 = vrot.lane.b32.xlu1 %v1612_v34, %s2664_s27 }
 0x244   : > { %1318 = vrot.lane.b32.xlu0 %v1227_v38, %s2665_s28  ;;  %v1891_v38 = vld [vmem:[#allocation3 + $0x178] sm:$0xff] }
 0x245   : > { %v1307_v53 = vpop.permute.xlu1 %1306 }
 0x246   : > { %1382 = vst.msk [vmem:[#allocation3 + $0x150] sm:$0xff] %vm1360_vm6, %v1307_v53  ;;  %v1501_v25 = vpop.permute.xlu0 %1500 }
 0x247   : > { %1576 = vst.msk [vmem:[#allocation3 + $0x150] sm:$0xff] %vm1554_vm7, %v1501_v25  ;;  %1677 = vrot.lane.b32.xlu2 %v1600_v55, %s2667_s30  ;;  %v3702_v34 = vpop.f32.mrf.mxu1 }
 0x248   : > { %1769 = vst.msk [vmem:[#allocation3 + $0x150] sm:$0xff] %vm1747_vm8, %v1694_v2 }
 0x249   : > { %v1475_v27 = vpop.permute.xlu2 %1474 }
 0x24b   : > { %1510 = vrot.lane.b32.xlu1 %v1420_v50, %s2666_s29 }
 0x24c   : > { %1703 = vrot.lane.b32.xlu0 %v3671_v44, %s2667_s30 }
 0x24d   : > { %v1692_v62 = vpop.permute.xlu1 %1691 }
 0x24e   : > { %1768 = vst.msk [vmem:[#allocation3 + $0x140] sm:$0xff] %vm1747_vm8, %v1692_v62  ;;  %v1281_v46 = vpop.permute.xlu0 %1280 }
 0x24f   : > { %1369 = vst.msk [vmem:[#allocation3 + $0x80] sm:$0xff] %vm1360_vm6, %v1281_v46  ;;  %1316 = vrot.lane.b32.xlu2 %v1226_v17, %s2665_s28  ;;  %v1886_v3 = vld [vmem:[#allocation3 + $0x150] sm:$0xff] }
 0x250   : > { %1563 = vst.msk [vmem:[#allocation3 + $0x80] sm:$0xff] %vm1554_vm7, %v1475_v27 }
 0x251   : > { %v1670_v20 = vpop.permute.xlu2 %1669 }
 0x253   : > { %1705 = vrot.lane.b32.xlu1 %v3681_v9, %s2667_s30  ;;  %v3730_v61 = vpop.f32.mrf.mxu1 }
 0x254   : > { %1101 = vrot.lane.b32.xlu0 %v1600_v55, %s2664_s27 }
 0x255   : > { %v1283_v58 = vpop.permute.xlu1 %1282  ;;  %v1884_v42 = vld [vmem:[#allocation3 + $0x140] sm:$0xff] }
 0x256   : > { %1370 = vst.msk [vmem:[#allocation3 + $0x90] sm:$0xff] %vm1360_vm6, %v1283_v58  ;;  %v1477_v41 = vpop.permute.xlu0 %1476  ;;  %v1928_v15 = vpack.c.bf16 %v1886_v3, %v1884_v42 }
 0x257   : > { %1564 = vst.msk [vmem:[#allocation3 + $0x90] sm:$0xff] %vm1554_vm7, %v1477_v41  ;;  %1512 = vrot.lane.b32.xlu2 %v1421_v59, %s2666_s29 }
 0x258   : > { %2122 = vmatmul.bf16.gmra.mxu2 %v1928_v15  ;;  %1757 = vst.msk [vmem:[#allocation3 + $0x90] sm:$0xff] %vm1747_vm8, %v1670_v20  ;;  %v1615_v20 = vld [vmem:[#allocation2 + $0x181] sm:$0xff] }
 0x259   : > { %v1309_v23 = vpop.permute.xlu2 %1308 }
 0x25b   : > { %1292 = vrot.lane.b32.xlu1 %v3502_v47, %s2665_s28  ;;  %v1931_v47 = vpack.c.bf16 %v1891_v38, %v1889_v52  ;;  %v3751_v2 = vpop.f32.mrf.mxu1 }
 0x25c   : > { %1486 = vrot.lane.b32.xlu0 %v1408_v0, %s2666_s29 }
 0x25d   : > { %v1668_v39 = vpop.permute.xlu1 %1667  ;;  %2608 = vmatmul.msk.bf16.gmra.mxu3 %vm275_vm0, %v1931_v47 }
 0x25e   : > { %1756 = vst.msk [vmem:[#allocation3 + $0x80] sm:$0xff] %vm1747_vm8, %v1668_v39  ;;  %v1116_v57 = vpop.permute.xlu0 %1115 }
 0x25f   : > { %1190 = vst.msk [vmem:[#allocation3 + $0x160] sm:$0xff] %vm1167_vm5, %v1116_v57  ;;  %1099 = vrot.lane.b32.xlu2 %v3652_v22, %s2664_s27  ;;  %v1862_v30 = vld [vmem:[#allocation3 + $0x90] sm:$0xff] }
 0x260   : > { %1383 = vst.msk [vmem:[#allocation3 + $0x160] sm:$0xff] %vm1360_vm6, %v1309_v23 }
 0x261   : > { %v1505_v31 = vpop.permute.xlu2 %1504 }
 0x263   : > { %1488 = vrot.lane.b32.xlu1 %v1409_v40, %s2666_s29  ;;  %v1038_v40 = vld [vmem:[#allocation2 + $0x189] sm:$0xff] }
 0x264   : > { %1681 = vrot.lane.b32.xlu0 %v1602_v24, %s2667_s30  ;;  %v1893_v24 = vld [vmem:[#allocation3 + $0x188] sm:$0xff] }
 0x265   : > { %v2073_v13 = vpop.f32.mrf.mxu0  ;;  %v1118_v19 = vpop.permute.xlu1 %1117  ;;  %v1860_v51 = vld [vmem:[#allocation3 + $0x80] sm:$0xff] }
 0x266   : > { %v2074_v21 = vadd.f32 %v3711_v11, %v2073_v13  ;;  %1191 = vst.msk [vmem:[#allocation3 + $0x170] sm:$0xff] %vm1167_vm5, %v1118_v19  ;;  %v1311_v54 = vpop.permute.xlu0 %1310  ;;  %v1916_v45 = vpack.c.bf16 %v1862_v30, %v1860_v51  ;;  %v1230_v19 = vld [vmem:[#allocation2 + $0x182] sm:$0xff] }
 0x267   : > { %1384 = vst.msk [vmem:[#allocation3 + $0x170] sm:$0xff] %vm1360_vm6, %v1311_v54  ;;  %1294 = vrot.lane.b32.xlu2 %v3506_v63, %s2665_s28  ;;  %v1601_v63 = vld [vmem:[#allocation2 + $0xd9] sm:$0xff] }
 0x268   : > { %v2163_v5 = vadd.f32 %v3557_v36, %v2074_v21  ;;  %2092 = vmatmul.bf16.gmra.mxu0 %v1916_v45  ;;  %1578 = vst.msk [vmem:[#allocation3 + $0x170] sm:$0xff] %vm1554_vm7, %v1505_v31  ;;  %v1895_v31 = vld [vmem:[#allocation3 + $0x198] sm:$0xff] }
 0x269   : > { %v1285_v56 = vpop.permute.xlu2 %1284  ;;  %v1933_v51 = vpack.c.bf16 %v1895_v31, %v1893_v24  ;;  %1840 = vst.msk [vmem:[#allocation3 + $0x1c8] sm:$0xff] %vm275_vm0, %v1230_v19 }
 0x26a   : > { %2242 = vst.msk [vmem:[%s3723_s10] sm:$0xff] %vm275_vm0, %v2163_v5  ;;  %v2345_v7 = vmul.f32 %v2163_v5, %v2163_v5  ;;  %v2274_v60 = vsel %vm275_vm0, %v2163_v5, 0.0 }
 0x26b   : > { %1127 = vrot.lane.b32.xlu1 %v3671_v44, %s2664_s27  ;;  %1371 = vst.msk [vmem:[#allocation3 + $0xa0] sm:$0xff] %vm1360_vm6, %v1285_v56 }
 0x26c   : > { %1320 = vrot.lane.b32.xlu0 %v1228_v1, %s2665_s28  ;;  %v2377_v53 = vsel %vm275_vm0, %v2345_v7, 0.0 }
 0x26d   : > { %v2075_v36 = vpop.f32.mrf.mxu0  ;;  %v1503_v22 = vpop.permute.xlu1 %1502  ;;  %2609 = vmatmul.msk.bf16.gmra.mxu3 %vm275_vm0, %v1933_v51 }
 0x26e   : > { %v2076_v4 = vadd.f32 %v3711_v11, %v2075_v36  ;;  %1577 = vst.msk [vmem:[#allocation3 + $0x160] sm:$0xff] %vm1554_vm7, %v1503_v22  ;;  %v1696_v17 = vpop.permute.xlu0 %1695  ;;  %v1617_v36 = vld [vmem:[#allocation2 + $0x199] sm:$0xff] }
 0x26f   : > { %1770 = vst.msk [vmem:[#allocation3 + $0x160] sm:$0xff] %vm1747_vm8, %v1696_v17  ;;  %1679 = vrot.lane.b32.xlu2 %v1601_v63, %s2667_s30  ;;  %v1424_v63 = vld [vmem:[#allocation2 + $0x198] sm:$0xff] }
 0x270   : > { %v2165_v43 = vadd.f32 %v3574_v28, %v2076_v4 }
 0x271   : > { %v1481_v14 = vpop.permute.xlu2 %1480 }
 0x272   : > { %2243 = vst.msk [vmem:[%s3723_s10 + $0x8] sm:$0xff] %vm275_vm0, %v2165_v43  ;;  %v2275_v26 = vsel %vm275_vm0, %v2165_v43, 0.0  ;;  %v2346_v16 = vmul.f32 %v2165_v43, %v2165_v43 }
 0x273   : > { %v2276_v55 = vadd.f32 %v2275_v26, %v2274_v60  ;;  %1322 = vrot.lane.b32.xlu1 %v3684_v18, %s2665_s28 }
 0x274   : > { %v2378_v28 = vsel %vm275_vm0, %v2346_v16, 0.0  ;;  %1516 = vrot.lane.b32.xlu0 %v1423_v33, %s2666_s29  ;;  %v1618_v33 = vld [vmem:[#allocation2 + $0x1a1] sm:$0xff] }
 0x275   : > { %v2379_v25 = vadd.f32 %v2378_v28, %v2377_v53  ;;  %v1698_v50 = vpop.permute.xlu1 %1697  ;;  %v2078_v44 = vpop.f32.mrf.mxu0 }
 0x276   : > { %1771 = vst.msk [vmem:[#allocation3 + $0x170] sm:$0xff] %vm1747_vm8, %v1698_v50  ;;  %v2079_v27 = vadd.f32 %v3711_v11, %v2078_v44  ;;  %v1287_v62 = vpop.permute.xlu0 %1286  ;;  %v1888_v58 = vld [vmem:[#allocation3 + $0x160] sm:$0xff] }
 0x277   : > { %1372 = vst.msk [vmem:[#allocation3 + $0xb0] sm:$0xff] %vm1360_vm6, %v1287_v62  ;;  %1129 = vrot.lane.b32.xlu2 %v3681_v9, %s2664_s27  ;;  %v1422_v9 = vld [vmem:[#allocation2 + $0x180] sm:$0xff] }
 0x278   : > { %v2168_v46 = vadd.f32 %v3582_v6, %v2079_v27  ;;  %1566 = vst.msk [vmem:[#allocation3 + $0xb0] sm:$0xff] %vm1554_vm7, %v1481_v14  ;;  %v3772_v6 = vpop.f32.mrf.mxu1 }
 0x279   : > { %v1120_v1 = vpop.permute.xlu2 %1119 }
 0x27a   : > { %2244 = vst.msk [vmem:[%s3723_s10 + $0x10] sm:$0xff] %vm275_vm0, %v2168_v46  ;;  %v2277_v18 = vsel %vm275_vm0, %v2168_v46, 0.0  ;;  %v2347_v3 = vmul.f32 %v2168_v46, %v2168_v46 }
 0x27b   : > { %v2278_v59 = vadd.f32 %v2277_v18, %v2276_v55  ;;  %1707 = vrot.lane.b32.xlu1 %v1615_v20, %s2667_s30  ;;  %1192 = vst.msk [vmem:[#allocation3 + $0x180] sm:$0xff] %vm1167_vm5, %v1120_v1  ;;  %v1425_v55 = vld [vmem:[#allocation2 + $0x1a0] sm:$0xff] }
 0x27c   : > { %v2380_v42 = vsel %vm275_vm0, %v2347_v3, 0.0  ;;  %1131 = vrot.lane.b32.xlu0 %v1615_v20, %s2664_s27 }
 0x27d   : > { %v2381_v41 = vadd.f32 %v2380_v42, %v2379_v25  ;;  %v1479_v15 = vpop.permute.xlu1 %1478  ;;  %v2080_v0 = vpop.f32.mrf.mxu0  ;;  %v1890_v23 = vld [vmem:[#allocation3 + $0x170] sm:$0xff] }
 0x27e   : > { %1565 = vst.msk [vmem:[#allocation3 + $0xa0] sm:$0xff] %vm1554_vm7, %v1479_v15  ;;  %v2081_v39 = vadd.f32 %v3711_v11, %v2080_v0  ;;  %v1672_v57 = vpop.permute.xlu0 %1671  ;;  %v1930_v52 = vpack.c.bf16 %v1890_v23, %v1888_v58 }
 0x27f   : > { %1758 = vst.msk [vmem:[#allocation3 + $0xa0] sm:$0xff] %vm1747_vm8, %v1672_v57  ;;  %1514 = vrot.lane.b32.xlu2 %v1422_v9, %s2666_s29 }
 0x280   : > { %v2170_v38 = vadd.f32 %v3597_v48, %v2081_v39  ;;  %2127 = vmatmul.bf16.gmra.mxu2 %v1930_v52  ;;  %v3792_v56 = vpop.f32.mrf.mxu1 }
 0x281   : > { %v1315_v47 = vpop.permute.xlu2 %1314 }
 0x282   : > { %2245 = vst.msk [vmem:[%s3723_s10 + $0x18] sm:$0xff] %vm275_vm0, %v2170_v38  ;;  %v2279_v30 = vsel %vm275_vm0, %v2170_v38, 0.0  ;;  %v2348_v13 = vmul.f32 %v2170_v38, %v2170_v38 }
 0x283   : > { %v3782_v21 = vadd.f32 %v2279_v30, %v2278_v59  ;;  %1133 = vrot.lane.b32.xlu1 %v1038_v40, %s2664_s27 }
 0x284   : > { %v2382_v48 = vsel %vm275_vm0, %v2348_v13, 0.0  ;;  %1326 = vrot.lane.b32.xlu0 %v3732_v32, %s2665_s28 }
 0x285   : > { %v2383_v54 = vadd.f32 %v2382_v48, %v2381_v41  ;;  %v1674_v45 = vpop.permute.xlu1 %1673 }
 0x286   : > { %1759 = vst.msk [vmem:[#allocation3 + $0xb0] sm:$0xff] %vm1747_vm8, %v1674_v45  ;;  %v1122_v5 = vpop.permute.xlu0 %1121  ;;  %v1864_v32 = vld [vmem:[#allocation3 + $0xa0] sm:$0xff] }
 0x287   : > { %1193 = vst.msk [vmem:[#allocation3 + $0x190] sm:$0xff] %vm1167_vm5, %v1122_v5  ;;  %1709 = vrot.lane.b32.xlu2 %v1038_v40, %s2667_s30 }
 0x288   : > { %1386 = vst.msk [vmem:[#allocation3 + $0x190] sm:$0xff] %vm1360_vm6, %v1315_v47  ;;  %v2202_v14 = vpop.f32.mrf.mxu1 }
 0x289   : > { %v1700_v22 = vpop.permute.xlu2 %1699 }
 0x28b   : > { %1518 = vrot.lane.b32.xlu1 %v1424_v63, %s2666_s29  ;;  %v2207_v63 = vpop.f32.mrf.mxu3 }
 0x28c   : > { %1711 = vrot.lane.b32.xlu0 %v1617_v36, %s2667_s30 }
 0x28d   : > { %v1313_v4 = vpop.permute.xlu1 %1312  ;;  %v1866_v17 = vld [vmem:[#allocation3 + $0xb0] sm:$0xff] }
 0x28e   : > { %1385 = vst.msk [vmem:[#allocation3 + $0x180] sm:$0xff] %vm1360_vm6, %v1313_v4  ;;  %v1507_v7 = vpop.permute.xlu0 %1506  ;;  %v1918_v43 = vpack.c.bf16 %v1866_v17, %v1864_v32 }
 0x28f   : > { %1579 = vst.msk [vmem:[#allocation3 + $0x180] sm:$0xff] %vm1554_vm7, %v1507_v7  ;;  %1324 = vrot.lane.b32.xlu2 %v1230_v19, %s2665_s28  ;;  %s238_s28 = scalar_lea.vmem %s4091_s4, %s4100_s19 }
 0x290   : > { %2097 = vmatmul.bf16.gmra.mxu0 %v1918_v43  ;;  %1772 = vst.msk [vmem:[#allocation3 + $0x180] sm:$0xff] %vm1747_vm8, %v1700_v22  ;;  %v2204_v27 = vpop.f32.mrf.mxu1 }
 0x291   : > { %v1098_v60 = vpop.permute.xlu2 %1097 }
 0x292   : > { %1181 = vst.msk [vmem:[#allocation3 + $0xd0] sm:$0xff] %vm1167_vm5, %v1098_v60 }
 0x293   : > { %1713 = vrot.lane.b32.xlu1 %v1618_v33, %s2667_s30  ;;  %v2113_v26 = vpop.f32.mrf.mxu2 }
 0x294   : > { %v2114_v16 = vadd.f32 %v3711_v11, %v2113_v26  ;;  %v2209_v26 = vpop.f32.mrf.mxu3 }
 0x295   : > { %v1509_v53 = vpop.permute.xlu1 %1508 }
 0x296   : > { %v3805_v28 = vadd.f32 %v2202_v14, %v2114_v16  ;;  %1580 = vst.msk [vmem:[#allocation3 + $0x190] sm:$0xff] %vm1554_vm7, %v1509_v53  ;;  %v1702_v25 = vpop.permute.xlu0 %1701 }
 0x297   : > { %1773 = vst.msk [vmem:[#allocation3 + $0x190] sm:$0xff] %vm1747_vm8, %v1702_v25  ;;  %1520 = vrot.lane.b32.xlu2 %v1425_v55, %s2666_s29  ;;  %v1892_v46 = vld [vmem:[#allocation3 + $0x180] sm:$0xff] }
 0x298   : > { %2258 = vst.msk [vmem:[%s3723_s10 + $0x80] sm:$0xff] %vm275_vm0, %v3805_v28 }
 0x299   : > { %v1483_v50 = vpop.permute.xlu2 %1482 }
 0x29b   : > { %v2115_v44 = vpop.f32.mrf.mxu2 }
 0x29c   : > { %v2116_v62 = vadd.f32 %v3711_v11, %v2115_v44 }
 0x29d   : > { %v1096_v20 = vpop.permute.xlu1 %1095  ;;  %v2083_v1 = vpop.f32.mrf.mxu0 }
 0x29e   : > { %v3814_v18 = vadd.f32 %v2204_v27, %v2116_v62  ;;  %1180 = vst.msk [vmem:[#allocation3 + $0xc0] sm:$0xff] %vm1167_vm5, %v1096_v20  ;;  %v2084_v3 = vadd.f32 %v3711_v11, %v2083_v1  ;;  %v1289_v59 = vpop.permute.xlu0 %1288  ;;  %v1894_v58 = vld [vmem:[#allocation3 + $0x190] sm:$0xff] }
 0x29f   : > { %1373 = vst.msk [vmem:[#allocation3 + $0xc0] sm:$0xff] %vm1360_vm6, %v1289_v59  ;;  %v1932_v42 = vpack.c.bf16 %v1894_v58, %v1892_v46 }
 0x2a0   : > { %2259 = vst.msk [vmem:[%s3723_s10 + $0x88] sm:$0xff] %vm275_vm0, %v3814_v18  ;;  %v2173_v9 = vadd.f32 %v3613_v10, %v2084_v3 }
 0x2a1   : > { %2132 = vmatmul.bf16.gmra.mxu2 %v1932_v42  ;;  %1567 = vst.msk [vmem:[#allocation3 + $0xc0] sm:$0xff] %vm1554_vm7, %v1483_v50  ;;  %v1678_v41 = vpop.permute.xlu2 %1677 }
 0x2a2   : > { %2246 = vst.msk [vmem:[%s3723_s10 + $0x20] sm:$0xff] %vm275_vm0, %v2173_v9  ;;  %v2281_v15 = vsel %vm275_vm0, %v2173_v9, 0.0  ;;  %v2349_v0 = vmul.f32 %v2173_v9, %v2173_v9 }
 0x2a3   : > { %v2282_v23 = vadd.f32 %v2281_v15, %v3782_v21 }
 0x2a4   : > { %v2384_v39 = vsel %vm275_vm0, %v2349_v0, 0.0 }
 0x2a5   : > { %v2385_v57 = vadd.f32 %v2384_v39, %v2383_v54  ;;  %v1291_v52 = vpop.permute.xlu1 %1290  ;;  %v2085_v38 = vpop.f32.mrf.mxu0  ;;  %v1897_v54 = vld [vmem:[#allocation3 + $0x1a8] sm:$0xff] }
 0x2a6   : > { %1374 = vst.msk [vmem:[#allocation3 + $0xd0] sm:$0xff] %vm1360_vm6, %v1291_v52  ;;  %v2086_v10 = vadd.f32 %v3711_v11, %v2085_v38  ;;  %v1485_v40 = vpop.permute.xlu0 %1484 }
 0x2a7   : > { %1568 = vst.msk [vmem:[#allocation3 + $0xd0] sm:$0xff] %vm1554_vm7, %v1485_v40 }
 0x2a8   : > { %v2175_v47 = vadd.f32 %v3624_v12, %v2086_v10  ;;  %1761 = vst.msk [vmem:[#allocation3 + $0xd0] sm:$0xff] %vm1747_vm8, %v1678_v41  ;;  %v1899_v12 = vld [vmem:[#allocation3 + $0x1b8] sm:$0xff] }
 0x2a9   : > { %v1317_v24 = vpop.permute.xlu2 %1316  ;;  %v1935_v45 = vpack.c.bf16 %v1899_v12, %v1897_v54 }
 0x2aa   : > { %2247 = vst.msk [vmem:[%s3723_s10 + $0x28] sm:$0xff] %vm275_vm0, %v2175_v47  ;;  %v2283_v31 = vsel %vm275_vm0, %v2175_v47, 0.0  ;;  %v2350_v30 = vmul.f32 %v2175_v47, %v2175_v47 }
 0x2ab   : > { %v2284_v13 = vadd.f32 %v2283_v31, %v2282_v23  ;;  %2610 = vmatmul.msk.bf16.gmra.mxu3 %vm275_vm0, %v1935_v45 }
 0x2ac   : > { %v2386_v19 = vsel %vm275_vm0, %v2350_v30, 0.0 }
 0x2ad   : > { %v2387_v51 = vadd.f32 %v2386_v19, %v2385_v57  ;;  %v1676_v21 = vpop.permute.xlu1 %1675  ;;  %v1903_v19 = vld [vmem:[#allocation3 + $0x1d8] sm:$0xff] }
 0x2ae   : > { %1760 = vst.msk [vmem:[#allocation3 + $0xc0] sm:$0xff] %vm1747_vm8, %v1676_v21  ;;  %v1124_v48 = vpop.permute.xlu0 %1123 }
 0x2af   : > { %1194 = vst.msk [vmem:[#allocation3 + $0x1a0] sm:$0xff] %vm1167_vm5, %v1124_v48  ;;  %v1870_v36 = vld [vmem:[#allocation3 + $0xd0] sm:$0xff] }
 0x2b0   : > { %1387 = vst.msk [vmem:[#allocation3 + $0x1a0] sm:$0xff] %vm1360_vm6, %v1317_v24 }
 0x2b1   : > { %v1513_v5 = vpop.permute.xlu2 %1512 }
 0x2b4   : > { %v2118_v22 = vpop.f32.mrf.mxu2 }
 0x2b5   : > { %v2119_v32 = vadd.f32 %v3711_v11, %v2118_v22  ;;  %v1126_v4 = vpop.permute.xlu1 %1125  ;;  %v1868_v17 = vld [vmem:[#allocation3 + $0xc0] sm:$0xff] }
 0x2b6   : > { %1195 = vst.msk [vmem:[#allocation3 + $0x1b0] sm:$0xff] %vm1167_vm5, %v1126_v4  ;;  %v1319_v7 = vpop.permute.xlu0 %1318  ;;  %v1920_v43 = vpack.c.bf16 %v1870_v36, %v1868_v17  ;;  %v1810_v4 = vld [vmem:[#allocation2 + $0x19a] sm:$0xff]  ;;  %v1811_v17 = vld [vmem:[#allocation2 + $0x1a2] sm:$0xff] }
 0x2b7   : > { %v3844_v33 = vadd.f32 %v2207_v63, %v2119_v32  ;;  %1388 = vst.msk [vmem:[#allocation3 + $0x1b0] sm:$0xff] %vm1360_vm6, %v1319_v7 }
 0x2b8   : > { %2102 = vmatmul.bf16.gmra.mxu0 %v1920_v43  ;;  %1582 = vst.msk [vmem:[#allocation3 + $0x1b0] sm:$0xff] %vm1554_vm7, %v1513_v5 }
 0x2b9   : > { %2260 = vst.msk [vmem:[%s3723_s10 + $0x90] sm:$0xff] %vm275_vm0, %v3844_v33  ;;  %v1100_v14 = vpop.permute.xlu2 %1099 }
 0x2ba   : > { %1182 = vst.msk [vmem:[#allocation3 + $0xe0] sm:$0xff] %vm1167_vm5, %v1100_v14 }
 0x2bb   : > { %1842 = vst.msk [vmem:[#allocation3 + $0x1e8] sm:$0xff] %vm275_vm0, %v1810_v4 }
 0x2bc   : > { %v2120_v60 = vpop.f32.mrf.mxu2  ;;  %1843 = vst.msk [vmem:[#allocation3 + $0x1f8] sm:$0xff] %vm275_vm0, %v1811_v17 }
 0x2bd   : > { %v2121_v16 = vadd.f32 %v3711_v11, %v2120_v60  ;;  %v1511_v55 = vpop.permute.xlu1 %1510 }
 0x2be   : > { %1581 = vst.msk [vmem:[#allocation3 + $0x1a0] sm:$0xff] %vm1554_vm7, %v1511_v55  ;;  %v1704_v53 = vpop.permute.xlu0 %1703  ;;  %v2088_v25 = vpop.f32.mrf.mxu0 }
 0x2bf   : > { %v3854_v50 = vadd.f32 %v2209_v26, %v2121_v16  ;;  %1774 = vst.msk [vmem:[#allocation3 + $0x1a0] sm:$0xff] %vm1747_vm8, %v1704_v53  ;;  %v2089_v44 = vadd.f32 %v3711_v11, %v2088_v25 }
 0x2c1   : > { %2261 = vst.msk [vmem:[%s3723_s10 + $0x98] sm:$0xff] %vm275_vm0, %v3854_v50  ;;  %v2178_v27 = vadd.f32 %v3636_v29, %v2089_v44  ;;  %v1295_v62 = vpop.permute.xlu2 %1294 }
 0x2c3   : > { %2248 = vst.msk [vmem:[%s3723_s10 + $0x30] sm:$0xff] %vm275_vm0, %v2178_v27  ;;  %v2285_v46 = vsel %vm275_vm0, %v2178_v27, 0.0  ;;  %v2351_v20 = vmul.f32 %v2178_v27, %v2178_v27  ;;  %v1905_v27 = vld [vmem:[#allocation3 + $0x1e8] sm:$0xff] }
 0x2c4   : > { %v2286_v1 = vadd.f32 %v2285_v46, %v2284_v13  ;;  %v1901_v13 = vld [vmem:[#allocation3 + $0x1c8] sm:$0xff] }
 0x2c5   : > { %v2388_v3 = vsel %vm275_vm0, %v2351_v20, 0.0  ;;  %v1706_v59 = vpop.permute.xlu1 %1705  ;;  %v1937_v21 = vpack.c.bf16 %v1903_v19, %v1901_v13  ;;  %v1907_v20 = vld [vmem:[#allocation3 + $0x1f8] sm:$0xff] }
 0x2c6   : > { %v2389_v58 = vadd.f32 %v2388_v3, %v2387_v51  ;;  %1775 = vst.msk [vmem:[#allocation3 + $0x1b0] sm:$0xff] %vm1747_vm8, %v1706_v59  ;;  %v1102_v42 = vpop.permute.xlu0 %1101  ;;  %v2090_v9 = vpop.f32.mrf.mxu0  ;;  %v1896_v39 = vld [vmem:[#allocation3 + $0x1a0] sm:$0xff]  ;;  %v1939_v59 = vpack.c.bf16 %v1907_v20, %v1905_v27 }
 0x2c7   : > { %1183 = vst.msk [vmem:[#allocation3 + $0xf0] sm:$0xff] %vm1167_vm5, %v1102_v42  ;;  %v2091_v29 = vadd.f32 %v3711_v11, %v2090_v9  ;;  %v2212_v51 = vpop.f32.mrf.mxu3  ;;  %2611 = vmatmul.msk.bf16.gmra.mxu3 %vm275_vm0, %v1937_v21 }
 0x2c8   : > { %1376 = vst.msk [vmem:[#allocation3 + $0xf0] sm:$0xff] %vm1360_vm6, %v1295_v62 }
 0x2c9   : > { %v2180_v41 = vadd.f32 %v3647_v35, %v2091_v29  ;;  %v1680_v15 = vpop.permute.xlu2 %1679 }
 0x2cb   : > { %2249 = vst.msk [vmem:[%s3723_s10 + $0x38] sm:$0xff] %vm275_vm0, %v2180_v41  ;;  %v2287_v0 = vsel %vm275_vm0, %v2180_v41, 0.0  ;;  %v2352_v23 = vmul.f32 %v2180_v41, %v2180_v41 }
 0x2cc   : > { %v2288_v57 = vadd.f32 %v2287_v0, %v2286_v1 }
 0x2cd   : > { %v2390_v52 = vsel %vm275_vm0, %v2352_v23, 0.0  ;;  %v1293_v38 = vpop.permute.xlu1 %1292  ;;  %v1898_v10 = vld [vmem:[#allocation3 + $0x1b0] sm:$0xff] }
 0x2ce   : > { %v2391_v40 = vadd.f32 %v2390_v52, %v2389_v58  ;;  %1375 = vst.msk [vmem:[#allocation3 + $0xe0] sm:$0xff] %vm1360_vm6, %v1293_v38  ;;  %v1487_v47 = vpop.permute.xlu0 %1486  ;;  %v1934_v24 = vpack.c.bf16 %v1898_v10, %v1896_v39 }
 0x2cf   : > { %1569 = vst.msk [vmem:[#allocation3 + $0xe0] sm:$0xff] %vm1554_vm7, %v1487_v47  ;;  %v2214_v7 = vpop.f32.mrf.mxu3 }
 0x2d0   : > { %2137 = vmatmul.bf16.gmra.mxu2 %v1934_v24  ;;  %1762 = vst.msk [vmem:[#allocation3 + $0xe0] sm:$0xff] %vm1747_vm8, %v1680_v15 }
 0x2d1   : > { %v1130_v35 = vpop.permute.xlu2 %1129 }
 0x2d2   : > { %1197 = vst.msk [vmem:[#allocation3 + $0x1d0] sm:$0xff] %vm1167_vm5, %v1130_v35 }
 0x2d5   : > { %v1489_v31 = vpop.permute.xlu1 %1488 }
 0x2d6   : > { %1570 = vst.msk [vmem:[#allocation3 + $0xf0] sm:$0xff] %vm1554_vm7, %v1489_v31  ;;  %v1682_v30 = vpop.permute.xlu0 %1681 }
 0x2d7   : > { %1763 = vst.msk [vmem:[#allocation3 + $0xf0] sm:$0xff] %vm1747_vm8, %v1682_v30  ;;  %v1872_v45 = vld [vmem:[#allocation3 + $0xe0] sm:$0xff]  ;;  %2612 = vmatmul.msk.bf16.gmra.mxu3 %vm275_vm0, %v1939_v59 }
 0x2d9   : > { %v1515_v48 = vpop.permute.xlu2 %1514 }
 0x2db   : > { %v2123_v54 = vpop.f32.mrf.mxu2 }
 0x2dc   : > { %v2124_v12 = vadd.f32 %v3711_v11, %v2123_v54 }
 0x2dd   : > { %v1128_v5 = vpop.permute.xlu1 %1127 }
 0x2de   : > { %v3883_v63 = vadd.f32 %v2212_v51, %v2124_v12  ;;  %1196 = vst.msk [vmem:[#allocation3 + $0x1c0] sm:$0xff] %vm1167_vm5, %v1128_v5  ;;  %v1874_v36 = vld [vmem:[#allocation3 + $0xf0] sm:$0xff]  ;;  %v1321_v22 = vpop.permute.xlu0 %1320 }
 0x2df   : > { %v1922_v32 = vpack.c.bf16 %v1874_v36, %v1872_v45  ;;  %1389 = vst.msk [vmem:[#allocation3 + $0x1c0] sm:$0xff] %vm1360_vm6, %v1321_v22 }
 0x2e0   : > { %2262 = vst.msk [vmem:[%s3723_s10 + $0xa0] sm:$0xff] %vm275_vm0, %v3883_v63  ;;  %v2217_v30 = vpop.f32.mrf.mxu3 }
 0x2e1   : > { %2107 = vmatmul.bf16.gmra.mxu0 %v1922_v32  ;;  %1583 = vst.msk [vmem:[#allocation3 + $0x1c0] sm:$0xff] %vm1554_vm7, %v1515_v48  ;;  %v1710_v14 = vpop.permute.xlu2 %1709 }
 0x2e3   : > { %v2125_v43 = vpop.f32.mrf.mxu2 }
 0x2e4   : > { %v2126_v60 = vadd.f32 %v3711_v11, %v2125_v43 }
 0x2e5   : > { %v1323_v26 = vpop.permute.xlu1 %1322  ;;  %v2093_v16 = vpop.f32.mrf.mxu0 }
 0x2e6   : > { %v3894_v55 = vadd.f32 %v2214_v7, %v2126_v60  ;;  %1390 = vst.msk [vmem:[#allocation3 + $0x1d0] sm:$0xff] %vm1360_vm6, %v1323_v26  ;;  %v2094_v53 = vadd.f32 %v3711_v11, %v2093_v16  ;;  %v1517_v25 = vpop.permute.xlu0 %1516 }
 0x2e7   : > { %1584 = vst.msk [vmem:[#allocation3 + $0x1d0] sm:$0xff] %vm1554_vm7, %v1517_v25 }
 0x2e8   : > { %2263 = vst.msk [vmem:[%s3723_s10 + $0xa8] sm:$0xff] %vm275_vm0, %v3894_v55  ;;  %v2183_v44 = vadd.f32 %v3663_v49, %v2094_v53  ;;  %v2219_v54 = vpop.f32.mrf.mxu3 }
 0x2e9   : > { %1777 = vst.msk [vmem:[#allocation3 + $0x1d0] sm:$0xff] %vm1747_vm8, %v1710_v14  ;;  %v1325_v3 = vpop.permute.xlu2 %1324 }
 0x2ea   : > { %2250 = vst.msk [vmem:[%s3723_s10 + $0x40] sm:$0xff] %vm275_vm0, %v2183_v44  ;;  %v2289_v62 = vsel %vm275_vm0, %v2183_v44, 0.0  ;;  %v2353_v46 = vmul.f32 %v2183_v44, %v2183_v44 }
 0x2eb   : > { %v2290_v1 = vadd.f32 %v2289_v62, %v2288_v57 }
 0x2ec   : > { %v2392_v58 = vsel %vm275_vm0, %v2353_v46, 0.0 }
 0x2ed   : > { %v2393_v42 = vadd.f32 %v2392_v58, %v2391_v40  ;;  %v1708_v9 = vpop.permute.xlu1 %1707  ;;  %v2095_v29 = vpop.f32.mrf.mxu0 }
 0x2ee   : > { %1776 = vst.msk [vmem:[#allocation3 + $0x1c0] sm:$0xff] %vm1747_vm8, %v1708_v9  ;;  %v2096_v49 = vadd.f32 %v3711_v11, %v2095_v29  ;;  %v1132_v41 = vpop.permute.xlu0 %1131 }
 0x2ef   : > { %1198 = vst.msk [vmem:[#allocation3 + $0x1e0] sm:$0xff] %vm1167_vm5, %v1132_v41 }
 0x2f0   : > { %v2185_v15 = vadd.f32 %v3673_v8, %v2096_v49  ;;  %1391 = vst.msk [vmem:[#allocation3 + $0x1e0] sm:$0xff] %vm1360_vm6, %v1325_v3  ;;  %v1902_v57 = vld [vmem:[#allocation3 + $0x1d0] sm:$0xff]  ;;  %v2222_v20 = vpop.f32.mrf.mxu3 }
 0x2f1   : > { %v1521_v47 = vpop.permute.xlu2 %1520 }
 0x2f2   : > { %2251 = vst.msk [vmem:[%s3723_s10 + $0x48] sm:$0xff] %vm275_vm0, %v2185_v15  ;;  %v2291_v0 = vsel %vm275_vm0, %v2185_v15, 0.0  ;;  %v2354_v23 = vmul.f32 %v2185_v15, %v2185_v15 }
 0x2f3   : > { %v2292_v39 = vadd.f32 %v2291_v0, %v2290_v1 }
 0x2f4   : > { %v2394_v52 = vsel %vm275_vm0, %v2354_v23, 0.0 }
 0x2f5   : > { %v2395_v38 = vadd.f32 %v2394_v52, %v2393_v42  ;;  %v1134_v10 = vpop.permute.xlu1 %1133  ;;  %v1900_v40 = vld [vmem:[#allocation3 + $0x1c0] sm:$0xff] }
 0x2f6   : > { %1199 = vst.msk [vmem:[#allocation3 + $0x1f0] sm:$0xff] %vm1167_vm5, %v1134_v10  ;;  %v1936_v24 = vpack.c.bf16 %v1902_v57, %v1900_v40  ;;  %v1327_v8 = vpop.permute.xlu0 %1326 }
 0x2f7   : > { %1392 = vst.msk [vmem:[#allocation3 + $0x1f0] sm:$0xff] %vm1360_vm6, %v1327_v8 }
 0x2f8   : > { %2142 = vmatmul.bf16.gmra.mxu2 %v1936_v24  ;;  %1586 = vst.msk [vmem:[#allocation3 + $0x1f0] sm:$0xff] %vm1554_vm7, %v1521_v47  ;;  %v2224_v58 = vpop.f32.mrf.mxu3 }
 0x2fd   : > { %v1519_v35 = vpop.permute.xlu1 %1518 }
 0x2fe   : > { %1585 = vst.msk [vmem:[#allocation3 + $0x1e0] sm:$0xff] %vm1554_vm7, %v1519_v35  ;;  %v1712_v31 = vpop.permute.xlu0 %1711 }
 0x2ff   : > { %1778 = vst.msk [vmem:[#allocation3 + $0x1e0] sm:$0xff] %vm1747_vm8, %v1712_v31 }
 0x303   : > { %v2128_v13 = vpop.f32.mrf.mxu2 }
 0x304   : > { %v2129_v19 = vadd.f32 %v3711_v11, %v2128_v13 }
 0x305   : > { %v1714_v51 = vpop.permute.xlu1 %1713 }
 0x306   : > { %v3924_v21 = vadd.f32 %v2217_v30, %v2129_v19  ;;  %1779 = vst.msk [vmem:[#allocation3 + $0x1f0] sm:$0xff] %vm1747_vm8, %v1714_v51  ;;  %v1904_v12 = vld [vmem:[#allocation3 + $0x1e0] sm:$0xff] }
 0x308   : > { %2264 = vst.msk [vmem:[%s3723_s10 + $0xb0] sm:$0xff] %vm275_vm0, %v3924_v21 }
 0x30b   : > { %v2130_v48 = vpop.f32.mrf.mxu2 }
 0x30c   : > { %v2131_v45 = vadd.f32 %v3711_v11, %v2130_v48 }
 0x30d   : > { %v2098_v5 = vpop.f32.mrf.mxu0  ;;  %v1906_v36 = vld [vmem:[#allocation3 + $0x1f0] sm:$0xff] }
 0x30e   : > { %v2099_v22 = vadd.f32 %v3711_v11, %v2098_v5  ;;  %v3932_v32 = vadd.f32 %v2219_v54, %v2131_v45  ;;  %v1938_v4 = vpack.c.bf16 %v1906_v36, %v1904_v12 }
 0x310   : > { %v2188_v17 = vadd.f32 %v3692_v37, %v2099_v22  ;;  %2265 = vst.msk [vmem:[%s3723_s10 + $0xb8] sm:$0xff] %vm275_vm0, %v3932_v32  ;;  %2147 = vmatmul.bf16.gmra.mxu2 %v1938_v4 }
 0x312   : > { %2252 = vst.msk [vmem:[%s3723_s10 + $0x50] sm:$0xff] %vm275_vm0, %v2188_v17  ;;  %v2293_v7 = vsel %vm275_vm0, %v2188_v17, 0.0  ;;  %v2355_v43 = vmul.f32 %v2188_v17, %v2188_v17 }
 0x313   : > { %v2294_v14 = vadd.f32 %v2293_v7, %v2292_v39 }
 0x314   : > { %v2396_v60 = vsel %vm275_vm0, %v2355_v43, 0.0  ;;  %v2361_v43 = vmul.f32 %v3805_v28, %v3805_v28 }
 0x315   : > { %v2397_v26 = vadd.f32 %v2396_v60, %v2395_v38  ;;  %v2100_v16 = vpop.f32.mrf.mxu0 }
 0x316   : > { %v2101_v53 = vadd.f32 %v3711_v11, %v2100_v16 }
 0x318   : > { %v2190_v25 = vadd.f32 %v3702_v34, %v2101_v53  ;;  %v2305_v53 = vsel %vm275_vm0, %v3805_v28, 0.0  ;;  %v2309_v28 = vsel %vm275_vm0, %v3844_v33, 0.0 }
 0x31a   : > { %2253 = vst.msk [vmem:[%s3723_s10 + $0x58] sm:$0xff] %vm275_vm0, %v2190_v25  ;;  %v2295_v37 = vsel %vm275_vm0, %v2190_v25, 0.0  ;;  %v2356_v44 = vmul.f32 %v2190_v25, %v2190_v25  ;;  %v2362_v25 = vmul.f32 %v3814_v18, %v3814_v18 }
 0x31b   : > { %v2296_v27 = vadd.f32 %v2295_v37, %v2294_v14 }
 0x31c   : > { %v2398_v62 = vsel %vm275_vm0, %v2356_v44, 0.0 }
 0x31d   : > { %v2399_v46 = vadd.f32 %v2398_v62, %v2397_v26  ;;  %v2307_v62 = vsel %vm275_vm0, %v3814_v18, 0.0  ;;  %v2311_v18 = vsel %vm275_vm0, %v3854_v50, 0.0 }
 0x324   : > { %v2133_v1 = vpop.f32.mrf.mxu2 }
 0x325   : > { %v2134_v3 = vadd.f32 %v3711_v11, %v2133_v1 }
 0x327   : > { %v3949_v59 = vadd.f32 %v2222_v20, %v2134_v3  ;;  %v2410_v3 = vsel %vm275_vm0, %v2362_v25, 0.0 }
 0x329   : > { %2266 = vst.msk [vmem:[%s3723_s10 + $0xc0] sm:$0xff] %vm275_vm0, %v3949_v59 }
 0x32c   : > { %v2135_v34 = vpop.f32.mrf.mxu2 }
 0x32d   : > { %v2136_v42 = vadd.f32 %v3711_v11, %v2135_v34  ;;  %v2364_v34 = vmul.f32 %v3854_v50, %v3854_v50  ;;  %v2315_v50 = vsel %vm275_vm0, %v3894_v55, 0.0 }
 0x32e   : > { %v2227_v40 = vpop.f32.mrf.mxu3 }
 0x32f   : > { %v3955_v9 = vadd.f32 %v2224_v58, %v2136_v42 }
 0x331   : > { %2267 = vst.msk [vmem:[%s3723_s10 + $0xc8] sm:$0xff] %vm275_vm0, %v3955_v9 }
 0x335   : > { %v2103_v29 = vpop.f32.mrf.mxu0 }
 0x336   : > { %v2104_v49 = vadd.f32 %v3711_v11, %v2103_v29  ;;  %v2229_v35 = vpop.f32.mrf.mxu3 }
 0x338   : > { %v2193_v41 = vadd.f32 %v3730_v61, %v2104_v49  ;;  %v2365_v49 = vmul.f32 %v3883_v63, %v3883_v63 }
 0x33a   : > { %2254 = vst.msk [vmem:[%s3723_s10 + $0x60] sm:$0xff] %vm275_vm0, %v2193_v41  ;;  %v2297_v15 = vsel %vm275_vm0, %v2193_v41, 0.0  ;;  %v2357_v0 = vmul.f32 %v2193_v41, %v2193_v41 }
 0x33b   : > { %v2298_v23 = vadd.f32 %v2297_v15, %v2296_v27  ;;  %v2408_v27 = vsel %vm275_vm0, %v2361_v43, 0.0 }
 0x33c   : > { %v2400_v39 = vsel %vm275_vm0, %v2357_v0, 0.0  ;;  %v2414_v0 = vsel %vm275_vm0, %v2364_v34, 0.0 }
 0x33d   : > { %v2401_v57 = vadd.f32 %v2400_v39, %v2399_v46  ;;  %v2105_v52 = vpop.f32.mrf.mxu0  ;;  %v2363_v46 = vmul.f32 %v3844_v33, %v3844_v33  ;;  %v2313_v33 = vsel %vm275_vm0, %v3883_v63, 0.0  ;;  %v2317_v63 = vsel %vm275_vm0, %v3924_v21, 0.0 }
 0x33e   : > { %v2106_v38 = vadd.f32 %v3711_v11, %v2105_v52  ;;  %v2416_v52 = vsel %vm275_vm0, %v2365_v49, 0.0 }
 0x33f   : > { %v2412_v29 = vsel %vm275_vm0, %v2363_v46, 0.0 }
 0x340   : > { %v2195_v10 = vadd.f32 %v3751_v2, %v2106_v38  ;;  %v2367_v38 = vmul.f32 %v3924_v21, %v3924_v21 }
 0x342   : > { %2255 = vst.msk [vmem:[%s3723_s10 + $0x68] sm:$0xff] %vm275_vm0, %v2195_v10  ;;  %v2358_v51 = vmul.f32 %v2195_v10, %v2195_v10  ;;  %v2299_v48 = vsel %vm275_vm0, %v2195_v10, 0.0 }
 0x343   : > { %v2300_v22 = vadd.f32 %v2299_v48, %v2298_v23  ;;  %v2366_v23 = vmul.f32 %v3894_v55, %v3894_v55  ;;  %v2319_v55 = vsel %vm275_vm0, %v3932_v32, 0.0 }
 0x344   : > { %v2402_v45 = vsel %vm275_vm0, %v2358_v51, 0.0 }
 0x345   : > { %v2403_v7 = vadd.f32 %v2402_v45, %v2401_v57  ;;  %v2370_v45 = vmul.f32 %v3955_v9, %v3955_v9 }
 0x353   : > { %v2138_v61 = vpop.f32.mrf.mxu2 }
 0x354   : > { %v2139_v47 = vadd.f32 %v3711_v11, %v2138_v61  ;;  %v2418_v61 = vsel %vm275_vm0, %v2366_v23, 0.0 }
 0x356   : > { %v3971_v24 = vadd.f32 %v2227_v40, %v2139_v47  ;;  %v2368_v47 = vmul.f32 %v3932_v32, %v3932_v32 }
 0x358   : > { %2268 = vst.msk [vmem:[%s3723_s10 + $0xd0] sm:$0xff] %vm275_vm0, %v3971_v24 }
 0x35b   : > { %v2140_v8 = vpop.f32.mrf.mxu2 }
 0x35c   : > { %v2141_v31 = vadd.f32 %v3711_v11, %v2140_v8  ;;  %v2232_v8 = vpop.f32.mrf.mxu3 }
 0x35e   : > { %v3977_v30 = vadd.f32 %v2229_v35, %v2141_v31  ;;  %v2108_v13 = vpop.f32.mrf.mxu0 }
 0x35f   : > { %v2109_v2 = vadd.f32 %v3711_v11, %v2108_v13  ;;  %v2420_v13 = vsel %vm275_vm0, %v2367_v38, 0.0 }
 0x360   : > { %2269 = vst.msk [vmem:[%s3723_s10 + $0xd8] sm:$0xff] %vm275_vm0, %v3977_v30 }
 0x361   : > { %v2198_v19 = vadd.f32 %v3772_v6, %v2109_v2  ;;  %v2369_v2 = vmul.f32 %v3949_v59, %v3949_v59 }
 0x363   : > { %2256 = vst.msk [vmem:[%s3723_s10 + $0x70] sm:$0xff] %vm275_vm0, %v2198_v19  ;;  %v2359_v54 = vmul.f32 %v2198_v19, %v2198_v19  ;;  %v2301_v5 = vsel %vm275_vm0, %v2198_v19, 0.0 }
 0x364   : > { %v2302_v6 = vadd.f32 %v2301_v5, %v2300_v22  ;;  %v2424_v22 = vsel %vm275_vm0, %v2369_v2, 0.0 }
 0x365   : > { %v2404_v4 = vsel %vm275_vm0, %v2359_v54, 0.0  ;;  %v2422_v54 = vsel %vm275_vm0, %v2368_v47, 0.0 }
 0x366   : > { %v2110_v12 = vpop.f32.mrf.mxu0  ;;  %v2405_v26 = vadd.f32 %v2404_v4, %v2403_v7  ;;  %v2323_v4 = vsel %vm275_vm0, %v3955_v9, 0.0  ;;  %v2325_v9 = vsel %vm275_vm0, %v3971_v24, 0.0 }
 0x367   : > { %v2111_v36 = vadd.f32 %v3711_v11, %v2110_v12  ;;  %v2321_v12 = vsel %vm275_vm0, %v3949_v59, 0.0 }
 0x369   : > { %v2200_v17 = vadd.f32 %v3792_v56, %v2111_v36 }
 0x36b   : > { %2257 = vst.msk [vmem:[%s3723_s10 + $0x78] sm:$0xff] %vm275_vm0, %v2200_v17  ;;  %v2303_v14 = vsel %vm275_vm0, %v2200_v17, 0.0  ;;  %v2360_v60 = vmul.f32 %v2200_v17, %v2200_v17 }
 0x36c   : > { %v2304_v16 = vadd.f32 %v2303_v14, %v2302_v6  ;;  %v2426_v6 = vsel %vm275_vm0, %v2370_v45, 0.0  ;;  %v2234_v14 = vpop.f32.mrf.mxu3 }
 0x36d   : > { %v2406_v56 = vsel %vm275_vm0, %v2360_v60, 0.0 }
 0x36e   : > { %v2306_v37 = vadd.f32 %v2305_v53, %v2304_v16  ;;  %v2407_v44 = vadd.f32 %v2406_v56, %v2405_v26  ;;  %v2371_v16 = vmul.f32 %v3971_v24, %v3971_v24  ;;  %v2372_v56 = vmul.f32 %v3977_v30, %v3977_v30 }
 0x370   : > { %v2308_v20 = vadd.f32 %v2307_v62, %v2306_v37  ;;  %v2409_v1 = vadd.f32 %v2408_v27, %v2407_v44  ;;  %v2428_v25 = vsel %vm275_vm0, %v2371_v16, 0.0  ;;  %v2327_v62 = vsel %vm275_vm0, %v3977_v30, 0.0 }
 0x372   : > { %v2310_v58 = vadd.f32 %v2309_v28, %v2308_v20  ;;  %v2411_v42 = vadd.f32 %v2410_v3, %v2409_v1  ;;  %v2430_v1 = vsel %vm275_vm0, %v2372_v56, 0.0 }
 0x374   : > { %v2312_v41 = vadd.f32 %v2311_v18, %v2310_v58  ;;  %v2413_v15 = vadd.f32 %v2412_v29, %v2411_v42  ;;  %v2237_v44 = vpop.f32.mrf.mxu3 }
 0x376   : > { %v2314_v39 = vadd.f32 %v2313_v33, %v2312_v41  ;;  %v2415_v57 = vadd.f32 %v2414_v0, %v2413_v15 }
 0x378   : > { %v2417_v10 = vadd.f32 %v2416_v52, %v2415_v57  ;;  %v2316_v40 = vadd.f32 %v2315_v50, %v2314_v39 }
 0x37a   : > { %v2318_v35 = vadd.f32 %v2317_v63, %v2316_v40  ;;  %v2419_v31 = vadd.f32 %v2418_v61, %v2417_v10 }
 0x37b   : > { %v2143_v19 = vpop.f32.mrf.mxu2 }
 0x37c   : > { %v2144_v51 = vadd.f32 %v3711_v11, %v2143_v19  ;;  %v2320_v48 = vadd.f32 %v2319_v55, %v2318_v35  ;;  %v2421_v21 = vadd.f32 %v2420_v13, %v2419_v31  ;;  %v2239_v39 = vpop.f32.mrf.mxu3 }
 0x37e   : > { %v2233_v5 = vadd.f32 %v2232_v8, %v2144_v51  ;;  %v2322_v36 = vadd.f32 %v2321_v12, %v2320_v48  ;;  %v2423_v32 = vadd.f32 %v2422_v54, %v2421_v21 }
 0x380   : > { %2270 = vst.msk [vmem:[%s3723_s10 + $0xe0] sm:$0xff] %vm275_vm0, %v2233_v5  ;;  %v2324_v17 = vadd.f32 %v2323_v4, %v2322_v36  ;;  %v2425_v7 = vadd.f32 %v2424_v22, %v2423_v32  ;;  %v2373_v3 = vmul.f32 %v2233_v5, %v2233_v5  ;;  %v2329_v34 = vsel %vm275_vm0, %v2233_v5, 0.0 }
 0x382   : > { %v2427_v43 = vadd.f32 %v2426_v6, %v2425_v7  ;;  %v2326_v53 = vadd.f32 %v2325_v9, %v2324_v17  ;;  %v2432_v29 = vsel %vm275_vm0, %v2373_v3, 0.0 }
 0x383   : > { %v2145_v59 = vpop.f32.mrf.mxu2 }
 0x384   : > { %v2146_v60 = vadd.f32 %v3711_v11, %v2145_v59  ;;  %v2429_v37 = vadd.f32 %v2428_v25, %v2427_v43  ;;  %v2328_v20 = vadd.f32 %v2327_v62, %v2326_v53 }
 0x386   : > { %v2235_v26 = vadd.f32 %v2234_v14, %v2146_v60  ;;  %v2431_v28 = vadd.f32 %v2430_v1, %v2429_v37  ;;  %v2330_v42 = vadd.f32 %v2329_v34, %v2328_v20 }
 0x388   : > { %2271 = vst.msk [vmem:[%s3723_s10 + $0xe8] sm:$0xff] %vm275_vm0, %v2235_v26  ;;  %v2374_v58 = vmul.f32 %v2235_v26, %v2235_v26  ;;  %v2331_v18 = vsel %vm275_vm0, %v2235_v26, 0.0  ;;  %v2433_v49 = vadd.f32 %v2432_v29, %v2431_v28 }
 0x389   : > { %v2332_v23 = vadd.f32 %v2331_v18, %v2330_v42 }
 0x38a   : > { %v2434_v15 = vsel %vm275_vm0, %v2374_v58, 0.0 }
 0x38b   : > { %v2435_v50 = vadd.f32 %v2434_v15, %v2433_v49 }
 0x393   : > { %v2148_v27 = vpop.f32.mrf.mxu2 }
 0x394   : > { %v2149_v46 = vadd.f32 %v3711_v11, %v2148_v27 }
 0x396   : > { %v2238_v24 = vadd.f32 %v2237_v44, %v2149_v46 }
 0x398   : > { %2272 = vst.msk [vmem:[%s3723_s10 + $0xf0] sm:$0xff] %vm275_vm0, %v2238_v24  ;;  %v2375_v30 = vmul.f32 %v2238_v24, %v2238_v24  ;;  %v2333_v0 = vsel %vm275_vm0, %v2238_v24, 0.0 }
 0x399   : > { %v2334_v38 = vadd.f32 %v2333_v0, %v2332_v23 }
 0x39a   : > { %v2436_v57 = vsel %vm275_vm0, %v2375_v30, 0.0 }
 0x39b   : > { %v2150_v41 = vpop.f32.mrf.mxu2  ;;  %v2437_v61 = vadd.f32 %v2436_v57, %v2435_v50 }
 0x39c   : > { %v2151_v33 = vadd.f32 %v3711_v11, %v2150_v41 }
 0x39e   : > { %v2240_v52 = vadd.f32 %v2239_v39, %v2151_v33 }
 0x3a0   : > { %2273 = vst.msk [vmem:[%s3723_s10 + $0xf8] sm:$0xff] %vm275_vm0, %v2240_v52  ;;  %v2335_v10 = vsel %vm275_vm0, %v2240_v52, 0.0  ;;  %v2376_v40 = vmul.f32 %v2240_v52, %v2240_v52 }
 0x3a1   : > { %v2336_v63 = vadd.f32 %v2335_v10, %v2334_v38 }
 0x3a2   : > { %v2438_v47 = vsel %vm275_vm0, %v2376_v40, 0.0 }
 0x3a3   : > { %v2337_v8 = vrot.slane %v2336_v63, 4  ;;  %v2439_v11 = vadd.f32 %v2438_v47, %v2437_v61 }
 0x3a5   : > { %v2338_v35 = vadd.f32 %v2337_v8, %v2336_v63  ;;  %v2440_v31 = vrot.slane %v2439_v11, 4 }
 0x3a7   : > { %v2339_v13 = vrot.slane %v2338_v35, 2  ;;  %v2441_v55 = vadd.f32 %v2440_v31, %v2439_v11 }
 0x3a9   : > { %v2340_v2 = vadd.f32 %v2339_v13, %v2338_v35  ;;  %v2442_v19 = vrot.slane %v2441_v55, 2 }
 0x3ab   : > { %v2341_v51 = vrot.slane %v2340_v2, 1  ;;  %v2443_v48 = vadd.f32 %v2442_v19, %v2441_v55 }
 0x3ad   : > { %v2342_v21 = vadd.f32 %v2341_v51, %v2340_v2  ;;  %v2444_v54 = vrot.slane %v2443_v48, 1 }
 0x3af   : > { %2344 = vst.msk [vmem:[%s238_s28] sm:$0x1] %vm2343_vm9, %v2342_v21  ;;  %v2445_v12 = vadd.f32 %v2444_v54, %v2443_v48 }
 0x3b1   : > { %2446 = vst.msk [vmem:[%s241_s11] sm:$0x1] %vm2343_vm9, %v2445_v12 }
 0x3b2 PF: > { %s16_s18 = sadd.s32 1, %s2658_s18  }
 0x3b3   : > { %p13_p4 = scmp.ge.s32.totalorder %s16_s18, 4  }
 0x3b5   :  { %15 = sbr.rel (!%p13_p4) target bundleno = 1 (0x1), region = 88 }

// kernel: resnet_block_a_forward.4
= control target key start
LH: loop header
LB: loop body
LE: loop exit
PB: predicated region body
PF: predicated region fallthrough
CT: control target
= control target key end

     0   :  { %s2868_s24 = smov 0   ;;  %s4299_s0 = inlined_call_operand.vmem [shape: f32[2,16,16,16], index: 0, kind: input, shape index: {}]   ;;  %s4300_s1 = inlined_call_operand.vmem [shape: f32[1,16], index: 1, kind: input, shape index: {}]   ;;  %s4301_s2 = inlined_call_operand.vmem [shape: f32[1,16], index: 2, kind: input, shape index: {}]   ;;  %s4302_s3 = inlined_call_operand.vmem [shape: bf16[144,16], index: 3, kind: input, shape index: {}]   ;;  %s4303_s4 = inlined_call_operand.vmem [shape: f32[1,16], index: 4, kind: input, shape index: {}]   ;;  %s4304_s5 = inlined_call_operand.vmem [shape: f32[2,16,16,16], index: 5, kind: output, shape index: {0}]   ;;  %s4305_s6 = inlined_call_operand.vmem [shape: f32[2,1,16], index: 6, kind: output, shape index: {1}]   ;;  %s4306_s7 = inlined_call_operand.vmem [shape: f32[2,1,16], index: 7, kind: output, shape index: {2}]  }
   0x1 LB: > { %s2710_s25 = sadd.s32 4294967295, %s2818_s24   ;;  %p2714_p0 = scmp.ge.s32.totalorder %s2818_s24, 1  ;;  %s2818_s24 = sphi %s2868_s24, %s18_s24  }
   0x2   : > { %p242_p1 = scmp.lt.s32.totalorder %s2818_s24, 3 }
   0x4   : > { %p243_p2 = pnand %p2714_p0, %p242_p1 }
   0x5   : > { %p280_p3 = scmp.lt.s32.totalorder (!%p243_p2), %s2710_s25, 1  ;;  %s2821_s26 = smov (!%p243_p2), 16  }
   0x6   : > { %246 = sbr.rel (%p243_p2) target bundleno = 946 (0x3b2), region = 40  ;;  %s2822_s12 = smov (!%p243_p2), 32  }
   0x7   : > { %s2823_s13 = smov (!%p243_p2), 48   ;;  %s2824_s14 = smov (!%p243_p2), 64  }
   0x8   : > { %s2825_s15 = smov (!%p243_p2), 80   ;;  %s2826_s16 = smov (!%p243_p2), 96  }
   0x9   : > { %s2827_s17 = smov (!%p243_p2), 112  }
   0xb   : > { %vm433_vm0 = vcmask 130048   ;;  %v2820_v0 = vmov 0.0   ;;  %s4308_s25 = smov (!%p280_p3, %s2710_s25), 1  ;;  %v2932_v2 = vld [vmem:[%s4300_s1] ss:$0 sm:$0xff]  ;;  %vm436_vm1 = vcmask 123904  }
   0xc   : > { %434 = vst.msk [vmem:[#allocation2] sm:$0xff] %vm433_vm0, %v2820_v0  ;;  %s2773_s27 = sshll.u32 %s4308_s25, 8  ;;  %v2947_v5 = vld [vmem:[%s4301_s2] ss:$0 sm:$0xff]  ;;  %vm746_vm2 = vcmask 261248   ;;  %vm939_vm3 = vcmask 392448   ;;  %s295_s28 = scalar_lea.vmem %s4306_s7, %s4308_s25 }
   0xd   : > { %435 = vst.msk [vmem:[#allocation2 + $0x8] sm:$0xff] %vm433_vm0, %v2820_v0  ;;  %s2923_s30 = scalar_lea.vmem %s4299_s0, %s2773_s27  ;;  %vm1132_vm4 = vcmask 523648   ;;  %vm1325_vm5 = vcmask 654848   ;;  %vm1518_vm6 = vcmask 786048   ;;  %vm1712_vm7 = vcmask 917248  }
   0xe   : > { %438 = vst.msk [vmem:[#allocation2 + $0x18] sm:$0xff] %vm433_vm0, %v2820_v0  ;;  %v297_v3 = vld [vmem:[%s2923_s30] sm:$0xff]  ;;  %v298_v8 = vld [vmem:[%s2923_s30 + $0x8] sm:$0xff]  ;;  %v304_v13 = vld [vmem:[%s2923_s30 + $0x38] sm:$0xff]  ;;  %vm1905_vm8 = vcmask 1048448   ;;  %vm2501_vm9 = vcmask 122880  }
   0xf   : > { %439 = vst.msk [vmem:[#allocation2 + $0x20] sm:$0xff] %vm433_vm0, %v2820_v0  ;;  %v334_v4 = vmul.f32 %v2932_v2, %v297_v3  ;;  %v301_v9 = vld [vmem:[%s2923_s30 + $0x20] sm:$0xff]  ;;  %v302_v10 = vld [vmem:[%s2923_s30 + $0x28] sm:$0xff]  ;;  %v335_v12 = vmul.f32 %v2932_v2, %v298_v8  ;;  %v299_v16 = vld [vmem:[%s2923_s30 + $0x10] sm:$0xff]  ;;  %v341_v19 = vmul.f32 %v2932_v2, %v304_v13 }
  0x10   : > { %441 = vst.msk [vmem:[#allocation2 + $0x30] sm:$0xff] %vm433_vm0, %v2820_v0  ;;  %v338_v15 = vmul.f32 %v2932_v2, %v301_v9  ;;  %v339_v17 = vmul.f32 %v2932_v2, %v302_v10  ;;  %v305_v18 = vld [vmem:[%s2923_s30 + $0x40] sm:$0xff]  ;;  %v307_v20 = vld [vmem:[%s2923_s30 + $0x50] sm:$0xff]  ;;  %v336_v22 = vmul.f32 %v2932_v2, %v299_v16  ;;  %v300_v23 = vld [vmem:[%s2923_s30 + $0x18] sm:$0xff] }
  0x11   : > { %442 = vst.msk [vmem:[#allocation2 + $0x38] sm:$0xff] %vm433_vm0, %v2820_v0  ;;  %v369_v6 = vadd.f32 %v2947_v5, %v334_v4  ;;  %v370_v21 = vadd.f32 %v2947_v5, %v335_v12  ;;  %v342_v25 = vmul.f32 %v2932_v2, %v305_v18  ;;  %v308_v26 = vld [vmem:[%s2923_s30 + $0x58] sm:$0xff]  ;;  %v344_v28 = vmul.f32 %v2932_v2, %v307_v20  ;;  %v310_v29 = vld [vmem:[%s2923_s30 + $0x68] sm:$0xff]  ;;  %v303_v32 = vld [vmem:[%s2923_s30 + $0x30] sm:$0xff] }
  0x12   : > { %444 = vst.msk [vmem:[#allocation2 + $0x48] sm:$0xff] %vm433_vm0, %v2820_v0  ;;  %v373_v24 = vadd.f32 %v2947_v5, %v338_v15  ;;  %v374_v27 = vadd.f32 %v2947_v5, %v339_v17  ;;  %v376_v30 = vadd.f32 %v2947_v5, %v341_v19  ;;  %v337_v31 = vmul.f32 %v2932_v2, %v300_v23  ;;  %v311_v36 = vld [vmem:[%s2923_s30 + $0x70] sm:$0xff]  ;;  %v313_v40 = vld [vmem:[%s2923_s30 + $0x80] sm:$0xff]  ;;  %v306_v52 = vld [vmem:[%s2923_s30 + $0x48] sm:$0xff] }
  0x13   : > { %445 = vst.msk [vmem:[#allocation2 + $0x50] sm:$0xff] %vm433_vm0, %v2820_v0  ;;  %v401_v7 = vmax.f32 %v369_v6, 0.0  ;;  %v402_v33 = vmax.f32 %v370_v21, 0.0  ;;  %v371_v34 = vadd.f32 %v2947_v5, %v336_v22  ;;  %v345_v35 = vmul.f32 %v2932_v2, %v308_v26  ;;  %v314_v53 = vld [vmem:[%s2923_s30 + $0x88] sm:$0xff]  ;;  %v316_v58 = vld [vmem:[%s2923_s30 + $0x98] sm:$0xff]  ;;  %v309_v12 = vld [vmem:[%s2923_s30 + $0x60] sm:$0xff] }
  0x14   : > { %v586_v1 = vld [vmem:[#allocation2 + $0x1] sm:$0xff]  ;;  %447 = vst.msk [vmem:[#allocation2 + $0x60] sm:$0xff] %vm433_vm0, %v2820_v0  ;;  %v405_v37 = vmax.f32 %v373_v24, 0.0  ;;  %v377_v38 = vadd.f32 %v2947_v5, %v342_v25  ;;  %v347_v39 = vmul.f32 %v2932_v2, %v310_v29  ;;  %v406_v41 = vmax.f32 %v374_v27, 0.0  ;;  %v319_v17 = vld [vmem:[%s2923_s30 + $0xb0] sm:$0xff] }
  0x15   : > { %650 = vrot.lane.b32.xlu0 %v586_v1, %s2821_s26  ;;  %448 = vst.msk [vmem:[#allocation2 + $0x68] sm:$0xff] %vm433_vm0, %v2820_v0  ;;  %v379_v42 = vadd.f32 %v2947_v5, %v344_v28  ;;  %v340_v43 = vmul.f32 %v2932_v2, %v303_v32  ;;  %v408_v44 = vmax.f32 %v376_v30, 0.0  ;;  %v372_v45 = vadd.f32 %v2947_v5, %v337_v31  ;;  %v317_v13 = vld [vmem:[%s2923_s30 + $0xa0] sm:$0xff]  ;;  %v312_v30 = vld [vmem:[%s2923_s30 + $0x78] sm:$0xff] }
  0x16   : > { %450 = vst.msk [vmem:[#allocation2 + $0x78] sm:$0xff] %vm433_vm0, %v2820_v0  ;;  %v348_v46 = vmul.f32 %v2932_v2, %v311_v36  ;;  %v403_v47 = vmax.f32 %v371_v34, 0.0  ;;  %v380_v48 = vadd.f32 %v2947_v5, %v345_v35  ;;  %v350_v49 = vmul.f32 %v2932_v2, %v313_v40  ;;  %v320_v31 = vld [vmem:[%s2923_s30 + $0xb8] sm:$0xff]  ;;  %v322_v34 = vld [vmem:[%s2923_s30 + $0xc8] sm:$0xff] }
  0x17   : > { %451 = vst.msk [vmem:[#allocation2 + $0x80] sm:$0xff] %vm433_vm0, %v2820_v0  ;;  %v409_v50 = vmax.f32 %v377_v38, 0.0  ;;  %v382_v51 = vadd.f32 %v2947_v5, %v347_v39  ;;  %v411_v54 = vmax.f32 %v379_v42, 0.0  ;;  %v375_v55 = vadd.f32 %v2947_v5, %v340_v43 }
  0x18   : > { %453 = vst.msk [vmem:[#allocation2 + $0x90] sm:$0xff] %vm433_vm0, %v2820_v0  ;;  %v343_v56 = vmul.f32 %v2932_v2, %v306_v52  ;;  %v351_v57 = vmul.f32 %v2932_v2, %v314_v53  ;;  %v404_v59 = vmax.f32 %v372_v45, 0.0  ;;  %v383_v60 = vadd.f32 %v2947_v5, %v348_v46  ;;  %v315_v45 = vld [vmem:[%s2923_s30 + $0x90] sm:$0xff] }
  0x19   : > { %454 = vst.msk [vmem:[#allocation2 + $0x98] sm:$0xff] %vm433_vm0, %v2820_v0  ;;  %v353_v61 = vmul.f32 %v2932_v2, %v316_v58  ;;  %v412_v62 = vmax.f32 %v380_v48, 0.0  ;;  %v385_v63 = vadd.f32 %v2947_v5, %v350_v49  ;;  %v407_v3 = vmax.f32 %v375_v55, 0.0  ;;  %v323_v46 = vld [vmem:[%s2923_s30 + $0xd0] sm:$0xff]  ;;  %v325_v49 = vld [vmem:[%s2923_s30 + $0xe0] sm:$0xff] }
  0x1a   : > { %456 = vst.msk [vmem:[#allocation2 + $0xa8] sm:$0xff] %vm433_vm0, %v2820_v0  ;;  %v378_v1 = vadd.f32 %v2947_v5, %v343_v56  ;;  %v386_v4 = vadd.f32 %v2947_v5, %v351_v57  ;;  %v346_v15 = vmul.f32 %v2932_v2, %v309_v12  ;;  %v354_v16 = vmul.f32 %v2932_v2, %v317_v13 }
  0x1b   : > { %457 = vst.msk [vmem:[#allocation2 + $0xb0] sm:$0xff] %vm433_vm0, %v2820_v0  ;;  %v388_v8 = vadd.f32 %v2947_v5, %v353_v61  ;;  %v417_v10 = vmax.f32 %v385_v63, 0.0  ;;  %v356_v20 = vmul.f32 %v2932_v2, %v319_v17  ;;  %v349_v32 = vmul.f32 %v2932_v2, %v312_v30  ;;  %v326_v61 = vld [vmem:[%s2923_s30 + $0xe8] sm:$0xff]  ;;  %v324_v17 = vld [vmem:[%s2923_s30 + $0xd8] sm:$0xff] }
  0x1c   : > { %459 = vst.msk [vmem:[#allocation2 + $0xc0] sm:$0xff] %vm433_vm0, %v2820_v0  ;;  %v381_v21 = vadd.f32 %v2947_v5, %v346_v15  ;;  %v389_v22 = vadd.f32 %v2947_v5, %v354_v16  ;;  %v359_v35 = vmul.f32 %v2932_v2, %v322_v34  ;;  %v360_v48 = vmul.f32 %v2932_v2, %v323_v46 }
  0x1d   : > { %460 = vst.msk [vmem:[#allocation2 + $0xc8] sm:$0xff] %vm433_vm0, %v2820_v0  ;;  %v420_v19 = vmax.f32 %v388_v8, 0.0  ;;  %v391_v24 = vadd.f32 %v2947_v5, %v356_v20  ;;  %v384_v36 = vadd.f32 %v2947_v5, %v349_v32  ;;  %v363_v63 = vmul.f32 %v2932_v2, %v326_v61 }
  0x1e   : > { %462 = vst.msk [vmem:[#allocation2 + $0xd8] sm:$0xff] %vm433_vm0, %v2820_v0  ;;  %v413_v26 = vmax.f32 %v381_v21, 0.0  ;;  %v421_v27 = vmax.f32 %v389_v22, 0.0  ;;  %v394_v39 = vadd.f32 %v2947_v5, %v359_v35  ;;  %v395_v52 = vadd.f32 %v2947_v5, %v360_v48  ;;  %v522_v35 = vld [vmem:[#allocation2] sm:$0xff] }
  0x1f   : > { %463 = vst.msk [vmem:[#allocation2 + $0xe0] sm:$0xff] %vm433_vm0, %v2820_v0  ;;  %v423_v28 = vmax.f32 %v391_v24, 0.0 }
  0x20   : > { %465 = vst.msk [vmem:[#allocation2 + $0xf0] sm:$0xff] %vm433_vm0, %v2820_v0  ;;  %v426_v43 = vmax.f32 %v394_v39, 0.0  ;;  %v427_v57 = vmax.f32 %v395_v52, 0.0 }
  0x21   : > { %466 = vst.msk [vmem:[#allocation2 + $0xf8] sm:$0xff] %vm433_vm0, %v2820_v0 }
  0x22   : > { %468 = vst.msk [vmem:[#allocation2 + $0x108] sm:$0xff] %vm433_vm0, %v2820_v0 }
  0x23   : > { %469 = vst.msk [vmem:[#allocation2 + $0x110] sm:$0xff] %vm433_vm0, %v2820_v0 }
  0x24   : > { %471 = vst.msk [vmem:[#allocation2 + $0x120] sm:$0xff] %vm433_vm0, %v2820_v0 }
  0x25   : > { %472 = vst.msk [vmem:[#allocation2 + $0x128] sm:$0xff] %vm433_vm0, %v2820_v0 }
  0x26   : > { %474 = vst.msk [vmem:[#allocation2 + $0x138] sm:$0xff] %vm433_vm0, %v2820_v0 }
  0x27   : > { %475 = vst.msk [vmem:[#allocation2 + $0x140] sm:$0xff] %vm433_vm0, %v2820_v0 }
  0x28   : > { %477 = vst.msk [vmem:[#allocation2 + $0x150] sm:$0xff] %vm433_vm0, %v2820_v0 }
  0x29   : > { %478 = vst.msk [vmem:[#allocation2 + $0x158] sm:$0xff] %vm433_vm0, %v2820_v0 }
  0x2a   : > { %480 = vst.msk [vmem:[#allocation2 + $0x168] sm:$0xff] %vm433_vm0, %v2820_v0 }
  0x2b   : > { %481 = vst.msk [vmem:[#allocation2 + $0x170] sm:$0xff] %vm433_vm0, %v2820_v0 }
  0x2c   : > { %483 = vst.msk [vmem:[#allocation2 + $0x180] sm:$0xff] %vm433_vm0, %v2820_v0 }
  0x2d   : > { %484 = vst.msk [vmem:[#allocation2 + $0x188] sm:$0xff] %vm433_vm0, %v2820_v0 }
  0x2e   : > { %486 = vst.msk [vmem:[#allocation2 + $0x198] sm:$0xff] %vm433_vm0, %v2820_v0 }
  0x2f   : > { %487 = vst.msk [vmem:[#allocation2 + $0x1a0] sm:$0xff] %vm433_vm0, %v2820_v0 }
  0x30   : > { %490 = vst.msk [vmem:[#allocation2 + $0x19] sm:$0xff] %vm433_vm0, %v401_v7  ;;  %v415_v7 = vmax.f32 %v383_v60, 0.0  ;;  %v318_v60 = vld [vmem:[%s2923_s30 + $0xa8] sm:$0xff] }
  0x31   : > { %437 = vst.msk [vmem:[#allocation2 + $0x10] sm:$0x3] %vm436_vm1, %v2820_v0 }
  0x32   : > { %440 = vst.msk [vmem:[#allocation2 + $0x28] sm:$0x3] %vm436_vm1, %v2820_v0 }
  0x33   : > { %443 = vst.msk [vmem:[#allocation2 + $0x40] sm:$0x3] %vm436_vm1, %v2820_v0 }
  0x34   : > { %446 = vst.msk [vmem:[#allocation2 + $0x58] sm:$0x3] %vm436_vm1, %v2820_v0 }
  0x35   : > { %449 = vst.msk [vmem:[#allocation2 + $0x70] sm:$0x3] %vm436_vm1, %v2820_v0 }
  0x36   : > { %452 = vst.msk [vmem:[#allocation2 + $0x88] sm:$0x3] %vm436_vm1, %v2820_v0 }
  0x37   : > { %v588_v11 = vld [vmem:[#allocation2 + $0x19] sm:$0xff]  ;;  %455 = vst.msk [vmem:[#allocation2 + $0xa0] sm:$0x3] %vm436_vm1, %v2820_v0 }
  0x38   : > { %654 = vrot.lane.b32.xlu1 %v588_v11, %s2821_s26  ;;  %v587_v14 = vld [vmem:[#allocation2 + $0x9] sm:$0xff]  ;;  %458 = vst.msk [vmem:[#allocation2 + $0xb8] sm:$0x3] %vm436_vm1, %v2820_v0  ;;  %v410_v11 = vmax.f32 %v378_v1, 0.0  ;;  %v398_v1 = vadd.f32 %v2947_v5, %v363_v63 }
  0x39   : > { %652 = vrot.lane.b32.xlu0 %v587_v14, %s2821_s26  ;;  %461 = vst.msk [vmem:[#allocation2 + $0xd0] sm:$0x3] %vm436_vm1, %v2820_v0  ;;  %v418_v14 = vmax.f32 %v386_v4, 0.0 }
  0x3a   : > { %464 = vst.msk [vmem:[#allocation2 + $0xe8] sm:$0x3] %vm436_vm1, %v2820_v0  ;;  %v430_v8 = vmax.f32 %v398_v1, 0.0 }
  0x3b   : > { %467 = vst.msk [vmem:[#allocation2 + $0x100] sm:$0x3] %vm436_vm1, %v2820_v0 }
  0x3c   : > { %470 = vst.msk [vmem:[#allocation2 + $0x118] sm:$0x3] %vm436_vm1, %v2820_v0 }
  0x3d   : > { %473 = vst.msk [vmem:[#allocation2 + $0x130] sm:$0x3] %vm436_vm1, %v2820_v0 }
  0x3e   : > { %476 = vst.msk [vmem:[#allocation2 + $0x148] sm:$0x3] %vm436_vm1, %v2820_v0 }
  0x3f   : > { %479 = vst.msk [vmem:[#allocation2 + $0x160] sm:$0x3] %vm436_vm1, %v2820_v0 }
  0x40   : > { %482 = vst.msk [vmem:[#allocation2 + $0x178] sm:$0x3] %vm436_vm1, %v2820_v0 }
  0x41   : > { %485 = vst.msk [vmem:[#allocation2 + $0x190] sm:$0x3] %vm436_vm1, %v2820_v0 }
  0x42   : > { %488 = vst.msk [vmem:[#allocation2 + $0x1a8] sm:$0x3] %vm436_vm1, %v2820_v0  ;;  %v414_v0 = vmax.f32 %v382_v51, 0.0 }
  0x43   : > { %491 = vst.msk [vmem:[#allocation2 + $0x21] sm:$0xff] %vm433_vm0, %v402_v33  ;;  %v357_v33 = vmul.f32 %v2932_v2, %v320_v31 }
  0x44   : > { %494 = vst.msk [vmem:[#allocation2 + $0x49] sm:$0xff] %vm433_vm0, %v405_v37 }
  0x45   : > { %495 = vst.msk [vmem:[#allocation2 + $0x51] sm:$0xff] %vm433_vm0, %v406_v41  ;;  %v392_v37 = vadd.f32 %v2947_v5, %v357_v33  ;;  %v416_v41 = vmax.f32 %v384_v36, 0.0 }
  0x46   : > { %497 = vst.msk [vmem:[#allocation2 + $0x69] sm:$0xff] %vm433_vm0, %v408_v44 }
  0x47   : > { %492 = vst.msk [vmem:[#allocation2 + $0x31] sm:$0xff] %vm433_vm0, %v403_v47  ;;  %v424_v42 = vmax.f32 %v392_v37, 0.0  ;;  %v352_v47 = vmul.f32 %v2932_v2, %v315_v45 }
  0x48   : > { %498 = vst.msk [vmem:[#allocation2 + $0x79] sm:$0xff] %vm433_vm0, %v409_v50  ;;  %v362_v50 = vmul.f32 %v2932_v2, %v325_v49 }
  0x49   : > { %500 = vst.msk [vmem:[#allocation2 + $0x91] sm:$0xff] %vm433_vm0, %v411_v54  ;;  %v387_v51 = vadd.f32 %v2947_v5, %v352_v47  ;;  %v779_v47 = vld [vmem:[#allocation2 + $0x2] sm:$0xff] }
  0x4a   : > { %v3065_v6 = vld [vmem:[#allocation2 + $0x21] sm:$0xff]  ;;  %493 = vst.msk [vmem:[#allocation2 + $0x39] sm:$0xff] %vm433_vm0, %v404_v59  ;;  %v397_v54 = vadd.f32 %v2947_v5, %v362_v50 }
  0x4b   : > { %656 = vrot.lane.b32.xlu1 %v3065_v6, %s2821_s26  ;;  %v592_v9 = vld [vmem:[#allocation2 + $0x49] sm:$0xff]  ;;  %501 = vst.msk [vmem:[#allocation2 + $0x99] sm:$0xff] %vm433_vm0, %v412_v62  ;;  %v419_v56 = vmax.f32 %v387_v51, 0.0  ;;  %v355_v62 = vmul.f32 %v2932_v2, %v318_v60  ;;  %v3201_v46 = vld [vmem:[#allocation2 + $0x1a] sm:$0xff] }
  0x4c   : > { %662 = vrot.lane.b32.xlu0 %v592_v9, %s2821_s26  ;;  %503 = vst.msk [vmem:[#allocation2 + $0xb1] sm:$0xff] %vm433_vm0, %v414_v0  ;;  %v593_v23 = vld [vmem:[#allocation2 + $0x51] sm:$0xff]  ;;  %v429_v58 = vmax.f32 %v397_v54, 0.0  ;;  %v3211_v49 = vld [vmem:[#allocation2 + $0x20] sm:$0xff]  ;;  %v3217_v50 = vld [vmem:[#allocation2 + $0x48] sm:$0xff] }
  0x4d   : > { %496 = vst.msk [vmem:[#allocation2 + $0x61] sm:$0xff] %vm433_vm0, %v407_v3  ;;  %v595_v25 = vld [vmem:[#allocation2 + $0x69] sm:$0xff]  ;;  %v390_v0 = vadd.f32 %v2947_v5, %v355_v62 }
  0x4e   : > { %v590_v18 = vld [vmem:[#allocation2 + $0x31] sm:$0xff]  ;;  %504 = vst.msk [vmem:[#allocation2 + $0xc1] sm:$0xff] %vm433_vm0, %v415_v7  ;;  %v3227_v52 = vld [vmem:[#allocation2 + $0x22] sm:$0xff] }
  0x4f   : > { %658 = vrot.lane.b32.xlu2 %v590_v18, %s2821_s26  ;;  %506 = vst.msk [vmem:[#allocation2 + $0xd9] sm:$0xff] %vm433_vm0, %v417_v10  ;;  %v596_v38 = vld [vmem:[#allocation2 + $0x79] sm:$0xff]  ;;  %v422_v7 = vmax.f32 %v390_v0, 0.0  ;;  %v361_v18 = vmul.f32 %v2932_v2, %v324_v17  ;;  %v3199_v45 = vld [vmem:[#allocation2 + $0x4a] sm:$0xff] }
  0x50   : > { %499 = vst.msk [vmem:[#allocation2 + $0x81] sm:$0xff] %vm433_vm0, %v410_v11  ;;  %v3108_v40 = vld [vmem:[#allocation2 + $0x91] sm:$0xff]  ;;  %v321_v10 = vld [vmem:[%s2923_s30 + $0xc0] sm:$0xff] }
  0x51   : > { %507 = vst.msk [vmem:[#allocation2 + $0xe1] sm:$0xff] %vm433_vm0, %v418_v14  ;;  %v3093_v29 = vld [vmem:[#allocation2 + $0x39] sm:$0xff]  ;;  %v358_v11 = vmul.f32 %v2932_v2, %v321_v10  ;;  %v788_v51 = vld [vmem:[#allocation2 + $0x6a] sm:$0xff] }
  0x52   : > { %509 = vst.msk [vmem:[#allocation2 + $0xf9] sm:$0xff] %vm433_vm0, %v420_v19  ;;  %v599_v53 = vld [vmem:[#allocation2 + $0x99] sm:$0xff]  ;;  %v396_v19 = vadd.f32 %v2947_v5, %v361_v18  ;;  %v3231_v54 = vld [vmem:[#allocation2 + $0x50] sm:$0xff] }
  0x53   : > { %664 = vrot.lane.b32.xlu1 %v593_v23, %s2821_s26  ;;  %502 = vst.msk [vmem:[#allocation2 + $0xa9] sm:$0xff] %vm433_vm0, %v413_v26  ;;  %v601_v55 = vld [vmem:[#allocation2 + $0xb1] sm:$0xff]  ;;  %v393_v12 = vadd.f32 %v2947_v5, %v358_v11  ;;  %v792_v1 = vld [vmem:[#allocation2 + $0x9a] sm:$0xff] }
  0x54   : > { %668 = vrot.lane.b32.xlu0 %v595_v25, %s2821_s26  ;;  %510 = vst.msk [vmem:[#allocation2 + $0x109] sm:$0xff] %vm433_vm0, %v421_v27  ;;  %v3114_v44 = vld [vmem:[#allocation2 + $0x61] sm:$0xff]  ;;  %v428_v22 = vmax.f32 %v396_v19, 0.0  ;;  %v3160_v23 = vld [vmem:[#allocation2 + $0x32] sm:$0xff] }
  0x55   : > { %512 = vst.msk [vmem:[#allocation2 + $0x121] sm:$0xff] %vm433_vm0, %v423_v28  ;;  %v602_v3 = vld [vmem:[#allocation2 + $0xc1] sm:$0xff]  ;;  %v425_v15 = vmax.f32 %v393_v12, 0.0  ;;  %v3175_v28 = vld [vmem:[#allocation2 + $0x52] sm:$0xff] }
  0x56   : > { %505 = vst.msk [vmem:[#allocation2 + $0xc9] sm:$0xff] %vm433_vm0, %v416_v41  ;;  %v604_v4 = vld [vmem:[#allocation2 + $0xd9] sm:$0xff]  ;;  %v787_v31 = vld [vmem:[#allocation2 + $0x62] sm:$0xff]  ;;  %v3189_v41 = vld [vmem:[#allocation2 + $0x30] sm:$0xff] }
  0x57   : > { %660 = vrot.lane.b32.xlu2 %v3093_v29, %s2821_s26  ;;  %513 = vst.msk [vmem:[#allocation2 + $0x129] sm:$0xff] %vm433_vm0, %v424_v42  ;;  %v3132_v59 = vld [vmem:[#allocation2 + $0x81] sm:$0xff]  ;;  %v3191_v42 = vld [vmem:[#allocation2 + $0x18] sm:$0xff]  ;;  %v3256_v63 = vld [vmem:[#allocation2 + $0x90] sm:$0xff] }
  0x58   : > { %515 = vst.msk [vmem:[#allocation2 + $0x141] sm:$0xff] %vm433_vm0, %v426_v43  ;;  %v605_v13 = vld [vmem:[#allocation2 + $0xe1] sm:$0xff]  ;;  %v3209_v48 = vld [vmem:[#allocation2 + $0x38] sm:$0xff] }
  0x59   : > { %508 = vst.msk [vmem:[#allocation2 + $0xf1] sm:$0xff] %vm433_vm0, %v419_v56  ;;  %v607_v14 = vld [vmem:[#allocation2 + $0xf9] sm:$0xff]  ;;  %v523_v43 = vld [vmem:[#allocation2 + $0x8] sm:$0xff] }
  0x5a   : > { %516 = vst.msk [vmem:[#allocation2 + $0x151] sm:$0xff] %vm433_vm0, %v427_v57  ;;  %v600_v9 = vld [vmem:[#allocation2 + $0xa9] sm:$0xff]  ;;  %v3166_v25 = vld [vmem:[#allocation2 + $0x3a] sm:$0xff]  ;;  %v791_v12 = vld [vmem:[#allocation2 + $0x92] sm:$0xff] }
  0x5b   : > { %670 = vrot.lane.b32.xlu1 %v596_v38, %s2821_s26  ;;  %518 = vst.msk [vmem:[#allocation2 + $0x169] sm:$0xff] %vm433_vm0, %v429_v58  ;;  %v608_v20 = vld [vmem:[#allocation2 + $0x109] sm:$0xff]  ;;  %v789_v56 = vld [vmem:[#allocation2 + $0x7a] sm:$0xff] }
  0x5c   : > { %674 = vrot.lane.b32.xlu0 %v3108_v40, %s2821_s26  ;;  %511 = vst.msk [vmem:[#allocation2 + $0x111] sm:$0xff] %vm433_vm0, %v422_v7  ;;  %v610_v21 = vld [vmem:[#allocation2 + $0x121] sm:$0xff]  ;;  %v780_v38 = vld [vmem:[#allocation2 + $0xa] sm:$0xff]  ;;  %v3250_v62 = vld [vmem:[#allocation2 + $0x78] sm:$0xff] }
  0x5d   : > { %519 = vst.msk [vmem:[#allocation2 + $0x171] sm:$0xff] %vm433_vm0, %v430_v8  ;;  %v603_v16 = vld [vmem:[#allocation2 + $0xc9] sm:$0xff]  ;;  %v3248_v61 = vld [vmem:[#allocation2 + $0x80] sm:$0xff]  ;;  %v3267_v7 = vld [vmem:[#allocation2 + $0x98] sm:$0xff] }
  0x5e   : > { %514 = vst.msk [vmem:[#allocation2 + $0x139] sm:$0xff] %vm433_vm0, %v425_v15  ;;  %v611_v26 = vld [vmem:[#allocation2 + $0x129] sm:$0xff]  ;;  %v3285_v15 = vld [vmem:[#allocation2 + $0xc0] sm:$0xff]  ;;  %v3288_v17 = vld [vmem:[#allocation2 + $0xd8] sm:$0xff] }
  0x5f   : > { %666 = vrot.lane.b32.xlu2 %v3114_v44, %s2821_s26  ;;  %517 = vst.msk [vmem:[#allocation2 + $0x159] sm:$0xff] %vm433_vm0, %v428_v22  ;;  %v613_v27 = vld [vmem:[#allocation2 + $0x141] sm:$0xff]  ;;  %v3273_v8 = vld [vmem:[#allocation2 + $0xb0] sm:$0xff] }
  0x60   : > { %v3164_v24 = vld [vmem:[#allocation2 + $0xf1] sm:$0xff]  ;;  %1970 = vst.msk [vmem:[#allocation3 + $0x8] sm:$0xff] %vm433_vm0, %v3160_v23  ;;  %v790_v0 = vld [vmem:[#allocation2 + $0x82] sm:$0xff] }
  0x61   : > { %1971 = vst.msk [vmem:[#allocation3 + $0x18] sm:$0xff] %vm433_vm0, %v3166_v25  ;;  %v614_v32 = vld [vmem:[#allocation2 + $0x151] sm:$0xff]  ;;  %v795_v10 = vld [vmem:[#allocation2 + $0xc2] sm:$0xff] }
  0x62   : > { %1973 = vst.msk [vmem:[#allocation3 + $0x38] sm:$0xff] %vm433_vm0, %v3175_v28  ;;  %v616_v33 = vld [vmem:[#allocation2 + $0x169] sm:$0xff] }
  0x63   : > { %676 = vrot.lane.b32.xlu1 %v599_v53, %s2821_s26  ;;  %v609_v30 = vld [vmem:[#allocation2 + $0x111] sm:$0xff]  ;;  %1974 = vst.msk [vmem:[#allocation3 + $0x48] sm:$0xff] %vm433_vm0, %v787_v31  ;;  %v3229_v53 = vld [vmem:[#allocation2 + $0x60] sm:$0xff] }
  0x64   : > { %680 = vrot.lane.b32.xlu0 %v601_v55, %s2821_s26  ;;  %554 = vst.msk [vmem:[#allocation3] sm:$0xff] %vm433_vm0, %v522_v35  ;;  %v617_v37 = vld [vmem:[#allocation2 + $0x171] sm:$0xff]  ;;  %v3237_v55 = vld [vmem:[#allocation2 + $0x68] sm:$0xff]  ;;  %v3326_v35 = vld [vmem:[#allocation2 + $0xda] sm:$0xff] }
  0x65   : > { %v612_v34 = vld [vmem:[#allocation2 + $0x139] sm:$0xff]  ;;  %558 = vst.msk [vmem:[#allocation3 + $0x40] sm:$0xff] %vm433_vm0, %v3189_v41  ;;  %v796_v18 = vld [vmem:[#allocation2 + $0xca] sm:$0xff]  ;;  %v3294_v19 = vld [vmem:[#allocation2 + $0xe2] sm:$0xff] }
  0x66   : > { %v615_v39 = vld [vmem:[#allocation2 + $0x159] sm:$0xff]  ;;  %556 = vst.msk [vmem:[#allocation3 + $0x20] sm:$0xff] %vm433_vm0, %v3191_v42  ;;  %v3302_v22 = vld [vmem:[#allocation2 + $0xf0] sm:$0xff] }
  0x67   : > { %672 = vrot.lane.b32.xlu2 %v3132_v59, %s2821_s26  ;;  %555 = vst.msk [vmem:[#allocation3 + $0x10] sm:$0xff] %vm433_vm0, %v523_v43  ;;  %v3335_v43 = vld [vmem:[#allocation2 + $0x120] sm:$0xff] }
  0x68   : > { %1972 = vst.msk [vmem:[#allocation3 + $0x28] sm:$0xff] %vm433_vm0, %v3199_v45 }
  0x69   : > { %559 = vst.msk [vmem:[#allocation3 + $0x50] sm:$0xff] %vm433_vm0, %v3209_v48 }
  0x6a   : > { %557 = vst.msk [vmem:[#allocation3 + $0x30] sm:$0xff] %vm433_vm0, %v3211_v49 }
  0x6b   : > { %682 = vrot.lane.b32.xlu1 %v602_v3, %s2821_s26  ;;  %560 = vst.msk [vmem:[#allocation3 + $0x60] sm:$0xff] %vm433_vm0, %v3217_v50 }
  0x6c   : > { %686 = vrot.lane.b32.xlu0 %v604_v4, %s2821_s26  ;;  %1975 = vst.msk [vmem:[#allocation3 + $0x58] sm:$0xff] %vm433_vm0, %v788_v51  ;;  %v3265_v4 = vld [vmem:[#allocation2 + $0xa8] sm:$0xff] }
  0x6d   : > { %562 = vst.msk [vmem:[#allocation3 + $0x80] sm:$0xff] %vm433_vm0, %v3229_v53 }
  0x6e   : > { %561 = vst.msk [vmem:[#allocation3 + $0x70] sm:$0xff] %vm433_vm0, %v3231_v54 }
  0x6f   : > { %678 = vrot.lane.b32.xlu2 %v600_v9, %s2821_s26  ;;  %563 = vst.msk [vmem:[#allocation3 + $0x90] sm:$0xff] %vm433_vm0, %v3237_v55  ;;  %v793_v9 = vld [vmem:[#allocation2 + $0xaa] sm:$0xff] }
  0x70   : > { %565 = vst.msk [vmem:[#allocation3 + $0xb0] sm:$0xff] %vm433_vm0, %v3248_v61 }
  0x71   : > { %564 = vst.msk [vmem:[#allocation3 + $0xa0] sm:$0xff] %vm433_vm0, %v3250_v62 }
  0x72   : > { %566 = vst.msk [vmem:[#allocation3 + $0xc0] sm:$0xff] %vm433_vm0, %v3256_v63 }
  0x73   : > { %688 = vrot.lane.b32.xlu1 %v605_v13, %s2821_s26  ;;  %568 = vst.msk [vmem:[#allocation3 + $0xe0] sm:$0xff] %vm433_vm0, %v3265_v4  ;;  %v3281_v13 = vld [vmem:[#allocation2 + $0xc8] sm:$0xff] }
  0x74   : > { %692 = vrot.lane.b32.xlu0 %v607_v14, %s2821_s26  ;;  %567 = vst.msk [vmem:[#allocation3 + $0xd0] sm:$0xff] %vm433_vm0, %v3267_v7 }
  0x75   : > { %569 = vst.msk [vmem:[#allocation3 + $0xf0] sm:$0xff] %vm433_vm0, %v3273_v8 }
  0x76   : > { %571 = vst.msk [vmem:[#allocation3 + $0x110] sm:$0xff] %vm433_vm0, %v3281_v13 }
  0x77   : > { %684 = vrot.lane.b32.xlu2 %v603_v16, %s2821_s26  ;;  %570 = vst.msk [vmem:[#allocation3 + $0x100] sm:$0xff] %vm433_vm0, %v3285_v15 }
  0x78   : > { %572 = vst.msk [vmem:[#allocation3 + $0x120] sm:$0xff] %vm433_vm0, %v3288_v17 }
  0x79   : > { %574 = vst.msk [vmem:[#allocation3 + $0x140] sm:$0xff] %vm433_vm0, %v3302_v22 }
  0x7a   : > { %578 = vst.msk [vmem:[#allocation3 + $0x180] sm:$0xff] %vm433_vm0, %v3335_v43 }
  0x7b   : > { %694 = vrot.lane.b32.xlu1 %v608_v20, %s2821_s26 }
  0x7c   : > { %698 = vrot.lane.b32.xlu0 %v610_v21, %s2821_s26  ;;  %v794_v21 = vld [vmem:[#allocation2 + $0xb2] sm:$0xff] }
  0x7f   : > { %690 = vrot.lane.b32.xlu2 %v3164_v24, %s2821_s26 }
  0x83   : > { %700 = vrot.lane.b32.xlu1 %v611_v26, %s2821_s26 }
  0x84   : > { %704 = vrot.lane.b32.xlu0 %v613_v27, %s2821_s26  ;;  %v3306_v27 = vld [vmem:[#allocation2 + $0xe0] sm:$0xff] }
  0x85   : > { %573 = vst.msk [vmem:[#allocation3 + $0x130] sm:$0xff] %vm433_vm0, %v3306_v27 }
  0x87   : > { %696 = vrot.lane.b32.xlu2 %v609_v30, %s2821_s26  ;;  %v651_v36 = vpop.permute.xlu0 %650 }
  0x88   : > { %747 = vst.msk [vmem:[#allocation3] sm:$0xff] %vm746_vm2, %v651_v36  ;;  %v3328_v36 = vld [vmem:[#allocation2 + $0x110] sm:$0xff] }
  0x89   : > { %577 = vst.msk [vmem:[#allocation3 + $0x170] sm:$0xff] %vm433_vm0, %v3328_v36 }
  0x8b   : > { %706 = vrot.lane.b32.xlu1 %v614_v32, %s2821_s26  ;;  %v3313_v32 = vld [vmem:[#allocation2 + $0xf2] sm:$0xff] }
  0x8c   : > { %710 = vrot.lane.b32.xlu0 %v616_v33, %s2821_s26  ;;  %v3317_v33 = vld [vmem:[#allocation2 + $0x10a] sm:$0xff] }
  0x8f   : > { %702 = vrot.lane.b32.xlu2 %v612_v34, %s2821_s26 }
  0x93   : > { %712 = vrot.lane.b32.xlu1 %v617_v37, %s2821_s26 }
  0x94   : > { %845 = vrot.lane.b32.xlu0 %v780_v38, %s2822_s12  ;;  %v3332_v38 = vld [vmem:[#allocation2 + $0x108] sm:$0xff] }
  0x95   : > { %576 = vst.msk [vmem:[#allocation3 + $0x160] sm:$0xff] %vm433_vm0, %v3332_v38 }
  0x97   : > { %708 = vrot.lane.b32.xlu2 %v615_v39, %s2821_s26  ;;  %s3935_s26 = scalar_lea.vmem %s4304_s5, %s2773_s27 }
  0x9b   : > { %847 = vrot.lane.b32.xlu1 %v3201_v46, %s2822_s12 }
  0x9c   : > { %851 = vrot.lane.b32.xlu0 %v3160_v23, %s2822_s12 }
  0x9f   : > { %843 = vrot.lane.b32.xlu2 %v779_v47, %s2822_s12  ;;  %v3340_v47 = vld [vmem:[#allocation2 + $0x112] sm:$0xff] }
  0xa3   : > { %853 = vrot.lane.b32.xlu1 %v3166_v25, %s2822_s12 }
  0xa4   : > { %857 = vrot.lane.b32.xlu0 %v3175_v28, %s2822_s12 }
  0xa7   : > { %849 = vrot.lane.b32.xlu2 %v3227_v52, %s2822_s12 }
  0xa9   : > { %v659_v57 = vpop.permute.xlu2 %658 }
  0xaa   : > { %751 = vst.msk [vmem:[#allocation3 + $0x40] sm:$0xff] %vm746_vm2, %v659_v57  ;;  %v655_v58 = vpop.permute.xlu1 %654  ;;  %v3350_v57 = vld [vmem:[#allocation2 + $0xfa] sm:$0xff] }
  0xab   : > { %859 = vrot.lane.b32.xlu1 %v787_v31, %s2822_s12  ;;  %749 = vst.msk [vmem:[#allocation3 + $0x20] sm:$0xff] %vm746_vm2, %v655_v58  ;;  %v653_v60 = vpop.permute.xlu0 %652  ;;  %v3309_v31 = vld [vmem:[#allocation2 + $0xf8] sm:$0xff] }
  0xac   : > { %863 = vrot.lane.b32.xlu0 %v789_v56, %s2822_s12  ;;  %748 = vst.msk [vmem:[#allocation3 + $0x10] sm:$0xff] %vm746_vm2, %v653_v60  ;;  %v3352_v58 = vld [vmem:[#allocation2 + $0x138] sm:$0xff] }
  0xad   : > { %575 = vst.msk [vmem:[#allocation3 + $0x150] sm:$0xff] %vm433_vm0, %v3309_v31 }
  0xae   : > { %580 = vst.msk [vmem:[#allocation3 + $0x1a0] sm:$0xff] %vm433_vm0, %v3352_v58 }
  0xaf   : > { %855 = vrot.lane.b32.xlu2 %v3199_v45, %s2822_s12 }
  0xb1   : > { %v661_v3 = vpop.permute.xlu2 %660 }
  0xb2   : > { %752 = vst.msk [vmem:[#allocation3 + $0x50] sm:$0xff] %vm746_vm2, %v661_v3  ;;  %v3359_v3 = vld [vmem:[#allocation2 + $0x140] sm:$0xff] }
  0xb3   : > { %865 = vrot.lane.b32.xlu1 %v790_v0, %s2822_s12  ;;  %v3356_v0 = vld [vmem:[#allocation2 + $0x128] sm:$0xff]  ;;  %581 = vst.msk [vmem:[#allocation3 + $0x1b0] sm:$0xff] %vm433_vm0, %v3359_v3 }
  0xb4   : > { %869 = vrot.lane.b32.xlu0 %v792_v1, %s2822_s12  ;;  %579 = vst.msk [vmem:[#allocation3 + $0x190] sm:$0xff] %vm433_vm0, %v3356_v0 }
  0xb7   : > { %861 = vrot.lane.b32.xlu2 %v788_v51, %s2822_s12  ;;  %v804_v51 = vld [vmem:[#allocation2 + $0x12a] sm:$0xff] }
  0xb9   : > { %v667_v11 = vpop.permute.xlu2 %666 }
  0xba   : > { %755 = vst.msk [vmem:[#allocation3 + $0x80] sm:$0xff] %vm746_vm2, %v667_v11 }
  0xbb   : > { %871 = vrot.lane.b32.xlu1 %v793_v9, %s2822_s12  ;;  %v805_v9 = vld [vmem:[#allocation2 + $0x13a] sm:$0xff] }
  0xbc   : > { %875 = vrot.lane.b32.xlu0 %v795_v10, %s2822_s12  ;;  %v807_v10 = vld [vmem:[#allocation2 + $0x152] sm:$0xff] }
  0xbd   : > { %v657_v14 = vpop.permute.xlu1 %656 }
  0xbe   : > { %750 = vst.msk [vmem:[#allocation3 + $0x30] sm:$0xff] %vm746_vm2, %v657_v14  ;;  %v663_v16 = vpop.permute.xlu0 %662  ;;  %v3371_v14 = vld [vmem:[#allocation2 + $0x158] sm:$0xff] }
  0xbf   : > { %753 = vst.msk [vmem:[#allocation3 + $0x60] sm:$0xff] %vm746_vm2, %v663_v16  ;;  %867 = vrot.lane.b32.xlu2 %v791_v12, %s2822_s12  ;;  %v803_v12 = vld [vmem:[#allocation2 + $0x122] sm:$0xff] }
  0xc0   : > { %583 = vst.msk [vmem:[#allocation3 + $0x1d0] sm:$0xff] %vm433_vm0, %v3371_v14 }
  0xc1   : > { %v673_v20 = vpop.permute.xlu2 %672 }
  0xc2   : > { %758 = vst.msk [vmem:[#allocation3 + $0xb0] sm:$0xff] %vm746_vm2, %v673_v20 }
  0xc3   : > { %877 = vrot.lane.b32.xlu1 %v796_v18, %s2822_s12  ;;  %v3375_v18 = vld [vmem:[#allocation2 + $0x150] sm:$0xff] }
  0xc4   : > { %881 = vrot.lane.b32.xlu0 %v3294_v19, %s2822_s12  ;;  %582 = vst.msk [vmem:[#allocation3 + $0x1c0] sm:$0xff] %vm433_vm0, %v3375_v18 }
  0xc5   : > { %v665_v26 = vpop.permute.xlu1 %664 }
  0xc6   : > { %754 = vst.msk [vmem:[#allocation3 + $0x70] sm:$0xff] %vm746_vm2, %v665_v26  ;;  %v669_v30 = vpop.permute.xlu0 %668  ;;  %v808_v26 = vld [vmem:[#allocation2 + $0x15a] sm:$0xff] }
  0xc7   : > { %756 = vst.msk [vmem:[#allocation3 + $0x90] sm:$0xff] %vm746_vm2, %v669_v30  ;;  %873 = vrot.lane.b32.xlu2 %v794_v21, %s2822_s12  ;;  %v3378_v21 = vld [vmem:[#allocation2 + $0x168] sm:$0xff]  ;;  %v810_v30 = vld [vmem:[#allocation2 + $0x172] sm:$0xff] }
  0xc8   : > { %584 = vst.msk [vmem:[#allocation3 + $0x1e0] sm:$0xff] %vm433_vm0, %v3378_v21 }
  0xc9   : > { %v679_v34 = vpop.permute.xlu2 %678 }
  0xca   : > { %761 = vst.msk [vmem:[#allocation3 + $0xe0] sm:$0xff] %vm746_vm2, %v679_v34 }
  0xcb   : > { %883 = vrot.lane.b32.xlu1 %v3313_v32, %s2822_s12 }
  0xcc   : > { %887 = vrot.lane.b32.xlu0 %v3317_v33, %s2822_s12 }
  0xcd   : > { %v671_v37 = vpop.permute.xlu1 %670 }
  0xce   : > { %757 = vst.msk [vmem:[#allocation3 + $0xa0] sm:$0xff] %vm746_vm2, %v671_v37  ;;  %v675_v39 = vpop.permute.xlu0 %674  ;;  %v806_v37 = vld [vmem:[#allocation2 + $0x142] sm:$0xff] }
  0xcf   : > { %759 = vst.msk [vmem:[#allocation3 + $0xc0] sm:$0xff] %vm746_vm2, %v675_v39  ;;  %879 = vrot.lane.b32.xlu2 %v3326_v35, %s2822_s12  ;;  %v3389_v39 = vld [vmem:[#allocation2 + $0x170] sm:$0xff] }
  0xd0   : > { %585 = vst.msk [vmem:[#allocation3 + $0x1f0] sm:$0xff] %vm433_vm0, %v3389_v39 }
  0xd1   : > { %v685_v56 = vpop.permute.xlu2 %684 }
  0xd2   : > { %764 = vst.msk [vmem:[#allocation3 + $0x110] sm:$0xff] %vm746_vm2, %v685_v56 }
  0xd3   : > { %889 = vrot.lane.b32.xlu1 %v3340_v47, %s2822_s12 }
  0xd4   : > { %893 = vrot.lane.b32.xlu0 %v804_v51, %s2822_s12 }
  0xd5   : > { %v677_v60 = vpop.permute.xlu1 %676 }
  0xd6   : > { %760 = vst.msk [vmem:[#allocation3 + $0xd0] sm:$0xff] %vm746_vm2, %v677_v60  ;;  %v681_v1 = vpop.permute.xlu0 %680 }
  0xd7   : > { %762 = vst.msk [vmem:[#allocation3 + $0xf0] sm:$0xff] %vm746_vm2, %v681_v1  ;;  %885 = vrot.lane.b32.xlu2 %v3350_v57, %s2822_s12  ;;  %v809_v1 = vld [vmem:[#allocation2 + $0x16a] sm:$0xff] }
  0xd9   : > { %v691_v11 = vpop.permute.xlu2 %690 }
  0xda   : > { %767 = vst.msk [vmem:[#allocation3 + $0x140] sm:$0xff] %vm746_vm2, %v691_v11 }
  0xdb   : > { %895 = vrot.lane.b32.xlu1 %v805_v9, %s2822_s12 }
  0xdc   : > { %899 = vrot.lane.b32.xlu0 %v807_v10, %s2822_s12 }
  0xdd   : > { %v683_v16 = vpop.permute.xlu1 %682 }
  0xde   : > { %763 = vst.msk [vmem:[#allocation3 + $0x100] sm:$0xff] %vm746_vm2, %v683_v16  ;;  %v687_v20 = vpop.permute.xlu0 %686 }
  0xdf   : > { %765 = vst.msk [vmem:[#allocation3 + $0x120] sm:$0xff] %vm746_vm2, %v687_v20  ;;  %891 = vrot.lane.b32.xlu2 %v803_v12, %s2822_s12 }
  0xe1   : > { %v697_v34 = vpop.permute.xlu2 %696 }
  0xe2   : > { %770 = vst.msk [vmem:[#allocation3 + $0x170] sm:$0xff] %vm746_vm2, %v697_v34 }
  0xe3   : > { %901 = vrot.lane.b32.xlu1 %v808_v26, %s2822_s12 }
  0xe4   : > { %905 = vrot.lane.b32.xlu0 %v810_v30, %s2822_s12 }
  0xe5   : > { %v689_v51 = vpop.permute.xlu1 %688 }
  0xe6   : > { %766 = vst.msk [vmem:[#allocation3 + $0x130] sm:$0xff] %vm746_vm2, %v689_v51  ;;  %v693_v56 = vpop.permute.xlu0 %692  ;;  %v327_v51 = vld [vmem:[%s2923_s30 + $0xf0] sm:$0xff] }
  0xe7   : > { %768 = vst.msk [vmem:[#allocation3 + $0x150] sm:$0xff] %vm746_vm2, %v693_v56  ;;  %897 = vrot.lane.b32.xlu2 %v806_v37, %s2822_s12  ;;  %v364_v56 = vmul.f32 %v2932_v2, %v327_v51 }
  0xe9   : > { %v703_v60 = vpop.permute.xlu2 %702 }
  0xea   : > { %773 = vst.msk [vmem:[#allocation3 + $0x1a0] sm:$0xff] %vm746_vm2, %v703_v60 }
  0xeb   : > { %1036 = vrot.lane.b32.xlu1 %v3191_v42, %s2823_s13 }
  0xec   : > { %1040 = vrot.lane.b32.xlu0 %v3189_v41, %s2823_s13 }
  0xed   : > { %v695_v9 = vpop.permute.xlu1 %694 }
  0xee   : > { %769 = vst.msk [vmem:[#allocation3 + $0x160] sm:$0xff] %vm746_vm2, %v695_v9  ;;  %v699_v10 = vpop.permute.xlu0 %698 }
  0xef   : > { %771 = vst.msk [vmem:[#allocation3 + $0x180] sm:$0xff] %vm746_vm2, %v699_v10  ;;  %903 = vrot.lane.b32.xlu2 %v809_v1, %s2822_s12  ;;  %v399_v1 = vadd.f32 %v2947_v5, %v364_v56 }
  0xf1   : > { %v709_v11 = vpop.permute.xlu2 %708  ;;  %v431_v10 = vmax.f32 %v399_v1, 0.0 }
  0xf2   : > { %776 = vst.msk [vmem:[#allocation3 + $0x1d0] sm:$0xff] %vm746_vm2, %v709_v11 }
  0xf3   : > { %1042 = vrot.lane.b32.xlu1 %v3209_v48, %s2823_s13  ;;  %520 = vst.msk [vmem:[#allocation2 + $0x181] sm:$0xff] %vm433_vm0, %v431_v10 }
  0xf4   : > { %1046 = vrot.lane.b32.xlu0 %v3231_v54, %s2823_s13 }
  0xf5   : > { %v701_v42 = vpop.permute.xlu1 %700 }
  0xf6   : > { %772 = vst.msk [vmem:[#allocation3 + $0x190] sm:$0xff] %vm746_vm2, %v701_v42  ;;  %v705_v12 = vpop.permute.xlu0 %704 }
  0xf7   : > { %774 = vst.msk [vmem:[#allocation3 + $0x1b0] sm:$0xff] %vm746_vm2, %v705_v12  ;;  %1038 = vrot.lane.b32.xlu2 %v3211_v49, %s2823_s13 }
  0xf9   : > { %v844_v16 = vpop.permute.xlu2 %843 }
  0xfa   : > { %940 = vst.msk [vmem:[#allocation3] sm:$0xff] %vm939_vm3, %v844_v16 }
  0xfb   : > { %1048 = vrot.lane.b32.xlu1 %v3229_v53, %s2823_s13 }
  0xfc   : > { %1052 = vrot.lane.b32.xlu0 %v3250_v62, %s2823_s13 }
  0xfd   : > { %v707_v20 = vpop.permute.xlu1 %706 }
  0xfe   : > { %775 = vst.msk [vmem:[#allocation3 + $0x1c0] sm:$0xff] %vm746_vm2, %v707_v20  ;;  %v711_v26 = vpop.permute.xlu0 %710 }
  0xff   : > { %777 = vst.msk [vmem:[#allocation3 + $0x1e0] sm:$0xff] %vm746_vm2, %v711_v26  ;;  %1044 = vrot.lane.b32.xlu2 %v3217_v50, %s2823_s13 }
 0x101   : > { %v850_v49 = vpop.permute.xlu2 %849 }
 0x102   : > { %943 = vst.msk [vmem:[#allocation3 + $0x30] sm:$0xff] %vm939_vm3, %v850_v49 }
 0x103   : > { %1054 = vrot.lane.b32.xlu1 %v3248_v61, %s2823_s13 }
 0x104   : > { %1058 = vrot.lane.b32.xlu0 %v3267_v7, %s2823_s13 }
 0x105   : > { %v713_v30 = vpop.permute.xlu1 %712 }
 0x106   : > { %778 = vst.msk [vmem:[#allocation3 + $0x1f0] sm:$0xff] %vm746_vm2, %v713_v30  ;;  %v846_v34 = vpop.permute.xlu0 %845  ;;  %v1002_v30 = vld [vmem:[#allocation2 + $0x180] sm:$0xff] }
 0x107   : > { %941 = vst.msk [vmem:[#allocation3 + $0x10] sm:$0xff] %vm939_vm3, %v846_v34  ;;  %1050 = vrot.lane.b32.xlu2 %v3237_v55, %s2823_s13  ;;  %v1165_v34 = vld [vmem:[#allocation2 + $0x19] sm:$0xff] }
 0x109   : > { %v856_v37 = vpop.permute.xlu2 %855 }
 0x10a   : > { %946 = vst.msk [vmem:[#allocation3 + $0x60] sm:$0xff] %vm939_vm3, %v856_v37 }
 0x10b   : > { %1060 = vrot.lane.b32.xlu1 %v3265_v4, %s2823_s13 }
 0x10c   : > { %1064 = vrot.lane.b32.xlu0 %v3285_v15, %s2823_s13 }
 0x10d   : > { %v848_v7 = vpop.permute.xlu1 %847 }
 0x10e   : > { %942 = vst.msk [vmem:[#allocation3 + $0x20] sm:$0xff] %vm939_vm3, %v848_v7  ;;  %v852_v60 = vpop.permute.xlu0 %851 }
 0x10f   : > { %944 = vst.msk [vmem:[#allocation3 + $0x40] sm:$0xff] %vm939_vm3, %v852_v60  ;;  %1056 = vrot.lane.b32.xlu2 %v3256_v63, %s2823_s13  ;;  %v3508_v60 = vld [vmem:[#allocation2 + $0x49] sm:$0xff] }
 0x111   : > { %v862_v9 = vpop.permute.xlu2 %861 }
 0x112   : > { %949 = vst.msk [vmem:[#allocation3 + $0x90] sm:$0xff] %vm939_vm3, %v862_v9  ;;  %v3518_v9 = vld [vmem:[#allocation2 + $0x69] sm:$0xff] }
 0x113   : > { %1066 = vrot.lane.b32.xlu1 %v3281_v13, %s2823_s13 }
 0x114   : > { %1070 = vrot.lane.b32.xlu0 %v3306_v27, %s2823_s13 }
 0x115   : > { %v854_v4 = vpop.permute.xlu1 %853 }
 0x116   : > { %945 = vst.msk [vmem:[#allocation3 + $0x50] sm:$0xff] %vm939_vm3, %v854_v4  ;;  %v858_v15 = vpop.permute.xlu0 %857 }
 0x117   : > { %947 = vst.msk [vmem:[#allocation3 + $0x70] sm:$0xff] %vm939_vm3, %v858_v15  ;;  %1062 = vrot.lane.b32.xlu2 %v3273_v8, %s2823_s13  ;;  %v328_v8 = vld [vmem:[%s2923_s30 + $0xf8] sm:$0xff] }
 0x118   : > { %v365_v12 = vmul.f32 %v2932_v2, %v328_v8 }
 0x119   : > { %v868_v63 = vpop.permute.xlu2 %867 }
 0x11a   : > { %952 = vst.msk [vmem:[#allocation3 + $0xc0] sm:$0xff] %vm939_vm3, %v868_v63 }
 0x11b   : > { %1072 = vrot.lane.b32.xlu1 %v3302_v22, %s2823_s13 }
 0x11c   : > { %1076 = vrot.lane.b32.xlu0 %v3332_v38, %s2823_s13 }
 0x11d   : > { %v860_v13 = vpop.permute.xlu1 %859 }
 0x11e   : > { %948 = vst.msk [vmem:[#allocation3 + $0x80] sm:$0xff] %vm939_vm3, %v860_v13  ;;  %v864_v27 = vpop.permute.xlu0 %863 }
 0x11f   : > { %950 = vst.msk [vmem:[#allocation3 + $0xa0] sm:$0xff] %vm939_vm3, %v864_v27  ;;  %1068 = vrot.lane.b32.xlu2 %v3288_v17, %s2823_s13  ;;  %v400_v17 = vadd.f32 %v2947_v5, %v365_v12 }
 0x121   : > { %v874_v11 = vpop.permute.xlu2 %873  ;;  %v432_v26 = vmax.f32 %v400_v17, 0.0 }
 0x122   : > { %955 = vst.msk [vmem:[#allocation3 + $0xf0] sm:$0xff] %vm939_vm3, %v874_v11 }
 0x123   : > { %1078 = vrot.lane.b32.xlu1 %v3328_v36, %s2823_s13  ;;  %521 = vst.msk [vmem:[#allocation2 + $0x189] sm:$0xff] %vm433_vm0, %v432_v26  ;;  %v2005_v26 = vld [vmem:[#allocation3 + $0x18] sm:$0xff] }
 0x124   : > { %1082 = vrot.lane.b32.xlu0 %v3356_v0, %s2823_s13 }
 0x125   : > { %v866_v42 = vpop.permute.xlu1 %865 }
 0x126   : > { %951 = vst.msk [vmem:[#allocation3 + $0xb0] sm:$0xff] %vm939_vm3, %v866_v42  ;;  %v870_v16 = vpop.permute.xlu0 %869 }
 0x127   : > { %953 = vst.msk [vmem:[#allocation3 + $0xd0] sm:$0xff] %vm939_vm3, %v870_v16  ;;  %1074 = vrot.lane.b32.xlu2 %v3309_v31, %s2823_s13  ;;  %v2783_v16 = vld [vmem:[%s4302_s3 + $0x40] sm:$0xff] }
 0x128   : > { %2318 = vmatpush.bf16.msra.mxu1 %v2783_v16  ;;  %2792 = vmatpush.bf16.msra.mxu3 %v2783_v16 }
 0x129   : > { %v880_v20 = vpop.permute.xlu2 %879 }
 0x12a   : > { %958 = vst.msk [vmem:[#allocation3 + $0x120] sm:$0xff] %vm939_vm3, %v880_v20  ;;  %v1003_v51 = vld [vmem:[#allocation2 + $0x188] sm:$0xff]  ;;  %v2003_v20 = vld [vmem:[#allocation3 + $0x8] sm:$0xff] }
 0x12b   : > { %1084 = vrot.lane.b32.xlu1 %v3352_v58, %s2823_s13 }
 0x12c   : > { %1088 = vrot.lane.b32.xlu0 %v3375_v18, %s2823_s13 }
 0x12d   : > { %v872_v2 = vpop.permute.xlu1 %871 }
 0x12e   : > { %954 = vst.msk [vmem:[#allocation3 + $0xe0] sm:$0xff] %vm939_vm3, %v872_v2  ;;  %v876_v49 = vpop.permute.xlu0 %875  ;;  %v2067_v2 = vpack.c.bf16 %v2005_v26, %v2003_v20 }
 0x12f   : > { %956 = vst.msk [vmem:[#allocation3 + $0x100] sm:$0xff] %vm939_vm3, %v876_v49  ;;  %1080 = vrot.lane.b32.xlu2 %v3335_v43, %s2823_s13 }
 0x130   : > { %2755 = vmatmul.msk.bf16.vlgmr.msra.gmra.mxu1 %vm433_vm0, %v2067_v2 }
 0x131   : > { %v886_v5 = vpop.permute.xlu2 %885 }
 0x132   : > { %961 = vst.msk [vmem:[#allocation3 + $0x150] sm:$0xff] %vm939_vm3, %v886_v5 }
 0x133   : > { %1090 = vrot.lane.b32.xlu1 %v3371_v14, %s2823_s13 }
 0x134   : > { %1094 = vrot.lane.b32.xlu0 %v3389_v39, %s2823_s13 }
 0x135   : > { %v878_v58 = vpop.permute.xlu1 %877 }
 0x136   : > { %957 = vst.msk [vmem:[#allocation3 + $0x110] sm:$0xff] %vm939_vm3, %v878_v58  ;;  %v882_v18 = vpop.permute.xlu0 %881  ;;  %v1182_v58 = vld [vmem:[#allocation2 + $0xe1] sm:$0xff] }
 0x137   : > { %959 = vst.msk [vmem:[#allocation3 + $0x130] sm:$0xff] %vm939_vm3, %v882_v18  ;;  %1086 = vrot.lane.b32.xlu2 %v3359_v3, %s2823_s13 }
 0x139   : > { %v892_v37 = vpop.permute.xlu2 %891 }
 0x13a   : > { %964 = vst.msk [vmem:[#allocation3 + $0x180] sm:$0xff] %vm939_vm3, %v892_v37  ;;  %v2009_v37 = vld [vmem:[#allocation3 + $0x38] sm:$0xff] }
 0x13b   : > { %1096 = vrot.lane.b32.xlu1 %v1002_v30, %s2823_s13 }
 0x13c   : > { %1229 = vrot.lane.b32.xlu0 %v1165_v34, %s2824_s14  ;;  %v2007_v34 = vld [vmem:[#allocation3 + $0x28] sm:$0xff] }
 0x13d   : > { %v884_v14 = vpop.permute.xlu1 %883 }
 0x13e   : > { %960 = vst.msk [vmem:[#allocation3 + $0x140] sm:$0xff] %vm939_vm3, %v884_v14  ;;  %v888_v39 = vpop.permute.xlu0 %887 }
 0x13f   : > { %962 = vst.msk [vmem:[#allocation3 + $0x160] sm:$0xff] %vm939_vm3, %v888_v39  ;;  %1092 = vrot.lane.b32.xlu2 %v3378_v21, %s2823_s13  ;;  %v2069_v39 = vpack.c.bf16 %v2009_v37, %v2007_v34 }
 0x141   : > { %v898_v3 = vpop.permute.xlu2 %897  ;;  %2756 = vmatmul.msk.bf16.gmra.mxu1 %vm433_vm0, %v2069_v39 }
 0x142   : > { %967 = vst.msk [vmem:[#allocation3 + $0x1b0] sm:$0xff] %vm939_vm3, %v898_v3 }
 0x143   : > { %1231 = vrot.lane.b32.xlu1 %v3065_v6, %s2824_s14  ;;  %v1167_v6 = vld [vmem:[#allocation2 + $0x31] sm:$0xff] }
 0x144   : > { %1235 = vrot.lane.b32.xlu0 %v3093_v29, %s2824_s14 }
 0x145   : > { %v890_v7 = vpop.permute.xlu1 %889 }
 0x146   : > { %963 = vst.msk [vmem:[#allocation3 + $0x170] sm:$0xff] %vm939_vm3, %v890_v7  ;;  %v894_v56 = vpop.permute.xlu0 %893 }
 0x147   : > { %965 = vst.msk [vmem:[#allocation3 + $0x190] sm:$0xff] %vm939_vm3, %v894_v56  ;;  %1098 = vrot.lane.b32.xlu2 %v1003_v51, %s2823_s13  ;;  %v1762_v51 = vld [vmem:[#allocation2 + $0xf9] sm:$0xff]  ;;  %v2013_v56 = vld [vmem:[#allocation3 + $0x58] sm:$0xff] }
 0x149   : > { %v904_v21 = vpop.permute.xlu2 %903 }
 0x14a   : > { %970 = vst.msk [vmem:[#allocation3 + $0x1e0] sm:$0xff] %vm939_vm3, %v904_v21 }
 0x14b   : > { %1237 = vrot.lane.b32.xlu1 %v3508_v60, %s2824_s14 }
 0x14c   : > { %1241 = vrot.lane.b32.xlu0 %v3114_v44, %s2824_s14  ;;  %v3525_v44 = vld [vmem:[#allocation2 + $0x51] sm:$0xff] }
 0x14d   : > { %v896_v29 = vpop.permute.xlu1 %895 }
 0x14e   : > { %966 = vst.msk [vmem:[#allocation3 + $0x1a0] sm:$0xff] %vm939_vm3, %v896_v29  ;;  %v900_v1 = vpop.permute.xlu0 %899  ;;  %v3612_v29 = vld [vmem:[#allocation2 + $0x7a] sm:$0xff] }
 0x14f   : > { %968 = vst.msk [vmem:[#allocation3 + $0x1c0] sm:$0xff] %vm939_vm3, %v900_v1  ;;  %1233 = vrot.lane.b32.xlu2 %v1167_v6, %s2824_s14 }
 0x150   : > { %1976 = vst.msk [vmem:[#allocation3 + $0x68] sm:$0xff] %vm433_vm0, %v3612_v29 }
 0x151   : > { %v1039_v10 = vpop.permute.xlu2 %1038 }
 0x152   : > { %1134 = vst.msk [vmem:[#allocation3 + $0x10] sm:$0xff] %vm1132_vm4, %v1039_v10  ;;  %v3615_v10 = vld [vmem:[#allocation2 + $0x82] sm:$0xff] }
 0x153   : > { %1243 = vrot.lane.b32.xlu1 %v3518_v9, %s2824_s14  ;;  %1977 = vst.msk [vmem:[#allocation3 + $0x78] sm:$0xff] %vm433_vm0, %v3615_v10 }
 0x154   : > { %1247 = vrot.lane.b32.xlu0 %v3132_v59, %s2824_s14  ;;  %v3536_v59 = vld [vmem:[#allocation2 + $0x79] sm:$0xff] }
 0x155   : > { %v902_v4 = vpop.permute.xlu1 %901 }
 0x156   : > { %969 = vst.msk [vmem:[#allocation3 + $0x1d0] sm:$0xff] %vm939_vm3, %v902_v4  ;;  %v906_v15 = vpop.permute.xlu0 %905  ;;  %v2782_v4 = vld [vmem:[%s4302_s3 + $0x38] sm:$0xff] }
 0x157   : > { %971 = vst.msk [vmem:[#allocation3 + $0x1f0] sm:$0xff] %vm939_vm3, %v906_v15  ;;  %1239 = vrot.lane.b32.xlu2 %v3525_v44, %s2824_s14  ;;  %2222 = vmatpush.bf16.msra.mxu0 %v2782_v4 }
 0x158   : > { %2784 = vmatpush.bf16.msra.mxu2 %v2782_v4 }
 0x159   : > { %v1045_v63 = vpop.permute.xlu2 %1044 }
 0x15a   : > { %1137 = vst.msk [vmem:[#allocation3 + $0x40] sm:$0xff] %vm1132_vm4, %v1045_v63  ;;  %v2017_v15 = vld [vmem:[#allocation3 + $0x78] sm:$0xff] }
 0x15b   : > { %1249 = vrot.lane.b32.xlu1 %v3108_v40, %s2824_s14  ;;  %v3547_v40 = vld [vmem:[#allocation2 + $0x99] sm:$0xff] }
 0x15c   : > { %1422 = vrot.lane.b32.xlu0 %v3201_v46, %s2825_s15 }
 0x15d   : > { %v1037_v13 = vpop.permute.xlu1 %1036 }
 0x15e   : > { %1133 = vst.msk [vmem:[#allocation3] sm:$0xff] %vm1132_vm4, %v1037_v13  ;;  %v1041_v27 = vpop.permute.xlu0 %1040  ;;  %v1183_v13 = vld [vmem:[#allocation2 + $0xf1] sm:$0xff] }
 0x15f   : > { %1135 = vst.msk [vmem:[#allocation3 + $0x20] sm:$0xff] %vm1132_vm4, %v1041_v27  ;;  %1245 = vrot.lane.b32.xlu2 %v3536_v59, %s2824_s14 }
 0x161   : > { %v1051_v11 = vpop.permute.xlu2 %1050 }
 0x162   : > { %1140 = vst.msk [vmem:[#allocation3 + $0x70] sm:$0xff] %vm1132_vm4, %v1051_v11  ;;  %v3644_v11 = vld [vmem:[#allocation2 + $0x92] sm:$0xff] }
 0x163   : > { %1424 = vrot.lane.b32.xlu1 %v3227_v52, %s2825_s15  ;;  %1978 = vst.msk [vmem:[#allocation3 + $0x88] sm:$0xff] %vm433_vm0, %v3644_v11 }
 0x164   : > { %1618 = vrot.lane.b32.xlu0 %v3209_v48, %s2826_s16 }
 0x165   : > { %v1043_v46 = vpop.permute.xlu1 %1042 }
 0x166   : > { %1136 = vst.msk [vmem:[#allocation3 + $0x30] sm:$0xff] %vm1132_vm4, %v1043_v46  ;;  %v1047_v8 = vpop.permute.xlu0 %1046 }
 0x167   : > { %1138 = vst.msk [vmem:[#allocation3 + $0x50] sm:$0xff] %vm1132_vm4, %v1047_v8  ;;  %1251 = vrot.lane.b32.xlu2 %v3547_v40, %s2824_s14  ;;  %v3647_v8 = vld [vmem:[#allocation2 + $0x9a] sm:$0xff] }
 0x168   : > { %1979 = vst.msk [vmem:[#allocation3 + $0x98] sm:$0xff] %vm433_vm0, %v3647_v8 }
 0x169   : > { %v1057_v42 = vpop.permute.xlu2 %1056 }
 0x16a   : > { %1143 = vst.msk [vmem:[#allocation3 + $0xa0] sm:$0xff] %vm1132_vm4, %v1057_v42  ;;  %v2019_v16 = vld [vmem:[#allocation3 + $0x88] sm:$0xff] }
 0x16b   : > { %1809 = vrot.lane.b32.xlu1 %v1167_v6, %s2827_s17 }
 0x16c   : > { %1426 = vrot.lane.b32.xlu0 %v3160_v23, %s2825_s15  ;;  %v1746_v23 = vld [vmem:[#allocation2 + $0x39] sm:$0xff] }
 0x16d   : > { %v1049_v48 = vpop.permute.xlu1 %1048 }
 0x16e   : > { %1139 = vst.msk [vmem:[#allocation3 + $0x60] sm:$0xff] %vm1132_vm4, %v1049_v48  ;;  %v1053_v52 = vpop.permute.xlu0 %1052  ;;  %v2779_v48 = vld [vmem:[%s4302_s3 + $0x20] sm:$0xff] }
 0x16f   : > { %1141 = vst.msk [vmem:[#allocation3 + $0x80] sm:$0xff] %vm1132_vm4, %v1053_v52  ;;  %1616 = vrot.lane.b32.xlu2 %v3189_v41, %s2826_s16 }
 0x171   : > { %v1063_v12 = vpop.permute.xlu2 %1062 }
 0x172   : > { %1146 = vst.msk [vmem:[#allocation3 + $0xd0] sm:$0xff] %vm1132_vm4, %v1063_v12 }
 0x173   : > { %1428 = vrot.lane.b32.xlu1 %v3166_v25, %s2825_s15  ;;  %v1181_v25 = vld [vmem:[#allocation2 + $0xd9] sm:$0xff] }
 0x174   : > { %1622 = vrot.lane.b32.xlu0 %v3231_v54, %s2826_s16 }
 0x175   : > { %v1055_v17 = vpop.permute.xlu1 %1054 }
 0x176   : > { %1142 = vst.msk [vmem:[#allocation3 + $0x90] sm:$0xff] %vm1132_vm4, %v1055_v17  ;;  %v1059_v41 = vpop.permute.xlu0 %1058  ;;  %v2021_v17 = vld [vmem:[#allocation3 + $0x98] sm:$0xff] }
 0x177   : > { %1144 = vst.msk [vmem:[#allocation3 + $0xb0] sm:$0xff] %vm1132_vm4, %v1059_v41  ;;  %1811 = vrot.lane.b32.xlu2 %v1746_v23, %s2827_s17  ;;  %v1364_v23 = vld [vmem:[#allocation2 + $0x62] sm:$0xff]  ;;  %v2075_v26 = vpack.c.bf16 %v2021_v17, %v2019_v16 }
 0x178   : > { %v1763_v41 = vld [vmem:[#allocation2 + $0x109] sm:$0xff] }
 0x179   : > { %v1069_v49 = vpop.permute.xlu2 %1068 }
 0x17a   : > { %1149 = vst.msk [vmem:[#allocation3 + $0x100] sm:$0xff] %vm1132_vm4, %v1069_v49 }
 0x17b   : > { %1813 = vrot.lane.b32.xlu1 %v3508_v60, %s2827_s17 }
 0x17c   : > { %1261 = vrot.lane.b32.xlu0 %v1181_v25, %s2824_s14  ;;  %v3683_v25 = vld [vmem:[#allocation2 + $0xaa] sm:$0xff] }
 0x17d   : > { %v1061_v54 = vpop.permute.xlu1 %1060  ;;  %1980 = vst.msk [vmem:[#allocation3 + $0xa8] sm:$0xff] %vm433_vm0, %v3683_v25 }
 0x17e   : > { %1145 = vst.msk [vmem:[#allocation3 + $0xc0] sm:$0xff] %vm1132_vm4, %v1061_v54  ;;  %v1065_v5 = vpop.permute.xlu0 %1064  ;;  %v3686_v54 = vld [vmem:[#allocation2 + $0xb2] sm:$0xff] }
 0x17f   : > { %1147 = vst.msk [vmem:[#allocation3 + $0xe0] sm:$0xff] %vm1132_vm4, %v1065_v5  ;;  %1620 = vrot.lane.b32.xlu2 %v3217_v50, %s2826_s16  ;;  %v2776_v5 = vld [vmem:[%s4302_s3 + $0x8] sm:$0xff] }
 0x180   : > { %1981 = vst.msk [vmem:[#allocation3 + $0xb8] sm:$0xff] %vm433_vm0, %v3686_v54 }
 0x181   : > { %v1075_v18 = vpop.permute.xlu2 %1074 }
 0x182   : > { %1152 = vst.msk [vmem:[#allocation3 + $0x130] sm:$0xff] %vm1132_vm4, %v1075_v18  ;;  %v2775_v18 = vld [vmem:[%s4302_s3] sm:$0xff] }
 0x183   : > { %1263 = vrot.lane.b32.xlu1 %v1182_v58, %s2824_s14 }
 0x184   : > { %1456 = vrot.lane.b32.xlu0 %v3294_v19, %s2825_s15 }
 0x185   : > { %v1067_v30 = vpop.permute.xlu1 %1066 }
 0x186   : > { %1148 = vst.msk [vmem:[#allocation3 + $0xf0] sm:$0xff] %vm1132_vm4, %v1067_v30  ;;  %v1071_v14 = vpop.permute.xlu0 %1070  ;;  %v1365_v30 = vld [vmem:[#allocation2 + $0x6a] sm:$0xff] }
 0x187   : > { %1150 = vst.msk [vmem:[#allocation3 + $0x110] sm:$0xff] %vm1132_vm4, %v1071_v14  ;;  %1815 = vrot.lane.b32.xlu2 %v3525_v44, %s2827_s17  ;;  %v2023_v14 = vld [vmem:[#allocation3 + $0xa8] sm:$0xff]  ;;  %v2025_v39 = vld [vmem:[#allocation3 + $0xb8] sm:$0xff] }
 0x189   : > { %v1081_v50 = vpop.permute.xlu2 %1080 }
 0x18a   : > { %1155 = vst.msk [vmem:[#allocation3 + $0x160] sm:$0xff] %vm1132_vm4, %v1081_v50  ;;  %v2077_v50 = vpack.c.bf16 %v2025_v39, %v2023_v14 }
 0x18b   : > { %1648 = vrot.lane.b32.xlu1 %v3302_v22, %s2826_s16 }
 0x18c   : > { %1841 = vrot.lane.b32.xlu0 %v3164_v24, %s2827_s17  ;;  %v2011_v24 = vld [vmem:[#allocation3 + $0x48] sm:$0xff] }
 0x18d   : > { %v1073_v19 = vpop.permute.xlu1 %1072  ;;  %v2071_v21 = vpack.c.bf16 %v2013_v56, %v2011_v24  ;;  %v1765_v56 = vld [vmem:[#allocation2 + $0x121] sm:$0xff] }
 0x18e   : > { %1151 = vst.msk [vmem:[#allocation3 + $0x120] sm:$0xff] %vm1132_vm4, %v1073_v19  ;;  %v1077_v3 = vpop.permute.xlu0 %1076 }
 0x18f   : > { %1153 = vst.msk [vmem:[#allocation3 + $0x140] sm:$0xff] %vm1132_vm4, %v1077_v3  ;;  %1454 = vrot.lane.b32.xlu2 %v3326_v35, %s2825_s15  ;;  %2757 = vmatmul.msk.bf16.gmra.mxu1 %vm433_vm0, %v2071_v21  ;;  %v1749_v35 = vld [vmem:[#allocation2 + $0x61] sm:$0xff] }
 0x191   : > { %v1087_v7 = vpop.permute.xlu2 %1086 }
 0x192   : > { %1158 = vst.msk [vmem:[#allocation3 + $0x190] sm:$0xff] %vm1132_vm4, %v1087_v7  ;;  %v3717_v7 = vld [vmem:[#allocation2 + $0xca] sm:$0xff] }
 0x193   : > { %1843 = vrot.lane.b32.xlu1 %v1762_v51, %s2827_s17  ;;  %1983 = vst.msk [vmem:[#allocation3 + $0xd8] sm:$0xff] %vm433_vm0, %v3717_v7 }
 0x194   : > { %1432 = vrot.lane.b32.xlu0 %v3175_v28, %s2825_s15 }
 0x195   : > { %v1079_v22 = vpop.permute.xlu1 %1078 }
 0x196   : > { %1154 = vst.msk [vmem:[#allocation3 + $0x150] sm:$0xff] %vm1132_vm4, %v1079_v22  ;;  %v1083_v60 = vpop.permute.xlu0 %1082 }
 0x197   : > { %1156 = vst.msk [vmem:[#allocation3 + $0x170] sm:$0xff] %vm1132_vm4, %v1083_v60  ;;  %1650 = vrot.lane.b32.xlu2 %v3309_v31, %s2826_s16 }
 0x199   : > { %v1093_v6 = vpop.permute.xlu2 %1092 }
 0x19a   : > { %1161 = vst.msk [vmem:[#allocation3 + $0x1c0] sm:$0xff] %vm1132_vm4, %v1093_v6  ;;  %v2029_v21 = vld [vmem:[#allocation3 + $0xd8] sm:$0xff] }
 0x19b   : > { %1624 = vrot.lane.b32.xlu1 %v3229_v53, %s2826_s16 }
 0x19c   : > { %1817 = vrot.lane.b32.xlu0 %v1749_v35, %s2827_s17 }
 0x19d   : > { %v1085_v28 = vpop.permute.xlu1 %1084 }
 0x19e   : > { %1157 = vst.msk [vmem:[#allocation3 + $0x180] sm:$0xff] %vm1132_vm4, %v1085_v28  ;;  %v1089_v1 = vpop.permute.xlu0 %1088  ;;  %v1952_v28 = vld [vmem:[#allocation2 + $0xda] sm:$0xff] }
 0x19f   : > { %1159 = vst.msk [vmem:[#allocation3 + $0x1a0] sm:$0xff] %vm1132_vm4, %v1089_v1  ;;  %1430 = vrot.lane.b32.xlu2 %v3199_v45, %s2825_s15  ;;  %v2015_v45 = vld [vmem:[#allocation3 + $0x68] sm:$0xff]  ;;  %v1953_v1 = vld [vmem:[#allocation2 + $0xe2] sm:$0xff] }
 0x1a0   : > { %1984 = vst.msk [vmem:[#allocation3 + $0xe8] sm:$0xff] %vm433_vm0, %v1952_v28 }
 0x1a1   : > { %v1099_v31 = vpop.permute.xlu2 %1098  ;;  %1985 = vst.msk [vmem:[#allocation3 + $0xf8] sm:$0xff] %vm433_vm0, %v1953_v1 }
 0x1a2   : > { %1164 = vst.msk [vmem:[#allocation3 + $0x1f0] sm:$0xff] %vm1132_vm4, %v1099_v31  ;;  %v1561_v31 = vld [vmem:[#allocation2 + $0x98] sm:$0xff] }
 0x1a3   : > { %1819 = vrot.lane.b32.xlu1 %v3518_v9, %s2827_s17  ;;  %v2073_v9 = vpack.c.bf16 %v2017_v15, %v2015_v45 }
 0x1a4   : > { %1267 = vrot.lane.b32.xlu0 %v1762_v51, %s2824_s14  ;;  %v3712_v51 = vld [vmem:[#allocation2 + $0xc2] sm:$0xff] }
 0x1a5   : > { %v1091_v53 = vpop.permute.xlu1 %1090  ;;  %2758 = vmatmul.msk.bf16.gmra.mxu1 %vm433_vm0, %v2073_v9  ;;  %1982 = vst.msk [vmem:[#allocation3 + $0xc8] sm:$0xff] %vm433_vm0, %v3712_v51 }
 0x1a6   : > { %1160 = vst.msk [vmem:[#allocation3 + $0x1b0] sm:$0xff] %vm1132_vm4, %v1091_v53  ;;  %v1095_v44 = vpop.permute.xlu0 %1094 }
 0x1a7   : > { %1162 = vst.msk [vmem:[#allocation3 + $0x1d0] sm:$0xff] %vm1132_vm4, %v1095_v44  ;;  %1626 = vrot.lane.b32.xlu2 %v3237_v55, %s2826_s16  ;;  %v2781_v55 = vld [vmem:[%s4302_s3 + $0x30] sm:$0xff]  ;;  %v2031_v9 = vld [vmem:[#allocation3 + $0xe8] sm:$0xff] }
 0x1a8   : > { %2223 = vmatpush.bf16.msra.mxu0 %v2781_v55  ;;  %2785 = vmatpush.bf16.msra.mxu2 %v2781_v55  ;;  %v1766_v44 = vld [vmem:[#allocation2 + $0x129] sm:$0xff] }
 0x1a9   : > { %v1234_v63 = vpop.permute.xlu2 %1233 }
 0x1aa   : > { %1328 = vst.msk [vmem:[#allocation3 + $0x20] sm:$0xff] %vm1325_vm5, %v1234_v63  ;;  %v1753_v63 = vld [vmem:[#allocation2 + $0x91] sm:$0xff] }
 0x1ab   : > { %1458 = vrot.lane.b32.xlu1 %v3313_v32, %s2825_s15  ;;  %v2780_v32 = vld [vmem:[%s4302_s3 + $0x28] sm:$0xff] }
 0x1ac   : > { %1652 = vrot.lane.b32.xlu0 %v3332_v38, %s2826_s16  ;;  %v3656_v38 = vld [vmem:[#allocation2 + $0x111] sm:$0xff]  ;;  %2224 = vmatpush.bf16.msra.mxu0 %v2780_v32 }
 0x1ad   : > { %v1097_v27 = vpop.permute.xlu1 %1096  ;;  %2786 = vmatpush.bf16.msra.mxu2 %v2780_v32 }
 0x1ae   : > { %1163 = vst.msk [vmem:[#allocation3 + $0x1e0] sm:$0xff] %vm1132_vm4, %v1097_v27  ;;  %v1230_v46 = vpop.permute.xlu0 %1229 }
 0x1af   : > { %1326 = vst.msk [vmem:[#allocation3] sm:$0xff] %vm1325_vm5, %v1230_v46  ;;  %1265 = vrot.lane.b32.xlu2 %v1183_v13, %s2824_s14  ;;  %v2033_v13 = vld [vmem:[#allocation3 + $0xf8] sm:$0xff]  ;;  %v1560_v46 = vld [vmem:[#allocation2 + $0x90] sm:$0xff] }
 0x1b0   : > { %2225 = vmatpush.bf16.msra.mxu0 %v2779_v48  ;;  %v2081_v27 = vpack.c.bf16 %v2033_v13, %v2031_v9 }
 0x1b1   : > { %v1240_v42 = vpop.permute.xlu2 %1239  ;;  %2787 = vmatpush.bf16.msra.mxu2 %v2779_v48  ;;  %v1955_v48 = vld [vmem:[#allocation2 + $0xfa] sm:$0xff] }
 0x1b2   : > { %1331 = vst.msk [vmem:[#allocation3 + $0x50] sm:$0xff] %vm1325_vm5, %v1240_v42  ;;  %v1954_v42 = vld [vmem:[#allocation2 + $0xf2] sm:$0xff] }
 0x1b3   : > { %1654 = vrot.lane.b32.xlu1 %v3328_v36, %s2826_s16  ;;  %v2778_v36 = vld [vmem:[%s4302_s3 + $0x18] sm:$0xff]  ;;  %1986 = vst.msk [vmem:[#allocation3 + $0x108] sm:$0xff] %vm433_vm0, %v1954_v42 }
 0x1b4   : > { %1847 = vrot.lane.b32.xlu0 %v3656_v38, %s2827_s17  ;;  %2226 = vmatpush.bf16.msra.mxu0 %v2778_v36  ;;  %1987 = vst.msk [vmem:[#allocation3 + $0x118] sm:$0xff] %vm433_vm0, %v1955_v48 }
 0x1b5   : > { %v1232_v52 = vpop.permute.xlu1 %1231  ;;  %2788 = vmatpush.bf16.msra.mxu2 %v2778_v36  ;;  %2759 = vmatmul.msk.bf16.gmra.mxu1 %vm433_vm0, %v2075_v26  ;;  %v1574_v26 = vld [vmem:[#allocation2 + $0x138] sm:$0xff] }
 0x1b6   : > { %1327 = vst.msk [vmem:[#allocation3 + $0x10] sm:$0xff] %vm1325_vm5, %v1232_v52  ;;  %v1236_v12 = vpop.permute.xlu0 %1235 }
 0x1b7   : > { %1329 = vst.msk [vmem:[#allocation3 + $0x30] sm:$0xff] %vm1325_vm5, %v1236_v12  ;;  %1460 = vrot.lane.b32.xlu2 %v3350_v57, %s2825_s15  ;;  %v2777_v57 = vld [vmem:[%s4302_s3 + $0x10] sm:$0xff] }
 0x1b8   : > { %2227 = vmatpush.bf16.msra.mxu0 %v2777_v57 }
 0x1b9   : > { %v1246_v20 = vpop.permute.xlu2 %1245  ;;  %2789 = vmatpush.bf16.msra.mxu2 %v2777_v57 }
 0x1ba   : > { %1334 = vst.msk [vmem:[#allocation3 + $0x80] sm:$0xff] %vm1325_vm5, %v1246_v20  ;;  %v2035_v57 = vld [vmem:[#allocation3 + $0x108] sm:$0xff] }
 0x1bb   : > { %1434 = vrot.lane.b32.xlu1 %v1364_v23, %s2825_s15  ;;  %v3768_v23 = vpop.f32.mrf.mxu1 }
 0x1bc   : > { %1628 = vrot.lane.b32.xlu0 %v3250_v62, %s2826_s16  ;;  %v1752_v62 = vld [vmem:[#allocation2 + $0x81] sm:$0xff]  ;;  %2228 = vmatpush.bf16.msra.mxu0 %v2776_v5 }
 0x1bd   : > { %v1238_v2 = vpop.permute.xlu1 %1237  ;;  %2790 = vmatpush.bf16.msra.mxu2 %v2776_v5  ;;  %v2037_v5 = vld [vmem:[#allocation3 + $0x118] sm:$0xff] }
 0x1be   : > { %1330 = vst.msk [vmem:[#allocation3 + $0x40] sm:$0xff] %vm1325_vm5, %v1238_v2  ;;  %v1242_v49 = vpop.permute.xlu0 %1241  ;;  %v3777_v2 = vld [vmem:[#allocation2 + $0x139] sm:$0xff] }
 0x1bf   : > { %1332 = vst.msk [vmem:[#allocation3 + $0x60] sm:$0xff] %vm1325_vm5, %v1242_v49  ;;  %1845 = vrot.lane.b32.xlu2 %v1763_v41, %s2827_s17 }
 0x1c0   : > { %2229 = vmatpush.bf16.msra.mxu0 %v2775_v18 }
 0x1c1   : > { %v1252_v58 = vpop.permute.xlu2 %1251  ;;  %2791 = vmatpush.bf16.msra.mxu2 %v2775_v18 }
 0x1c2   : > { %1337 = vst.msk [vmem:[#allocation3 + $0xb0] sm:$0xff] %vm1325_vm5, %v1252_v58 }
 0x1c3   : > { %1630 = vrot.lane.b32.xlu1 %v3248_v61, %s2826_s16  ;;  %v3786_v58 = vpop.f32.mrf.mxu1 }
 0x1c4   : > { %1823 = vrot.lane.b32.xlu0 %v1752_v62, %s2827_s17  ;;  %v2083_v62 = vpack.c.bf16 %v2037_v5, %v2035_v57 }
 0x1c5   : > { %v1244_v34 = vpop.permute.xlu1 %1243  ;;  %2760 = vmatmul.msk.bf16.gmra.mxu1 %vm433_vm0, %v2077_v50  ;;  %v1562_v50 = vld [vmem:[#allocation2 + $0xa8] sm:$0xff] }
 0x1c6   : > { %1333 = vst.msk [vmem:[#allocation3 + $0x70] sm:$0xff] %vm1325_vm5, %v1244_v34  ;;  %v1248_v37 = vpop.permute.xlu0 %1247 }
 0x1c7   : > { %1335 = vst.msk [vmem:[#allocation3 + $0x90] sm:$0xff] %vm1325_vm5, %v1248_v37  ;;  %1436 = vrot.lane.b32.xlu2 %v1365_v30, %s2825_s15  ;;  %v1768_v30 = vld [vmem:[#allocation2 + $0x141] sm:$0xff] }
 0x1c8   : > { %v1575_v37 = vld [vmem:[#allocation2 + $0x140] sm:$0xff] }
 0x1c9   : > { %v1617_v61 = vpop.permute.xlu2 %1616 }
 0x1cb   : > { %1269 = vrot.lane.b32.xlu1 %v1763_v41, %s2824_s14  ;;  %v3775_v41 = vld [vmem:[#allocation2 + $0x13a] sm:$0xff]  ;;  %v3794_v39 = vpop.f32.mrf.mxu1 }
 0x1cc   : > { %1462 = vrot.lane.b32.xlu0 %v3317_v33, %s2825_s15  ;;  %v3726_v33 = vld [vmem:[#allocation2 + $0x12a] sm:$0xff]  ;;  %1992 = vst.msk [vmem:[#allocation3 + $0x168] sm:$0xff] %vm433_vm0, %v3775_v41 }
 0x1cd   : > { %v1250_v19 = vpop.permute.xlu1 %1249  ;;  %1991 = vst.msk [vmem:[#allocation3 + $0x158] sm:$0xff] %vm433_vm0, %v3726_v33 }
 0x1ce   : > { %1336 = vst.msk [vmem:[#allocation3 + $0xa0] sm:$0xff] %vm1325_vm5, %v1250_v19  ;;  %v1423_v3 = vpop.permute.xlu0 %1422  ;;  %v1956_v19 = vld [vmem:[#allocation2 + $0x10a] sm:$0xff] }
 0x1cf   : > { %1519 = vst.msk [vmem:[#allocation3] sm:$0xff] %vm1518_vm6, %v1423_v3  ;;  %1821 = vrot.lane.b32.xlu2 %v3536_v59, %s2827_s17  ;;  %v1957_v3 = vld [vmem:[#allocation2 + $0x112] sm:$0xff] }
 0x1d0   : > { %1713 = vst.msk [vmem:[#allocation3] sm:$0xff] %vm1712_vm7, %v1617_v61 }
 0x1d1   : > { %v1812_v22 = vpop.permute.xlu2 %1811  ;;  %1988 = vst.msk [vmem:[#allocation3 + $0x128] sm:$0xff] %vm433_vm0, %v1956_v19 }
 0x1d2   : > { %1989 = vst.msk [vmem:[#allocation3 + $0x138] sm:$0xff] %vm433_vm0, %v1957_v3 }
 0x1d3   : > { %1464 = vrot.lane.b32.xlu1 %v3340_v47, %s2825_s15  ;;  %v2027_v47 = vld [vmem:[#allocation3 + $0xc8] sm:$0xff] }
 0x1d4   : > { %1658 = vrot.lane.b32.xlu0 %v3356_v0, %s2826_s16  ;;  %v2079_v0 = vpack.c.bf16 %v2029_v21, %v2027_v47  ;;  %v3814_v21 = vld [vmem:[#allocation2 + $0xb1] sm:$0xff]  ;;  %v2045_v5 = vld [vmem:[#allocation3 + $0x158] sm:$0xff] }
 0x1d5   : > { %v1425_v59 = vpop.permute.xlu1 %1424 }
 0x1d6   : > { %1520 = vst.msk [vmem:[#allocation3 + $0x10] sm:$0xff] %vm1518_vm6, %v1425_v59  ;;  %v1619_v24 = vpop.permute.xlu0 %1618  ;;  %2761 = vmatmul.msk.bf16.gmra.mxu1 %vm433_vm0, %v2079_v0 }
 0x1d7   : > { %1714 = vst.msk [vmem:[#allocation3 + $0x10] sm:$0xff] %vm1712_vm7, %v1619_v24  ;;  %1271 = vrot.lane.b32.xlu2 %v3656_v38, %s2824_s14 }
 0x1d8   : > { %1907 = vst.msk [vmem:[#allocation3 + $0x10] sm:$0xff] %vm1905_vm8, %v1812_v22  ;;  %v3800_v22 = vld [vmem:[#allocation2 + $0xa9] sm:$0xff]  ;;  %v2039_v0 = vld [vmem:[#allocation3 + $0x128] sm:$0xff] }
 0x1d9   : > { %v1621_v60 = vpop.permute.xlu2 %1620  ;;  %v2041_v28 = vld [vmem:[#allocation3 + $0x138] sm:$0xff] }
 0x1da   : > { %v2085_v1 = vpack.c.bf16 %v2041_v28, %v2039_v0  ;;  %v1386_v28 = vld [vmem:[#allocation2 + $0x16a] sm:$0xff] }
 0x1db   : > { %1849 = vrot.lane.b32.xlu1 %v1765_v56, %s2827_s17  ;;  %1996 = vst.msk [vmem:[#allocation3 + $0x1a8] sm:$0xff] %vm433_vm0, %v1386_v28 }
 0x1dc   : > { %1438 = vrot.lane.b32.xlu0 %v3612_v29, %s2825_s15  ;;  %2764 = vmatmul.msk.bf16.vlgmr.msra.gmra.mxu3 %vm433_vm0, %v2085_v1  ;;  %v3896_v1 = vld [vmem:[#allocation2 + $0x172] sm:$0xff] }
 0x1dd   : > { %v1810_v35 = vpop.permute.xlu1 %1809  ;;  %1997 = vst.msk [vmem:[#allocation3 + $0x1b8] sm:$0xff] %vm433_vm0, %v3896_v1 }
 0x1de   : > { %1906 = vst.msk [vmem:[#allocation3] sm:$0xff] %vm1905_vm8, %v1810_v35  ;;  %v1427_v6 = vpop.permute.xlu0 %1426 }
 0x1df   : > { %1521 = vst.msk [vmem:[#allocation3 + $0x20] sm:$0xff] %vm1518_vm6, %v1427_v6  ;;  %1656 = vrot.lane.b32.xlu2 %v3335_v43, %s2826_s16  ;;  %v2004_v29 = vld [vmem:[#allocation3 + $0x10] sm:$0xff] }
 0x1e0   : > { %1715 = vst.msk [vmem:[#allocation3 + $0x20] sm:$0xff] %vm1712_vm7, %v1621_v60  ;;  %v3809_v60 = vpop.f32.mrf.mxu1  ;;  %v1383_v6 = vld [vmem:[#allocation2 + $0x142] sm:$0xff] }
 0x1e1   : > { %v1816_v53 = vpop.permute.xlu2 %1815  ;;  %1993 = vst.msk [vmem:[#allocation3 + $0x178] sm:$0xff] %vm433_vm0, %v1383_v6 }
 0x1e3   : > { %1440 = vrot.lane.b32.xlu1 %v3615_v10, %s2825_s15  ;;  %v1380_v10 = vld [vmem:[#allocation2 + $0x122] sm:$0xff] }
 0x1e4   : > { %1634 = vrot.lane.b32.xlu0 %v1561_v31, %s2826_s16  ;;  %1990 = vst.msk [vmem:[#allocation3 + $0x148] sm:$0xff] %vm433_vm0, %v1380_v10  ;;  %v1563_v31 = vld [vmem:[#allocation2 + $0xb0] sm:$0xff] }
 0x1e5   : > { %v1429_v45 = vpop.permute.xlu1 %1428  ;;  %v2002_v4 = vld [vmem:[#allocation3] sm:$0xff] }
 0x1e6   : > { %1522 = vst.msk [vmem:[#allocation3 + $0x30] sm:$0xff] %vm1518_vm6, %v1429_v45  ;;  %v1623_v43 = vpop.permute.xlu0 %1622  ;;  %v2066_v15 = vpack.c.bf16 %v2004_v29, %v2002_v4  ;;  %2762 = vmatmul.msk.bf16.gmra.mxu1 %vm433_vm0, %v2081_v27 }
 0x1e7   : > { %1716 = vst.msk [vmem:[#allocation3 + $0x30] sm:$0xff] %vm1712_vm7, %v1623_v43  ;;  %1851 = vrot.lane.b32.xlu2 %v1766_v44, %s2827_s17 }
 0x1e8   : > { %2230 = vmatmul.bf16.vlgmr.msra.gmra.mxu0 %v2066_v15  ;;  %1909 = vst.msk [vmem:[#allocation3 + $0x30] sm:$0xff] %vm1905_vm8, %v1816_v53 }
 0x1e9   : > { %v1455_v55 = vpop.permute.xlu2 %1454 }
 0x1eb   : > { %1825 = vrot.lane.b32.xlu1 %v1753_v63, %s2827_s17 }
 0x1ec   : > { %1273 = vrot.lane.b32.xlu0 %v1765_v56, %s2824_s14 }
 0x1ed   : > { %v1814_v32 = vpop.permute.xlu1 %1813 }
 0x1ee   : > { %1908 = vst.msk [vmem:[#allocation3 + $0x20] sm:$0xff] %vm1905_vm8, %v1814_v32  ;;  %v1262_v38 = vpop.permute.xlu0 %1261 }
 0x1ef   : > { %1342 = vst.msk [vmem:[#allocation3 + $0x100] sm:$0xff] %vm1325_vm5, %v1262_v38  ;;  %1632 = vrot.lane.b32.xlu2 %v1560_v46, %s2826_s16  ;;  %v2008_v12 = vld [vmem:[#allocation3 + $0x30] sm:$0xff] }
 0x1f0   : > { %1535 = vst.msk [vmem:[#allocation3 + $0x100] sm:$0xff] %vm1518_vm6, %v1455_v55  ;;  %v1770_v55 = vld [vmem:[#allocation2 + $0x159] sm:$0xff] }
 0x1f1   : > { %v1651_v52 = vpop.permute.xlu2 %1650  ;;  %v1385_v46 = vld [vmem:[#allocation2 + $0x15a] sm:$0xff] }
 0x1f2   : > { %1995 = vst.msk [vmem:[#allocation3 + $0x198] sm:$0xff] %vm433_vm0, %v1385_v46 }
 0x1f3   : > { %1275 = vrot.lane.b32.xlu1 %v1766_v44, %s2824_s14  ;;  %v1576_v44 = vld [vmem:[#allocation2 + $0x150] sm:$0xff] }
 0x1f4   : > { %1468 = vrot.lane.b32.xlu0 %v3726_v33, %s2825_s15 }
 0x1f5   : > { %v1264_v16 = vpop.permute.xlu1 %1263  ;;  %v2006_v36 = vld [vmem:[#allocation3 + $0x20] sm:$0xff] }
 0x1f6   : > { %1343 = vst.msk [vmem:[#allocation3 + $0x110] sm:$0xff] %vm1325_vm5, %v1264_v16  ;;  %v1457_v17 = vpop.permute.xlu0 %1456  ;;  %v2068_v20 = vpack.c.bf16 %v2008_v12, %v2006_v36  ;;  %2763 = vmatmul.msk.bf16.gmra.mxu1 %vm433_vm0, %v2083_v62  ;;  %v3864_v62 = vld [vmem:[#allocation2 + $0xc1] sm:$0xff] }
 0x1f7   : > { %1536 = vst.msk [vmem:[#allocation3 + $0x110] sm:$0xff] %vm1518_vm6, %v1457_v17  ;;  %1827 = vrot.lane.b32.xlu2 %v3547_v40, %s2827_s17 }
 0x1f8   : > { %2235 = vmatmul.bf16.gmra.mxu0 %v2068_v20  ;;  %1730 = vst.msk [vmem:[#allocation3 + $0x110] sm:$0xff] %vm1712_vm7, %v1651_v52  ;;  %v1769_v52 = vld [vmem:[#allocation2 + $0x151] sm:$0xff] }
 0x1f9   : > { %v1431_v49 = vpop.permute.xlu2 %1430 }
 0x1fa   : > { %1523 = vst.msk [vmem:[#allocation3 + $0x40] sm:$0xff] %vm1518_vm6, %v1431_v49  ;;  %v2043_v49 = vld [vmem:[#allocation3 + $0x148] sm:$0xff] }
 0x1fb   : > { %1660 = vrot.lane.b32.xlu1 %v1574_v26, %s2826_s16  ;;  %v1565_v26 = vld [vmem:[#allocation2 + $0xc8] sm:$0xff] }
 0x1fc   : > { %1853 = vrot.lane.b32.xlu0 %v3777_v2, %s2827_s17 }
 0x1fd   : > { %v1649_v40 = vpop.permute.xlu1 %1648 }
 0x1fe   : > { %1729 = vst.msk [vmem:[#allocation3 + $0x100] sm:$0xff] %vm1712_vm7, %v1649_v40  ;;  %v1842_v18 = vpop.permute.xlu0 %1841  ;;  %v2087_v40 = vpack.c.bf16 %v2045_v5, %v2043_v49  ;;  %v3944_v49 = vld [vmem:[#allocation2 + $0x18a] sm:$0xff] }
 0x1ff   : > { %1922 = vst.msk [vmem:[#allocation3 + $0x100] sm:$0xff] %vm1905_vm8, %v1842_v18  ;;  %1466 = vrot.lane.b32.xlu2 %v1380_v10, %s2825_s15  ;;  %v1577_v10 = vld [vmem:[#allocation2 + $0x158] sm:$0xff] }
 0x200   : > { %v1384_v18 = vld [vmem:[#allocation2 + $0x152] sm:$0xff]  ;;  %2765 = vmatmul.msk.bf16.gmra.mxu3 %vm433_vm0, %v2087_v40  ;;  %1999 = vst.msk [vmem:[#allocation3 + $0x1d8] sm:$0xff] %vm433_vm0, %v3944_v49 }
 0x201   : > { %v1627_v34 = vpop.permute.xlu2 %1626  ;;  %1994 = vst.msk [vmem:[#allocation3 + $0x188] sm:$0xff] %vm433_vm0, %v1384_v18 }
 0x203   : > { %1855 = vrot.lane.b32.xlu1 %v1768_v30, %s2827_s17 }
 0x204   : > { %1444 = vrot.lane.b32.xlu0 %v3647_v8, %s2825_s15 }
 0x205   : > { %v1844_v14 = vpop.permute.xlu1 %1843 }
 0x206   : > { %1923 = vst.msk [vmem:[#allocation3 + $0x110] sm:$0xff] %vm1905_vm8, %v1844_v14  ;;  %v1433_v61 = vpop.permute.xlu0 %1432  ;;  %v2034_v8 = vld [vmem:[#allocation3 + $0x100] sm:$0xff] }
 0x207   : > { %1524 = vst.msk [vmem:[#allocation3 + $0x50] sm:$0xff] %vm1518_vm6, %v1433_v61  ;;  %1662 = vrot.lane.b32.xlu2 %v1575_v37, %s2826_s16 }
 0x208   : > { %1718 = vst.msk [vmem:[#allocation3 + $0x50] sm:$0xff] %vm1712_vm7, %v1627_v34  ;;  %v1564_v34 = vld [vmem:[#allocation2 + $0xc0] sm:$0xff] }
 0x209   : > { %v1266_v33 = vpop.permute.xlu2 %1265 }
 0x20a   : > { %1344 = vst.msk [vmem:[#allocation3 + $0x120] sm:$0xff] %vm1325_vm5, %v1266_v33 }
 0x20b   : > { %1636 = vrot.lane.b32.xlu1 %v1562_v50, %s2826_s16 }
 0x20c   : > { %1829 = vrot.lane.b32.xlu0 %v3800_v22, %s2827_s17  ;;  %v3825_v29 = vpop.f32.mrf.mxu1 }
 0x20d   : > { %v1625_v59 = vpop.permute.xlu1 %1624  ;;  %v2036_v24 = vld [vmem:[#allocation3 + $0x110] sm:$0xff] }
 0x20e   : > { %1717 = vst.msk [vmem:[#allocation3 + $0x40] sm:$0xff] %vm1712_vm7, %v1625_v59  ;;  %v1818_v56 = vpop.permute.xlu0 %1817  ;;  %v2082_v47 = vpack.c.bf16 %v2036_v24, %v2034_v8  ;;  %v1578_v59 = vld [vmem:[#allocation2 + $0x168] sm:$0xff] }
 0x20f   : > { %1910 = vst.msk [vmem:[#allocation3 + $0x40] sm:$0xff] %vm1905_vm8, %v1818_v56  ;;  %1442 = vrot.lane.b32.xlu2 %v3644_v11, %s2825_s15  ;;  %v3883_v24 = vld [vmem:[#allocation2 + $0x169] sm:$0xff] }
 0x210   : > { %2270 = vmatmul.bf16.vlgmr.msra.gmra.mxu2 %v2082_v47 }
 0x211   : > { %v1461_v35 = vpop.permute.xlu2 %1460 }
 0x213   : > { %1831 = vrot.lane.b32.xlu1 %v3814_v21, %s2827_s17 }
 0x214   : > { %1279 = vrot.lane.b32.xlu0 %v1768_v30, %s2824_s14  ;;  %v3836_v27 = vpop.f32.mrf.mxu1 }
 0x215   : > { %v1820_v53 = vpop.permute.xlu1 %1819 }
 0x216   : > { %1911 = vst.msk [vmem:[#allocation3 + $0x50] sm:$0xff] %vm1905_vm8, %v1820_v53  ;;  %v1268_v11 = vpop.permute.xlu0 %1267  ;;  %v2010_v4 = vld [vmem:[#allocation3 + $0x40] sm:$0xff] }
 0x217   : > { %1345 = vst.msk [vmem:[#allocation3 + $0x130] sm:$0xff] %vm1325_vm5, %v1268_v11  ;;  %1638 = vrot.lane.b32.xlu2 %v1563_v31, %s2826_s16  ;;  %v1579_v53 = vld [vmem:[#allocation2 + $0x170] sm:$0xff] }
 0x218   : > { %1538 = vst.msk [vmem:[#allocation3 + $0x130] sm:$0xff] %vm1518_vm6, %v1461_v35  ;;  %v3893_v35 = vld [vmem:[#allocation2 + $0x171] sm:$0xff] }
 0x219   : > { %v1846_v45 = vpop.permute.xlu2 %1845 }
 0x21b   : > { %1470 = vrot.lane.b32.xlu1 %v3775_v41, %s2825_s15 }
 0x21c   : > { %1664 = vrot.lane.b32.xlu0 %v1576_v44, %s2826_s16 }
 0x21d   : > { %v1459_v43 = vpop.permute.xlu1 %1458  ;;  %v2012_v15 = vld [vmem:[#allocation3 + $0x50] sm:$0xff] }
 0x21e   : > { %1537 = vst.msk [vmem:[#allocation3 + $0x120] sm:$0xff] %vm1518_vm6, %v1459_v43  ;;  %v1653_v63 = vpop.permute.xlu0 %1652  ;;  %v2070_v9 = vpack.c.bf16 %v2012_v15, %v2010_v4  ;;  %v1566_v15 = vld [vmem:[#allocation2 + $0xd8] sm:$0xff] }
 0x21f   : > { %1731 = vst.msk [vmem:[#allocation3 + $0x120] sm:$0xff] %vm1712_vm7, %v1653_v63  ;;  %1277 = vrot.lane.b32.xlu2 %v3777_v2, %s2824_s14 }
 0x220   : > { %2240 = vmatmul.bf16.gmra.mxu0 %v2070_v9  ;;  %1924 = vst.msk [vmem:[#allocation3 + $0x120] sm:$0xff] %vm1905_vm8, %v1846_v45 }
 0x221   : > { %v1437_v13 = vpop.permute.xlu2 %1436 }
 0x222   : > { %1526 = vst.msk [vmem:[#allocation3 + $0x70] sm:$0xff] %vm1518_vm6, %v1437_v13  ;;  %v3848_v12 = vpop.f32.mrf.mxu1  ;;  %v2047_v13 = vld [vmem:[#allocation3 + $0x168] sm:$0xff] }
 0x223   : > { %1666 = vrot.lane.b32.xlu1 %v1577_v10, %s2826_s16 }
 0x224   : > { %1859 = vrot.lane.b32.xlu0 %v1770_v55, %s2827_s17 }
 0x225   : > { %v1655_v32 = vpop.permute.xlu1 %1654 }
 0x226   : > { %1732 = vst.msk [vmem:[#allocation3 + $0x130] sm:$0xff] %vm1712_vm7, %v1655_v32  ;;  %v1848_v38 = vpop.permute.xlu0 %1847  ;;  %v1567_v32 = vld [vmem:[#allocation2 + $0xe0] sm:$0xff] }
 0x227   : > { %1925 = vst.msk [vmem:[#allocation3 + $0x130] sm:$0xff] %vm1905_vm8, %v1848_v38  ;;  %1472 = vrot.lane.b32.xlu2 %v1383_v6, %s2825_s15  ;;  %v2038_v48 = vld [vmem:[#allocation3 + $0x120] sm:$0xff]  ;;  %v1760_v38 = vld [vmem:[#allocation2 + $0xe1] sm:$0xff] }
 0x229   : > { %v1822_v42 = vpop.permute.xlu2 %1821 }
 0x22a   : > { %v3859_v2 = vpop.f32.mrf.mxu1 }
 0x22b   : > { %1253 = vrot.lane.b32.xlu1 %v3800_v22, %s2824_s14  ;;  %v1758_v22 = vld [vmem:[#allocation2 + $0xc9] sm:$0xff] }
 0x22c   : > { %1446 = vrot.lane.b32.xlu0 %v3683_v25, %s2825_s15 }
 0x22d   : > { %v1435_v16 = vpop.permute.xlu1 %1434 }
 0x22e   : > { %1525 = vst.msk [vmem:[#allocation3 + $0x60] sm:$0xff] %vm1518_vm6, %v1435_v16  ;;  %v1629_v36 = vpop.permute.xlu0 %1628  ;;  %v2040_v17 = vld [vmem:[#allocation3 + $0x130] sm:$0xff] }
 0x22f   : > { %1719 = vst.msk [vmem:[#allocation3 + $0x60] sm:$0xff] %vm1712_vm7, %v1629_v36  ;;  %v2084_v20 = vpack.c.bf16 %v2040_v17, %v2038_v48  ;;  %1857 = vrot.lane.b32.xlu2 %v1769_v52, %s2827_s17  ;;  %v3923_v48 = vld [vmem:[%s4303_s4] ss:$0 sm:$0xff] }
 0x230   : > { %1912 = vst.msk [vmem:[#allocation3 + $0x60] sm:$0xff] %vm1905_vm8, %v1822_v42 }
 0x231   : > { %2275 = vmatmul.bf16.gmra.mxu2 %v2084_v20  ;;  %v1272_v57 = vpop.permute.xlu2 %1271 }
 0x232   : > { %1347 = vst.msk [vmem:[#allocation3 + $0x150] sm:$0xff] %vm1325_vm5, %v1272_v57  ;;  %v3875_v19 = vpop.f32.mrf.mxu1 }
 0x233   : > { %1448 = vrot.lane.b32.xlu1 %v3686_v54, %s2825_s15 }
 0x234   : > { %1642 = vrot.lane.b32.xlu0 %v1565_v26, %s2826_s16 }
 0x235   : > { %v1631_v25 = vpop.permute.xlu1 %1630 }
 0x236   : > { %1720 = vst.msk [vmem:[#allocation3 + $0x70] sm:$0xff] %vm1712_vm7, %v1631_v25  ;;  %v1824_v41 = vpop.permute.xlu0 %1823 }
 0x237   : > { %1913 = vst.msk [vmem:[#allocation3 + $0x70] sm:$0xff] %vm1905_vm8, %v1824_v41  ;;  %1255 = vrot.lane.b32.xlu2 %v3814_v21, %s2824_s14  ;;  %v2014_v30 = vld [vmem:[#allocation3 + $0x60] sm:$0xff] }
 0x239   : > { %v1657_v54 = vpop.permute.xlu2 %1656 }
 0x23a   : > { %v3885_v47 = vpop.f32.mrf.mxu1 }
 0x23b   : > { %1833 = vrot.lane.b32.xlu1 %v3864_v62, %s2827_s17 }
 0x23c   : > { %1281 = vrot.lane.b32.xlu0 %v1769_v52, %s2824_s14 }
 0x23d   : > { %v1270_v37 = vpop.permute.xlu1 %1269 }
 0x23e   : > { %1346 = vst.msk [vmem:[#allocation3 + $0x140] sm:$0xff] %vm1325_vm5, %v1270_v37  ;;  %v1463_v14 = vpop.permute.xlu0 %1462  ;;  %v2016_v61 = vld [vmem:[#allocation3 + $0x70] sm:$0xff] }
 0x23f   : > { %1539 = vst.msk [vmem:[#allocation3 + $0x140] sm:$0xff] %vm1518_vm6, %v1463_v14  ;;  %v2072_v50 = vpack.c.bf16 %v2016_v61, %v2014_v30  ;;  %1640 = vrot.lane.b32.xlu2 %v1564_v34, %s2826_s16  ;;  %v1581_v34 = vld [vmem:[#allocation2 + $0x188] sm:$0xff] }
 0x240   : > { %1733 = vst.msk [vmem:[#allocation3 + $0x140] sm:$0xff] %vm1712_vm7, %v1657_v54 }
 0x241   : > { %2245 = vmatmul.bf16.gmra.mxu0 %v2072_v50  ;;  %v1852_v3 = vpop.permute.xlu2 %1851 }
 0x242   : > { %v3904_v11 = vpop.f32.mrf.mxu1 }
 0x243   : > { %1283 = vrot.lane.b32.xlu1 %v1770_v55, %s2824_s14 }
 0x244   : > { %1476 = vrot.lane.b32.xlu0 %v1385_v46, %s2825_s15  ;;  %v2049_v46 = vld [vmem:[#allocation3 + $0x178] sm:$0xff] }
 0x245   : > { %v1465_v33 = vpop.permute.xlu1 %1464 }
 0x246   : > { %1540 = vst.msk [vmem:[#allocation3 + $0x150] sm:$0xff] %vm1518_vm6, %v1465_v33  ;;  %v1659_v8 = vpop.permute.xlu0 %1658 }
 0x247   : > { %1734 = vst.msk [vmem:[#allocation3 + $0x150] sm:$0xff] %vm1712_vm7, %v1659_v8  ;;  %1835 = vrot.lane.b32.xlu2 %v1758_v22, %s2827_s17 }
 0x248   : > { %1927 = vst.msk [vmem:[#allocation3 + $0x150] sm:$0xff] %vm1905_vm8, %v1852_v3 }
 0x249   : > { %v1633_v56 = vpop.permute.xlu2 %1632 }
 0x24a   : > { %v3914_v55 = vpop.f32.mrf.mxu1 }
 0x24b   : > { %1668 = vrot.lane.b32.xlu1 %v1578_v59, %s2826_s16 }
 0x24c   : > { %1861 = vrot.lane.b32.xlu0 %v3883_v24, %s2827_s17 }
 0x24d   : > { %v1850_v21 = vpop.permute.xlu1 %1849 }
 0x24e   : > { %1926 = vst.msk [vmem:[#allocation3 + $0x140] sm:$0xff] %vm1905_vm8, %v1850_v21  ;;  %v1439_v0 = vpop.permute.xlu0 %1438 }
 0x24f   : > { %1527 = vst.msk [vmem:[#allocation3 + $0x80] sm:$0xff] %vm1518_vm6, %v1439_v0  ;;  %1474 = vrot.lane.b32.xlu2 %v1384_v18, %s2825_s15  ;;  %v2044_v31 = vld [vmem:[#allocation3 + $0x150] sm:$0xff] }
 0x250   : > { %1721 = vst.msk [vmem:[#allocation3 + $0x80] sm:$0xff] %vm1712_vm7, %v1633_v56 }
 0x251   : > { %v1828_v6 = vpop.permute.xlu2 %1827 }
 0x253   : > { %1863 = vrot.lane.b32.xlu1 %v3893_v35, %s2827_s17  ;;  %v3942_v41 = vpop.f32.mrf.mxu1 }
 0x254   : > { %1259 = vrot.lane.b32.xlu0 %v1758_v22, %s2824_s14 }
 0x255   : > { %v1441_v44 = vpop.permute.xlu1 %1440  ;;  %v2042_v45 = vld [vmem:[#allocation3 + $0x140] sm:$0xff] }
 0x256   : > { %1528 = vst.msk [vmem:[#allocation3 + $0x90] sm:$0xff] %vm1518_vm6, %v1441_v44  ;;  %v1635_v4 = vpop.permute.xlu0 %1634  ;;  %v2086_v43 = vpack.c.bf16 %v2044_v31, %v2042_v45 }
 0x257   : > { %1722 = vst.msk [vmem:[#allocation3 + $0x90] sm:$0xff] %vm1712_vm7, %v1635_v4  ;;  %1670 = vrot.lane.b32.xlu2 %v1579_v53, %s2826_s16 }
 0x258   : > { %2280 = vmatmul.bf16.gmra.mxu2 %v2086_v43  ;;  %1915 = vst.msk [vmem:[#allocation3 + $0x90] sm:$0xff] %vm1905_vm8, %v1828_v6  ;;  %v1773_v6 = vld [vmem:[#allocation2 + $0x181] sm:$0xff] }
 0x259   : > { %v1467_v63 = vpop.permute.xlu2 %1466 }
 0x25b   : > { %1450 = vrot.lane.b32.xlu1 %v3712_v51, %s2825_s15  ;;  %v2089_v51 = vpack.c.bf16 %v2049_v46, %v2047_v13  ;;  %v3963_v3 = vpop.f32.mrf.mxu1 }
 0x25c   : > { %1644 = vrot.lane.b32.xlu0 %v1566_v15, %s2826_s16 }
 0x25d   : > { %v1826_v9 = vpop.permute.xlu1 %1825  ;;  %2766 = vmatmul.msk.bf16.gmra.mxu3 %vm433_vm0, %v2089_v51  ;;  %v2051_v51 = vld [vmem:[#allocation3 + $0x188] sm:$0xff] }
 0x25e   : > { %1914 = vst.msk [vmem:[#allocation3 + $0x80] sm:$0xff] %vm1905_vm8, %v1826_v9  ;;  %v1274_v10 = vpop.permute.xlu0 %1273 }
 0x25f   : > { %1348 = vst.msk [vmem:[#allocation3 + $0x160] sm:$0xff] %vm1325_vm5, %v1274_v10  ;;  %1257 = vrot.lane.b32.xlu2 %v3864_v62, %s2824_s14  ;;  %v2020_v52 = vld [vmem:[#allocation3 + $0x90] sm:$0xff] }
 0x260   : > { %1541 = vst.msk [vmem:[#allocation3 + $0x160] sm:$0xff] %vm1518_vm6, %v1467_v63 }
 0x261   : > { %v1663_v42 = vpop.permute.xlu2 %1662 }
 0x263   : > { %1646 = vrot.lane.b32.xlu1 %v1567_v32, %s2826_s16  ;;  %v1196_v32 = vld [vmem:[#allocation2 + $0x189] sm:$0xff] }
 0x264   : > { %1839 = vrot.lane.b32.xlu0 %v1760_v38, %s2827_s17  ;;  %v2053_v38 = vld [vmem:[#allocation3 + $0x198] sm:$0xff] }
 0x265   : > { %v2231_v16 = vpop.f32.mrf.mxu0  ;;  %v1276_v36 = vpop.permute.xlu1 %1275  ;;  %v2018_v17 = vld [vmem:[#allocation3 + $0x80] sm:$0xff] }
 0x266   : > { %v2232_v20 = vadd.f32 %v3923_v48, %v2231_v16  ;;  %1349 = vst.msk [vmem:[#allocation3 + $0x170] sm:$0xff] %vm1325_vm5, %v1276_v36  ;;  %v1469_v26 = vpop.permute.xlu0 %1468  ;;  %v2074_v57 = vpack.c.bf16 %v2020_v52, %v2018_v17  ;;  %v2091_v52 = vpack.c.bf16 %v2053_v38, %v2051_v51  ;;  %v1388_v17 = vld [vmem:[#allocation2 + $0x182] sm:$0xff] }
 0x267   : > { %1542 = vst.msk [vmem:[#allocation3 + $0x170] sm:$0xff] %vm1518_vm6, %v1469_v26  ;;  %1452 = vrot.lane.b32.xlu2 %v3717_v7, %s2825_s15  ;;  %v1759_v7 = vld [vmem:[#allocation2 + $0xd9] sm:$0xff] }
 0x268   : > { %v2321_v25 = vadd.f32 %v3768_v23, %v2232_v20  ;;  %2250 = vmatmul.bf16.gmra.mxu0 %v2074_v57  ;;  %1736 = vst.msk [vmem:[#allocation3 + $0x170] sm:$0xff] %vm1712_vm7, %v1663_v42 }
 0x269   : > { %v1443_v5 = vpop.permute.xlu2 %1442  ;;  %1998 = vst.msk [vmem:[#allocation3 + $0x1c8] sm:$0xff] %vm433_vm0, %v1388_v17 }
 0x26a   : > { %2400 = vst.msk [vmem:[%s3935_s26] sm:$0xff] %vm433_vm0, %v2321_v25  ;;  %v2503_v54 = vmul.f32 %v2321_v25, %v2321_v25  ;;  %v2432_v14 = vsel %vm433_vm0, %v2321_v25, 0.0 }
 0x26b   : > { %1285 = vrot.lane.b32.xlu1 %v3883_v24, %s2824_s14  ;;  %1529 = vst.msk [vmem:[#allocation3 + $0xa0] sm:$0xff] %vm1518_vm6, %v1443_v5 }
 0x26c   : > { %1478 = vrot.lane.b32.xlu0 %v1386_v28, %s2825_s15  ;;  %v2535_v33 = vsel %vm433_vm0, %v2503_v54, 0.0 }
 0x26d   : > { %v2233_v23 = vpop.f32.mrf.mxu0  ;;  %v1661_v62 = vpop.permute.xlu1 %1660  ;;  %2767 = vmatmul.msk.bf16.gmra.mxu3 %vm433_vm0, %v2091_v52 }
 0x26e   : > { %v2234_v40 = vadd.f32 %v3923_v48, %v2233_v23  ;;  %1735 = vst.msk [vmem:[#allocation3 + $0x160] sm:$0xff] %vm1712_vm7, %v1661_v62  ;;  %v1854_v18 = vpop.permute.xlu0 %1853  ;;  %v1775_v23 = vld [vmem:[#allocation2 + $0x199] sm:$0xff] }
 0x26f   : > { %1928 = vst.msk [vmem:[#allocation3 + $0x160] sm:$0xff] %vm1905_vm8, %v1854_v18  ;;  %1837 = vrot.lane.b32.xlu2 %v1759_v7, %s2827_s17  ;;  %v1582_v7 = vld [vmem:[#allocation2 + $0x198] sm:$0xff] }
 0x270   : > { %v2323_v30 = vadd.f32 %v3786_v58, %v2234_v40 }
 0x271   : > { %v1639_v37 = vpop.permute.xlu2 %1638 }
 0x272   : > { %2401 = vst.msk [vmem:[%s3935_s26 + $0x8] sm:$0xff] %vm433_vm0, %v2323_v30  ;;  %v2433_v61 = vsel %vm433_vm0, %v2323_v30, 0.0  ;;  %v2504_v50 = vmul.f32 %v2323_v30, %v2323_v30 }
 0x273   : > { %v2434_v22 = vadd.f32 %v2433_v61, %v2432_v14  ;;  %1480 = vrot.lane.b32.xlu1 %v3896_v1, %s2825_s15 }
 0x274   : > { %v2536_v58 = vsel %vm433_vm0, %v2504_v50, 0.0  ;;  %1674 = vrot.lane.b32.xlu0 %v1581_v34, %s2826_s16  ;;  %v1776_v34 = vld [vmem:[#allocation2 + $0x1a1] sm:$0xff] }
 0x275   : > { %v2537_v8 = vadd.f32 %v2536_v58, %v2535_v33  ;;  %v1856_v59 = vpop.permute.xlu1 %1855  ;;  %v2236_v24 = vpop.f32.mrf.mxu0 }
 0x276   : > { %1929 = vst.msk [vmem:[#allocation3 + $0x170] sm:$0xff] %vm1905_vm8, %v1856_v59  ;;  %v2237_v56 = vadd.f32 %v3923_v48, %v2236_v24  ;;  %v1445_v21 = vpop.permute.xlu0 %1444  ;;  %v2046_v44 = vld [vmem:[#allocation3 + $0x160] sm:$0xff] }
 0x277   : > { %1530 = vst.msk [vmem:[#allocation3 + $0xb0] sm:$0xff] %vm1518_vm6, %v1445_v21  ;;  %1287 = vrot.lane.b32.xlu2 %v3893_v35, %s2824_s14  ;;  %v1580_v35 = vld [vmem:[#allocation2 + $0x180] sm:$0xff] }
 0x278   : > { %v2326_v0 = vadd.f32 %v3794_v39, %v2237_v56  ;;  %1724 = vst.msk [vmem:[#allocation3 + $0xb0] sm:$0xff] %vm1712_vm7, %v1639_v37  ;;  %v3984_v39 = vpop.f32.mrf.mxu1 }
 0x279   : > { %v1278_v28 = vpop.permute.xlu2 %1277 }
 0x27a   : > { %2402 = vst.msk [vmem:[%s3935_s26 + $0x10] sm:$0xff] %vm433_vm0, %v2326_v0  ;;  %v2435_v1 = vsel %vm433_vm0, %v2326_v0, 0.0  ;;  %v2505_v31 = vmul.f32 %v2326_v0, %v2326_v0 }
 0x27b   : > { %v2436_v53 = vadd.f32 %v2435_v1, %v2434_v22  ;;  %1865 = vrot.lane.b32.xlu1 %v1773_v6, %s2827_s17  ;;  %1350 = vst.msk [vmem:[#allocation3 + $0x180] sm:$0xff] %vm1325_vm5, %v1278_v28  ;;  %v1583_v22 = vld [vmem:[#allocation2 + $0x1a0] sm:$0xff] }
 0x27c   : > { %v2538_v45 = vsel %vm433_vm0, %v2505_v31, 0.0  ;;  %1289 = vrot.lane.b32.xlu0 %v1773_v6, %s2824_s14 }
 0x27d   : > { %v2539_v4 = vadd.f32 %v2538_v45, %v2537_v8  ;;  %v1637_v43 = vpop.permute.xlu1 %1636  ;;  %v2238_v15 = vpop.f32.mrf.mxu0  ;;  %v2048_v63 = vld [vmem:[#allocation3 + $0x170] sm:$0xff] }
 0x27e   : > { %1723 = vst.msk [vmem:[#allocation3 + $0xa0] sm:$0xff] %vm1712_vm7, %v1637_v43  ;;  %v2239_v9 = vadd.f32 %v3923_v48, %v2238_v15  ;;  %v1830_v10 = vpop.permute.xlu0 %1829  ;;  %v2088_v13 = vpack.c.bf16 %v2048_v63, %v2046_v44 }
 0x27f   : > { %1916 = vst.msk [vmem:[#allocation3 + $0xa0] sm:$0xff] %vm1905_vm8, %v1830_v10  ;;  %1672 = vrot.lane.b32.xlu2 %v1580_v35, %s2826_s16 }
 0x280   : > { %v2328_v46 = vadd.f32 %v3809_v60, %v2239_v9  ;;  %2285 = vmatmul.bf16.gmra.mxu2 %v2088_v13  ;;  %v4004_v5 = vpop.f32.mrf.mxu1 }
 0x281   : > { %v1473_v42 = vpop.permute.xlu2 %1472 }
 0x282   : > { %2403 = vst.msk [vmem:[%s3935_s26 + $0x18] sm:$0xff] %vm433_vm0, %v2328_v46  ;;  %v2437_v16 = vsel %vm433_vm0, %v2328_v46, 0.0  ;;  %v2506_v36 = vmul.f32 %v2328_v46, %v2328_v46 }
 0x283   : > { %v3994_v20 = vadd.f32 %v2437_v16, %v2436_v53  ;;  %1291 = vrot.lane.b32.xlu1 %v1196_v32, %s2824_s14 }
 0x284   : > { %v2540_v60 = vsel %vm433_vm0, %v2506_v36, 0.0  ;;  %1484 = vrot.lane.b32.xlu0 %v3944_v49, %s2825_s15 }
 0x285   : > { %v2541_v26 = vadd.f32 %v2540_v60, %v2539_v4  ;;  %v1832_v57 = vpop.permute.xlu1 %1831 }
 0x286   : > { %1917 = vst.msk [vmem:[#allocation3 + $0xb0] sm:$0xff] %vm1905_vm8, %v1832_v57  ;;  %v1280_v25 = vpop.permute.xlu0 %1279  ;;  %v2022_v40 = vld [vmem:[#allocation3 + $0xa0] sm:$0xff] }
 0x287   : > { %1351 = vst.msk [vmem:[#allocation3 + $0x190] sm:$0xff] %vm1325_vm5, %v1280_v25  ;;  %1867 = vrot.lane.b32.xlu2 %v1196_v32, %s2827_s17 }
 0x288   : > { %1544 = vst.msk [vmem:[#allocation3 + $0x190] sm:$0xff] %vm1518_vm6, %v1473_v42  ;;  %v2360_v37 = vpop.f32.mrf.mxu1 }
 0x289   : > { %v1858_v62 = vpop.permute.xlu2 %1857 }
 0x28b   : > { %1676 = vrot.lane.b32.xlu1 %v1582_v7, %s2826_s16  ;;  %v2365_v7 = vpop.f32.mrf.mxu3 }
 0x28c   : > { %1869 = vrot.lane.b32.xlu0 %v1775_v23, %s2827_s17 }
 0x28d   : > { %v1471_v49 = vpop.permute.xlu1 %1470  ;;  %v2024_v18 = vld [vmem:[#allocation3 + $0xb0] sm:$0xff] }
 0x28e   : > { %1543 = vst.msk [vmem:[#allocation3 + $0x180] sm:$0xff] %vm1518_vm6, %v1471_v49  ;;  %v1665_v54 = vpop.permute.xlu0 %1664  ;;  %v2076_v30 = vpack.c.bf16 %v2024_v18, %v2022_v40 }
 0x28f   : > { %1737 = vst.msk [vmem:[#allocation3 + $0x180] sm:$0xff] %vm1712_vm7, %v1665_v54  ;;  %1482 = vrot.lane.b32.xlu2 %v1388_v17, %s2825_s15  ;;  %s292_s15 = scalar_lea.vmem %s4305_s6, %s4308_s25 }
 0x290   : > { %2255 = vmatmul.bf16.gmra.mxu0 %v2076_v30  ;;  %1930 = vst.msk [vmem:[#allocation3 + $0x180] sm:$0xff] %vm1905_vm8, %v1858_v62  ;;  %v2362_v56 = vpop.f32.mrf.mxu1 }
 0x291   : > { %v1256_v14 = vpop.permute.xlu2 %1255 }
 0x292   : > { %1339 = vst.msk [vmem:[#allocation3 + $0xd0] sm:$0xff] %vm1325_vm5, %v1256_v14 }
 0x293   : > { %1871 = vrot.lane.b32.xlu1 %v1776_v34, %s2827_s17  ;;  %v2271_v61 = vpop.f32.mrf.mxu2 }
 0x294   : > { %v2272_v50 = vadd.f32 %v3923_v48, %v2271_v61  ;;  %v2367_v61 = vpop.f32.mrf.mxu3 }
 0x295   : > { %v1667_v33 = vpop.permute.xlu1 %1666 }
 0x296   : > { %v4017_v58 = vadd.f32 %v2360_v37, %v2272_v50  ;;  %1738 = vst.msk [vmem:[#allocation3 + $0x190] sm:$0xff] %vm1712_vm7, %v1667_v33  ;;  %v1860_v8 = vpop.permute.xlu0 %1859 }
 0x297   : > { %1931 = vst.msk [vmem:[#allocation3 + $0x190] sm:$0xff] %vm1905_vm8, %v1860_v8  ;;  %1678 = vrot.lane.b32.xlu2 %v1583_v22, %s2826_s16  ;;  %v2050_v0 = vld [vmem:[#allocation3 + $0x180] sm:$0xff] }
 0x298   : > { %2416 = vst.msk [vmem:[%s3935_s26 + $0x80] sm:$0xff] %vm433_vm0, %v4017_v58 }
 0x299   : > { %v1641_v59 = vpop.permute.xlu2 %1640 }
 0x29b   : > { %v2273_v24 = vpop.f32.mrf.mxu2 }
 0x29c   : > { %v2274_v21 = vadd.f32 %v3923_v48, %v2273_v24 }
 0x29d   : > { %v1254_v6 = vpop.permute.xlu1 %1253  ;;  %v2241_v28 = vpop.f32.mrf.mxu0 }
 0x29e   : > { %v4026_v1 = vadd.f32 %v2362_v56, %v2274_v21  ;;  %1338 = vst.msk [vmem:[#allocation3 + $0xc0] sm:$0xff] %vm1325_vm5, %v1254_v6  ;;  %v2242_v31 = vadd.f32 %v3923_v48, %v2241_v28  ;;  %v1447_v53 = vpop.permute.xlu0 %1446  ;;  %v2052_v44 = vld [vmem:[#allocation3 + $0x190] sm:$0xff] }
 0x29f   : > { %1531 = vst.msk [vmem:[#allocation3 + $0xc0] sm:$0xff] %vm1518_vm6, %v1447_v53  ;;  %v2090_v45 = vpack.c.bf16 %v2052_v44, %v2050_v0 }
 0x2a0   : > { %2417 = vst.msk [vmem:[%s3935_s26 + $0x88] sm:$0xff] %vm433_vm0, %v4026_v1  ;;  %v2331_v35 = vadd.f32 %v3825_v29, %v2242_v31 }
 0x2a1   : > { %2290 = vmatmul.bf16.gmra.mxu2 %v2090_v45  ;;  %1725 = vst.msk [vmem:[#allocation3 + $0xc0] sm:$0xff] %vm1712_vm7, %v1641_v59  ;;  %v1836_v4 = vpop.permute.xlu2 %1835 }
 0x2a2   : > { %2404 = vst.msk [vmem:[%s3935_s26 + $0x20] sm:$0xff] %vm433_vm0, %v2331_v35  ;;  %v2439_v43 = vsel %vm433_vm0, %v2331_v35, 0.0  ;;  %v2507_v15 = vmul.f32 %v2331_v35, %v2331_v35 }
 0x2a3   : > { %v2440_v63 = vadd.f32 %v2439_v43, %v3994_v20 }
 0x2a4   : > { %v2542_v9 = vsel %vm433_vm0, %v2507_v15, 0.0 }
 0x2a5   : > { %v2543_v10 = vadd.f32 %v2542_v9, %v2541_v26  ;;  %v1449_v13 = vpop.permute.xlu1 %1448  ;;  %v2243_v46 = vpop.f32.mrf.mxu0  ;;  %v2055_v26 = vld [vmem:[#allocation3 + $0x1a8] sm:$0xff] }
 0x2a6   : > { %1532 = vst.msk [vmem:[#allocation3 + $0xd0] sm:$0xff] %vm1518_vm6, %v1449_v13  ;;  %v2244_v29 = vadd.f32 %v3923_v48, %v2243_v46  ;;  %v1643_v32 = vpop.permute.xlu0 %1642 }
 0x2a7   : > { %1726 = vst.msk [vmem:[#allocation3 + $0xd0] sm:$0xff] %vm1712_vm7, %v1643_v32 }
 0x2a8   : > { %v2333_v51 = vadd.f32 %v3836_v27, %v2244_v29  ;;  %1919 = vst.msk [vmem:[#allocation3 + $0xd0] sm:$0xff] %vm1905_vm8, %v1836_v4  ;;  %v2057_v27 = vld [vmem:[#allocation3 + $0x1b8] sm:$0xff] }
 0x2a9   : > { %v1475_v38 = vpop.permute.xlu2 %1474  ;;  %v2093_v57 = vpack.c.bf16 %v2057_v27, %v2055_v26 }
 0x2aa   : > { %2405 = vst.msk [vmem:[%s3935_s26 + $0x28] sm:$0xff] %vm433_vm0, %v2333_v51  ;;  %v2441_v42 = vsel %vm433_vm0, %v2333_v51, 0.0  ;;  %v2508_v52 = vmul.f32 %v2333_v51, %v2333_v51 }
 0x2ab   : > { %v2442_v16 = vadd.f32 %v2441_v42, %v2440_v63  ;;  %2768 = vmatmul.msk.bf16.gmra.mxu3 %vm433_vm0, %v2093_v57 }
 0x2ac   : > { %v2544_v36 = vsel %vm433_vm0, %v2508_v52, 0.0 }
 0x2ad   : > { %v2545_v17 = vadd.f32 %v2544_v36, %v2543_v10  ;;  %v1834_v20 = vpop.permute.xlu1 %1833  ;;  %v2061_v36 = vld [vmem:[#allocation3 + $0x1d8] sm:$0xff] }
 0x2ae   : > { %1918 = vst.msk [vmem:[#allocation3 + $0xc0] sm:$0xff] %vm1905_vm8, %v1834_v20  ;;  %v1282_v60 = vpop.permute.xlu0 %1281 }
 0x2af   : > { %1352 = vst.msk [vmem:[#allocation3 + $0x1a0] sm:$0xff] %vm1325_vm5, %v1282_v60  ;;  %v2028_v23 = vld [vmem:[#allocation3 + $0xd0] sm:$0xff] }
 0x2b0   : > { %1545 = vst.msk [vmem:[#allocation3 + $0x1a0] sm:$0xff] %vm1518_vm6, %v1475_v38 }
 0x2b1   : > { %v1671_v25 = vpop.permute.xlu2 %1670 }
 0x2b4   : > { %v2276_v62 = vpop.f32.mrf.mxu2 }
 0x2b5   : > { %v2277_v40 = vadd.f32 %v3923_v48, %v2276_v62  ;;  %v1284_v49 = vpop.permute.xlu1 %1283  ;;  %v2026_v18 = vld [vmem:[#allocation3 + $0xc0] sm:$0xff] }
 0x2b6   : > { %1353 = vst.msk [vmem:[#allocation3 + $0x1b0] sm:$0xff] %vm1325_vm5, %v1284_v49  ;;  %v1477_v54 = vpop.permute.xlu0 %1476  ;;  %v2078_v30 = vpack.c.bf16 %v2028_v23, %v2026_v18  ;;  %v1968_v49 = vld [vmem:[#allocation2 + $0x19a] sm:$0xff]  ;;  %v1969_v18 = vld [vmem:[#allocation2 + $0x1a2] sm:$0xff] }
 0x2b7   : > { %v4056_v34 = vadd.f32 %v2365_v7, %v2277_v40  ;;  %1546 = vst.msk [vmem:[#allocation3 + $0x1b0] sm:$0xff] %vm1518_vm6, %v1477_v54 }
 0x2b8   : > { %2260 = vmatmul.bf16.gmra.mxu0 %v2078_v30  ;;  %1740 = vst.msk [vmem:[#allocation3 + $0x1b0] sm:$0xff] %vm1712_vm7, %v1671_v25 }
 0x2b9   : > { %2418 = vst.msk [vmem:[%s3935_s26 + $0x90] sm:$0xff] %vm433_vm0, %v4056_v34  ;;  %v1258_v37 = vpop.permute.xlu2 %1257 }
 0x2ba   : > { %1340 = vst.msk [vmem:[#allocation3 + $0xe0] sm:$0xff] %vm1325_vm5, %v1258_v37 }
 0x2bb   : > { %2000 = vst.msk [vmem:[#allocation3 + $0x1e8] sm:$0xff] %vm433_vm0, %v1968_v49 }
 0x2bc   : > { %v2278_v14 = vpop.f32.mrf.mxu2  ;;  %2001 = vst.msk [vmem:[#allocation3 + $0x1f8] sm:$0xff] %vm433_vm0, %v1969_v18 }
 0x2bd   : > { %v2279_v50 = vadd.f32 %v3923_v48, %v2278_v14  ;;  %v1669_v22 = vpop.permute.xlu1 %1668 }
 0x2be   : > { %1739 = vst.msk [vmem:[#allocation3 + $0x1a0] sm:$0xff] %vm1712_vm7, %v1669_v22  ;;  %v1862_v33 = vpop.permute.xlu0 %1861  ;;  %v2246_v8 = vpop.f32.mrf.mxu0 }
 0x2bf   : > { %v4066_v59 = vadd.f32 %v2367_v61, %v2279_v50  ;;  %1932 = vst.msk [vmem:[#allocation3 + $0x1a0] sm:$0xff] %vm1905_vm8, %v1862_v33  ;;  %v2247_v24 = vadd.f32 %v3923_v48, %v2246_v8 }
 0x2c1   : > { %2419 = vst.msk [vmem:[%s3935_s26 + $0x98] sm:$0xff] %vm433_vm0, %v4066_v59  ;;  %v2336_v56 = vadd.f32 %v3848_v12, %v2247_v24  ;;  %v1453_v21 = vpop.permute.xlu2 %1452 }
 0x2c3   : > { %2406 = vst.msk [vmem:[%s3935_s26 + $0x30] sm:$0xff] %vm433_vm0, %v2336_v56  ;;  %v2443_v0 = vsel %vm433_vm0, %v2336_v56, 0.0  ;;  %v2509_v6 = vmul.f32 %v2336_v56, %v2336_v56  ;;  %v2063_v56 = vld [vmem:[#allocation3 + $0x1e8] sm:$0xff] }
 0x2c4   : > { %v2444_v28 = vadd.f32 %v2443_v0, %v2442_v16  ;;  %v2059_v16 = vld [vmem:[#allocation3 + $0x1c8] sm:$0xff] }
 0x2c5   : > { %v2546_v31 = vsel %vm433_vm0, %v2509_v6, 0.0  ;;  %v1864_v53 = vpop.permute.xlu1 %1863  ;;  %v2095_v20 = vpack.c.bf16 %v2061_v36, %v2059_v16  ;;  %v2065_v6 = vld [vmem:[#allocation3 + $0x1f8] sm:$0xff] }
 0x2c6   : > { %v2547_v44 = vadd.f32 %v2546_v31, %v2545_v17  ;;  %1933 = vst.msk [vmem:[#allocation3 + $0x1b0] sm:$0xff] %vm1905_vm8, %v1864_v53  ;;  %v1260_v45 = vpop.permute.xlu0 %1259  ;;  %v2248_v35 = vpop.f32.mrf.mxu0  ;;  %v2054_v9 = vld [vmem:[#allocation3 + $0x1a0] sm:$0xff]  ;;  %v2097_v53 = vpack.c.bf16 %v2065_v6, %v2063_v56 }
 0x2c7   : > { %1341 = vst.msk [vmem:[#allocation3 + $0xf0] sm:$0xff] %vm1325_vm5, %v1260_v45  ;;  %v2249_v12 = vadd.f32 %v3923_v48, %v2248_v35  ;;  %v2370_v17 = vpop.f32.mrf.mxu3  ;;  %2769 = vmatmul.msk.bf16.gmra.mxu3 %vm433_vm0, %v2095_v20 }
 0x2c8   : > { %1534 = vst.msk [vmem:[#allocation3 + $0xf0] sm:$0xff] %vm1518_vm6, %v1453_v21 }
 0x2c9   : > { %v2338_v4 = vadd.f32 %v3859_v2, %v2249_v12  ;;  %v1838_v43 = vpop.permute.xlu2 %1837 }
 0x2cb   : > { %2407 = vst.msk [vmem:[%s3935_s26 + $0x38] sm:$0xff] %vm433_vm0, %v2338_v4  ;;  %v2445_v15 = vsel %vm433_vm0, %v2338_v4, 0.0  ;;  %v2510_v63 = vmul.f32 %v2338_v4, %v2338_v4 }
 0x2cc   : > { %v2446_v10 = vadd.f32 %v2445_v15, %v2444_v28 }
 0x2cd   : > { %v2548_v13 = vsel %vm433_vm0, %v2510_v63, 0.0  ;;  %v1451_v46 = vpop.permute.xlu1 %1450  ;;  %v2056_v29 = vld [vmem:[#allocation3 + $0x1b0] sm:$0xff] }
 0x2ce   : > { %v2549_v32 = vadd.f32 %v2548_v13, %v2547_v44  ;;  %1533 = vst.msk [vmem:[#allocation3 + $0xe0] sm:$0xff] %vm1518_vm6, %v1451_v46  ;;  %v1645_v51 = vpop.permute.xlu0 %1644  ;;  %v2092_v38 = vpack.c.bf16 %v2056_v29, %v2054_v9 }
 0x2cf   : > { %1727 = vst.msk [vmem:[#allocation3 + $0xe0] sm:$0xff] %vm1712_vm7, %v1645_v51  ;;  %v2372_v54 = vpop.f32.mrf.mxu3 }
 0x2d0   : > { %2295 = vmatmul.bf16.gmra.mxu2 %v2092_v38  ;;  %1920 = vst.msk [vmem:[#allocation3 + $0xe0] sm:$0xff] %vm1905_vm8, %v1838_v43 }
 0x2d1   : > { %v1288_v2 = vpop.permute.xlu2 %1287 }
 0x2d2   : > { %1355 = vst.msk [vmem:[#allocation3 + $0x1d0] sm:$0xff] %vm1325_vm5, %v1288_v2 }
 0x2d5   : > { %v1647_v42 = vpop.permute.xlu1 %1646 }
 0x2d6   : > { %1728 = vst.msk [vmem:[#allocation3 + $0xf0] sm:$0xff] %vm1712_vm7, %v1647_v42  ;;  %v1840_v52 = vpop.permute.xlu0 %1839 }
 0x2d7   : > { %1921 = vst.msk [vmem:[#allocation3 + $0xf0] sm:$0xff] %vm1905_vm8, %v1840_v52  ;;  %v2030_v57 = vld [vmem:[#allocation3 + $0xe0] sm:$0xff]  ;;  %2770 = vmatmul.msk.bf16.gmra.mxu3 %vm433_vm0, %v2097_v53 }
 0x2d9   : > { %v1673_v60 = vpop.permute.xlu2 %1672 }
 0x2db   : > { %v2281_v26 = vpop.f32.mrf.mxu2 }
 0x2dc   : > { %v2282_v27 = vadd.f32 %v3923_v48, %v2281_v26 }
 0x2dd   : > { %v1286_v25 = vpop.permute.xlu1 %1285 }
 0x2de   : > { %v4095_v7 = vadd.f32 %v2370_v17, %v2282_v27  ;;  %1354 = vst.msk [vmem:[#allocation3 + $0x1c0] sm:$0xff] %vm1325_vm5, %v1286_v25  ;;  %v2032_v23 = vld [vmem:[#allocation3 + $0xf0] sm:$0xff]  ;;  %v1479_v62 = vpop.permute.xlu0 %1478 }
 0x2df   : > { %v2080_v40 = vpack.c.bf16 %v2032_v23, %v2030_v57  ;;  %1547 = vst.msk [vmem:[#allocation3 + $0x1c0] sm:$0xff] %vm1518_vm6, %v1479_v62 }
 0x2e0   : > { %2420 = vst.msk [vmem:[%s3935_s26 + $0xa0] sm:$0xff] %vm433_vm0, %v4095_v7  ;;  %v2375_v52 = vpop.f32.mrf.mxu3 }
 0x2e1   : > { %2265 = vmatmul.bf16.gmra.mxu0 %v2080_v40  ;;  %1741 = vst.msk [vmem:[#allocation3 + $0x1c0] sm:$0xff] %vm1712_vm7, %v1673_v60  ;;  %v1868_v37 = vpop.permute.xlu2 %1867 }
 0x2e3   : > { %v2283_v30 = vpop.f32.mrf.mxu2 }
 0x2e4   : > { %v2284_v14 = vadd.f32 %v3923_v48, %v2283_v30 }
 0x2e5   : > { %v1481_v61 = vpop.permute.xlu1 %1480  ;;  %v2251_v50 = vpop.f32.mrf.mxu0 }
 0x2e6   : > { %v4106_v22 = vadd.f32 %v2372_v54, %v2284_v14  ;;  %1548 = vst.msk [vmem:[#allocation3 + $0x1d0] sm:$0xff] %vm1518_vm6, %v1481_v61  ;;  %v2252_v33 = vadd.f32 %v3923_v48, %v2251_v50  ;;  %v1675_v8 = vpop.permute.xlu0 %1674 }
 0x2e7   : > { %1742 = vst.msk [vmem:[#allocation3 + $0x1d0] sm:$0xff] %vm1712_vm7, %v1675_v8 }
 0x2e8   : > { %2421 = vst.msk [vmem:[%s3935_s26 + $0xa8] sm:$0xff] %vm433_vm0, %v4106_v22  ;;  %v2341_v24 = vadd.f32 %v3875_v19, %v2252_v33  ;;  %v2377_v26 = vpop.f32.mrf.mxu3 }
 0x2e9   : > { %1935 = vst.msk [vmem:[#allocation3 + $0x1d0] sm:$0xff] %vm1905_vm8, %v1868_v37  ;;  %v1483_v31 = vpop.permute.xlu2 %1482 }
 0x2ea   : > { %2408 = vst.msk [vmem:[%s3935_s26 + $0x40] sm:$0xff] %vm433_vm0, %v2341_v24  ;;  %v2447_v21 = vsel %vm433_vm0, %v2341_v24, 0.0  ;;  %v2511_v0 = vmul.f32 %v2341_v24, %v2341_v24 }
 0x2eb   : > { %v2448_v28 = vadd.f32 %v2447_v21, %v2446_v10 }
 0x2ec   : > { %v2550_v44 = vsel %vm433_vm0, %v2511_v0, 0.0 }
 0x2ed   : > { %v2551_v45 = vadd.f32 %v2550_v44, %v2549_v32  ;;  %v1866_v35 = vpop.permute.xlu1 %1865  ;;  %v2253_v12 = vpop.f32.mrf.mxu0 }
 0x2ee   : > { %1934 = vst.msk [vmem:[#allocation3 + $0x1c0] sm:$0xff] %vm1905_vm8, %v1866_v35  ;;  %v2254_v19 = vadd.f32 %v3923_v48, %v2253_v12  ;;  %v1290_v4 = vpop.permute.xlu0 %1289 }
 0x2ef   : > { %1356 = vst.msk [vmem:[#allocation3 + $0x1e0] sm:$0xff] %vm1325_vm5, %v1290_v4 }
 0x2f0   : > { %v2343_v43 = vadd.f32 %v3885_v47, %v2254_v19  ;;  %1549 = vst.msk [vmem:[#allocation3 + $0x1e0] sm:$0xff] %vm1518_vm6, %v1483_v31  ;;  %v2060_v10 = vld [vmem:[#allocation3 + $0x1d0] sm:$0xff]  ;;  %v2380_v6 = vpop.f32.mrf.mxu3 }
 0x2f1   : > { %v1679_v51 = vpop.permute.xlu2 %1678 }
 0x2f2   : > { %2409 = vst.msk [vmem:[%s3935_s26 + $0x48] sm:$0xff] %vm433_vm0, %v2343_v43  ;;  %v2449_v15 = vsel %vm433_vm0, %v2343_v43, 0.0  ;;  %v2512_v63 = vmul.f32 %v2343_v43, %v2343_v43 }
 0x2f3   : > { %v2450_v9 = vadd.f32 %v2449_v15, %v2448_v28 }
 0x2f4   : > { %v2552_v13 = vsel %vm433_vm0, %v2512_v63, 0.0 }
 0x2f5   : > { %v2553_v46 = vadd.f32 %v2552_v13, %v2551_v45  ;;  %v1292_v29 = vpop.permute.xlu1 %1291  ;;  %v2058_v32 = vld [vmem:[#allocation3 + $0x1c0] sm:$0xff] }
 0x2f6   : > { %1357 = vst.msk [vmem:[#allocation3 + $0x1f0] sm:$0xff] %vm1325_vm5, %v1292_v29  ;;  %v2094_v38 = vpack.c.bf16 %v2060_v10, %v2058_v32  ;;  %v1485_v47 = vpop.permute.xlu0 %1484 }
 0x2f7   : > { %1550 = vst.msk [vmem:[#allocation3 + $0x1f0] sm:$0xff] %vm1518_vm6, %v1485_v47 }
 0x2f8   : > { %2300 = vmatmul.bf16.gmra.mxu2 %v2094_v38  ;;  %1744 = vst.msk [vmem:[#allocation3 + $0x1f0] sm:$0xff] %vm1712_vm7, %v1679_v51  ;;  %v2382_v44 = vpop.f32.mrf.mxu3 }
 0x2fd   : > { %v1677_v2 = vpop.permute.xlu1 %1676 }
 0x2fe   : > { %1743 = vst.msk [vmem:[#allocation3 + $0x1e0] sm:$0xff] %vm1712_vm7, %v1677_v2  ;;  %v1870_v42 = vpop.permute.xlu0 %1869 }
 0x2ff   : > { %1936 = vst.msk [vmem:[#allocation3 + $0x1e0] sm:$0xff] %vm1905_vm8, %v1870_v42 }
 0x303   : > { %v2286_v16 = vpop.f32.mrf.mxu2 }
 0x304   : > { %v2287_v36 = vadd.f32 %v3923_v48, %v2286_v16 }
 0x305   : > { %v1872_v17 = vpop.permute.xlu1 %1871 }
 0x306   : > { %v4136_v20 = vadd.f32 %v2375_v52, %v2287_v36  ;;  %1937 = vst.msk [vmem:[#allocation3 + $0x1f0] sm:$0xff] %vm1905_vm8, %v1872_v17  ;;  %v2062_v27 = vld [vmem:[#allocation3 + $0x1e0] sm:$0xff] }
 0x308   : > { %2422 = vst.msk [vmem:[%s3935_s26 + $0xb0] sm:$0xff] %vm433_vm0, %v4136_v20 }
 0x30b   : > { %v2288_v60 = vpop.f32.mrf.mxu2 }
 0x30c   : > { %v2289_v57 = vadd.f32 %v3923_v48, %v2288_v60 }
 0x30d   : > { %v2256_v25 = vpop.f32.mrf.mxu0  ;;  %v2064_v23 = vld [vmem:[#allocation3 + $0x1f0] sm:$0xff] }
 0x30e   : > { %v2257_v62 = vadd.f32 %v3923_v48, %v2256_v25  ;;  %v4144_v40 = vadd.f32 %v2377_v26, %v2289_v57  ;;  %v2096_v49 = vpack.c.bf16 %v2064_v23, %v2062_v27 }
 0x310   : > { %v2346_v18 = vadd.f32 %v3904_v11, %v2257_v62  ;;  %2423 = vst.msk [vmem:[%s3935_s26 + $0xb8] sm:$0xff] %vm433_vm0, %v4144_v40  ;;  %2305 = vmatmul.bf16.gmra.mxu2 %v2096_v49 }
 0x312   : > { %2410 = vst.msk [vmem:[%s3935_s26 + $0x50] sm:$0xff] %vm433_vm0, %v2346_v18  ;;  %v2451_v54 = vsel %vm433_vm0, %v2346_v18, 0.0  ;;  %v2513_v30 = vmul.f32 %v2346_v18, %v2346_v18 }
 0x313   : > { %v2452_v37 = vadd.f32 %v2451_v54, %v2450_v9 }
 0x314   : > { %v2554_v14 = vsel %vm433_vm0, %v2513_v30, 0.0  ;;  %v2519_v30 = vmul.f32 %v4017_v58, %v4017_v58 }
 0x315   : > { %v2555_v61 = vadd.f32 %v2554_v14, %v2553_v46  ;;  %v2258_v50 = vpop.f32.mrf.mxu0 }
 0x316   : > { %v2259_v33 = vadd.f32 %v3923_v48, %v2258_v50 }
 0x318   : > { %v2348_v8 = vadd.f32 %v3914_v55, %v2259_v33  ;;  %v2463_v33 = vsel %vm433_vm0, %v4017_v58, 0.0  ;;  %v2467_v58 = vsel %vm433_vm0, %v4056_v34, 0.0 }
 0x31a   : > { %2411 = vst.msk [vmem:[%s3935_s26 + $0x58] sm:$0xff] %vm433_vm0, %v2348_v8  ;;  %v2453_v11 = vsel %vm433_vm0, %v2348_v8, 0.0  ;;  %v2514_v24 = vmul.f32 %v2348_v8, %v2348_v8  ;;  %v2520_v8 = vmul.f32 %v4026_v1, %v4026_v1 }
 0x31b   : > { %v2454_v56 = vadd.f32 %v2453_v11, %v2452_v37 }
 0x31c   : > { %v2556_v21 = vsel %vm433_vm0, %v2514_v24, 0.0 }
 0x31d   : > { %v2557_v0 = vadd.f32 %v2556_v21, %v2555_v61  ;;  %v2465_v21 = vsel %vm433_vm0, %v4026_v1, 0.0  ;;  %v2469_v1 = vsel %vm433_vm0, %v4066_v59, 0.0 }
 0x324   : > { %v2291_v28 = vpop.f32.mrf.mxu2 }
 0x325   : > { %v2292_v31 = vadd.f32 %v3923_v48, %v2291_v28 }
 0x327   : > { %v4161_v53 = vadd.f32 %v2380_v6, %v2292_v31  ;;  %v2568_v31 = vsel %vm433_vm0, %v2520_v8, 0.0 }
 0x329   : > { %2424 = vst.msk [vmem:[%s3935_s26 + $0xc0] sm:$0xff] %vm433_vm0, %v4161_v53 }
 0x32c   : > { %v2293_v55 = vpop.f32.mrf.mxu2 }
 0x32d   : > { %v2294_v45 = vadd.f32 %v3923_v48, %v2293_v55  ;;  %v2522_v55 = vmul.f32 %v4066_v59, %v4066_v59  ;;  %v2473_v59 = vsel %vm433_vm0, %v4106_v22, 0.0 }
 0x32e   : > { %v2385_v32 = vpop.f32.mrf.mxu3 }
 0x32f   : > { %v4167_v35 = vadd.f32 %v2382_v44, %v2294_v45 }
 0x331   : > { %2425 = vst.msk [vmem:[%s3935_s26 + $0xc8] sm:$0xff] %vm433_vm0, %v4167_v35 }
 0x335   : > { %v2261_v12 = vpop.f32.mrf.mxu0 }
 0x336   : > { %v2262_v19 = vadd.f32 %v3923_v48, %v2261_v12  ;;  %v2387_v2 = vpop.f32.mrf.mxu3 }
 0x338   : > { %v2351_v4 = vadd.f32 %v3942_v41, %v2262_v19  ;;  %v2523_v19 = vmul.f32 %v4095_v7, %v4095_v7 }
 0x33a   : > { %2412 = vst.msk [vmem:[%s3935_s26 + $0x60] sm:$0xff] %vm433_vm0, %v2351_v4  ;;  %v2455_v43 = vsel %vm433_vm0, %v2351_v4, 0.0  ;;  %v2515_v15 = vmul.f32 %v2351_v4, %v2351_v4 }
 0x33b   : > { %v2456_v63 = vadd.f32 %v2455_v43, %v2454_v56  ;;  %v2566_v56 = vsel %vm433_vm0, %v2519_v30, 0.0 }
 0x33c   : > { %v2558_v9 = vsel %vm433_vm0, %v2515_v15, 0.0  ;;  %v2572_v15 = vsel %vm433_vm0, %v2522_v55, 0.0 }
 0x33d   : > { %v2559_v10 = vadd.f32 %v2558_v9, %v2557_v0  ;;  %v2263_v13 = vpop.f32.mrf.mxu0  ;;  %v2521_v0 = vmul.f32 %v4056_v34, %v4056_v34  ;;  %v2471_v34 = vsel %vm433_vm0, %v4095_v7, 0.0  ;;  %v2475_v7 = vsel %vm433_vm0, %v4136_v20, 0.0 }
 0x33e   : > { %v2264_v46 = vadd.f32 %v3923_v48, %v2263_v13  ;;  %v2574_v13 = vsel %vm433_vm0, %v2523_v19, 0.0 }
 0x33f   : > { %v2570_v12 = vsel %vm433_vm0, %v2521_v0, 0.0 }
 0x340   : > { %v2353_v29 = vadd.f32 %v3963_v3, %v2264_v46  ;;  %v2525_v46 = vmul.f32 %v4136_v20, %v4136_v20 }
 0x342   : > { %2413 = vst.msk [vmem:[%s3935_s26 + $0x68] sm:$0xff] %vm433_vm0, %v2353_v29  ;;  %v2516_v17 = vmul.f32 %v2353_v29, %v2353_v29  ;;  %v2457_v60 = vsel %vm433_vm0, %v2353_v29, 0.0 }
 0x343   : > { %v2458_v62 = vadd.f32 %v2457_v60, %v2456_v63  ;;  %v2524_v63 = vmul.f32 %v4106_v22, %v4106_v22  ;;  %v2477_v22 = vsel %vm433_vm0, %v4144_v40, 0.0 }
 0x344   : > { %v2560_v57 = vsel %vm433_vm0, %v2516_v17, 0.0 }
 0x345   : > { %v2561_v54 = vadd.f32 %v2560_v57, %v2559_v10  ;;  %v2528_v57 = vmul.f32 %v4167_v35, %v4167_v35 }
 0x353   : > { %v2296_v41 = vpop.f32.mrf.mxu2 }
 0x354   : > { %v2297_v51 = vadd.f32 %v3923_v48, %v2296_v41  ;;  %v2576_v41 = vsel %vm433_vm0, %v2524_v63, 0.0 }
 0x356   : > { %v4183_v38 = vadd.f32 %v2385_v32, %v2297_v51  ;;  %v2526_v51 = vmul.f32 %v4144_v40, %v4144_v40 }
 0x358   : > { %2426 = vst.msk [vmem:[%s3935_s26 + $0xd0] sm:$0xff] %vm433_vm0, %v4183_v38 }
 0x35b   : > { %v2298_v47 = vpop.f32.mrf.mxu2 }
 0x35c   : > { %v2299_v42 = vadd.f32 %v3923_v48, %v2298_v47  ;;  %v2390_v47 = vpop.f32.mrf.mxu3 }
 0x35e   : > { %v4189_v52 = vadd.f32 %v2387_v2, %v2299_v42  ;;  %v2266_v16 = vpop.f32.mrf.mxu0 }
 0x35f   : > { %v2267_v3 = vadd.f32 %v3923_v48, %v2266_v16  ;;  %v2578_v16 = vsel %vm433_vm0, %v2525_v46, 0.0 }
 0x360   : > { %2427 = vst.msk [vmem:[%s3935_s26 + $0xd8] sm:$0xff] %vm433_vm0, %v4189_v52 }
 0x361   : > { %v2356_v36 = vadd.f32 %v3984_v39, %v2267_v3  ;;  %v2527_v3 = vmul.f32 %v4161_v53, %v4161_v53 }
 0x363   : > { %2414 = vst.msk [vmem:[%s3935_s26 + $0x70] sm:$0xff] %vm433_vm0, %v2356_v36  ;;  %v2517_v26 = vmul.f32 %v2356_v36, %v2356_v36  ;;  %v2459_v25 = vsel %vm433_vm0, %v2356_v36, 0.0 }
 0x364   : > { %v2460_v39 = vadd.f32 %v2459_v25, %v2458_v62  ;;  %v2582_v62 = vsel %vm433_vm0, %v2527_v3, 0.0 }
 0x365   : > { %v2562_v49 = vsel %vm433_vm0, %v2517_v26, 0.0  ;;  %v2580_v26 = vsel %vm433_vm0, %v2526_v51, 0.0 }
 0x366   : > { %v2268_v27 = vpop.f32.mrf.mxu0  ;;  %v2563_v61 = vadd.f32 %v2562_v49, %v2561_v54  ;;  %v2481_v49 = vsel %vm433_vm0, %v4167_v35, 0.0  ;;  %v2483_v35 = vsel %vm433_vm0, %v4183_v38, 0.0 }
 0x367   : > { %v2269_v23 = vadd.f32 %v3923_v48, %v2268_v27  ;;  %v2479_v27 = vsel %vm433_vm0, %v4161_v53, 0.0 }
 0x369   : > { %v2358_v18 = vadd.f32 %v4004_v5, %v2269_v23 }
 0x36b   : > { %2415 = vst.msk [vmem:[%s3935_s26 + $0x78] sm:$0xff] %vm433_vm0, %v2358_v18  ;;  %v2461_v37 = vsel %vm433_vm0, %v2358_v18, 0.0  ;;  %v2518_v14 = vmul.f32 %v2358_v18, %v2358_v18 }
 0x36c   : > { %v2462_v50 = vadd.f32 %v2461_v37, %v2460_v39  ;;  %v2584_v39 = vsel %vm433_vm0, %v2528_v57, 0.0  ;;  %v2392_v37 = vpop.f32.mrf.mxu3 }
 0x36d   : > { %v2564_v5 = vsel %vm433_vm0, %v2518_v14, 0.0 }
 0x36e   : > { %v2464_v11 = vadd.f32 %v2463_v33, %v2462_v50  ;;  %v2565_v24 = vadd.f32 %v2564_v5, %v2563_v61  ;;  %v2529_v50 = vmul.f32 %v4183_v38, %v4183_v38  ;;  %v2530_v5 = vmul.f32 %v4189_v52, %v4189_v52 }
 0x370   : > { %v2466_v6 = vadd.f32 %v2465_v21, %v2464_v11  ;;  %v2567_v28 = vadd.f32 %v2566_v56, %v2565_v24  ;;  %v2586_v8 = vsel %vm433_vm0, %v2529_v50, 0.0  ;;  %v2485_v21 = vsel %vm433_vm0, %v4189_v52, 0.0 }
 0x372   : > { %v2468_v44 = vadd.f32 %v2467_v58, %v2466_v6  ;;  %v2569_v45 = vadd.f32 %v2568_v31, %v2567_v28  ;;  %v2588_v28 = vsel %vm433_vm0, %v2530_v5, 0.0 }
 0x374   : > { %v2470_v4 = vadd.f32 %v2469_v1, %v2468_v44  ;;  %v2571_v43 = vadd.f32 %v2570_v12, %v2569_v45  ;;  %v2395_v24 = vpop.f32.mrf.mxu3 }
 0x376   : > { %v2472_v9 = vadd.f32 %v2471_v34, %v2470_v4  ;;  %v2573_v10 = vadd.f32 %v2572_v15, %v2571_v43 }
 0x378   : > { %v2575_v29 = vadd.f32 %v2574_v13, %v2573_v10  ;;  %v2474_v32 = vadd.f32 %v2473_v59, %v2472_v9 }
 0x37a   : > { %v2476_v2 = vadd.f32 %v2475_v7, %v2474_v32  ;;  %v2577_v42 = vadd.f32 %v2576_v41, %v2575_v29 }
 0x37b   : > { %v2301_v36 = vpop.f32.mrf.mxu2 }
 0x37c   : > { %v2302_v17 = vadd.f32 %v3923_v48, %v2301_v36  ;;  %v2478_v60 = vadd.f32 %v2477_v22, %v2476_v2  ;;  %v2579_v20 = vadd.f32 %v2578_v16, %v2577_v42  ;;  %v2397_v9 = vpop.f32.mrf.mxu3 }
 0x37e   : > { %v2391_v25 = vadd.f32 %v2390_v47, %v2302_v17  ;;  %v2480_v23 = vadd.f32 %v2479_v27, %v2478_v60  ;;  %v2581_v40 = vadd.f32 %v2580_v26, %v2579_v20 }
 0x380   : > { %2428 = vst.msk [vmem:[%s3935_s26 + $0xe0] sm:$0xff] %vm433_vm0, %v2391_v25  ;;  %v2482_v18 = vadd.f32 %v2481_v49, %v2480_v23  ;;  %v2583_v54 = vadd.f32 %v2582_v62, %v2581_v40  ;;  %v2531_v31 = vmul.f32 %v2391_v25, %v2391_v25  ;;  %v2487_v55 = vsel %vm433_vm0, %v2391_v25, 0.0 }
 0x382   : > { %v2585_v30 = vadd.f32 %v2584_v39, %v2583_v54  ;;  %v2484_v33 = vadd.f32 %v2483_v35, %v2482_v18  ;;  %v2590_v12 = vsel %vm433_vm0, %v2531_v31, 0.0 }
 0x383   : > { %v2303_v53 = vpop.f32.mrf.mxu2 }
 0x384   : > { %v2304_v14 = vadd.f32 %v3923_v48, %v2303_v53  ;;  %v2587_v11 = vadd.f32 %v2586_v8, %v2585_v30  ;;  %v2486_v6 = vadd.f32 %v2485_v21, %v2484_v33 }
 0x386   : > { %v2393_v61 = vadd.f32 %v2392_v37, %v2304_v14  ;;  %v2589_v58 = vadd.f32 %v2588_v28, %v2587_v11  ;;  %v2488_v45 = vadd.f32 %v2487_v55, %v2486_v6 }
 0x388   : > { %2429 = vst.msk [vmem:[%s3935_s26 + $0xe8] sm:$0xff] %vm433_vm0, %v2393_v61  ;;  %v2532_v44 = vmul.f32 %v2393_v61, %v2393_v61  ;;  %v2489_v1 = vsel %vm433_vm0, %v2393_v61, 0.0  ;;  %v2591_v19 = vadd.f32 %v2590_v12, %v2589_v58 }
 0x389   : > { %v2490_v63 = vadd.f32 %v2489_v1, %v2488_v45 }
 0x38a   : > { %v2592_v43 = vsel %vm433_vm0, %v2532_v44, 0.0 }
 0x38b   : > { %v2593_v59 = vadd.f32 %v2592_v43, %v2591_v19 }
 0x393   : > { %v2306_v56 = vpop.f32.mrf.mxu2 }
 0x394   : > { %v2307_v0 = vadd.f32 %v3923_v48, %v2306_v56 }
 0x396   : > { %v2396_v38 = vadd.f32 %v2395_v24, %v2307_v0 }
 0x398   : > { %2430 = vst.msk [vmem:[%s3935_s26 + $0xf0] sm:$0xff] %vm433_vm0, %v2396_v38  ;;  %v2533_v52 = vmul.f32 %v2396_v38, %v2396_v38  ;;  %v2491_v15 = vsel %vm433_vm0, %v2396_v38, 0.0 }
 0x399   : > { %v2492_v46 = vadd.f32 %v2491_v15, %v2490_v63 }
 0x39a   : > { %v2594_v10 = vsel %vm433_vm0, %v2533_v52, 0.0 }
 0x39b   : > { %v2308_v4 = vpop.f32.mrf.mxu2  ;;  %v2595_v41 = vadd.f32 %v2594_v10, %v2593_v59 }
 0x39c   : > { %v2309_v34 = vadd.f32 %v3923_v48, %v2308_v4 }
 0x39e   : > { %v2398_v13 = vadd.f32 %v2397_v9, %v2309_v34 }
 0x3a0   : > { %2431 = vst.msk [vmem:[%s3935_s26 + $0xf8] sm:$0xff] %vm433_vm0, %v2398_v13  ;;  %v2493_v29 = vsel %vm433_vm0, %v2398_v13, 0.0  ;;  %v2534_v32 = vmul.f32 %v2398_v13, %v2398_v13 }
 0x3a1   : > { %v2494_v7 = vadd.f32 %v2493_v29, %v2492_v46 }
 0x3a2   : > { %v2596_v51 = vsel %vm433_vm0, %v2534_v32, 0.0 }
 0x3a3   : > { %v2495_v47 = vrot.slane %v2494_v7, 4  ;;  %v2597_v48 = vadd.f32 %v2596_v51, %v2595_v41 }
 0x3a5   : > { %v2496_v2 = vadd.f32 %v2495_v47, %v2494_v7  ;;  %v2598_v42 = vrot.slane %v2597_v48, 4 }
 0x3a7   : > { %v2497_v16 = vrot.slane %v2496_v2, 2  ;;  %v2599_v22 = vadd.f32 %v2598_v42, %v2597_v48 }
 0x3a9   : > { %v2498_v3 = vadd.f32 %v2497_v16, %v2496_v2  ;;  %v2600_v36 = vrot.slane %v2599_v22, 2 }
 0x3ab   : > { %v2499_v17 = vrot.slane %v2498_v3, 1  ;;  %v2601_v60 = vadd.f32 %v2600_v36, %v2599_v22 }
 0x3ad   : > { %v2500_v20 = vadd.f32 %v2499_v17, %v2498_v3  ;;  %v2602_v26 = vrot.slane %v2601_v60, 1 }
 0x3af   : > { %2502 = vst.msk [vmem:[%s292_s15] sm:$0x1] %vm2501_vm9, %v2500_v20  ;;  %v2603_v27 = vadd.f32 %v2602_v26, %v2601_v60 }
 0x3b1   : > { %2604 = vst.msk [vmem:[%s295_s28] sm:$0x1] %vm2501_vm9, %v2603_v27 }
 0x3b2 PF: > { %s18_s24 = sadd.s32 1, %s2818_s24  }
 0x3b3   : > { %p15_p4 = scmp.ge.s32.totalorder %s18_s24, 4  }
 0x3b5   :  { %17 = sbr.rel (!%p15_p4) target bundleno = 1 (0x1), region = 96 }

</bundles_post_ra>
